<compile_context>
chip_gen: v7x
topology: tpu7x:2x2x1
jax: 0.10.0
libtpu: 0.0.40
codegen_flags: <defaults>
</compile_context>

<pallas_src>
import math
from functools import partial

import jax
import jax.numpy as jnp
import numpy as np
from jax.experimental import pallas as pl
from jax.experimental.pallas import tpu as pltpu

BN_EPS = 1e-5


# ----------------------------------------------------------------------------
# Small helpers
# ----------------------------------------------------------------------------
def _round_up(x, m):
    return (x + m - 1) // m * m


def _padded_tile_bytes(shape, itemsize):
    """VMEM footprint: last dim padded to 128 lanes, second-minor to the sublane
    tile (32 bytes / itemsize)."""
    dims = list(shape)
    dims[-1] = _round_up(dims[-1], 128)
    if len(dims) >= 2:
        dims[-2] = _round_up(dims[-2], 32 // itemsize)
    n = 1
    for d in dims:
        n *= d
    return n * itemsize


_VMEM_LIMIT = None


def _vmem_limit_bytes():
    """Per-core VMEM limit with headroom for compiler scratch (generation aware)."""
    global _VMEM_LIMIT
    if _VMEM_LIMIT is None:
        try:
            cap = int(pltpu.get_tpu_info().vmem_capacity_bytes)
        except Exception:
            cap = 64 << 20                      # conservative (v7x per-TC size)
        cap = min(cap, 128 << 20)
        _VMEM_LIMIT = max(32 << 20, cap - (8 << 20))
    return _VMEM_LIMIT


def _pick_depth_tile(Dout, Hout, Wout, Cin, Cout, K, Dk, H, W, N, budget):
    """Largest divisor of Dout whose working set (double-buffered input + output
    blocks, weights, staging scratch) fits the VMEM budget."""
    fixed = (2 * _padded_tile_bytes((Dk, H, W, Cin), 2)      # input block, dbl-buf
             + 2 * _padded_tile_bytes((K, Cout), 2)          # folded weights
             + 2 * _padded_tile_bytes((1, Cout), 4))         # folded bias

    def cost(td):
        out = 2 * _padded_tile_bytes((td * Hout * Wout, Cout), 2)
        lhs = td * Hout * _padded_tile_bytes((Wout, K), 2)   # staging scratch
        return fixed + out + lhs

    divs = [t for t in range(1, Dout + 1) if Dout % t == 0]
    # Output block second-minor dim must be a multiple of 8 (or the full extent).
    legal = [t for t in divs if (t * Hout * Wout) % 8 == 0 or t == Dout]
    if not legal:
        legal = [Dout]
    fits = [t for t in legal if cost(t) <= budget]
    if not fits:
        # TODO(synk): per-sample input block alone exceeds the budget here;
        # H-row tiling with a halo would be required.
        fits = [min(legal)]
    if N == 1:
        two = [t for t in fits if Dout // t >= 2]            # feed both cores
        if two:
            return max(two)
    return max(fits)


# ----------------------------------------------------------------------------
# Fused Conv3d + BatchNorm3d(eval) kernel body
# ----------------------------------------------------------------------------
def _conv_bn_kernel(*, kd, kh, kw, sd, sh, sw, ph, pw, H, W,
                    Hout, Wout, td, Cin, Cout, use_stage):
    """Kernel for one (sample, depth-tile) grid step.

    1. Stage an im2col block lhs[td, Hout, Wout, T*Cin] in VMEM by copying each of
       the T = kd*kh*kw taps from the unpadded channels-last input block; the H/W
       zero halo is written directly into the staging buffer (no padded x in HBM).
    2. One bf16 MXU matmul with M = td*Hout*Wout, K = T*Cin, f32 accumulation,
       single f32 bias add, bf16 channels-last store.
    """
    T = kd * kh * kw
    K = T * Cin
    M = td * Hout * Wout
    cdt = jnp.bfloat16

    # Static per-tap geometry (valid output range + input slice start).
    taps = []
    for i_d in range(kd):
        for i_h in range(kh):
            for i_w in range(kw):
                h_lo = max(0, -(-(ph - i_h) // sh))                # ceil((ph-i_h)/sh)
                h_hi = min(Hout, (H - 1 - i_h + ph) // sh + 1)
                w_lo = max(0, -(-(pw - i_w) // sw))
                w_hi = min(Wout, (W - 1 - i_w + pw) // sw + 1)
                taps.append((i_d, i_h, i_w, h_lo, h_hi, w_lo, w_hi))

    def kernel(x_ref, w_ref, b_ref, o_ref, *scratch):
        # x_ref : (1, Dk, H, W, Cin)   bf16, whole sample (depth pre-padded iff pd>0)
        # w_ref : (K, Cout)            bf16, BN scale folded in (tap-major K order)
        # b_ref : (1, Cout)            f32 folded BN bias
        # o_ref : (1, M, Cout)         bf16, channels-last, flat (depth,h,w) rows
        dblk = pl.program_id(1)
        d_base = pl.multiple_of(dblk * (td * sd), td * sd)

        if not use_stage:
            # Pointwise conv: feed the input tile straight to the MXU.
            ds_ = pl.ds(d_base, td) if sd == 1 else pl.ds(d_base, td, sd)
            lhs = x_ref[0, ds_, :, :, :].reshape(M, K)
        else:
            lhs_ref = scratch[0]                 # (td, Hout, Wout, K) bf16
            for kidx, (i_d, i_h, i_w, h_lo, h_hi, w_lo, w_hi) in enumerate(taps):
                c0 = kidx * Cin
                n_h, n_w = h_hi - h_lo, w_hi - w_lo
                if n_h <= 0 or n_w <= 0:         # tap entirely inside the halo
                    lhs_ref[:, :, :, c0:c0 + Cin] = jnp.zeros(
                        (td, Hout, Wout, Cin), cdt)
                    continue
                # Zero halo strips of this tap's K-band (static, thin).
                if h_lo > 0:
                    lhs_ref[:, 0:h_lo, :, c0:c0 + Cin] = jnp.zeros(
                        (td, h_lo, Wout, Cin), cdt)
                if h_hi < Hout:
                    lhs_ref[:, h_hi:Hout, :, c0:c0 + Cin] = jnp.zeros(
                        (td, Hout - h_hi, Wout, Cin), cdt)
                if w_lo > 0:
                    lhs_ref[:, h_lo:h_hi, 0:w_lo, c0:c0 + Cin] = jnp.zeros(
                        (td, n_h, w_lo, Cin), cdt)
                if w_hi < Wout:
                    lhs_ref[:, h_lo:h_hi, w_hi:Wout, c0:c0 + Cin] = jnp.zeros(
                        (td, n_h, Wout - w_hi, Cin), cdt)
                # Valid region: one multi-depth slice per tap (depth is a major
                # dim, so the dynamic offset is plain address arithmetic).
                ds_ = (pl.ds(d_base + i_d, td) if sd == 1
                       else pl.ds(d_base + i_d, td, sd))
                hs = (pl.ds(h_lo * sh + i_h - ph, n_h) if sh == 1
                      else pl.ds(h_lo * sh + i_h - ph, n_h, sh))
                ws = (pl.ds(w_lo * sw + i_w - pw, n_w) if sw == 1
                      else pl.ds(w_lo * sw + i_w - pw, n_w, sw))
                lhs_ref[:, h_lo:h_hi, w_lo:w_hi, c0:c0 + Cin] = \
                    x_ref[0, ds_, hs, ws, :]
            lhs = lhs_ref[...].reshape(M, K)

        # One MXU GEMM (f32 accumulation), single bias add, bf16 store.
        acc = jnp.dot(lhs, w_ref[...], preferred_element_type=jnp.float32)
        o_ref[0] = (acc + b_ref[...]).astype(o_ref.dtype)

    return kernel


# ----------------------------------------------------------------------------
# Wrapper: layout plumbing + pallas_call
# ----------------------------------------------------------------------------
@partial(jax.jit, static_argnames=("kernel_size", "stride", "padding"))
def basicconv_forward(x, w_flat, bias_row, *, kernel_size,
                      stride=(1, 1, 1), padding=(0, 0, 0)):
    """BasicConv.forward: BatchNorm3d(Conv3d(x)) with eval-mode BN statistics.

    x        : (N, D, H, W, Cin) channels-last (NDHWC); cast to bf16 if needed.
    w_flat   : (kd*kh*kw*Cin, Cout) bf16 conv weight, BN scale folded in.
    bias_row : (1, Cout) float32 folded BN bias.
    returns  : (N, Dout, Hout, Wout, Cout) bf16, channels-last.
    """
    N, D, H, W, Cin = x.shape
    kd, kh, kw = kernel_size
    sd, sh, sw = stride
    pd, ph, pw = padding
    K, Cout = w_flat.shape
    T = kd * kh * kw
    assert K == T * Cin

    Dout = (D + 2 * pd - kd) // sd + 1
    Hout = (H + 2 * ph - kh) // sh + 1
    Wout = (W + 2 * pw - kw) // sw + 1

    if x.dtype != jnp.bfloat16:
        x = x.astype(jnp.bfloat16)
    if pd > 0:
        # Only the depth halo is materialised in HBM (see TODO at top of file).
        x = jnp.pad(x, ((0, 0), (pd, pd), (0, 0), (0, 0), (0, 0)))
    Dk = D + 2 * pd

    limit = _vmem_limit_bytes()
    td = _pick_depth_tile(Dout, Hout, Wout, Cin, Cout, K, Dk, H, W, N,
                          budget=limit - (4 << 20))
    n_dt = Dout // td
    M = td * Hout * Wout

    use_stage = not (T == 1 and ph == 0 and pw == 0 and sh == 1 and sw == 1)
    kernel = _conv_bn_kernel(kd=kd, kh=kh, kw=kw, sd=sd, sh=sh, sw=sw,
                             ph=ph, pw=pw, H=H, W=W, Hout=Hout, Wout=Wout,
                             td=td, Cin=Cin, Cout=Cout, use_stage=use_stage)
    scratch_shapes = ([pltpu.VMEM((td, Hout, Wout, K), jnp.bfloat16)]
                      if use_stage else [])

    # Megacore split on the batch axis when possible so the per-sample input
    # block (index map constant along the depth axis) is not re-fetched per core.
    dims = ("parallel", "arbitrary") if N >= 2 else ("arbitrary", "parallel")

    y = pl.pallas_call(
        kernel,
        out_shape=jax.ShapeDtypeStruct((N, Dout * Hout * Wout, Cout),
                                       jnp.bfloat16),
        grid=(N, n_dt),
        in_specs=[
            # Whole (unpadded-in-H/W) sample; fetched once per sample, reused
            # across depth tiles.
            pl.BlockSpec((1, Dk, H, W, Cin), lambda n, d: (n, 0, 0, 0, 0)),
            pl.BlockSpec((K, Cout), lambda n, d: (0, 0)),
            pl.BlockSpec((1, Cout), lambda n, d: (0, 0)),
        ],
        out_specs=pl.BlockSpec((1, M, Cout), lambda n, d: (n, d, 0)),
        scratch_shapes=scratch_shapes,
        compiler_params=pltpu.CompilerParams(
            dimension_semantics=dims,
            vmem_limit_bytes=limit,
        ),
    )(x, w_flat, bias_row)

    # Free (contiguous) metadata reshape back to 5-D channels-last.
    return y.reshape(N, Dout, Hout, Wout, Cout)


# ----------------------------------------------------------------------------
# Parameter construction (deterministic) and BN folding
# ----------------------------------------------------------------------------
def init_basicconv(key, in_c, out_c, kernel_size, bias=False):
    """Mimics BasicConv(in_, out_, kernel_size, bias=bias) + BatchNorm3d params."""
    kd, kh, kw = kernel_size
    ks = jax.random.split(key, 6)
    fan_in = in_c * kd * kh * kw
    bound = 1.0 / math.sqrt(fan_in)
    w = jax.random.uniform(ks[0], (out_c, in_c, kd, kh, kw), jnp.float32,
                           -bound, bound)
    conv_b = (jax.random.uniform(ks[1], (out_c,), jnp.float32, -bound, bound)
              if bias else None)
    gamma = 1.0 + 0.1 * jax.random.normal(ks[2], (out_c,), jnp.float32)
    beta = 0.1 * jax.random.normal(ks[3], (out_c,), jnp.float32)
    rmean = 0.1 * jax.random.normal(ks[4], (out_c,), jnp.float32)
    rvar = jnp.abs(jax.random.normal(ks[5], (out_c,), jnp.float32)) + 0.5
    return dict(w=w, conv_b=conv_b, gamma=gamma, beta=beta, rmean=rmean, rvar=rvar)


def fold_bn_weights(p, compute_dtype=jnp.bfloat16):
    """Fold eval-mode BN into a flat bf16 weight (kd*kh*kw*Cin, Cout) whose K order
    matches the kernel's staging layout, plus a float32 bias row."""
    w = p["w"]                                           # (Cout, Cin, kd, kh, kw)
    Cout, Cin, kd, kh, kw = w.shape
    s = p["gamma"] / jnp.sqrt(p["rvar"] + BN_EPS)        # (Cout,)
    w_flat = jnp.transpose(w, (2, 3, 4, 1, 0)).reshape(kd * kh * kw * Cin, Cout)
    w_flat = (w_flat * s[None, :]).astype(compute_dtype)
    cb = p["conv_b"] if p["conv_b"] is not None else jnp.zeros((Cout,), jnp.float32)
    b = (p["beta"] + s * (cb - p["rmean"]))[None, :].astype(jnp.float32)
    return w_flat, b


# ----------------------------------------------------------------------------
# Plain-JAX f32 reference (channels-last), for the correctness check only
# ----------------------------------------------------------------------------
def basicconv_reference(x_ndhwc, p, stride, padding):
    w = jnp.transpose(p["w"], (2, 3, 4, 1, 0))           # (kd,kh,kw,Cin,Cout)
    y = jax.lax.conv_general_dilated(
        x_ndhwc, w, window_strides=stride,
        padding=[(q, q) for q in padding],
        dimension_numbers=("NDHWC", "DHWIO", "NDHWC"))
    if p["conv_b"] is not None:
        y = y + p["conv_b"]
    s = p["gamma"] / jnp.sqrt(p["rvar"] + BN_EPS)
    b = p["beta"] - p["rmean"] * s
    return y * s + b


def _run_case(key, N, Cin, Cout, D, H, W, ksize, stride, padding, bias, rtol, atol):
    kx, kp = jax.random.split(key)
    # Channels-last bf16 activations end-to-end (no NCDHW<->NDHWC passes).
    x = jax.random.normal(kx, (N, D, H, W, Cin), jnp.float32)
    x_bf16 = x.astype(jnp.bfloat16)
    p = init_basicconv(kp, Cin, Cout, ksize, bias=bias)
    w_flat, b_row = fold_bn_weights(p)
    y = basicconv_forward(x_bf16, w_flat, b_row, kernel_size=ksize,
                          stride=stride, padding=padding)
    y = jax.block_until_ready(y)
    ref = basicconv_reference(x_bf16.astype(jnp.float32), p, stride, padding)
    assert y.shape == ref.shape, (y.shape, ref.shape)
    np.testing.assert_allclose(np.asarray(y, dtype=np.float32), np.asarray(ref),
                               rtol=rtol, atol=atol)
    return y


# ----------------------------------------------------------------------------
if __name__ == "__main__":
    key = jax.random.PRNGKey(0)
    k1, k2 = jax.random.split(key)

    # Typical SlowFast spatial BasicConv: (1,3,3) conv, padding (0,1,1), stride 1.
    _run_case(k1, N=2, Cin=32, Cout=128, D=4, H=16, W=16,
              ksize=(1, 3, 3), stride=(1, 1, 1), padding=(0, 1, 1),
              bias=False, rtol=4e-2, atol=4e-2)

    # Pointwise 1x1x1 BasicConv with a conv bias (staging-free MXU path).
    _run_case(k2, N=2, Cin=64, Cout=128, D=4, H=8, W=8,
              ksize=(1, 1, 1), stride=(1, 1, 1), padding=(0, 0, 0),
              bias=True, rtol=4e-2, atol=4e-2)

    print("KERNEL_OK")
</pallas_src>

<mosaic_0001>
module attributes {stable_mosaic.version = 11 : i64} {
  func.func @kernel(%arg0: i32, %arg1: i32, %arg2: memref<1x4x16x16x32xbf16, #tpu.memory_space<vmem>>, %arg3: memref<288x128xbf16, #tpu.memory_space<vmem>>, %arg4: memref<1x128xf32, #tpu.memory_space<vmem>>, %arg5: memref<1x1024x128xbf16, #tpu.memory_space<vmem>>, %arg6: memref<4x16x16x288xbf16, #tpu.memory_space<vmem>>) attributes {dimension_semantics = [#tpu.dimension_semantics<parallel>, #tpu.dimension_semantics<arbitrary>], iteration_bounds = array<i64: 2, 1>, scalar_prefetch = 0 : i64, scratch_operands = 1 : i64, tpu.core_type = #tpu.core_type<tc>, window_params = [{transform_indices = @transform_0, window_bounds = array<i64: 1, 4, 16, 16, 32>}, {pipeline_mode = #tpu.pipeline_mode<synchronous>, transform_indices = @transform_1, window_bounds = array<i64: 288, 128>}, {pipeline_mode = #tpu.pipeline_mode<synchronous>, transform_indices = @transform_2, window_bounds = array<i64: 1, 128>}, {transform_indices = @transform_3, window_bounds = array<i64: 1, 1024, 128>}]} {
    %c4_i32 = arith.constant 4 : i32
    %0 = arith.muli %arg1, %c4_i32 : i32
    %1 = tpu.assume_multiple %0, 4 : i32
    %cst = arith.constant 0.000000e+00 : bf16
    %2 = vector.broadcast %cst : bf16 to vector<4x1x16x32xbf16>
    %c0 = arith.constant 0 : index
    %c0_0 = arith.constant 0 : index
    %c0_1 = arith.constant 0 : index
    %c0_2 = arith.constant 0 : index
    %3 = vector.load %arg6[%c0, %c0_0, %c0_1, %c0_2] : memref<4x16x16x288xbf16, #tpu.memory_space<vmem>>, vector<4x1x16x32xbf16>
    tpu.vector_store %arg6[%c0, %c0_0, %c0_1, %c0_2], %2 {strides = array<i32>} : memref<4x16x16x288xbf16, #tpu.memory_space<vmem>>, vector<4x1x16x32xbf16>,
    %cst_3 = arith.constant 0.000000e+00 : bf16
    %4 = vector.broadcast %cst_3 : bf16 to vector<4x15x1x32xbf16>
    %c0_4 = arith.constant 0 : index
    %c1 = arith.constant 1 : index
    %c0_5 = arith.constant 0 : index
    %c0_6 = arith.constant 0 : index
    %5 = vector.load %arg6[%c0_4, %c1, %c0_5, %c0_6] : memref<4x16x16x288xbf16, #tpu.memory_space<vmem>>, vector<4x15x1x32xbf16>
    tpu.vector_store %arg6[%c0_4, %c1, %c0_5, %c0_6], %4 {strides = array<i32>} : memref<4x16x16x288xbf16, #tpu.memory_space<vmem>>, vector<4x15x1x32xbf16>,
    %c0_i32 = arith.constant 0 : i32
    %6 = arith.addi %1, %c0_i32 : i32
    %c0_7 = arith.constant 0 : index
    %7 = arith.index_cast %6 : i32 to index
    %c0_8 = arith.constant 0 : index
    %c0_9 = arith.constant 0 : index
    %c0_10 = arith.constant 0 : index
    %8 = vector.load %arg2[%c0_7, %7, %c0_8, %c0_9, %c0_10] : memref<1x4x16x16x32xbf16, #tpu.memory_space<vmem>>, vector<1x4x15x15x32xbf16>
    %9 = vector.shape_cast %8 : vector<1x4x15x15x32xbf16> to vector<4x15x15x32xbf16>
    %c0_11 = arith.constant 0 : index
    %c1_12 = arith.constant 1 : index
    %c1_13 = arith.constant 1 : index
    %c0_14 = arith.constant 0 : index
    %10 = vector.load %arg6[%c0_11, %c1_12, %c1_13, %c0_14] : memref<4x16x16x288xbf16, #tpu.memory_space<vmem>>, vector<4x15x15x32xbf16>
    tpu.vector_store %arg6[%c0_11, %c1_12, %c1_13, %c0_14], %9 {strides = array<i32>} : memref<4x16x16x288xbf16, #tpu.memory_space<vmem>>, vector<4x15x15x32xbf16>,
    %cst_15 = arith.constant 0.000000e+00 : bf16
    %11 = vector.broadcast %cst_15 : bf16 to vector<4x1x16x32xbf16>
    %c0_16 = arith.constant 0 : index
    %c0_17 = arith.constant 0 : index
    %c0_18 = arith.constant 0 : index
    %c32 = arith.constant 32 : index
    %12 = vector.load %arg6[%c0_16, %c0_17, %c0_18, %c32] : memref<4x16x16x288xbf16, #tpu.memory_space<vmem>>, vector<4x1x16x32xbf16>
    tpu.vector_store %arg6[%c0_16, %c0_17, %c0_18, %c32], %11 {strides = array<i32>} : memref<4x16x16x288xbf16, #tpu.memory_space<vmem>>, vector<4x1x16x32xbf16>,
    %c0_i32_19 = arith.constant 0 : i32
    %13 = arith.addi %1, %c0_i32_19 : i32
    %c0_20 = arith.constant 0 : index
    %14 = arith.index_cast %13 : i32 to index
    %c0_21 = arith.constant 0 : index
    %c0_22 = arith.constant 0 : index
    %c0_23 = arith.constant 0 : index
    %15 = vector.load %arg2[%c0_20, %14, %c0_21, %c0_22, %c0_23] : memref<1x4x16x16x32xbf16, #tpu.memory_space<vmem>>, vector<1x4x15x16x32xbf16>
    %16 = vector.shape_cast %15 : vector<1x4x15x16x32xbf16> to vector<4x15x16x32xbf16>
    %c0_24 = arith.constant 0 : index
    %c1_25 = arith.constant 1 : index
    %c0_26 = arith.constant 0 : index
    %c32_27 = arith.constant 32 : index
    %17 = vector.load %arg6[%c0_24, %c1_25, %c0_26, %c32_27] : memref<4x16x16x288xbf16, #tpu.memory_space<vmem>>, vector<4x15x16x32xbf16>
    tpu.vector_store %arg6[%c0_24, %c1_25, %c0_26, %c32_27], %16 {strides = array<i32>} : memref<4x16x16x288xbf16, #tpu.memory_space<vmem>>, vector<4x15x16x32xbf16>,
    %cst_28 = arith.constant 0.000000e+00 : bf16
    %18 = vector.broadcast %cst_28 : bf16 to vector<4x1x16x32xbf16>
    %c0_29 = arith.constant 0 : index
    %c0_30 = arith.constant 0 : index
    %c0_31 = arith.constant 0 : index
    %c64 = arith.constant 64 : index
    %19 = vector.load %arg6[%c0_29, %c0_30, %c0_31, %c64] : memref<4x16x16x288xbf16, #tpu.memory_space<vmem>>, vector<4x1x16x32xbf16>
    tpu.vector_store %arg6[%c0_29, %c0_30, %c0_31, %c64], %18 {strides = array<i32>} : memref<4x16x16x288xbf16, #tpu.memory_space<vmem>>, vector<4x1x16x32xbf16>,
    %cst_32 = arith.constant 0.000000e+00 : bf16
    %20 = vector.broadcast %cst_32 : bf16 to vector<4x15x1x32xbf16>
    %c0_33 = arith.constant 0 : index
    %c1_34 = arith.constant 1 : index
    %c15 = arith.constant 15 : index
    %c64_35 = arith.constant 64 : index
    %21 = vector.load %arg6[%c0_33, %c1_34, %c15, %c64_35] : memref<4x16x16x288xbf16, #tpu.memory_space<vmem>>, vector<4x15x1x32xbf16>
    tpu.vector_store %arg6[%c0_33, %c1_34, %c15, %c64_35], %20 {strides = array<i32>} : memref<4x16x16x288xbf16, #tpu.memory_space<vmem>>, vector<4x15x1x32xbf16>,
    %c0_i32_36 = arith.constant 0 : i32
    %22 = arith.addi %1, %c0_i32_36 : i32
    %c0_37 = arith.constant 0 : index
    %23 = arith.index_cast %22 : i32 to index
    %c0_38 = arith.constant 0 : index
    %c1_39 = arith.constant 1 : index
    %c0_40 = arith.constant 0 : index
    %24 = vector.load %arg2[%c0_37, %23, %c0_38, %c1_39, %c0_40] : memref<1x4x16x16x32xbf16, #tpu.memory_space<vmem>>, vector<1x4x15x15x32xbf16>
    %25 = vector.shape_cast %24 : vector<1x4x15x15x32xbf16> to vector<4x15x15x32xbf16>
    %c0_41 = arith.constant 0 : index
    %c1_42 = arith.constant 1 : index
    %c0_43 = arith.constant 0 : index
    %c64_44 = arith.constant 64 : index
    %26 = vector.load %arg6[%c0_41, %c1_42, %c0_43, %c64_44] : memref<4x16x16x288xbf16, #tpu.memory_space<vmem>>, vector<4x15x15x32xbf16>
    tpu.vector_store %arg6[%c0_41, %c1_42, %c0_43, %c64_44], %25 {strides = array<i32>} : memref<4x16x16x288xbf16, #tpu.memory_space<vmem>>, vector<4x15x15x32xbf16>,
    %cst_45 = arith.constant 0.000000e+00 : bf16
    %27 = vector.broadcast %cst_45 : bf16 to vector<4x16x1x32xbf16>
    %c0_46 = arith.constant 0 : index
    %c0_47 = arith.constant 0 : index
    %c0_48 = arith.constant 0 : index
    %c96 = arith.constant 96 : index
    %28 = vector.load %arg6[%c0_46, %c0_47, %c0_48, %c96] : memref<4x16x16x288xbf16, #tpu.memory_space<vmem>>, vector<4x16x1x32xbf16>
    tpu.vector_store %arg6[%c0_46, %c0_47, %c0_48, %c96], %27 {strides = array<i32>} : memref<4x16x16x288xbf16, #tpu.memory_space<vmem>>, vector<4x16x1x32xbf16>,
    %c0_i32_49 = arith.constant 0 : i32
    %29 = arith.addi %1, %c0_i32_49 : i32
    %c0_50 = arith.constant 0 : index
    %30 = arith.index_cast %29 : i32 to index
    %c0_51 = arith.constant 0 : index
    %c0_52 = arith.constant 0 : index
    %c0_53 = arith.constant 0 : index
    %31 = vector.load %arg2[%c0_50, %30, %c0_51, %c0_52, %c0_53] : memref<1x4x16x16x32xbf16, #tpu.memory_space<vmem>>, vector<1x4x16x15x32xbf16>
    %32 = vector.shape_cast %31 : vector<1x4x16x15x32xbf16> to vector<4x16x15x32xbf16>
    %c0_54 = arith.constant 0 : index
    %c0_55 = arith.constant 0 : index
    %c1_56 = arith.constant 1 : index
    %c96_57 = arith.constant 96 : index
    %33 = vector.load %arg6[%c0_54, %c0_55, %c1_56, %c96_57] : memref<4x16x16x288xbf16, #tpu.memory_space<vmem>>, vector<4x16x15x32xbf16>
    tpu.vector_store %arg6[%c0_54, %c0_55, %c1_56, %c96_57], %32 {strides = array<i32>} : memref<4x16x16x288xbf16, #tpu.memory_space<vmem>>, vector<4x16x15x32xbf16>,
    %c0_i32_58 = arith.constant 0 : i32
    %34 = arith.addi %1, %c0_i32_58 : i32
    %c0_59 = arith.constant 0 : index
    %35 = arith.index_cast %34 : i32 to index
    %c0_60 = arith.constant 0 : index
    %c0_61 = arith.constant 0 : index
    %c0_62 = arith.constant 0 : index
    %36 = vector.load %arg2[%c0_59, %35, %c0_60, %c0_61, %c0_62] : memref<1x4x16x16x32xbf16, #tpu.memory_space<vmem>>, vector<1x4x16x16x32xbf16>
    %37 = vector.shape_cast %36 : vector<1x4x16x16x32xbf16> to vector<4x16x16x32xbf16>
    %c0_63 = arith.constant 0 : index
    %c0_64 = arith.constant 0 : index
    %c0_65 = arith.constant 0 : index
    %c128 = arith.constant 128 : index
    %38 = vector.load %arg6[%c0_63, %c0_64, %c0_65, %c128] : memref<4x16x16x288xbf16, #tpu.memory_space<vmem>>, vector<4x16x16x32xbf16>
    tpu.vector_store %arg6[%c0_63, %c0_64, %c0_65, %c128], %37 {strides = array<i32>} : memref<4x16x16x288xbf16, #tpu.memory_space<vmem>>, vector<4x16x16x32xbf16>,
    %cst_66 = arith.constant 0.000000e+00 : bf16
    %39 = vector.broadcast %cst_66 : bf16 to vector<4x16x1x32xbf16>
    %c0_67 = arith.constant 0 : index
    %c0_68 = arith.constant 0 : index
    %c15_69 = arith.constant 15 : index
    %c160 = arith.constant 160 : index
    %40 = vector.load %arg6[%c0_67, %c0_68, %c15_69, %c160] : memref<4x16x16x288xbf16, #tpu.memory_space<vmem>>, vector<4x16x1x32xbf16>
    tpu.vector_store %arg6[%c0_67, %c0_68, %c15_69, %c160], %39 {strides = array<i32>} : memref<4x16x16x288xbf16, #tpu.memory_space<vmem>>, vector<4x16x1x32xbf16>,
    %c0_i32_70 = arith.constant 0 : i32
    %41 = arith.addi %1, %c0_i32_70 : i32
    %c0_71 = arith.constant 0 : index
    %42 = arith.index_cast %41 : i32 to index
    %c0_72 = arith.constant 0 : index
    %c1_73 = arith.constant 1 : index
    %c0_74 = arith.constant 0 : index
    %43 = vector.load %arg2[%c0_71, %42, %c0_72, %c1_73, %c0_74] : memref<1x4x16x16x32xbf16, #tpu.memory_space<vmem>>, vector<1x4x16x15x32xbf16>
    %44 = vector.shape_cast %43 : vector<1x4x16x15x32xbf16> to vector<4x16x15x32xbf16>
    %c0_75 = arith.constant 0 : index
    %c0_76 = arith.constant 0 : index
    %c0_77 = arith.constant 0 : index
    %c160_78 = arith.constant 160 : index
    %45 = vector.load %arg6[%c0_75, %c0_76, %c0_77, %c160_78] : memref<4x16x16x288xbf16, #tpu.memory_space<vmem>>, vector<4x16x15x32xbf16>
    tpu.vector_store %arg6[%c0_75, %c0_76, %c0_77, %c160_78], %44 {strides = array<i32>} : memref<4x16x16x288xbf16, #tpu.memory_space<vmem>>, vector<4x16x15x32xbf16>,
    %cst_79 = arith.constant 0.000000e+00 : bf16
    %46 = vector.broadcast %cst_79 : bf16 to vector<4x1x16x32xbf16>
    %c0_80 = arith.constant 0 : index
    %c15_81 = arith.constant 15 : index
    %c0_82 = arith.constant 0 : index
    %c192 = arith.constant 192 : index
    %47 = vector.load %arg6[%c0_80, %c15_81, %c0_82, %c192] : memref<4x16x16x288xbf16, #tpu.memory_space<vmem>>, vector<4x1x16x32xbf16>
    tpu.vector_store %arg6[%c0_80, %c15_81, %c0_82, %c192], %46 {strides = array<i32>} : memref<4x16x16x288xbf16, #tpu.memory_space<vmem>>, vector<4x1x16x32xbf16>,
    %cst_83 = arith.constant 0.000000e+00 : bf16
    %48 = vector.broadcast %cst_83 : bf16 to vector<4x15x1x32xbf16>
    %c0_84 = arith.constant 0 : index
    %c0_85 = arith.constant 0 : index
    %c0_86 = arith.constant 0 : index
    %c192_87 = arith.constant 192 : index
    %49 = vector.load %arg6[%c0_84, %c0_85, %c0_86, %c192_87] : memref<4x16x16x288xbf16, #tpu.memory_space<vmem>>, vector<4x15x1x32xbf16>
    tpu.vector_store %arg6[%c0_84, %c0_85, %c0_86, %c192_87], %48 {strides = array<i32>} : memref<4x16x16x288xbf16, #tpu.memory_space<vmem>>, vector<4x15x1x32xbf16>,
    %c0_i32_88 = arith.constant 0 : i32
    %50 = arith.addi %1, %c0_i32_88 : i32
    %c0_89 = arith.constant 0 : index
    %51 = arith.index_cast %50 : i32 to index
    %c1_90 = arith.constant 1 : index
    %c0_91 = arith.constant 0 : index
    %c0_92 = arith.constant 0 : index
    %52 = vector.load %arg2[%c0_89, %51, %c1_90, %c0_91, %c0_92] : memref<1x4x16x16x32xbf16, #tpu.memory_space<vmem>>, vector<1x4x15x15x32xbf16>
    %53 = vector.shape_cast %52 : vector<1x4x15x15x32xbf16> to vector<4x15x15x32xbf16>
    %c0_93 = arith.constant 0 : index
    %c0_94 = arith.constant 0 : index
    %c1_95 = arith.constant 1 : index
    %c192_96 = arith.constant 192 : index
    %54 = vector.load %arg6[%c0_93, %c0_94, %c1_95, %c192_96] : memref<4x16x16x288xbf16, #tpu.memory_space<vmem>>, vector<4x15x15x32xbf16>
    tpu.vector_store %arg6[%c0_93, %c0_94, %c1_95, %c192_96], %53 {strides = array<i32>} : memref<4x16x16x288xbf16, #tpu.memory_space<vmem>>, vector<4x15x15x32xbf16>,
    %cst_97 = arith.constant 0.000000e+00 : bf16
    %55 = vector.broadcast %cst_97 : bf16 to vector<4x1x16x32xbf16>
    %c0_98 = arith.constant 0 : index
    %c15_99 = arith.constant 15 : index
    %c0_100 = arith.constant 0 : index
    %c224 = arith.constant 224 : index
    %56 = vector.load %arg6[%c0_98, %c15_99, %c0_100, %c224] : memref<4x16x16x288xbf16, #tpu.memory_space<vmem>>, vector<4x1x16x32xbf16>
    tpu.vector_store %arg6[%c0_98, %c15_99, %c0_100, %c224], %55 {strides = array<i32>} : memref<4x16x16x288xbf16, #tpu.memory_space<vmem>>, vector<4x1x16x32xbf16>,
    %c0_i32_101 = arith.constant 0 : i32
    %57 = arith.addi %1, %c0_i32_101 : i32
    %c0_102 = arith.constant 0 : index
    %58 = arith.index_cast %57 : i32 to index
    %c1_103 = arith.constant 1 : index
    %c0_104 = arith.constant 0 : index
    %c0_105 = arith.constant 0 : index
    %59 = vector.load %arg2[%c0_102, %58, %c1_103, %c0_104, %c0_105] : memref<1x4x16x16x32xbf16, #tpu.memory_space<vmem>>, vector<1x4x15x16x32xbf16>
    %60 = vector.shape_cast %59 : vector<1x4x15x16x32xbf16> to vector<4x15x16x32xbf16>
    %c0_106 = arith.constant 0 : index
    %c0_107 = arith.constant 0 : index
    %c0_108 = arith.constant 0 : index
    %c224_109 = arith.constant 224 : index
    %61 = vector.load %arg6[%c0_106, %c0_107, %c0_108, %c224_109] : memref<4x16x16x288xbf16, #tpu.memory_space<vmem>>, vector<4x15x16x32xbf16>
    tpu.vector_store %arg6[%c0_106, %c0_107, %c0_108, %c224_109], %60 {strides = array<i32>} : memref<4x16x16x288xbf16, #tpu.memory_space<vmem>>, vector<4x15x16x32xbf16>,
    %cst_110 = arith.constant 0.000000e+00 : bf16
    %62 = vector.broadcast %cst_110 : bf16 to vector<4x1x16x32xbf16>
    %c0_111 = arith.constant 0 : index
    %c15_112 = arith.constant 15 : index
    %c0_113 = arith.constant 0 : index
    %c256 = arith.constant 256 : index
    %63 = vector.load %arg6[%c0_111, %c15_112, %c0_113, %c256] : memref<4x16x16x288xbf16, #tpu.memory_space<vmem>>, vector<4x1x16x32xbf16>
    tpu.vector_store %arg6[%c0_111, %c15_112, %c0_113, %c256], %62 {strides = array<i32>} : memref<4x16x16x288xbf16, #tpu.memory_space<vmem>>, vector<4x1x16x32xbf16>,
    %cst_114 = arith.constant 0.000000e+00 : bf16
    %64 = vector.broadcast %cst_114 : bf16 to vector<4x15x1x32xbf16>
    %c0_115 = arith.constant 0 : index
    %c0_116 = arith.constant 0 : index
    %c15_117 = arith.constant 15 : index
    %c256_118 = arith.constant 256 : index
    %65 = vector.load %arg6[%c0_115, %c0_116, %c15_117, %c256_118] : memref<4x16x16x288xbf16, #tpu.memory_space<vmem>>, vector<4x15x1x32xbf16>
    tpu.vector_store %arg6[%c0_115, %c0_116, %c15_117, %c256_118], %64 {strides = array<i32>} : memref<4x16x16x288xbf16, #tpu.memory_space<vmem>>, vector<4x15x1x32xbf16>,
    %c0_i32_119 = arith.constant 0 : i32
    %66 = arith.addi %1, %c0_i32_119 : i32
    %c0_120 = arith.constant 0 : index
    %67 = arith.index_cast %66 : i32 to index
    %c1_121 = arith.constant 1 : index
    %c1_122 = arith.constant 1 : index
    %c0_123 = arith.constant 0 : index
    %68 = vector.load %arg2[%c0_120, %67, %c1_121, %c1_122, %c0_123] : memref<1x4x16x16x32xbf16, #tpu.memory_space<vmem>>, vector<1x4x15x15x32xbf16>
    %69 = vector.shape_cast %68 : vector<1x4x15x15x32xbf16> to vector<4x15x15x32xbf16>
    %c0_124 = arith.constant 0 : index
    %c0_125 = arith.constant 0 : index
    %c0_126 = arith.constant 0 : index
    %c256_127 = arith.constant 256 : index
    %70 = vector.load %arg6[%c0_124, %c0_125, %c0_126, %c256_127] : memref<4x16x16x288xbf16, #tpu.memory_space<vmem>>, vector<4x15x15x32xbf16>
    tpu.vector_store %arg6[%c0_124, %c0_125, %c0_126, %c256_127], %69 {strides = array<i32>} : memref<4x16x16x288xbf16, #tpu.memory_space<vmem>>, vector<4x15x15x32xbf16>,
    %c0_128 = arith.constant 0 : index
    %c0_129 = arith.constant 0 : index
    %c0_130 = arith.constant 0 : index
    %c0_131 = arith.constant 0 : index
    %71 = vector.load %arg6[%c0_128, %c0_129, %c0_130, %c0_131] : memref<4x16x16x288xbf16, #tpu.memory_space<vmem>>, vector<4x16x16x288xbf16>
    %72 = vector.shape_cast %71 : vector<4x16x16x288xbf16> to vector<1024x288xbf16>
    %c0_132 = arith.constant 0 : index
    %c0_133 = arith.constant 0 : index
    %73 = vector.load %arg3[%c0_132, %c0_133] : memref<288x128xbf16, #tpu.memory_space<vmem>>, vector<288x128xbf16>
    %cst_134 = arith.constant dense<0.000000e+00> : vector<1024x128xf32>
    %74 = tpu.matmul %72, %73, %cst_134 {dimension_numbers = #tpu.dot_dimension_numbers<[1], [0], [0], [1], [0, 0, 1, 1], [], []>} : vector<1024x288xbf16>, vector<288x128xbf16>, vector<1024x128xf32> -> vector<1024x128xf32>
    %c0_135 = arith.constant 0 : index
    %c0_136 = arith.constant 0 : index
    %75 = vector.load %arg4[%c0_135, %c0_136] : memref<1x128xf32, #tpu.memory_space<vmem>>, vector<1x128xf32>
    %76 = vector.broadcast %75 : vector<1x128xf32> to vector<1024x128xf32>
    %77 = arith.addf %74, %76 : vector<1024x128xf32>
    %78 = arith.truncf %77 : vector<1024x128xf32> to vector<1024x128xbf16>
    %c0_137 = arith.constant 0 : index
    %c0_138 = arith.constant 0 : index
    %c0_139 = arith.constant 0 : index
    %79 = vector.load %arg5[%c0_137, %c0_138, %c0_139] : memref<1x1024x128xbf16, #tpu.memory_space<vmem>>, vector<1x1024x128xbf16>
    %80 = vector.shape_cast %79 : vector<1x1024x128xbf16> to vector<1024x128xbf16>
    %81 = vector.shape_cast %78 : vector<1024x128xbf16> to vector<1x1024x128xbf16>
    tpu.vector_store %arg5[%c0_137, %c0_138, %c0_139], %81 {strides = array<i32>} : memref<1x1024x128xbf16, #tpu.memory_space<vmem>>, vector<1x1024x128xbf16>,
    return
  }
  func.func @transform_0(%arg0: i32, %arg1: i32) -> (i32, i32, i32, i32, i32) {
    %c0_i32 = arith.constant 0 : i32
    %c0_i32_0 = arith.constant 0 : i32
    %c0_i32_1 = arith.constant 0 : i32
    %c0_i32_2 = arith.constant 0 : i32
    %c0_i32_3 = arith.constant 0 : i32
    return %arg0, %c0_i32, %c0_i32_0, %c0_i32_1, %c0_i32_2 : i32, i32, i32, i32, i32
  }
  func.func @transform_1(%arg0: i32, %arg1: i32) -> (i32, i32) {
    %c0_i32 = arith.constant 0 : i32
    %c0_i32_0 = arith.constant 0 : i32
    %c0_i32_1 = arith.constant 0 : i32
    return %c0_i32, %c0_i32_0 : i32, i32
  }
  func.func @transform_2(%arg0: i32, %arg1: i32) -> (i32, i32) {
    %c0_i32 = arith.constant 0 : i32
    %c0_i32_0 = arith.constant 0 : i32
    %c0_i32_1 = arith.constant 0 : i32
    return %c0_i32, %c0_i32_0 : i32, i32
  }
  func.func @transform_3(%arg0: i32, %arg1: i32) -> (i32, i32, i32) {
    %c0_i32 = arith.constant 0 : i32
    %c0_i32_0 = arith.constant 0 : i32
    return %arg0, %arg1, %c0_i32 : i32, i32, i32
  }
}

</mosaic_0001>

<bundles_post_ra>
// kernel: basicconv_forward.1
= control target key start
LH: loop header
LB: loop body
LE: loop exit
PB: predicated region body
PF: predicated region fallthrough
CT: control target
= control target key end

     0   :  { %8 = vsyncpa [#allocation4], 0  ;;  %s20257_s0 = inlined_call_operand.hbm [shape: bf16[2,4,16,16,32], index: 0, kind: input, shape index: {}]   ;;  %s20258_s1 = inlined_call_operand.hbm [shape: bf16[288,128], index: 1, kind: input, shape index: {}]   ;;  %s20259_s2 = inlined_call_operand.vmem [shape: f32[1,128], index: 2, kind: input, shape index: {}]   ;;  %s20260_s3 = inlined_call_operand.hbm [shape: bf16[2,1024,128], index: 3, kind: output, shape index: {}]  }
   0x1   :  { %10 = vsyncpa [#allocation4 + $0x1], 0 }
   0x2   :  { %11 = vsyncpa [#allocation7], 0 }
   0x3   :  { %12 = vsyncpa [#allocation5], 0 }
   0x4   :  { %14 = vsyncpa [#allocation5 + $0x1], 0  ;;  %s15495_s12 = smov 0   ;;  %s15497_s13 = smov 0  }
   0x5   :  { %s15499_s14 = smov 0   ;;  %s15501_s15 = smov 0  }
   0x6   :  { %s15503_s16 = smov 0   ;;  %s15505_s17 = smov 0  }
   0x7 LB: > { %s12784_s18 = sadd.s32 4294967295, %s15463_s17   ;;  %s12785_s19 = sadd.s32 4294967294, %s15463_s17   ;;  %s15463_s17 = sphi %s15505_s17, %s20_s17   ;;  %s15459_s16 = sphi %s15503_s16, %s20433_s16   ;;  %s15455_s15 = sphi %s15501_s15, %s20432_s15   ;;  %s15451_s14 = sphi %s15499_s14, %s20431_s14   ;;  %s15447_s13 = sphi %s15497_s13, %s20430_s13   ;;  %s15443_s12 = sphi %s15495_s12, %s20429_s12  }
   0x8   : > { %p52_p0 = scmp.ne.s32.totalorder %s15447_s13, %s15443_s12  ;;  %p15529_p1 = scmp.eq.s32.totalorder %s12784_s18, 0 }
   0x9   : > { %p15533_p2 = scmp.eq.s32.totalorder %s12784_s18, 1  ;;  %p126_p3 = scmp.eq.s32.totalorder %s12785_s19, 1 }
   0xa   : > { %s20270_s20 = scalar_select %p15529_p1, 1, 0 }
   0xb   : > { %s20271_s21 = scalar_select %p15533_p2, 1, 0 }
   0xc   : > { %p15539_p4 = por %p15529_p1, %p52_p0  ;;  %p12786_p5 = scmp.ge.s32.totalorder %s15463_s17, 1 }
   0xd   : > { %p15544_p6 = por %p126_p3, %p52_p0  ;;  %p133_p7 = scmp.lt.s32.totalorder %s15463_s17, 3 }
   0xe   : > { %s20272_s22 = scalar_select %p15539_p4, 1, 0 }
   0xf   : > { %s20273_s23 = scalar_select %p15544_p6, 1, 0 }
  0x10   : > { %p15549_p8 = pnand %p12786_p5, %p133_p7  ;;  %s15465_s25 = smov [#allocation6]  }
  0x11   : > { %s145_s26 = sshll.u32 %s15465_s25, 4  ;;  %s32_s28 = sadd.s32 1, %s15459_s16  ;;  %s146_s26 = int_to_ptr.vmem [resolvable:$true] %s145_s26 }
  0x12   : > { %s20274_s24 = scalar_select %p15549_p8, 1, 0 }
  0x13   : > { %p14675_p9 = pneg %p15549_p8  ;;  %s15319_s4 = scalar_lea.hbm %s20258_s1, 2304 }
  0x14   : > { %p15320_p12 = scmp.ne.s32.totalorder %s20258_s1, %s15319_s4  ;;  %p15326_p5 = scmp.lt.u32.totalorder %s15319_s4, %s20258_s1 }
  0x15   : > { %p15558_p11 = pnand %p14675_p9, %p15529_p1 }
  0x17   : > { %p15321_p13 = pneg %p15558_p11 }
  0x19   : > { %p15322_p0 = pnand %p15321_p13, %p15320_p12 }
  0x1b   : > { %p15323_p3 = pneg %p15322_p0 }
  0x1d   : > { %p15328_p7 = pnand %p15326_p5, %p15323_p3 }
  0x1f   : > { %15331 = shalt.err (!%p15328_p7)
}
  0x20   : > { %s15332_s9 = scalar_lea.vmem %s146_s26, 2304  ;;  %p15340_p1 = scmp.lt.s32.totalorder %s146_s26, %s146_s26 }
  0x21   : > { %p15333_p9 = scmp.ne.s32.totalorder %s146_s26, %s15332_s9  ;;  %p15341_p4 = scmp.lt.s32.totalorder %s15332_s9, %s15332_s9 }
  0x23   : > { %p15335_p10 = pnand %p15333_p9, %p15321_p13  ;;  %p15342_p8 = por %p15341_p4, %p15340_p1 }
  0x25   : > { %p15336_p6 = pneg %p15335_p10 }
  0x27   : > { %p15343_p2 = pnand %p15342_p8, %p15336_p6 }
  0x29   : > { %15346 = shalt.err (!%p15343_p2)
}
  0x2a   : > { %s15466_s10 = smov 64   ;;  %s15467_s11 = smov 4  }
  0x2b   : > { %14678 = dma.hbm_to_vmem [thread:$0]  (!%p15558_p11), %s20258_s1, 2304, %s146_s26, [#allocation7], %s15466_s10, %s15466_s10, %s15467_s11  }
  0x2c   : > { %p34_p1 = scmp.ge.s32.totalorder %s32_s28, 2  ;;  %s39_s25 = sadd.s32 1, %s15451_s14 }
  0x2d   : > { %p46_p2 = scmp.ne.s32.totalorder %s15451_s14, %s15447_s13  ;;  %p47_p4 = scmp.eq.s32.totalorder %s15463_s17, 0 }
  0x2e   : > { %s20435_s28 = smov (%p34_p1, %s32_s28), 0  ;;  %p20277_p8 = scmp.ne.s32.totalorder %s20271_s21, 0 }
  0x2f   : > { %p15588_p6 = por %p47_p4, %p46_p2  ;;  %s36_s30 = ssub.s32 %s15459_s16, %s20435_s28 }
  0x30   : > { %p15594_p10 = por %p20277_p8, %p46_p2  ;;  %p14688_p12 = scmp.lt.s32.totalorder %s15463_s17, 2 }
  0x31   : > { %p37_p11 = scmp.eq.s32.totalorder %s36_s30, 0  ;;  %s162_s26 = sand.u32 1, %s15451_s14  }
  0x32   : > { %s12789_s4 = sshll.u32 %s162_s26, 9  ;;  %s13924_s6 = sshll.u32 %s15459_s16, 13 }
  0x33   : > { %s15603_s5 = scalar_select %p37_p11, %s15451_s14, %s39_s25  }
  0x34   : > { %s15609_s9 = scalar_lea.hbm %s20257_s0, %s13924_s6  ;;  %s166_s21 = scalar_lea.vmem [#allocation3], %s12789_s4 }
  0x35   : > { %s173_s18 = sshll.u32 %s166_s21, 4  ;;  %p15615_p13 = pnand %p14688_p12, %p15588_p6  ;;  %s15611_s18 = int_to_ptr.vmem [resolvable:$true] %s173_s18 }
  0x36   : > { %s15619_s25 = scalar_lea.sflag [#allocation4], %s162_s26  ;;  %s15347_s30 = scalar_lea.hbm %s15609_s9, 8192 }
  0x37   : > { %p15348_p0 = scmp.ne.s32.totalorder %s15609_s9, %s15347_s30  ;;  %p15349_p3 = pneg %p15615_p13 }
  0x38   : > { %s15352_s29 = scalar_lea.hbm %s20257_s0, 16384  ;;  %p15353_p9 = scmp.lt.u32.totalorder %s15609_s9, %s20257_s0 }
  0x39   : > { %p15350_p5 = pnand %p15349_p3, %p15348_p0  ;;  %p15354_p1 = scmp.lt.u32.totalorder %s15352_s29, %s15347_s30 }
  0x3a   : > { %p15356_p4 = scmp.lt.u32.totalorder %s15347_s30, %s15609_s9 }
  0x3b   : > { %p15351_p7 = pneg %p15350_p5  ;;  %p15355_p2 = por %p15354_p1, %p15353_p9 }
  0x3d   : > { %p15357_p6 = por %p15356_p4, %p15355_p2 }
  0x3f   : > { %p15358_p8 = pnand %p15357_p6, %p15351_p7 }
  0x41   : > { %15361 = shalt.err (!%p15358_p8)
}
  0x42   : > { %s15362_s26 = scalar_lea.vmem %s15611_s18, 8192  ;;  %s15468_s21 = smov [#allocation3]  }
  0x43   : > { %p15363_p12 = scmp.ne.s32.totalorder %s15611_s18, %s15362_s26  ;;  %s15367_s4 = sshll.u32 %s15468_s21, 4  ;;  %s15368_s4 = int_to_ptr.vmem [resolvable:$false] %s15367_s4 }
  0x44   : > { %s15369_s6 = scalar_lea.vmem %s15368_s4, 16384  ;;  %p15370_p5 = scmp.lt.s32.totalorder %s15611_s18, %s15368_s4 }
  0x45   : > { %p15365_p11 = pnand %p15363_p12, %p15349_p3  ;;  %p15371_p9 = scmp.lt.s32.totalorder %s15369_s6, %s15362_s26 }
  0x47   : > { %p15366_p0 = pneg %p15365_p11  ;;  %p15372_p1 = por %p15371_p9, %p15370_p5 }
  0x49   : > { %p15373_p2 = pnand %p15372_p1, %p15366_p0 }
  0x4b   : > { %15376 = shalt.err (!%p15373_p2)
}
  0x4c   : > { %14682 = dma.hbm_to_vmem [thread:$0]  (!%p15615_p13), %s15609_s9, 8192, %s15611_s18, %s15619_s25, %s15466_s10, %s15466_s10, %s15467_s11  }
  0x4d   : > { %p20280_p3 = scmp.ne.s32.totalorder %s20274_s24, 0 }
  0x4f   : > { %185 = sbr.rel (%p20280_p3) target bundleno = 1314 (0x522), region = 32 }
  0x56   : > { %s15653_s30 = sand.u32 1, %s15447_s13   ;;  %p20281_p7 = scmp.ne.s32.totalorder %s20272_s22, 0 }
  0x57   : > { %s12793_s29 = sshll.u32 %s15653_s30, 9  ;;  %s188_s7 = scalar_lea.sflag [#allocation4], %s15653_s30 }
  0x58   : > { %s15659_s19 = scalar_lea.vmem [#allocation3], %s12793_s29 }
  0x59   : > { %15430 = dma.done.wait (%p20281_p7), %s188_s7, 8192  }
  0x5a   : > { %15432 = vsyncadd (%p20281_p7), %s188_s7, 4294959104  ;;  %p20282_p13 = scmp.ne.s32.totalorder %s20270_s20, 0 }
  0x5c   : > { %15434 = dma.done.wait (%p20282_p13), [#allocation7], 2304  }
  0x5d   : > { %15436 = vsyncadd (%p20282_p13), [#allocation7], 4294964992  ;;  %v14747_v0 = vld [vmem:[%s15659_s19 + $0x10] sm:$0xff]   ;;  %v14748_v1 = vld [vmem:[%s15659_s19] sm:$0xff]   ;;  %s15469_s24 = smov 32   ;;  %vm221_vm0 = vcmask 261120  }
  0x5e   : > { %1925 = vrot.lane.b32.xlu1 %v14747_v0, %s15469_s24  ;;  %v14749_v2 = vld [vmem:[%s15659_s19 + $0x18] sm:$0xff]   ;;  %1921 = vrot.lane.b32.xlu0 %v14748_v1, %s15469_s24  ;;  %v14750_v3 = vld [vmem:[%s15659_s19 + $0x8] sm:$0xff]   ;;  %vm20266_vm1 = vcmask 523520   ;;  %v20267_v12 = vmov 0   ;;  %vm227_vm2 = vcmask 253952   ;;  %s15471_s20 = smov 64  }
  0x5f   : > { %v14751_v4 = vld [vmem:[%s15659_s19 + $0x28] sm:$0xff]   ;;  %v14752_v5 = vld [vmem:[%s15659_s19 + $0x20] sm:$0xff]   ;;  %v14753_v6 = vld [vmem:[%s15659_s19 + $0x38] sm:$0xff]   ;;  %10938 = vmatprep.subr.bf16.mxu0 %v20267_v12  ;;  %222 = vst.msk [vmem:[#allocation2] sm:$0xff] %vm221_vm0, %v20267_v12  ;;  %14635 = vmatprep.subr.bf16.mxu1 %v20267_v12  ;;  %vm228_vm3 = vsmask.f32 256 }
  0x60   : > { %v14754_v7 = vld [vmem:[%s15659_s19 + $0x30] sm:$0xff]   ;;  %v14755_v8 = vld [vmem:[%s15659_s19 + $0x48] sm:$0xff]   ;;  %v14756_v9 = vld [vmem:[%s15659_s19 + $0x40] sm:$0xff]   ;;  %223 = vst.msk [vmem:[#allocation2 + $0x180] sm:$0xff] %vm221_vm0, %v20267_v12  ;;  %vm1314_vm4 = vsmask.f32 7938 }
  0x61   : > { %v14757_v10 = vld [vmem:[%s15659_s19 + $0x58] sm:$0xff]   ;;  %v14758_v11 = vld [vmem:[%s15659_s19 + $0x50] sm:$0xff]   ;;  %224 = vst.msk [vmem:[#allocation2 + $0x300] sm:$0xff] %vm221_vm0, %v20267_v12  ;;  %225 = vst.msk [vmem:[#allocation2 + $0x480] sm:$0xff] %vm221_vm0, %v20267_v12  ;;  %vm2161_vm7 = vcmask 785920   ;;  %s15472_s22 = smov 96  }
  0x62   : > { %1927 = vrot.lane.b32.xlu1 %v14749_v2, %s15469_s24  ;;  %1923 = vrot.lane.b32.xlu0 %v14750_v3, %s15469_s24  ;;  %9136 = vst.msk [vmem:[#allocation2 + $0x178] sm:$0xff] %vm221_vm0, %v20267_v12  ;;  %9137 = vst.msk [vmem:[#allocation2 + $0x2f8] sm:$0xff] %vm221_vm0, %v20267_v12  ;;  %v14759_v13 = vld [vmem:[%s15659_s19 + $0x68] sm:$0xff]   ;;  %v14760_v14 = vld [vmem:[%s15659_s19 + $0x60] sm:$0xff]   ;;  %vm2166_vm8 = vcmask 785927   ;;  %vm5604_vm12 = vcmask 523527  }
  0x63   : > { %9138 = vst.msk [vmem:[#allocation2 + $0x478] sm:$0xff] %vm221_vm0, %v20267_v12  ;;  %9139 = vst.msk [vmem:[#allocation2 + $0x5f8] sm:$0xff] %vm221_vm0, %v20267_v12  ;;  %v14761_v15 = vld [vmem:[%s15659_s19 + $0x80] sm:$0xff]   ;;  %v14762_v16 = vld [vmem:[%s15659_s19 + $0x70] sm:$0xff]   ;;  %vm2167_vm9 = vsmask.f32 7966 }
  0x64   : > { %1497 = vst.msk [vmem:[#allocation2] sm:$0xff] %vm20266_vm1, %v20267_v12  ;;  %1498 = vst.msk [vmem:[#allocation2 + $0x180] sm:$0xff] %vm20266_vm1, %v20267_v12  ;;  %v14763_v17 = vld [vmem:[%s15659_s19 + $0x90] sm:$0xff]   ;;  %v14764_v18 = vld [vmem:[%s15659_s19 + $0x88] sm:$0xff]   ;;  %vm20265_vm11 = vsmask.f32 7424 }
  0x65   : > { %1499 = vst.msk [vmem:[#allocation2 + $0x300] sm:$0xff] %vm20266_vm1, %v20267_v12  ;;  %1500 = vst.msk [vmem:[#allocation2 + $0x480] sm:$0xff] %vm20266_vm1, %v20267_v12  ;;  %v14773_v19 = vld [vmem:[%s15659_s19 + $0x180] sm:$0xff]   ;;  %v14766_v22 = vld [vmem:[%s15659_s19 + $0x98] sm:$0xff]   ;;  %s19369_s9 = scalar_lea.vmem [#allocation8], %s12793_s29  ;;  %s14053_s21 = sshll.u32 %s15455_s15, 13 }
  0x66   : > { %1931 = vrot.lane.b32.xlu1 %v14751_v4, %s15469_s24  ;;  %1929 = vrot.lane.b32.xlu0 %v14752_v5, %s15469_s24  ;;  %v14774_v20 = vld [vmem:[%s15659_s19] sm:$0xff]   ;;  %v14767_v23 = vld [vmem:[%s15659_s19 + $0xb0] sm:$0xff]   ;;  %v6585_v24 = vshll.u32 %v14773_v19, 16  ;;  %v6583_v29 = vshrl.u32 %v14773_v19, 16  ;;  %vm15873_vm5 = vmand %vm227_vm2, %vm228_vm3  ;;  %2162 = vst.msk [vmem:[#allocation2] sm:$0xff] %vm2161_vm7, %v20267_v12  ;;  %vm7085_vm2 = vcmask 778752   ;;  %s20203_s7 = scalar_lea.hbm %s20260_s3, %s14053_s21 }
  0x67   : > { %v14765_v21 = vld [vmem:[%s15659_s19 + $0xa0] sm:$0xff]   ;;  %v15737_v25 = vld [vmem:[%s15659_s19 + $0x188] sm:$0xff]   ;;  %v6249_v27 = vshll.u32 %v14774_v20, 16  ;;  %v6247_v31 = vshrl.u32 %v14774_v20, 16  ;;  %v15749_v32 = vld [vmem:[%s15659_s19 + $0x10] sm:$0xff]   ;;  %2163 = vst.msk [vmem:[#allocation2 + $0x180] sm:$0xff] %vm2161_vm7, %v20267_v12 }
  0x68   : > { %v14768_v26 = vld [vmem:[%s15659_s19 + $0xa8] sm:$0xff]   ;;  %v15745_v30 = vld [vmem:[%s15659_s19] sm:$0xff]   ;;  %v6587_v34 = vrot.slane %v6585_v24, 1  ;;  %v6592_v35 = vshll.u32 %v15737_v25, 16  ;;  %v14770_v36 = vld [vmem:[%s15659_s19 + $0xb8] sm:$0xff]   ;;  %v6590_v41 = vshrl.u32 %v15737_v25, 16 }
  0x69   : > { %v15741_v28 = vld [vmem:[%s15659_s19 + $0x8] sm:$0xff]   ;;  %v14769_v33 = vld [vmem:[%s15659_s19 + $0x180] sm:$0xff]   ;;  %v6251_v37 = vrot.slane %v6249_v27, 1  ;;  %v2772_v39 = vshll.u32 %v15745_v30, 16  ;;  %v6263_v42 = vshll.u32 %v15749_v32, 16  ;;  %v15766_v46 = vld [vmem:[%s15659_s19 + $0x190] sm:$0xff]  }
  0x6a   : > { %1935 = vrot.lane.b32.xlu1 %v14753_v6, %s15469_s24  ;;  %1933 = vrot.lane.b32.xlu0 %v14754_v7, %s15469_s24  ;;  %v6256_v38 = vshll.u32 %v15741_v28, 16  ;;  %v15758_v40 = vld [vmem:[%s15659_s19 + $0x180] sm:$0xff]   ;;  %v14771_v43 = vld [vmem:[%s15659_s19 + $0xc8] sm:$0xff]   ;;  %v6594_v44 = vrot.slane %v6592_v35, 1  ;;  %v6254_v45 = vshrl.u32 %v15741_v28, 16  ;;  %v2770_v50 = vshrl.u32 %v15745_v30, 16  ;;  %vm15906_vm6 = vmand %vm221_vm0, %vm1314_vm4 }
  0x6b   : > { %v15769_v47 = vld [vmem:[%s15659_s19 + $0x8] sm:$0xff]   ;;  %v14772_v48 = vld [vmem:[%s15659_s19 + $0xc0] sm:$0xff]   ;;  %v15774_v51 = vrot.slane %v2772_v39, 1  ;;  %v6261_v52 = vshrl.u32 %v15749_v32, 16  ;;  %v3087_v53 = vshll.u32 %v15758_v40, 16  ;;  %v15782_v55 = vrot.slane %v6263_v42, 1  ;;  %vm16187_vm10 = vmand %vm2166_vm8, %vm2167_vm9 }
  0x6c   : > { %v6258_v49 = vrot.slane %v6256_v38, 1  ;;  %v15779_v54 = vld [vmem:[%s15659_s19 + $0x8] sm:$0xff]   ;;  %v3085_v56 = vshrl.u32 %v15758_v40, 16  ;;  %v6599_v57 = vshll.u32 %v15766_v46, 16  ;;  %v7691_v58 = vshrl.u32 %v15769_v47, 16  ;;  %v15799_v1 = vld [vmem:[%s15659_s19] sm:$0xff]   ;;  %vm16435_vm13 = vmand %vm5604_vm12, %vm2167_vm9 }
  0x6d   : > { %v15788_v59 = vld [vmem:[%s15659_s19 + $0x188] sm:$0xff]   ;;  %v6588_v61 = vor.u32 %v6587_v34, %v6583_v29  ;;  %v15794_v62 = vrot.slane %v3087_v53, 1  ;;  %v6597_v63 = vshrl.u32 %v15766_v46, 16  ;;  %v2779_v0 = vshll.u32 %v15779_v54, 16  ;;  %v15804_v4 = vld [vmem:[%s15659_s19 + $0x180] sm:$0xff]   ;;  %v14775_v5 = vld [vmem:[%s15659_s19 + $0xd0] sm:$0xff]  }
  0x6e   : > { %1939 = vrot.lane.b32.xlu1 %v14755_v8, %s15469_s24  ;;  %1937 = vrot.lane.b32.xlu0 %v14756_v9, %s15469_s24  ;;  %v15791_v60 = vld [vmem:[%s15659_s19 + $0x188] sm:$0xff]   ;;  %v6252_v2 = vor.u32 %v6251_v37, %v6247_v31  ;;  %v7694_v3 = vshll.u32 %v15769_v47, 16  ;;  %v15807_v6 = vrot.slane %v6599_v57, 1  ;;  %v15809_v7 = vrot.slane %v7691_v58, 7  ;;  %v15813_v9 = vld [vmem:[%s15659_s19 + $0x198] sm:$0xff]   ;;  %2164 = vst.msk [vmem:[#allocation2 + $0x300] sm:$0xff] %vm2161_vm7, %v20267_v12  ;;  %vm16456_vm14 = vmand %vm20266_vm1, %vm20265_vm11 }
  0x6f   : > { %v2777_v8 = vshrl.u32 %v15779_v54, 16  ;;  %v4531_v19 = vshrl.u32 %v15804_v4, 16  ;;  %v3092_v20 = vshrl.u32 %v15791_v60, 16  ;;  %v4198_v24 = vshll.u32 %v15799_v1, 16  ;;  %v15839_v25 = vld [vmem:[%s15659_s19 + $0x190] sm:$0xff]   ;;  %v14783_v32 = vld [vmem:[%s15659_s19 + $0x198] sm:$0xff]   ;;  %vm16474_vm15 = vmand %vm2161_vm7, %vm20265_vm11 }
  0x70   : > { %v6259_v27 = vor.u32 %v6258_v49, %v6254_v45  ;;  %v4534_v34 = vshll.u32 %v15804_v4, 16  ;;  %v6604_v35 = vshrl.u32 %v15813_v9, 16  ;;  %v15856_v39 = vld [vmem:[%s15659_s19 + $0x10] sm:$0xff]   ;;  %v3101_v42 = vshll.u32 %v15839_v25, 16  ;;  %v15927_v46 = vld [vmem:[%s15659_s19 + $0x20] sm:$0xff]   ;;  %2165 = vst.msk [vmem:[#allocation2 + $0x480] sm:$0xff] %vm2161_vm7, %v20267_v12  ;;  %vm16520_vm12 = vmand %vm7085_vm2, %vm228_vm3 }
  0x71   : > { %v3099_v53 = vshrl.u32 %v15839_v25, 16  ;;  %v15880_v57 = vld [vmem:[%s15659_s19 + $0x190] sm:$0xff]   ;;  %v7698_v30 = vshrl.u32 %v15856_v39, 16  ;;  %vm3552_vm8 = vcmask 1041152   ;;  %s12684_s4 = sshll.u32 %s19369_s9, 4  ;;  %s15473_s15 = smov [#allocation8]   ;;  %s20205_s4 = int_to_ptr.vmem [resolvable:$true] %s12684_s4 }
  0x72   : > { %1943 = vrot.lane.b32.xlu1 %v14757_v10, %s15469_s24  ;;  %1941 = vrot.lane.b32.xlu0 %v14758_v11, %s15469_s24  ;;  %v14776_v10 = vld [vmem:[%s15659_s19 + $0x188] sm:$0xff]   ;;  %v8006_v11 = vshrl.u32 %v15788_v59, 16  ;;  %v15884_v58 = vrot.slane %v3101_v42, 1  ;;  %v8013_v40 = vshrl.u32 %v15880_v57, 16  ;;  %vm16542_vm2 = vmand %vm3552_vm8, %vm228_vm3  ;;  %vm4834_vm3 = vcmask 1048320  }
  0x73   : > { %vm16606_vm8 = vmand %vm2161_vm7, %vm1314_vm4 }
  0x74   : > { %vm16689_vm11 = vmand %vm4834_vm3, %vm1314_vm4  ;;  %vm9140_vm4 = vcmask 261127  }
  0x76   : > { %1947 = vrot.lane.b32.xlu1 %v14759_v13, %s15469_s24  ;;  %1945 = vrot.lane.b32.xlu0 %v14760_v14, %s15469_s24  ;;  %v3094_v13 = vshll.u32 %v15791_v60, 16  ;;  %v15819_v14 = vrot.slane %v2779_v0, 1 }
  0x7a   : > { %1951 = vrot.lane.b32.xlu1 %v14761_v15, %s15469_s24  ;;  %1949 = vrot.lane.b32.xlu0 %v14762_v16, %s15469_s24  ;;  %v8009_v15 = vshll.u32 %v15788_v59, 16  ;;  %v15823_v16 = vld [vmem:[%s15659_s19 + $0x18] sm:$0xff]  }
  0x7b   : > { %v6270_v28 = vshll.u32 %v15823_v16, 16  ;;  %v6268_v37 = vshrl.u32 %v15823_v16, 16  ;;  %v14796_v16 = vld [vmem:[%s15659_s19 + $0x1a0] sm:$0xff]  }
  0x7d   : > { %v15867_v45 = vrot.slane %v6270_v28, 1  ;;  %v6602_v28 = vor.u32 %v15807_v6, %v6597_v63 }
  0x7e   : > { %1955 = vrot.lane.b32.xlu1 %v14763_v17, %s15469_s24  ;;  %1953 = vrot.lane.b32.xlu0 %v14764_v18, %s15469_s24  ;;  %v15826_v17 = vld [vmem:[%s15659_s19 + $0x10] sm:$0xff]   ;;  %v4195_v18 = vshrl.u32 %v15799_v1, 16 }
  0x7f   : > { %v2786_v29 = vshll.u32 %v15826_v17, 16  ;;  %v2784_v38 = vshrl.u32 %v15826_v17, 16 }
  0x80   : > { %v15845_v31 = vrot.slane %v4195_v18, 7 }
  0x82   : > { %1959 = vrot.lane.b32.xlu1 %v14765_v21, %s15469_s24  ;;  %1957 = vrot.lane.b32.xlu0 %v14766_v22, %s15469_s24  ;;  %v6606_v21 = vshll.u32 %v15813_v9, 16  ;;  %v15833_v22 = vrot.slane %v8006_v11, 7  ;;  %v230_v11 = vld [vmem:[#allocation2 + $0x18] sm:$0x1]  ;;  %v14822_v9 = vld [vmem:[%s15659_s19 + $0x40] sm:$0xff]  }
  0x84   : > { %v8011_v54 = vor.u32 %v8009_v15, %v15833_v22 }
  0x86   : > { %1963 = vrot.lane.b32.xlu1 %v14767_v23, %s15469_s24  ;;  %1961 = vrot.lane.b32.xlu0 %v14768_v26, %s15469_s24  ;;  %v15835_v23 = vrot.slane %v3094_v13, 1  ;;  %v6595_v26 = vor.u32 %v6594_v44, %v6590_v41  ;;  %v14780_v41 = vld [vmem:[%s15659_s19 + $0x190] sm:$0xff]   ;;  %v2775_v44 = vor.u32 %v15774_v51, %v2770_v50  ;;  %v7701_v50 = vshll.u32 %v15856_v39, 16  ;;  %v236_v51 = vld [vmem:[#allocation2 + $0x48] sm:$0x1] }
  0x87   : > { %v237_v0 = vsel %vm15873_vm5, 0, %v236_v51  ;;  %v14809_v51 = vld [vmem:[%s15659_s19 + $0x18] sm:$0xff]  }
  0x88   : > { %238 = vst [vmem:[#allocation2 + $0x48] sm:$0x1] %v237_v0  ;;  %v233_v0 = vld [vmem:[#allocation2 + $0x30] sm:$0x1]  ;;  %v3097_v15 = vor.u32 %v15835_v23, %v3092_v20 }
  0x8a   : > { %2011 = vrot.lane.b32.xlu1 %v14769_v33, %s15469_s24  ;;  %1965 = vrot.lane.b32.xlu0 %v14770_v36, %s15469_s24  ;;  %v15847_v33 = vrot.slane %v4531_v19, 7  ;;  %v15851_v36 = vrot.slane %v6606_v21, 1  ;;  %v231_v21 = vsel %vm15873_vm5, 0, %v230_v11  ;;  %v858_v11 = vshll.u32 %v14809_v51, 16 }
  0x8b   : > { %232 = vst [vmem:[#allocation2 + $0x18] sm:$0x1] %v231_v21 }
  0x8e   : > { %1969 = vrot.lane.b32.xlu1 %v14771_v43, %s15469_s24  ;;  %1967 = vrot.lane.b32.xlu0 %v14772_v48, %s15469_s24  ;;  %v15861_v43 = vld [vmem:[%s15659_s19 + $0x8] sm:$0xff]   ;;  %v15869_v48 = vrot.slane %v2786_v29, 1  ;;  %v15915_v29 = vrot.slane %v7698_v30, 7  ;;  %v855_v30 = vshrl.u32 %v14809_v51, 16 }
  0x8f   : > { %v4205_v13 = vshll.u32 %v15861_v43, 16  ;;  %v1322_v63 = vld [vmem:[#allocation2 + $0x48] sm:$0xff] }
  0x92   : > { %6790 = vrot.lane.b32.xlu1 %v6588_v61, %s15469_s24  ;;  %6694 = vrot.lane.b32.xlu0 %v6252_v2, %s15469_s24  ;;  %v4202_v61 = vshrl.u32 %v15861_v43, 16  ;;  %v14805_v2 = vld [vmem:[%s15659_s19 + $0x10] sm:$0xff]   ;;  %v16096_v43 = vld [vmem:[%s15659_s19 + $0x1a8] sm:$0xff]  }
  0x93   : > { %v848_v18 = vshrl.u32 %v14805_v2, 16  ;;  %v851_v19 = vshll.u32 %v14805_v2, 16 }
  0x96   : > { %1971 = vrot.lane.b32.xlu1 %v14775_v5, %s15469_s24  ;;  %2013 = vrot.lane.b32.xlu0 %v14776_v10, %s15469_s24  ;;  %v6266_v5 = vor.u32 %v15782_v55, %v6261_v52  ;;  %v3090_v10 = vor.u32 %v15794_v62, %v3085_v56  ;;  %v850_v55 = vrot.slane %v848_v18, 7  ;;  %v14810_v18 = vld [vmem:[%s15659_s19 + $0x8] sm:$0xff]  }
  0x98   : > { %v853_v42 = vor.u32 %v851_v19, %v850_v55  ;;  %v7696_v19 = vor.u32 %v7694_v3, %v15809_v7  ;;  %v1316_v55 = vld [vmem:[#allocation2 + $0x18] sm:$0xff]  ;;  %v15946_v3 = vld [vmem:[%s15659_s19 + $0x1a0] sm:$0xff]   ;;  %v245_v7 = vld [vmem:[#allocation2 + $0x90] sm:$0x1] }
  0x99   : > { %v6613_v60 = vshll.u32 %v15946_v3, 16 }
  0x9a   : > { %6792 = vrot.lane.b32.xlu1 %v6595_v26, %s15469_s24  ;;  %6696 = vrot.lane.b32.xlu0 %v6259_v27, %s15469_s24  ;;  %v14806_v26 = vld [vmem:[%s15659_s19] sm:$0xff]   ;;  %v1323_v21 = vsel %vm15906_vm6, %v853_v42, %v1322_v63  ;;  %v15955_v42 = vrot.slane %v8013_v40, 7 }
  0x9b   : > { %v834_v56 = vshrl.u32 %v14806_v26, 16  ;;  %v837_v62 = vshll.u32 %v14806_v26, 16  ;;  %v239_v27 = vld [vmem:[#allocation2 + $0x60] sm:$0x1]  ;;  %v2782_v26 = vor.u32 %v15819_v14, %v2777_v8  ;;  %1324 = vst [vmem:[#allocation2 + $0x48] sm:$0xff] %v1323_v21 }
  0x9c   : > { %v240_v2 = vsel %vm15873_vm5, 0, %v239_v27  ;;  %v844_v27 = vshll.u32 %v14810_v18, 16  ;;  %v14814_v21 = vld [vmem:[%s15659_s19 + $0x20] sm:$0xff]  }
  0x9d   : > { %241 = vst [vmem:[#allocation2 + $0x60] sm:$0x1] %v240_v2  ;;  %v242_v2 = vld [vmem:[#allocation2 + $0x78] sm:$0x1] }
  0x9e   : > { %3189 = vrot.lane.b32.xlu1 %v2775_v44, %s15471_s20  ;;  %2015 = vrot.lane.b32.xlu0 %v14780_v41, %s15469_s24  ;;  %v15918_v41 = vld [vmem:[%s15659_s19 + $0x188] sm:$0xff]   ;;  %v836_v44 = vrot.slane %v834_v56, 7  ;;  %v857_v56 = vrot.slane %v855_v30, 7  ;;  %v243_v63 = vsel %vm15873_vm5, 0, %v242_v2 }
  0x9f   : > { %v4541_v51 = vshll.u32 %v15918_v41, 16  ;;  %244 = vst [vmem:[#allocation2 + $0x78] sm:$0x1] %v243_v63 }
  0xa0   : > { %v839_v6 = vor.u32 %v837_v62, %v836_v44  ;;  %v841_v62 = vshrl.u32 %v14810_v18, 16  ;;  %v15940_v44 = vrot.slane %v4202_v61, 7  ;;  %v860_v8 = vor.u32 %v858_v11, %v857_v56 }
  0xa1   : > { %v246_v61 = vsel %vm15873_vm5, 0, %v245_v7  ;;  %v862_v56 = vshrl.u32 %v14814_v21, 16  ;;  %v6611_v7 = vshrl.u32 %v15946_v3, 16 }
  0xa2   : > { %6698 = vrot.lane.b32.xlu1 %v6266_v5, %s15469_s24  ;;  %3279 = vrot.lane.b32.xlu0 %v3090_v10, %s15471_s20  ;;  %v234_v5 = vsel %vm15873_vm5, 0, %v233_v0  ;;  %v8016_v10 = vshll.u32 %v15880_v57, 16  ;;  %v1317_v47 = vsel %vm15906_vm6, %v839_v6, %v1316_v55  ;;  %v843_v14 = vrot.slane %v841_v62, 7  ;;  %247 = vst [vmem:[#allocation2 + $0x90] sm:$0x1] %v246_v61  ;;  %v14789_v6 = vld [vmem:[%s15659_s19 + $0x8] sm:$0xff]  }
  0xa3   : > { %235 = vst [vmem:[#allocation2 + $0x30] sm:$0x1] %v234_v5  ;;  %1318 = vst [vmem:[#allocation2 + $0x18] sm:$0xff] %v1317_v47  ;;  %v6277_v0 = vshll.u32 %v15927_v46, 16  ;;  %v15964_v5 = vld [vmem:[%s15659_s19 + $0x18] sm:$0xff]   ;;  %v865_v62 = vshll.u32 %v14814_v21, 16 }
  0xa4   : > { %v846_v22 = vor.u32 %v844_v27, %v843_v14  ;;  %v1325_v11 = vld [vmem:[#allocation2 + $0x60] sm:$0xff]  ;;  %v4200_v27 = vor.u32 %v4198_v24, %v15845_v31  ;;  %v864_v14 = vrot.slane %v862_v56, 7  ;;  %v7705_v2 = vshrl.u32 %v15964_v5, 16  ;;  %v16015_v21 = vld [vmem:[%s15659_s19 + $0x198] sm:$0xff]  }
  0xa5   : > { %v1326_v20 = vsel %vm15906_vm6, %v860_v8, %v1325_v11  ;;  %v15994_v47 = vrot.slane %v6277_v0, 1  ;;  %v14791_v8 = vld [vmem:[%s15659_s19 + $0x188] sm:$0xff]   ;;  %v7708_v1 = vshll.u32 %v15964_v5, 16  ;;  %v14818_v0 = vld [vmem:[%s15659_s19 + $0x30] sm:$0xff]  }
  0xa6   : > { %2017 = vrot.lane.b32.xlu1 %v14783_v32, %s15469_s24  ;;  %6794 = vrot.lane.b32.xlu0 %v6602_v28, %s15469_s24  ;;  %v4538_v32 = vshrl.u32 %v15918_v41, 16  ;;  %v14813_v28 = vld [vmem:[%s15659_s19 + $0x28] sm:$0xff]   ;;  %1327 = vst [vmem:[#allocation2 + $0x60] sm:$0xff] %v1326_v20  ;;  %v16021_v56 = vrot.slane %v7705_v2, 7 }
  0xa7   : > { %v869_v59 = vshrl.u32 %v14813_v28, 16  ;;  %v872_v40 = vshll.u32 %v14813_v28, 16  ;;  %v251_v28 = vld [vmem:[#allocation2 + $0xc0] sm:$0x1]  ;;  %v248_v11 = vld [vmem:[#allocation2 + $0xa8] sm:$0x1] }
  0xa8   : > { %v15969_v30 = vrot.slane %v4538_v32, 7  ;;  %v6275_v32 = vshrl.u32 %v15927_v46, 16  ;;  %v252_v61 = vsel %vm15873_vm5, 0, %v251_v28  ;;  %v14821_v28 = vld [vmem:[%s15659_s19 + $0x48] sm:$0xff]  }
  0xa9   : > { %v1331_v24 = vld [vmem:[#allocation2 + $0x90] sm:$0xff]  ;;  %253 = vst [vmem:[#allocation2 + $0xc0] sm:$0x1] %v252_v61  ;;  %v8020_v61 = vshrl.u32 %v16015_v21, 16 }
  0xaa   : > { %8110 = vrot.lane.b32.xlu1 %v7696_v19, %s15471_s20  ;;  %3191 = vrot.lane.b32.xlu0 %v2782_v26, %s15471_s20  ;;  %v1319_v18 = vld [vmem:[#allocation2 + $0x30] sm:$0xff]  ;;  %v871_v19 = vrot.slane %v869_v59, 7  ;;  %v15978_v26 = vld [vmem:[%s15659_s19 + $0x18] sm:$0xff]   ;;  %v16001_v59 = vrot.slane %v6613_v60, 1  ;;  %v249_v60 = vsel %vm15873_vm5, 0, %v248_v11  ;;  %v890_v11 = vshrl.u32 %v14822_v9, 16 }
  0xab   : > { %v1320_v23 = vsel %vm15906_vm6, %v846_v22, %v1319_v18  ;;  %v4536_v18 = vor.u32 %v4534_v34, %v15847_v33  ;;  %250 = vst [vmem:[#allocation2 + $0xa8] sm:$0x1] %v249_v60  ;;  %v2791_v4 = vshrl.u32 %v15978_v26, 16  ;;  %v6609_v34 = vor.u32 %v15851_v36, %v6604_v35  ;;  %v16040_v35 = vld [vmem:[%s15659_s19 + $0x198] sm:$0xff]  }
  0xac   : > { %1321 = vst [vmem:[#allocation2 + $0x30] sm:$0xff] %v1320_v23  ;;  %v874_v55 = vor.u32 %v872_v40, %v871_v19  ;;  %v867_v40 = vor.u32 %v865_v62, %v864_v14  ;;  %v1328_v19 = vld [vmem:[#allocation2 + $0x78] sm:$0xff]  ;;  %v876_v23 = vshrl.u32 %v14818_v0, 16  ;;  %v3108_v60 = vshll.u32 %v16040_v35, 16 }
  0xad   : > { %v4543_v57 = vor.u32 %v4541_v51, %v15969_v30  ;;  %v6618_v51 = vshrl.u32 %v16096_v43, 16 }
  0xae   : > { %8200 = vrot.lane.b32.xlu1 %v8011_v54, %s15471_s20  ;;  %3281 = vrot.lane.b32.xlu0 %v3097_v15, %s15471_s20  ;;  %v14817_v54 = vld [vmem:[%s15659_s19 + $0x38] sm:$0xff]   ;;  %v2793_v15 = vshll.u32 %v15978_v26, 16  ;;  %v1332_v22 = vsel %vm15906_vm6, %v874_v55, %v1331_v24  ;;  %v1329_v20 = vsel %vm15906_vm6, %v867_v40, %v1328_v19  ;;  %v879_v55 = vshll.u32 %v14818_v0, 16  ;;  %v16053_v40 = vld [vmem:[%s15659_s19 + $0x10] sm:$0xff]  }
  0xaf   : > { %v883_v31 = vshrl.u32 %v14817_v54, 16  ;;  %v886_v63 = vshll.u32 %v14817_v54, 16  ;;  %1333 = vst [vmem:[#allocation2 + $0x90] sm:$0xff] %v1332_v22  ;;  %1330 = vst [vmem:[#allocation2 + $0x78] sm:$0xff] %v1329_v20  ;;  %v878_v62 = vrot.slane %v876_v23, 7  ;;  %v6273_v54 = vor.u32 %v15867_v45, %v6268_v37  ;;  %v16062_v23 = vld [vmem:[%s15659_s19 + $0x190] sm:$0xff]  }
  0xb0   : > { %v16033_v14 = vrot.slane %v2793_v15, 1  ;;  %v1337_v36 = vld [vmem:[#allocation2 + $0xc0] sm:$0xff]  ;;  %v897_v24 = vshrl.u32 %v14821_v28, 16  ;;  %v254_v0 = vld [vmem:[#allocation2 + $0xd8] sm:$0x1]  ;;  %v8023_v37 = vshll.u32 %v16015_v21, 16  ;;  %v2789_v22 = vor.u32 %v15869_v48, %v2784_v38 }
  0xb1   : > { %v881_v2 = vor.u32 %v879_v55, %v878_v62  ;;  %v255_v15 = vsel %vm15873_vm5, 0, %v254_v0  ;;  %v16056_v19 = vrot.slane %v8020_v61, 7  ;;  %v892_v48 = vrot.slane %v890_v11, 7  ;;  %v263_v20 = vld [vmem:[#allocation2 + $0x120] sm:$0x1]  ;;  %v14819_v21 = vld [vmem:[%s15659_s19 + $0x18] sm:$0xff]  }
  0xb2   : > { %8896 = vrot.lane.b32.xlu1 %v14789_v6, %s15472_s22  ;;  %4642 = vrot.lane.b32.xlu0 %v4200_v27, %s15472_s22  ;;  %v885_v6 = vrot.slane %v883_v31, 7  ;;  %v257_v27 = vld [vmem:[#allocation2 + $0xf0] sm:$0x1]  ;;  %v900_v31 = vshll.u32 %v14821_v28, 16  ;;  %256 = vst [vmem:[#allocation2 + $0xd8] sm:$0x1] %v255_v15  ;;  %v8018_v15 = vor.u32 %v8016_v10, %v15955_v42 }
  0xb3   : > { %v264_v55 = vsel %vm15873_vm5, 0, %v263_v20  ;;  %v260_v28 = vld [vmem:[#allocation2 + $0x108] sm:$0x1]  ;;  %v4209_v61 = vshrl.u32 %v16053_v40, 16  ;;  %v4545_v0 = vshrl.u32 %v16062_v23, 16  ;;  %v4212_v11 = vshll.u32 %v16053_v40, 16 }
  0xb4   : > { %v888_v33 = vor.u32 %v886_v63, %v885_v6  ;;  %v899_v63 = vrot.slane %v897_v24, 7  ;;  %v1334_v6 = vld [vmem:[#allocation2 + $0xa8] sm:$0xff]  ;;  %265 = vst [vmem:[#allocation2 + $0x120] sm:$0x1] %v264_v55  ;;  %v261_v25 = vsel %vm15873_vm5, 0, %v260_v28  ;;  %v4207_v24 = vor.u32 %v4205_v13, %v15940_v44 }
  0xb5   : > { %v1335_v17 = vsel %vm15906_vm6, %v881_v2, %v1334_v6  ;;  %262 = vst [vmem:[#allocation2 + $0x108] sm:$0x1] %v261_v25  ;;  %v16082_v2 = vrot.slane %v3108_v60, 1  ;;  %v16099_v13 = vld [vmem:[%s15659_s19 + $0x28] sm:$0xff]   ;;  %v14830_v60 = vld [vmem:[%s15659_s19 + $0x60] sm:$0xff]   ;;  %v4548_v10 = vshll.u32 %v16062_v23, 16 }
  0xb6   : > { %8986 = vrot.lane.b32.xlu1 %v14791_v8, %s15472_s22  ;;  %4738 = vrot.lane.b32.xlu0 %v4536_v18, %s15472_s22  ;;  %v258_v8 = vsel %vm15873_vm5, 0, %v257_v27  ;;  %v1338_v45 = vsel %vm15906_vm6, %v888_v33, %v1337_v36  ;;  %v893_v18 = vshll.u32 %v14822_v9, 16  ;;  %v902_v38 = vor.u32 %v900_v31, %v899_v63  ;;  %1336 = vst [vmem:[#allocation2 + $0xa8] sm:$0xff] %v1335_v17  ;;  %v14825_v27 = vld [vmem:[%s15659_s19 + $0x58] sm:$0xff]   ;;  %v14826_v9 = vld [vmem:[%s15659_s19 + $0x50] sm:$0xff]  }
  0xb7   : > { %259 = vst [vmem:[#allocation2 + $0xf0] sm:$0x1] %v258_v8  ;;  %1339 = vst [vmem:[#allocation2 + $0xc0] sm:$0xff] %v1338_v45  ;;  %v3104_v33 = vor.u32 %v15884_v58, %v3099_v53  ;;  %v911_v58 = vshrl.u32 %v14825_v27, 16  ;;  %v914_v36 = vshll.u32 %v14825_v27, 16  ;;  %v16103_v63 = vrot.slane %v4209_v61, 7 }
  0xb8   : > { %v895_v62 = vor.u32 %v893_v18, %v892_v48  ;;  %v269_v45 = vld [vmem:[#allocation2 + $0x150] sm:$0x1]  ;;  %v14829_v6 = vld [vmem:[%s15659_s19 + $0x68] sm:$0xff]   ;;  %v16114_v20 = vrot.slane %v4545_v0, 7  ;;  %v918_v27 = vshrl.u32 %v14830_v60, 16  ;;  %v921_v61 = vshll.u32 %v14830_v60, 16 }
  0xb9   : > { %v1340_v39 = vld [vmem:[#allocation2 + $0xd8] sm:$0xff]  ;;  %v270_v44 = vsel %vm15873_vm5, 0, %v269_v45  ;;  %v14802_v48 = vld [vmem:[%s15659_s19 + $0x10] sm:$0xff]   ;;  %v6620_v25 = vshll.u32 %v16096_v43, 16  ;;  %v14807_v45 = vld [vmem:[%s15659_s19 + $0x1a8] sm:$0xff]   ;;  %v6616_v60 = vor.u32 %v16001_v59, %v6611_v7 }
  0xba   : > { %6796 = vrot.lane.b32.xlu1 %v6609_v34, %s15469_s24  ;;  %6700 = vrot.lane.b32.xlu0 %v6273_v54, %s15469_s24  ;;  %v3106_v34 = vshrl.u32 %v16040_v35, 16  ;;  %v7703_v54 = vor.u32 %v7701_v50, %v15915_v29  ;;  %v904_v50 = vshrl.u32 %v14826_v9, 16  ;;  %v907_v29 = vshll.u32 %v14826_v9, 16  ;;  %271 = vst [vmem:[#allocation2 + $0x150] sm:$0x1] %v270_v44  ;;  %v14834_v44 = vld [vmem:[%s15659_s19 + $0x70] sm:$0xff]  }
  0xbb   : > { %v1341_v31 = vsel %vm15906_vm6, %v895_v62, %v1340_v39  ;;  %v1349_v42 = vld [vmem:[#allocation2 + $0x120] sm:$0xff]  ;;  %v928_v62 = vshll.u32 %v14829_v6, 16  ;;  %v6284_v9 = vshll.u32 %v16099_v13, 16 }
  0xbc   : > { %1342 = vst [vmem:[#allocation2 + $0xd8] sm:$0xff] %v1341_v31  ;;  %v1346_v41 = vld [vmem:[#allocation2 + $0x108] sm:$0xff] }
  0xbe   : > { %3193 = vrot.lane.b32.xlu1 %v2789_v22, %s15471_s20  ;;  %2019 = vrot.lane.b32.xlu0 %v14796_v16, %s15469_s24  ;;  %v1343_v8 = vld [vmem:[#allocation2 + $0xf0] sm:$0xff]  ;;  %v913_v16 = vrot.slane %v911_v58, 7  ;;  %v906_v22 = vrot.slane %v904_v50, 7  ;;  %v14833_v58 = vld [vmem:[%s15659_s19 + $0x80] sm:$0xff]   ;;  %v275_v50 = vld [vmem:[#allocation2 + $0x198] sm:$0x1] }
  0xbf   : > { %v1344_v53 = vsel %vm15906_vm6, %v902_v38, %v1343_v8  ;;  %v266_v38 = vld [vmem:[#allocation2 + $0x138] sm:$0x1]  ;;  %v14804_v8 = vld [vmem:[%s15659_s19 + $0x190] sm:$0xff]   ;;  %v276_v31 = vsel %vm15873_vm5, 0, %v275_v50  ;;  %v939_v0 = vshrl.u32 %v14833_v58, 16 }
  0xc0   : > { %1345 = vst [vmem:[#allocation2 + $0xf0] sm:$0xff] %v1344_v53  ;;  %v916_v18 = vor.u32 %v914_v36, %v913_v16  ;;  %v909_v17 = vor.u32 %v907_v29, %v906_v22  ;;  %v267_v30 = vsel %vm15873_vm5, 0, %v266_v38  ;;  %v920_v53 = vrot.slane %v918_v27, 7  ;;  %v272_v16 = vld [vmem:[#allocation2 + $0x168] sm:$0x1]  ;;  %v16154_v38 = vld [vmem:[%s15659_s19 + $0x20] sm:$0xff]  }
  0xc1   : > { %268 = vst [vmem:[#allocation2 + $0x138] sm:$0x1] %v267_v30  ;;  %v6280_v36 = vor.u32 %v15994_v47, %v6275_v32  ;;  %v1355_v29 = vld [vmem:[#allocation2 + $0x150] sm:$0xff]  ;;  %277 = vst [vmem:[#allocation2 + $0x198] sm:$0x1] %v276_v31  ;;  %v942_v47 = vshll.u32 %v14833_v58, 16 }
  0xc2   : > { %3283 = vrot.lane.b32.xlu1 %v3104_v33, %s15471_s20  ;;  %8112 = vrot.lane.b32.xlu0 %v7703_v54, %s15471_s20  ;;  %v1350_v55 = vsel %vm15906_vm6, %v916_v18, %v1349_v42  ;;  %v925_v33 = vshrl.u32 %v14829_v6, 16  ;;  %v1347_v28 = vsel %vm15906_vm6, %v909_v17, %v1346_v41  ;;  %v923_v32 = vor.u32 %v921_v61, %v920_v53  ;;  %v16147_v6 = vld [vmem:[%s15659_s19 + $0x1a0] sm:$0xff]   ;;  %v14838_v27 = vld [vmem:[%s15659_s19 + $0x90] sm:$0xff]  }
  0xc3   : > { %1351 = vst [vmem:[#allocation2 + $0x120] sm:$0xff] %v1350_v55  ;;  %1348 = vst [vmem:[#allocation2 + $0x108] sm:$0xff] %v1347_v28  ;;  %v941_v22 = vrot.slane %v939_v0, 7  ;;  %v6282_v18 = vshrl.u32 %v16099_v13, 16  ;;  %v932_v42 = vshrl.u32 %v14834_v44, 16  ;;  %v935_v17 = vshll.u32 %v14834_v44, 16 }
  0xc4   : > { %v927_v54 = vrot.slane %v925_v33, 7  ;;  %v16156_v55 = vrot.slane %v6620_v25, 1  ;;  %v16158_v33 = vrot.slane %v6284_v9, 1  ;;  %v14837_v30 = vld [vmem:[#allocation6] sm:$0xff]   ;;  %v14839_v61 = vld [vmem:[%s15659_s19 + $0x88] sm:$0xff]   ;;  %v2796_v25 = vor.u32 %v16033_v14, %v2791_v4 }
  0xc5   : > { %v944_v41 = vor.u32 %v942_v47, %v941_v22  ;;  %v934_v28 = vrot.slane %v932_v42, 7  ;;  %v3115_v9 = vshll.u32 %v16147_v6, 16  ;;  %10939 = vmatpush1.bf16.msra.mxu0 %v14837_v30  ;;  %v953_v50 = vshrl.u32 %v14838_v27, 16  ;;  %14651 = vmatpush1.bf16.msra.mxu1 %v14837_v30  ;;  %v16201_v47 = vld [vmem:[%s15659_s19 + $0x18] sm:$0xff]  }
  0xc6   : > { %4644 = vrot.lane.b32.xlu1 %v4207_v24, %s15472_s22  ;;  %8202 = vrot.lane.b32.xlu0 %v8018_v15, %s15471_s20  ;;  %v930_v39 = vor.u32 %v928_v62, %v927_v54  ;;  %v16134_v24 = vld [vmem:[%s15659_s19 + $0x20] sm:$0xff]   ;;  %v273_v15 = vsel %vm15873_vm5, 0, %v272_v16  ;;  %v281_v54 = vld [vmem:[#allocation2 + $0x1c8] sm:$0x1]  ;;  %v956_v5 = vshll.u32 %v14838_v27, 16  ;;  %v16221_v27 = vld [vmem:[%s15659_s19 + $0x98] sm:$0xff]  }
  0xc7   : > { %274 = vst [vmem:[#allocation2 + $0x168] sm:$0x1] %v273_v15  ;;  %v2798_v7 = vshrl.u32 %v16134_v24, 16  ;;  %v2800_v59 = vshll.u32 %v16134_v24, 16  ;;  %v282_v53 = vsel %vm15873_vm5, 0, %v281_v54  ;;  %10940 = vmatprep.subr.bf16.mxu0 %v20267_v12  ;;  %v955_v16 = vrot.slane %v953_v50, 7  ;;  %14636 = vmatprep.subr.bf16.mxu1 %v20267_v12 }
  0xc8   : > { %v1356_v46 = vsel %vm15906_vm6, %v930_v39, %v1355_v29  ;;  %v1361_v58 = vld [vmem:[#allocation2 + $0x198] sm:$0xff]  ;;  %v7712_v39 = vshrl.u32 %v16154_v38, 16  ;;  %283 = vst [vmem:[#allocation2 + $0x1c8] sm:$0x1] %v282_v53  ;;  %v3111_v15 = vor.u32 %v16082_v2, %v3106_v34  ;;  %v16216_v2 = vrot.slane %v3115_v9, 1  ;;  %v16236_v53 = vld [vmem:[%s15659_s19 + $0x1a0] sm:$0xff]  }
  0xc9   : > { %1357 = vst [vmem:[#allocation2 + $0x150] sm:$0xff] %v1356_v46  ;;  %v8025_v46 = vor.u32 %v8023_v37, %v16056_v19  ;;  %v16207_v22 = vrot.slane %v2800_v59, 1  ;;  %v958_v44 = vor.u32 %v956_v5, %v955_v16  ;;  %v3113_v37 = vshrl.u32 %v16147_v6, 16  ;;  %v287_v54 = vld [vmem:[#allocation2 + $0x1f8] sm:$0x1]  ;;  %v14832_v24 = vld [vmem:[%s15659_s19 + $0x1b0] sm:$0xff]  }
  0xca   : > { %4740 = vrot.lane.b32.xlu1 %v4543_v57, %s15472_s22  ;;  %8898 = vrot.lane.b32.xlu0 %v14802_v48, %s15472_s22  ;;  %v1352_v57 = vld [vmem:[#allocation2 + $0x138] sm:$0xff]  ;;  %v7715_v19 = vshll.u32 %v16154_v38, 16  ;;  %v4219_v9 = vshll.u32 %v16201_v47, 16  ;;  %v8030_v23 = vshll.u32 %v16236_v53, 16 }
  0xcb   : > { %v1353_v62 = vsel %vm15906_vm6, %v923_v32, %v1352_v57  ;;  %v949_v32 = vshll.u32 %v14839_v61, 16  ;;  %v14823_v50 = vld [vmem:[%s15659_s19 + $0x198] sm:$0xff]  }
  0xcc   : > { %1354 = vst [vmem:[#allocation2 + $0x138] sm:$0xff] %v1353_v62 }
  0xce   : > { %6702 = vrot.lane.b32.xlu1 %v6280_v36, %s15469_s24  ;;  %8988 = vrot.lane.b32.xlu0 %v14804_v8, %s15472_s22  ;;  %v7710_v8 = vor.u32 %v7708_v1, %v16021_v56  ;;  %v937_v36 = vor.u32 %v935_v17, %v934_v28  ;;  %v278_v1 = vld [vmem:[#allocation2 + $0x1b0] sm:$0x1]  ;;  %v1362_v56 = vsel %vm15906_vm6, %v944_v41, %v1361_v58  ;;  %v1358_v4 = vld [vmem:[#allocation2 + $0x168] sm:$0xff]  ;;  %v16218_v41 = vrot.slane %v7712_v39, 7 }
  0xcf   : > { %v279_v14 = vsel %vm15873_vm5, 0, %v278_v1  ;;  %1363 = vst [vmem:[#allocation2 + $0x198] sm:$0xff] %v1362_v56  ;;  %v14842_v17 = vld [vmem:[#allocation6 + $0x8] sm:$0xff]   ;;  %v4216_v28 = vshrl.u32 %v16201_v47, 16  ;;  %v288_v58 = vsel %vm15873_vm5, 0, %v287_v54  ;;  %v2803_v54 = vor.u32 %v16207_v22, %v2798_v7 }
  0xd0   : > { %v1926_v48 = vpop.permute.xlu1 %1925  ;;  %v1922_v3 = vpop.permute.xlu0 %1921  ;;  %v1359_v0 = vsel %vm15906_vm6, %v937_v36, %v1358_v4  ;;  %280 = vst [vmem:[#allocation2 + $0x1b0] sm:$0x1] %v279_v14  ;;  %v1367_v59 = vld [vmem:[#allocation2 + $0x1c8] sm:$0xff]  ;;  %10941 = vmatpush1.bf16.msra.mxu0 %v14842_v17  ;;  %289 = vst [vmem:[#allocation2 + $0x1f8] sm:$0x1] %v288_v58  ;;  %14652 = vmatpush1.bf16.msra.mxu1 %v14842_v17 }
  0xd1   : > { %2103 = vst.msk [vmem:[#allocation2 + $0x48] sm:$0xff] %vm20266_vm1, %v1926_v48  ;;  %2101 = vst.msk [vmem:[#allocation2 + $0x18] sm:$0xff] %vm20266_vm1, %v1922_v3  ;;  %v14843_v48 = vld [vmem:[%s15659_s19 + $0xa0] sm:$0xff]   ;;  %10942 = vmatprep.subr.bf16.mxu0 %v20267_v12  ;;  %14637 = vmatprep.subr.bf16.mxu1 %v20267_v12  ;;  %v16266_v17 = vrot.slane %v4216_v28, 7 }
  0xd2   : > { %2021 = vrot.lane.b32.xlu1 %v14807_v45, %s15469_s24  ;;  %6798 = vrot.lane.b32.xlu0 %v6616_v60, %s15469_s24  ;;  %v946_v45 = vshrl.u32 %v14839_v61, 16  ;;  %1360 = vst [vmem:[#allocation2 + $0x168] sm:$0xff] %v1359_v0  ;;  %v967_v61 = vshrl.u32 %v14843_v48, 16  ;;  %v284_v14 = vld [vmem:[#allocation2 + $0x1e0] sm:$0x1] }
  0xd3   : > { %v285_v16 = vsel %vm15873_vm5, 0, %v284_v14 }
  0xd4   : > { %v1928_v26 = vpop.permute.xlu1 %1927  ;;  %v1924_v31 = vpop.permute.xlu0 %1923  ;;  %v948_v60 = vrot.slane %v946_v45, 7  ;;  %v969_v40 = vrot.slane %v967_v61, 7  ;;  %v4550_v45 = vor.u32 %v4548_v10, %v16114_v20  ;;  %286 = vst [vmem:[#allocation2 + $0x1e0] sm:$0x1] %v285_v16  ;;  %v6623_v20 = vor.u32 %v16156_v55, %v6618_v51  ;;  %v14848_v55 = vld [vmem:[%s15659_s19 + $0xb0] sm:$0xff]  }
  0xd5   : > { %2104 = vst.msk [vmem:[#allocation2 + $0x60] sm:$0xff] %vm20266_vm1, %v1928_v26  ;;  %2102 = vst.msk [vmem:[#allocation2 + $0x30] sm:$0xff] %vm20266_vm1, %v1924_v31  ;;  %v963_v31 = vshll.u32 %v16221_v27, 16  ;;  %v290_v61 = vld [vmem:[#allocation2 + $0x210] sm:$0x1]  ;;  %v981_v7 = vshrl.u32 %v14848_v55, 16 }
  0xd6   : > { %8114 = vrot.lane.b32.xlu1 %v7710_v8, %s15471_s20  ;;  %3195 = vrot.lane.b32.xlu0 %v2796_v25, %s15471_s20  ;;  %v951_v30 = vor.u32 %v949_v32, %v948_v60  ;;  %v4214_v8 = vor.u32 %v4212_v11, %v16103_v63  ;;  %v1368_v25 = vsel %vm15906_vm6, %v958_v44, %v1367_v59  ;;  %v970_v63 = vshll.u32 %v14843_v48, 16  ;;  %v16261_v32 = vld [vmem:[%s15659_s19 + $0x198] sm:$0xff]  }
  0xd7   : > { %1369 = vst [vmem:[#allocation2 + $0x1c8] sm:$0xff] %v1368_v25  ;;  %v1364_v5 = vld [vmem:[#allocation2 + $0x1b0] sm:$0xff]  ;;  %v960_v11 = vshrl.u32 %v16221_v27, 16  ;;  %v8027_v48 = vshrl.u32 %v16236_v53, 16  ;;  %v4552_v27 = vshrl.u32 %v16261_v32, 16  ;;  %v984_v22 = vshll.u32 %v14848_v55, 16 }
  0xd8   : > { %v2175_v57 = vld [vmem:[#allocation2 + $0x48] sm:$0x80]  ;;  %v1932_v42 = vpop.permute.xlu1 %1931  ;;  %v2169_v35 = vld [vmem:[#allocation2 + $0x18] sm:$0x80]  ;;  %v1930_v34 = vpop.permute.xlu0 %1929  ;;  %v1365_v4 = vsel %vm15906_vm6, %v951_v30, %v1364_v5  ;;  %v972_v60 = vor.u32 %v970_v63, %v969_v40 }
  0xd9   : > { %v2176_v62 = vsel %vm16187_vm10, 0, %v2175_v57  ;;  %2106 = vst.msk [vmem:[#allocation2 + $0x90] sm:$0xff] %vm20266_vm1, %v1932_v42  ;;  %v2170_v3 = vsel %vm16187_vm10, 0, %v2169_v35  ;;  %2105 = vst.msk [vmem:[#allocation2 + $0x78] sm:$0xff] %vm20266_vm1, %v1930_v34  ;;  %v6287_v35 = vor.u32 %v16158_v33, %v6282_v18  ;;  %v1373_v34 = vld [vmem:[#allocation2 + $0x1f8] sm:$0xff]  ;;  %v8029_v16 = vrot.slane %v8027_v48, 7 }
  0xda   : > { %2177 = vst [vmem:[#allocation2 + $0x48] sm:$0x80] %v2176_v62  ;;  %8204 = vrot.lane.b32.xlu1 %v8025_v46, %s15471_s20  ;;  %2171 = vst [vmem:[#allocation2 + $0x18] sm:$0x80] %v2170_v3  ;;  %3285 = vrot.lane.b32.xlu0 %v3111_v15, %s15471_s20  ;;  %v962_v46 = vrot.slane %v960_v11, 7  ;;  %v14847_v62 = vld [vmem:[#allocation6 + $0x10] sm:$0xff]   ;;  %v1374_v43 = vsel %vm15906_vm6, %v972_v60, %v1373_v34 }
  0xdb   : > { %1366 = vst [vmem:[#allocation2 + $0x1b0] sm:$0xff] %v1365_v4  ;;  %v293_v3 = vld [vmem:[#allocation2 + $0x228] sm:$0x1]  ;;  %10943 = vmatpush1.bf16.msra.mxu0 %v14847_v62  ;;  %14653 = vmatpush1.bf16.msra.mxu1 %v14847_v62  ;;  %1375 = vst [vmem:[#allocation2 + $0x1f8] sm:$0xff] %v1374_v43  ;;  %v1370_v58 = vld [vmem:[#allocation2 + $0x1e0] sm:$0xff]  ;;  %v983_v11 = vrot.slane %v981_v7, 7  ;;  %v4221_v62 = vor.u32 %v4219_v9, %v16266_v17 }
  0xdc   : > { %v2178_v36 = vld [vmem:[#allocation2 + $0x60] sm:$0x80]  ;;  %v1936_v39 = vpop.permute.xlu1 %1935  ;;  %v2172_v26 = vld [vmem:[#allocation2 + $0x30] sm:$0x80]  ;;  %v1934_v56 = vpop.permute.xlu0 %1933  ;;  %v965_v30 = vor.u32 %v963_v31, %v962_v46  ;;  %v294_v51 = vsel %vm15873_vm5, 0, %v293_v3  ;;  %10944 = vmatprep.subr.bf16.mxu0 %v20267_v12  ;;  %14638 = vmatprep.subr.bf16.mxu1 %v20267_v12  ;;  %v7717_v46 = vor.u32 %v7715_v19, %v16218_v41 }
  0xdd   : > { %v2179_v1 = vsel %vm16187_vm10, 0, %v2178_v36  ;;  %2108 = vst.msk [vmem:[#allocation2 + $0xc0] sm:$0xff] %vm20266_vm1, %v1936_v39  ;;  %v2173_v0 = vsel %vm16187_vm10, 0, %v2172_v26  ;;  %2107 = vst.msk [vmem:[#allocation2 + $0xa8] sm:$0xff] %vm20266_vm1, %v1934_v56  ;;  %v291_v36 = vsel %vm15873_vm5, 0, %v290_v61 }
  0xde   : > { %2180 = vst [vmem:[#allocation2 + $0x60] sm:$0x80] %v2179_v1  ;;  %8900 = vrot.lane.b32.xlu1 %v14819_v21, %s15472_s22  ;;  %2174 = vst [vmem:[#allocation2 + $0x30] sm:$0x80] %v2173_v0  ;;  %4646 = vrot.lane.b32.xlu0 %v4214_v8, %s15472_s22  ;;  %v14849_v8 = vld [vmem:[%s15659_s19 + $0xa8] sm:$0xff]   ;;  %v1371_v39 = vsel %vm15906_vm6, %v965_v30, %v1370_v58  ;;  %v16307_v1 = vld [vmem:[%s15659_s19 + $0x30] sm:$0xff]   ;;  %v3118_v0 = vor.u32 %v16216_v2, %v3113_v37 }
  0xdf   : > { %295 = vst [vmem:[#allocation2 + $0x228] sm:$0x1] %v294_v51  ;;  %292 = vst [vmem:[#allocation2 + $0x210] sm:$0x1] %v291_v36  ;;  %v977_v5 = vshll.u32 %v14849_v8, 16  ;;  %v6289_v37 = vshrl.u32 %v16307_v1, 16 }
  0xe0   : > { %v2184_v15 = vld [vmem:[#allocation2 + $0x90] sm:$0x80]  ;;  %v1940_v44 = vpop.permute.xlu1 %1939  ;;  %v2181_v42 = vld [vmem:[#allocation2 + $0x78] sm:$0x80]  ;;  %v1938_v21 = vpop.permute.xlu0 %1937  ;;  %1372 = vst [vmem:[#allocation2 + $0x1e0] sm:$0xff] %v1371_v39  ;;  %v6291_v2 = vshll.u32 %v16307_v1, 16 }
  0xe1   : > { %v2185_v57 = vsel %vm16187_vm10, 0, %v2184_v15  ;;  %2110 = vst.msk [vmem:[#allocation2 + $0xf0] sm:$0xff] %vm20266_vm1, %v1940_v44  ;;  %v2182_v10 = vsel %vm16187_vm10, 0, %v2181_v42  ;;  %2109 = vst.msk [vmem:[#allocation2 + $0xd8] sm:$0xff] %vm20266_vm1, %v1938_v21  ;;  %v4554_v15 = vrot.slane %v4552_v27, 7  ;;  %v4555_v44 = vshll.u32 %v16261_v32, 16 }
  0xe2   : > { %2186 = vst [vmem:[#allocation2 + $0x90] sm:$0x80] %v2185_v57  ;;  %8990 = vrot.lane.b32.xlu1 %v14823_v50, %s15472_s22  ;;  %2183 = vst [vmem:[#allocation2 + $0x78] sm:$0x80] %v2182_v10  ;;  %4742 = vrot.lane.b32.xlu0 %v4550_v45, %s15472_s22  ;;  %v974_v50 = vshrl.u32 %v14849_v8, 16  ;;  %v986_v45 = vor.u32 %v984_v22, %v983_v11  ;;  %v14852_v21 = vld [vmem:[#allocation6 + $0x18] sm:$0xff]   ;;  %v8032_v27 = vor.u32 %v8030_v23, %v8029_v16 }
  0xe3   : > { %v365_v41 = vld [vmem:[#allocation2 + $0x498] sm:$0x1]  ;;  %v14853_v32 = vld [vmem:[%s15659_s19 + $0x180] sm:$0xff]   ;;  %10945 = vmatpush1.bf16.msra.mxu0 %v14852_v21  ;;  %14654 = vmatpush1.bf16.msra.mxu1 %v14852_v21  ;;  %v6293_v61 = vrot.slane %v6291_v2, 1  ;;  %v14856_v22 = vld [vmem:[%s15659_s19 + $0x1b0] sm:$0xff]  }
  0xe4   : > { %v2190_v59 = vld [vmem:[#allocation2 + $0xc0] sm:$0x80]  ;;  %v1944_v28 = vpop.permute.xlu1 %1943  ;;  %v2187_v18 = vld [vmem:[#allocation2 + $0xa8] sm:$0x80]  ;;  %v1942_v33 = vpop.permute.xlu0 %1941  ;;  %v976_v14 = vrot.slane %v974_v50, 7  ;;  %v366_v34 = vsel %vm15873_vm5, 0, %v365_v41  ;;  %10946 = vmatprep.subr.bf16.mxu0 %v20267_v12  ;;  %14639 = vmatprep.subr.bf16.mxu1 %v20267_v12 }
  0xe5   : > { %v2191_v13 = vsel %vm16187_vm10, 0, %v2190_v59  ;;  %2112 = vst.msk [vmem:[#allocation2 + $0x120] sm:$0xff] %vm20266_vm1, %v1944_v28  ;;  %v2188_v25 = vsel %vm16187_vm10, 0, %v2187_v18  ;;  %2111 = vst.msk [vmem:[#allocation2 + $0x108] sm:$0xff] %vm20266_vm1, %v1942_v33  ;;  %v14854_v30 = vld [vmem:[%s15659_s19 + $0xb8] sm:$0xff]   ;;  %v1149_v47 = vshrl.u32 %v14853_v32, 16 }
  0xe6   : > { %2192 = vst [vmem:[#allocation2 + $0xc0] sm:$0x80] %v2191_v13  ;;  %6800 = vrot.lane.b32.xlu1 %v6623_v20, %s15469_s24  ;;  %2189 = vst [vmem:[#allocation2 + $0xa8] sm:$0x80] %v2188_v25  ;;  %6704 = vrot.lane.b32.xlu0 %v6287_v35, %s15469_s24  ;;  %v979_v60 = vor.u32 %v977_v5, %v976_v14  ;;  %v1379_v42 = vld [vmem:[#allocation2 + $0x228] sm:$0xff]  ;;  %v1376_v35 = vld [vmem:[#allocation2 + $0x210] sm:$0xff]  ;;  %v4557_v13 = vor.u32 %v4555_v44, %v4554_v15 }
  0xe7   : > { %v1380_v19 = vsel %vm15906_vm6, %v986_v45, %v1379_v42  ;;  %367 = vst [vmem:[#allocation2 + $0x498] sm:$0x1] %v366_v34  ;;  %v1152_v9 = vshll.u32 %v14853_v32, 16  ;;  %v296_v17 = vld [vmem:[#allocation2 + $0x240] sm:$0x1]  ;;  %v988_v51 = vshrl.u32 %v14854_v30, 16 }
  0xe8   : > { %v2196_v40 = vld [vmem:[#allocation2 + $0xf0] sm:$0x80]  ;;  %v1948_v63 = vpop.permute.xlu1 %1947  ;;  %v2193_v56 = vld [vmem:[#allocation2 + $0xd8] sm:$0x80]  ;;  %v1946_v4 = vpop.permute.xlu0 %1945  ;;  %1381 = vst [vmem:[#allocation2 + $0x228] sm:$0xff] %v1380_v19  ;;  %v1377_v3 = vsel %vm15906_vm6, %v979_v60, %v1376_v35  ;;  %v297_v43 = vsel %vm15873_vm5, 0, %v296_v17 }
  0xe9   : > { %v2197_v26 = vsel %vm16187_vm10, 0, %v2196_v40  ;;  %2114 = vst.msk [vmem:[#allocation2 + $0x150] sm:$0xff] %vm20266_vm1, %v1948_v63  ;;  %v2194_v31 = vsel %vm16187_vm10, 0, %v2193_v56  ;;  %2113 = vst.msk [vmem:[#allocation2 + $0x138] sm:$0xff] %vm20266_vm1, %v1946_v4  ;;  %v14846_v18 = vld [vmem:[%s15659_s19 + $0x20] sm:$0xff]   ;;  %v1151_v33 = vrot.slane %v1149_v47, 7 }
  0xea   : > { %2198 = vst [vmem:[#allocation2 + $0xf0] sm:$0x80] %v2197_v26  ;;  %3197 = vrot.lane.b32.xlu1 %v2803_v54, %s15471_s20  ;;  %2195 = vst [vmem:[#allocation2 + $0xd8] sm:$0x80] %v2194_v31  ;;  %2023 = vrot.lane.b32.xlu0 %v14832_v24, %s15469_s24  ;;  %v990_v8 = vrot.slane %v988_v51, 7  ;;  %v991_v25 = vshll.u32 %v14854_v30, 16  ;;  %v6294_v26 = vor.u32 %v6293_v61, %v6289_v37 }
  0xeb   : > { %1378 = vst [vmem:[#allocation2 + $0x210] sm:$0xff] %v1377_v3  ;;  %298 = vst [vmem:[#allocation2 + $0x240] sm:$0x1] %v297_v43  ;;  %v1154_v24 = vor.u32 %v1152_v9, %v1151_v33  ;;  %v14851_v5 = vld [vmem:[%s15659_s19 + $0x1a0] sm:$0xff]   ;;  %v6625_v4 = vshrl.u32 %v14856_v22, 16  ;;  %v6627_v14 = vshll.u32 %v14856_v22, 16 }
  0xec   : > { %v2202_v57 = vld [vmem:[#allocation2 + $0x120] sm:$0x80]  ;;  %v1952_v6 = vpop.permute.xlu1 %1951  ;;  %v2199_v10 = vld [vmem:[#allocation2 + $0x108] sm:$0x80]  ;;  %v1950_v38 = vpop.permute.xlu0 %1949  ;;  %v993_v40 = vor.u32 %v991_v25, %v990_v8  ;;  %v302_v31 = vld [vmem:[#allocation2 + $0x270] sm:$0x1] }
  0xed   : > { %v2203_v48 = vsel %vm16187_vm10, 0, %v2202_v57  ;;  %2116 = vst.msk [vmem:[#allocation2 + $0x198] sm:$0xff] %vm20266_vm1, %v1952_v6  ;;  %v2200_v20 = vsel %vm16187_vm10, 0, %v2199_v10  ;;  %2115 = vst.msk [vmem:[#allocation2 + $0x168] sm:$0xff] %vm20266_vm1, %v1950_v38  ;;  %v14857_v63 = vld [vmem:[#allocation6 + $0x20] sm:$0xff]   ;;  %v303_v16 = vsel %vm15873_vm5, 0, %v302_v31 }
  0xee   : > { %2204 = vst [vmem:[#allocation2 + $0x120] sm:$0x80] %v2203_v48  ;;  %3287 = vrot.lane.b32.xlu1 %v3118_v0, %s15471_s20  ;;  %2201 = vst [vmem:[#allocation2 + $0x108] sm:$0x80] %v2200_v20  ;;  %8116 = vrot.lane.b32.xlu0 %v7717_v46, %s15471_s20  ;;  %v1451_v56 = vld [vmem:[#allocation2 + $0x498] sm:$0xff]  ;;  %v14858_v45 = vld [vmem:[%s15659_s19 + $0xc8] sm:$0xff]  }
  0xef   : > { %v1452_v0 = vsel %vm15906_vm6, %v1154_v24, %v1451_v56  ;;  %10947 = vmatpush1.bf16.msra.mxu0 %v14857_v63  ;;  %v14855_v44 = vld [vmem:[%s15659_s19 + $0x1b8] sm:$0xff]   ;;  %v6629_v60 = vrot.slane %v6627_v14, 1  ;;  %304 = vst [vmem:[#allocation2 + $0x270] sm:$0x1] %v303_v16  ;;  %14655 = vmatpush1.bf16.msra.mxu1 %v14857_v63  ;;  %v1002_v21 = vshrl.u32 %v14858_v45, 16  ;;  %v1005_v48 = vshll.u32 %v14858_v45, 16 }
  0xf0   : > { %v2208_v59 = vld [vmem:[#allocation2 + $0x150] sm:$0x80]  ;;  %v1956_v28 = vpop.permute.xlu1 %1955  ;;  %v2205_v23 = vld [vmem:[#allocation2 + $0x138] sm:$0x80]  ;;  %v1954_v55 = vpop.permute.xlu0 %1953  ;;  %1453 = vst [vmem:[#allocation2 + $0x498] sm:$0xff] %v1452_v0  ;;  %10948 = vmatprep.subr.bf16.mxu0 %v20267_v12  ;;  %v14859_v10 = vld [vmem:[%s15659_s19 + $0xc0] sm:$0xff]   ;;  %14640 = vmatprep.subr.bf16.mxu1 %v20267_v12 }
  0xf1   : > { %v2209_v53 = vsel %vm16187_vm10, 0, %v2208_v59  ;;  %2118 = vst.msk [vmem:[#allocation2 + $0x1c8] sm:$0xff] %vm20266_vm1, %v1956_v28  ;;  %v2206_v54 = vsel %vm16187_vm10, 0, %v2205_v23  ;;  %2117 = vst.msk [vmem:[#allocation2 + $0x1b0] sm:$0xff] %vm20266_vm1, %v1954_v55  ;;  %v299_v57 = vld [vmem:[#allocation2 + $0x258] sm:$0x1]  ;;  %v6630_v41 = vor.u32 %v6629_v60, %v6625_v4 }
  0xf2   : > { %2210 = vst [vmem:[#allocation2 + $0x150] sm:$0x80] %v2209_v53  ;;  %4648 = vrot.lane.b32.xlu1 %v4221_v62, %s15472_s22  ;;  %2207 = vst [vmem:[#allocation2 + $0x138] sm:$0x80] %v2206_v54  ;;  %8206 = vrot.lane.b32.xlu0 %v8032_v27, %s15471_s20  ;;  %v1382_v1 = vld [vmem:[#allocation2 + $0x240] sm:$0xff]  ;;  %v300_v19 = vsel %vm15873_vm5, 0, %v299_v57 }
  0xf3   : > { %v1383_v2 = vsel %vm15906_vm6, %v993_v40, %v1382_v1  ;;  %v1004_v32 = vrot.slane %v1002_v21, 7  ;;  %301 = vst [vmem:[#allocation2 + $0x258] sm:$0x1] %v300_v19  ;;  %v995_v20 = vshrl.u32 %v14859_v10, 16  ;;  %v998_v62 = vshll.u32 %v14859_v10, 16  ;;  %v14860_v35 = vld [vmem:[%s15659_s19 + $0x28] sm:$0xff]  }
  0xf4   : > { %v2214_v58 = vld [vmem:[#allocation2 + $0x198] sm:$0x80]  ;;  %v1960_v7 = vpop.permute.xlu1 %1959  ;;  %v2211_v39 = vld [vmem:[#allocation2 + $0x168] sm:$0x80]  ;;  %v1958_v50 = vpop.permute.xlu0 %1957  ;;  %1384 = vst [vmem:[#allocation2 + $0x240] sm:$0xff] %v1383_v2  ;;  %v7719_v59 = vshrl.u32 %v14860_v35, 16 }
  0xf5   : > { %v2215_v36 = vsel %vm16187_vm10, 0, %v2214_v58  ;;  %2120 = vst.msk [vmem:[#allocation2 + $0x1f8] sm:$0xff] %vm20266_vm1, %v1960_v7  ;;  %v2212_v11 = vsel %vm16187_vm10, 0, %v2211_v39  ;;  %2119 = vst.msk [vmem:[#allocation2 + $0x1e0] sm:$0xff] %vm20266_vm1, %v1958_v50  ;;  %v1007_v9 = vor.u32 %v1005_v48, %v1004_v32  ;;  %v997_v17 = vrot.slane %v995_v20, 7  ;;  %v14861_v28 = vld [vmem:[%s15659_s19 + $0x28] sm:$0xff]  }
  0xf6   : > { %2216 = vst [vmem:[#allocation2 + $0x198] sm:$0x80] %v2215_v36  ;;  %4744 = vrot.lane.b32.xlu1 %v4557_v13, %s15472_s22  ;;  %2213 = vst [vmem:[#allocation2 + $0x168] sm:$0x80] %v2212_v11  ;;  %8902 = vrot.lane.b32.xlu0 %v14846_v18, %s15472_s22  ;;  %v7722_v51 = vshll.u32 %v14860_v35, 16  ;;  %v1388_v53 = vld [vmem:[#allocation2 + $0x270] sm:$0xff] }
  0xf7   : > { %v1000_v23 = vor.u32 %v998_v62, %v997_v17  ;;  %v7721_v55 = vrot.slane %v7719_v59, 7  ;;  %v2805_v13 = vshrl.u32 %v14861_v28, 16  ;;  %v2807_v18 = vshll.u32 %v14861_v28, 16  ;;  %v14862_v8 = vld [vmem:[#allocation6 + $0x28] sm:$0xff]   ;;  %v14863_v25 = vld [vmem:[%s15659_s19 + $0x180] sm:$0xff]  }
  0xf8   : > { %v2220_v46 = vld [vmem:[#allocation2 + $0x1c8] sm:$0x80]  ;;  %v1964_v15 = vpop.permute.xlu1 %1963  ;;  %v2217_v42 = vld [vmem:[#allocation2 + $0x1b0] sm:$0x80]  ;;  %v1962_v37 = vpop.permute.xlu0 %1961  ;;  %v1389_v61 = vsel %vm15906_vm6, %v1007_v9, %v1388_v53  ;;  %10949 = vmatpush1.bf16.msra.mxu0 %v14862_v8  ;;  %5588 = vst.msk [vmem:[#allocation2 + $0x488] sm:$0xff] %vm221_vm0, %v14863_v25  ;;  %14656 = vmatpush1.bf16.msra.mxu1 %v14862_v8  ;;  %v14864_v63 = vld [vmem:[%s15659_s19] sm:$0xff]  }
  0xf9   : > { %v2221_v6 = vsel %vm16187_vm10, 0, %v2220_v46  ;;  %2122 = vst.msk [vmem:[#allocation2 + $0x228] sm:$0xff] %vm20266_vm1, %v1964_v15  ;;  %v2218_v38 = vsel %vm16187_vm10, 0, %v2217_v42  ;;  %2121 = vst.msk [vmem:[#allocation2 + $0x210] sm:$0xff] %vm20266_vm1, %v1962_v37  ;;  %v7724_v22 = vor.u32 %v7722_v51, %v7721_v55  ;;  %v2809_v36 = vrot.slane %v2807_v18, 1  ;;  %10950 = vmatprep.subr.bf16.mxu0 %v20267_v12  ;;  %v14865_v56 = vld [vmem:[%s15659_s19 + $0x1a8] sm:$0xff]   ;;  %14641 = vmatprep.subr.bf16.mxu1 %v20267_v12 }
  0xfa   : > { %2222 = vst [vmem:[#allocation2 + $0x1c8] sm:$0x80] %v2221_v6  ;;  %6706 = vrot.lane.b32.xlu1 %v6294_v26, %s15469_s24  ;;  %2219 = vst [vmem:[#allocation2 + $0x1b0] sm:$0x80] %v2218_v38  ;;  %8992 = vrot.lane.b32.xlu0 %v14851_v5, %s15472_s22  ;;  %v1385_v50 = vld [vmem:[#allocation2 + $0x258] sm:$0xff]  ;;  %v14866_v0 = vld [vmem:[%s15659_s19 + $0x1a8] sm:$0xff]  }
  0xfb   : > { %1390 = vst [vmem:[#allocation2 + $0x270] sm:$0xff] %v1389_v61  ;;  %v1386_v5 = vsel %vm15906_vm6, %v1000_v23, %v1385_v50  ;;  %v2810_v40 = vor.u32 %v2809_v36, %v2805_v13  ;;  %5540 = vst.msk [vmem:[#allocation2 + $0x8] sm:$0xff] %vm221_vm0, %v14864_v63  ;;  %v8034_v45 = vshrl.u32 %v14865_v56, 16  ;;  %v8037_v46 = vshll.u32 %v14865_v56, 16  ;;  %v14867_v15 = vld [vmem:[#allocation6 + $0x30] sm:$0xff]   ;;  %v14869_v62 = vld [vmem:[%s15659_s19 + $0x188] sm:$0xff]  }
  0xfc   : > { %v2226_v34 = vld [vmem:[#allocation2 + $0x1f8] sm:$0x80]  ;;  %v2012_v30 = vpop.permute.xlu1 %2011  ;;  %v2223_v3 = vld [vmem:[#allocation2 + $0x1e0] sm:$0x80]  ;;  %v1966_v47 = vpop.permute.xlu0 %1965  ;;  %1387 = vst [vmem:[#allocation2 + $0x258] sm:$0xff] %v1386_v5  ;;  %v3122_v60 = vshll.u32 %v14866_v0, 16  ;;  %10951 = vmatpush1.bf16.msra.mxu0 %v14867_v15  ;;  %14657 = vmatpush1.bf16.msra.mxu1 %v14867_v15 }
  0xfd   : > { %v2227_v27 = vsel %vm16187_vm10, 0, %v2226_v34  ;;  %2146 = vst.msk [vmem:[#allocation2 + $0x498] sm:$0xff] %vm20266_vm1, %v2012_v30  ;;  %v2224_v43 = vsel %vm16187_vm10, 0, %v2223_v3  ;;  %2123 = vst.msk [vmem:[#allocation2 + $0x240] sm:$0xff] %vm20266_vm1, %v1966_v47  ;;  %v8036_v57 = vrot.slane %v8034_v45, 7  ;;  %v14868_v37 = vld [vmem:[%s15659_s19 + $0xd0] sm:$0xff]   ;;  %10952 = vmatprep.subr.bf16.mxu0 %v20267_v12  ;;  %14642 = vmatprep.subr.bf16.mxu1 %v20267_v12 }
  0xfe   : > { %2228 = vst [vmem:[#allocation2 + $0x1f8] sm:$0x80] %v2227_v27  ;;  %2025 = vrot.lane.b32.xlu1 %v14855_v44, %s15469_s24  ;;  %2225 = vst [vmem:[#allocation2 + $0x1e0] sm:$0x80] %v2224_v43  ;;  %6802 = vrot.lane.b32.xlu0 %v6630_v41, %s15469_s24  ;;  %v3120_v44 = vshrl.u32 %v14866_v0, 16  ;;  %v3124_v48 = vrot.slane %v3122_v60, 1 }
  0xff   : > { %v305_v42 = vld [vmem:[#allocation2 + $0x288] sm:$0x1]  ;;  %v5750_v21 = vld [vmem:[#allocation2 + $0x488] sm:$0x80]  ;;  %v8039_v32 = vor.u32 %v8037_v46, %v8036_v57  ;;  %v1009_v20 = vshrl.u32 %v14868_v37, 16  ;;  %v1012_v34 = vshll.u32 %v14868_v37, 16 }
 0x100   : > { %v2232_v33 = vld [vmem:[#allocation2 + $0x228] sm:$0x80]  ;;  %v1970_v54 = vpop.permute.xlu1 %1969  ;;  %v2229_v58 = vld [vmem:[#allocation2 + $0x210] sm:$0x80]  ;;  %v1968_v7 = vpop.permute.xlu0 %1967  ;;  %v306_v10 = vsel %vm15873_vm5, 0, %v305_v42  ;;  %v5751_v41 = vsel %vm16435_vm13, 0, %v5750_v21  ;;  %v3125_v35 = vor.u32 %v3124_v48, %v3120_v44 }
 0x101   : > { %v2233_v24 = vsel %vm16187_vm10, 0, %v2232_v33  ;;  %v2230_v39 = vsel %vm16187_vm10, 0, %v2229_v58  ;;  %2125 = vst.msk [vmem:[#allocation2 + $0x270] sm:$0xff] %vm20266_vm1, %v1970_v54  ;;  %2124 = vst.msk [vmem:[#allocation2 + $0x258] sm:$0xff] %vm20266_vm1, %v1968_v7  ;;  %v368_v30 = vld [vmem:[#allocation2 + $0x4b0] sm:$0x1] }
 0x102   : > { %2234 = vst [vmem:[#allocation2 + $0x228] sm:$0x80] %v2233_v24  ;;  %2231 = vst [vmem:[#allocation2 + $0x210] sm:$0x80] %v2230_v39  ;;  %8118 = vrot.lane.b32.xlu1 %v7724_v22, %s15471_s20  ;;  %3199 = vrot.lane.b32.xlu0 %v2810_v40, %s15471_s20  ;;  %v14870_v27 = vld [vmem:[%s15659_s19 + $0x28] sm:$0xff]   ;;  %v1011_v17 = vrot.slane %v1009_v20, 7 }
 0x103   : > { %307 = vst [vmem:[#allocation2 + $0x288] sm:$0x1] %v306_v10  ;;  %5752 = vst [vmem:[#allocation2 + $0x488] sm:$0x80] %v5751_v41  ;;  %v5606_v9 = vld [vmem:[#allocation2 + $0x8] sm:$0x80] }
 0x104   : > { %v2304_v11 = vld [vmem:[#allocation2 + $0x498] sm:$0x80]  ;;  %v16419_v26 = vpop.permute.xlu1 %6790  ;;  %v2235_v14 = vld [vmem:[#allocation2 + $0x240] sm:$0x80]  ;;  %v16428_v31 = vpop.permute.xlu0 %6694  ;;  %v369_v59 = vsel %vm15873_vm5, 0, %v368_v30  ;;  %v5607_v51 = vsel %vm16435_vm13, 0, %v5606_v9  ;;  %v1014_v18 = vor.u32 %v1012_v34, %v1011_v17 }
 0x105   : > { %v2305_v4 = vsel %vm16187_vm10, 0, %v2304_v11  ;;  %v2236_v16 = vsel %vm16187_vm10, 0, %v2235_v14  ;;  %370 = vst [vmem:[#allocation2 + $0x4b0] sm:$0x1] %v369_v59  ;;  %v1156_v53 = vshrl.u32 %v14869_v62, 16  ;;  %v1159_v23 = vshll.u32 %v14869_v62, 16 }
 0x106   : > { %2306 = vst [vmem:[#allocation2 + $0x498] sm:$0x80] %v2305_v4  ;;  %2237 = vst [vmem:[#allocation2 + $0x240] sm:$0x80] %v2236_v16  ;;  %8208 = vrot.lane.b32.xlu1 %v8039_v32, %s15471_s20  ;;  %3289 = vrot.lane.b32.xlu0 %v3125_v35, %s15471_s20  ;;  %v14871_v54 = vld [vmem:[%s15659_s19 + $0x20] sm:$0xff]   ;;  %v14872_v61 = vld [vmem:[#allocation6 + $0x38] sm:$0xff]  }
 0x107   : > { %5608 = vst [vmem:[#allocation2 + $0x8] sm:$0x80] %v5607_v51  ;;  %v1158_v33 = vrot.slane %v1156_v53, 7  ;;  %v4223_v58 = vshrl.u32 %v14871_v54, 16  ;;  %v4226_v7 = vshll.u32 %v14871_v54, 16  ;;  %v14873_v22 = vld [vmem:[%s15659_s19 + $0x188] sm:$0xff]   ;;  %10953 = vmatpush1.bf16.msra.mxu0 %v14872_v61  ;;  %14658 = vmatpush1.bf16.msra.mxu1 %v14872_v61 }
 0x108   : > { %v16439_v6 = vpop.permute.xlu1 %1971  ;;  %v2241_v2 = vld [vmem:[#allocation2 + $0x270] sm:$0x80]  ;;  %v16444_v38 = vpop.permute.xlu0 %2013  ;;  %v2238_v3 = vld [vmem:[#allocation2 + $0x258] sm:$0x80]  ;;  %5589 = vst.msk [vmem:[#allocation2 + $0x4a0] sm:$0xff] %vm221_vm0, %v14873_v22  ;;  %v14874_v63 = vld [vmem:[%s15659_s19 + $0x8] sm:$0xff]   ;;  %10954 = vmatprep.subr.bf16.mxu0 %v20267_v12  ;;  %14643 = vmatprep.subr.bf16.mxu1 %v20267_v12 }
 0x109   : > { %v2242_v19 = vsel %vm16187_vm10, 0, %v2241_v2  ;;  %v2239_v43 = vsel %vm16187_vm10, 0, %v2238_v3  ;;  %v1161_v24 = vor.u32 %v1159_v23, %v1158_v33  ;;  %v4225_v40 = vrot.slane %v4223_v58, 7  ;;  %v14875_v56 = vld [vmem:[%s15659_s19 + $0x1a8] sm:$0xff]   ;;  %5541 = vst.msk [vmem:[#allocation2 + $0x20] sm:$0xff] %vm221_vm0, %v14874_v63  ;;  %v14876_v16 = vld [vmem:[%s15659_s19 + $0x1a0] sm:$0xff]  }
 0x10a   : > { %2243 = vst [vmem:[#allocation2 + $0x270] sm:$0x80] %v2242_v19  ;;  %2240 = vst [vmem:[#allocation2 + $0x258] sm:$0x80] %v2239_v43  ;;  %8904 = vrot.lane.b32.xlu1 %v14870_v27, %s15472_s22  ;;  %v1391_v25 = vld [vmem:[#allocation2 + $0x288] sm:$0xff]  ;;  %v14877_v15 = vld [vmem:[#allocation6 + $0x40] sm:$0xff]  }
 0x10b   : > { %v7032_v39 = vld [vmem:[#allocation2 + $0x488] sm:$0xff]  ;;  %v1392_v50 = vsel %vm15906_vm6, %v1014_v18, %v1391_v25  ;;  %v4228_v0 = vor.u32 %v4226_v7, %v4225_v40  ;;  %v4559_v44 = vshrl.u32 %v14876_v16, 16  ;;  %v4562_v60 = vshll.u32 %v14876_v16, 16  ;;  %v3372_v57 = vld [vmem:[#allocation2 + $0x18] sm:$0xff]  ;;  %v14878_v42 = vld [vmem:[%s15659_s19 + $0x190] sm:$0xff]   ;;  %10955 = vmatpush1.bf16.msra.mxu0 %v14877_v15  ;;  %14659 = vmatpush1.bf16.msra.mxu1 %v14877_v15 }
 0x10c   : > { %v16463_v28 = vpop.permute.xlu1 %6792  ;;  %v16470_v55 = vpop.permute.xlu0 %6696  ;;  %v7033_v5 = vsel %vm16456_vm14, %v16419_v26, %v7032_v39  ;;  %1393 = vst [vmem:[#allocation2 + $0x288] sm:$0xff] %v1392_v50  ;;  %v1454_v11 = vld [vmem:[#allocation2 + $0x4b0] sm:$0xff]  ;;  %v14879_v2 = vld [vmem:[%s15659_s19 + $0x1b8] sm:$0xff]   ;;  %v1166_v19 = vshll.u32 %v14878_v42, 16  ;;  %10956 = vmatprep.subr.bf16.mxu0 %v20267_v12  ;;  %14644 = vmatprep.subr.bf16.mxu1 %v20267_v12  ;;  %v14881_v50 = vld [vmem:[#allocation6 + $0x48] sm:$0xff]  }
 0x10d   : > { %7034 = vst [vmem:[#allocation2 + $0x488] sm:$0xff] %v7033_v5  ;;  %2126 = vst.msk [vmem:[#allocation2 + $0x288] sm:$0xff] %vm20266_vm1, %v16439_v6  ;;  %v1455_v14 = vsel %vm15906_vm6, %v1161_v24, %v1454_v11  ;;  %4650 = vrot.lane.b32.xlu0 %v4228_v0, %s15472_s22  ;;  %v371_v6 = vld [vmem:[#allocation2 + $0x4c8] sm:$0x1]  ;;  %v4561_v10 = vrot.slane %v4559_v44, 7  ;;  %v14880_v41 = vld [vmem:[%s15659_s19 + $0x38] sm:$0xff]  }
 0x10e   : > { %v6888_v26 = vld [vmem:[#allocation2 + $0x8] sm:$0xff]  ;;  %1456 = vst [vmem:[#allocation2 + $0x4b0] sm:$0xff] %v1455_v14  ;;  %8994 = vrot.lane.b32.xlu1 %v14875_v56, %s15472_s22  ;;  %v372_v37 = vsel %vm15873_vm5, 0, %v371_v6  ;;  %v6632_v62 = vshrl.u32 %v14879_v2, 16  ;;  %v6634_v35 = vshll.u32 %v14879_v2, 16  ;;  %v6296_v53 = vshrl.u32 %v14880_v41, 16 }
 0x10f   : > { %v6889_v46 = vsel %vm16456_vm14, %v16428_v31, %v6888_v26  ;;  %2147 = vst.msk [vmem:[#allocation2 + $0x4b0] sm:$0xff] %vm20266_vm1, %v16444_v38  ;;  %373 = vst [vmem:[#allocation2 + $0x4c8] sm:$0x1] %v372_v37  ;;  %v1163_v38 = vshrl.u32 %v14878_v42, 16  ;;  %v5753_v20 = vld [vmem:[#allocation2 + $0x4a0] sm:$0x80]  ;;  %v4564_v3 = vor.u32 %v4562_v60, %v4561_v10  ;;  %10957 = vmatpush1.bf16.msra.mxu0 %v14881_v50  ;;  %14660 = vmatpush1.bf16.msra.mxu1 %v14881_v50 }
 0x110   : > { %v3190_v8 = vpop.permute.xlu1 %3189  ;;  %v16481_v36 = vpop.permute.xlu0 %2015  ;;  %6890 = vst [vmem:[#allocation2 + $0x8] sm:$0xff] %v6889_v46  ;;  %v5754_v27 = vsel %vm16435_vm13, 0, %v5753_v20  ;;  %v5609_v43 = vld [vmem:[#allocation2 + $0x20] sm:$0x80]  ;;  %v6636_v51 = vrot.slane %v6634_v35, 1  ;;  %v6298_v61 = vshll.u32 %v14880_v41, 16  ;;  %10958 = vmatprep.subr.bf16.mxu0 %v20267_v12  ;;  %14645 = vmatprep.subr.bf16.mxu1 %v20267_v12 }
 0x111   : > { %v3373_v31 = vsel %vm16474_vm15, %v3190_v8, %v3372_v57  ;;  %v1165_v9 = vrot.slane %v1163_v38, 7  ;;  %5755 = vst [vmem:[#allocation2 + $0x4a0] sm:$0x80] %v5754_v27  ;;  %v5610_v18 = vsel %vm16435_vm13, 0, %v5609_v43  ;;  %4746 = vrot.lane.b32.xlu0 %v4564_v3, %s15472_s22  ;;  %v14882_v14 = vld [vmem:[%s15659_s19 + $0x10] sm:$0xff]   ;;  %v3507_v0 = vld [vmem:[#allocation2 + $0x498] sm:$0xff] }
 0x112   : > { %3374 = vst [vmem:[#allocation2 + $0x18] sm:$0xff] %v3373_v31  ;;  %5611 = vst [vmem:[#allocation2 + $0x20] sm:$0x80] %v5610_v18  ;;  %v6637_v58 = vor.u32 %v6636_v51, %v6632_v62  ;;  %v6300_v39 = vrot.slane %v6298_v61, 1  ;;  %v14883_v15 = vld [vmem:[%s15659_s19 + $0x30] sm:$0xff]   ;;  %v14884_v6 = vld [vmem:[%s15659_s19 + $0x1c0] sm:$0xff]  }
 0x113   : > { %v1168_v54 = vor.u32 %v1166_v19, %v1165_v9  ;;  %5542 = vst.msk [vmem:[#allocation2 + $0x38] sm:$0xff] %vm221_vm0, %v14882_v14  ;;  %v2812_v57 = vshrl.u32 %v14883_v15, 16  ;;  %v14885_v42 = vld [vmem:[#allocation6 + $0x50] sm:$0xff]   ;;  %v14886_v19 = vld [vmem:[%s15659_s19 + $0x198] sm:$0xff]  }
 0x114   : > { %v16495_v4 = vpop.permute.xlu1 %6698  ;;  %v16501_v45 = vpop.permute.xlu0 %3279  ;;  %v7222_v34 = vld [vmem:[#allocation2 + $0x488] sm:$0x1]  ;;  %v2244_v30 = vld [vmem:[#allocation2 + $0x288] sm:$0x80]  ;;  %6804 = vrot.lane.b32.xlu1 %v6637_v58, %s15469_s24  ;;  %v6301_v26 = vor.u32 %v6300_v39, %v6296_v53  ;;  %10959 = vmatpush1.bf16.msra.mxu0 %v14885_v42  ;;  %v14887_v20 = vld [vmem:[%s15659_s19 + $0x190] sm:$0xff]   ;;  %v1170_v62 = vshrl.u32 %v14886_v19, 16 }
 0x115   : > { %v7223_v17 = vsel %vm16520_vm12, 0, %v7222_v34  ;;  %v2245_v59 = vsel %vm16187_vm10, 0, %v2244_v30  ;;  %v3508_v46 = vsel %vm16474_vm15, %v16501_v45, %v3507_v0  ;;  %v2814_v45 = vshll.u32 %v14883_v15, 16  ;;  %14661 = vmatpush1.bf16.msra.mxu1 %v14885_v42  ;;  %10960 = vmatprep.subr.bf16.mxu0 %v20267_v12  ;;  %v14888_v34 = vld [vmem:[%s15659_s19 + $0x1b0] sm:$0xff]   ;;  %5590 = vst.msk [vmem:[#allocation2 + $0x4b8] sm:$0xff] %vm221_vm0, %v14887_v20  ;;  %v14890_v50 = vld [vmem:[#allocation6 + $0x58] sm:$0xff]  }
 0x116   : > { %7224 = vst [vmem:[#allocation2 + $0x488] sm:$0x1] %v7223_v17  ;;  %2246 = vst [vmem:[#allocation2 + $0x288] sm:$0x80] %v2245_v59  ;;  %v2307_v24 = vld [vmem:[#allocation2 + $0x4b0] sm:$0x80]  ;;  %6708 = vrot.lane.b32.xlu0 %v6301_v26, %s15469_s24  ;;  %14646 = vmatprep.subr.bf16.mxu1 %v20267_v12 }
 0x117   : > { %v7087_v25 = vld [vmem:[#allocation2 + $0x8] sm:$0x1]  ;;  %v2308_v22 = vsel %vm16187_vm10, 0, %v2307_v24  ;;  %3509 = vst [vmem:[#allocation2 + $0x498] sm:$0xff] %v3508_v46  ;;  %v2816_v38 = vrot.slane %v2814_v45, 1  ;;  %v1173_v35 = vshll.u32 %v14886_v19, 16 }
 0x118   : > { %v16516_v21 = vpop.permute.xlu1 %2017  ;;  %v16527_v32 = vpop.permute.xlu0 %6794  ;;  %v7088_v7 = vsel %vm16520_vm12, 0, %v7087_v25  ;;  %2309 = vst [vmem:[#allocation2 + $0x4b0] sm:$0x80] %v2308_v22  ;;  %v1457_v40 = vld [vmem:[#allocation2 + $0x4c8] sm:$0xff]  ;;  %v7035_v44 = vld [vmem:[#allocation2 + $0x4a0] sm:$0xff]  ;;  %v14889_v30 = vld [vmem:[%s15659_s19 + $0x30] sm:$0xff]   ;;  %10961 = vmatpush1.bf16.msra.mxu0 %v14890_v50 }
 0x119   : > { %7089 = vst [vmem:[#allocation2 + $0x8] sm:$0x1] %v7088_v7  ;;  %v3557_v5 = vld [vmem:[#allocation2 + $0x18] sm:$0x1]  ;;  %v1458_v56 = vsel %vm15906_vm6, %v1168_v54, %v1457_v40  ;;  %v7036_v60 = vsel %vm16456_vm14, %v16463_v28, %v7035_v44  ;;  %v6891_v37 = vld [vmem:[#allocation2 + $0x20] sm:$0xff]  ;;  %v2817_v41 = vor.u32 %v2816_v38, %v2812_v57  ;;  %v1172_v53 = vrot.slane %v1170_v62, 7  ;;  %14662 = vmatpush1.bf16.msra.mxu1 %v14890_v50 }
 0x11a   : > { %v3558_v11 = vsel %vm16542_vm2, 0, %v3557_v5  ;;  %1459 = vst [vmem:[#allocation2 + $0x4c8] sm:$0xff] %v1458_v56  ;;  %7037 = vst [vmem:[#allocation2 + $0x4a0] sm:$0xff] %v7036_v60  ;;  %v6892_v10 = vsel %vm16456_vm14, %v16470_v55, %v6891_v37  ;;  %2027 = vrot.lane.b32.xlu0 %v14884_v6, %s15469_s24  ;;  %v5612_v9 = vld [vmem:[#allocation2 + $0x38] sm:$0x80]  ;;  %v3127_v54 = vshrl.u32 %v14888_v34, 16  ;;  %10962 = vmatprep.subr.bf16.mxu0 %v20267_v12 }
 0x11b   : > { %3559 = vst [vmem:[#allocation2 + $0x18] sm:$0x1] %v3558_v11  ;;  %2148 = vst.msk [vmem:[#allocation2 + $0x4c8] sm:$0xff] %vm20266_vm1, %v16481_v36  ;;  %v374_v36 = vld [vmem:[#allocation2 + $0x4e0] sm:$0x1]  ;;  %3201 = vrot.lane.b32.xlu1 %v2817_v41, %s15471_s20  ;;  %v5613_v43 = vsel %vm16435_vm13, 0, %v5612_v9  ;;  %v1175_v39 = vor.u32 %v1173_v35, %v1172_v53  ;;  %14647 = vmatprep.subr.bf16.mxu1 %v20267_v12 }
 0x11c   : > { %v16535_v23 = vpop.permute.xlu1 %8110  ;;  %v16546_v8 = vpop.permute.xlu0 %3191  ;;  %v375_v28 = vsel %vm15873_vm5, 0, %v374_v36  ;;  %6893 = vst [vmem:[#allocation2 + $0x20] sm:$0xff] %v6892_v10  ;;  %5614 = vst [vmem:[#allocation2 + $0x38] sm:$0x80] %v5613_v43  ;;  %v3129_v61 = vshll.u32 %v14888_v34, 16  ;;  %v7726_v25 = vshrl.u32 %v14889_v30, 16 }
 0x11d   : > { %376 = vst [vmem:[#allocation2 + $0x4e0] sm:$0x1] %v375_v28  ;;  %v7729_v24 = vshll.u32 %v14889_v30, 16  ;;  %v3375_v44 = vld [vmem:[#allocation2 + $0x30] sm:$0xff]  ;;  %v14891_v6 = vld [vmem:[%s15659_s19 + $0x28] sm:$0xff]   ;;  %v14893_v28 = vld [vmem:[#allocation6 + $0x60] sm:$0xff]  }
 0x11e   : > { %v3701_v17 = vld [vmem:[#allocation2 + $0x498] sm:$0x1]  ;;  %v3131_v56 = vrot.slane %v3129_v61, 1  ;;  %v7728_v26 = vrot.slane %v7726_v25, 7  ;;  %v3376_v45 = vsel %vm16474_vm15, %v16546_v8, %v3375_v44  ;;  %v14892_v37 = vld [vmem:[%s15659_s19 + $0x1b0] sm:$0xff]   ;;  %v4230_v10 = vshrl.u32 %v14891_v6, 16  ;;  %10963 = vmatpush1.bf16.msra.mxu0 %v14893_v28  ;;  %14663 = vmatpush1.bf16.msra.mxu1 %v14893_v28 }
 0x11f   : > { %v3702_v51 = vsel %vm16542_vm2, 0, %v3701_v17  ;;  %3377 = vst [vmem:[#allocation2 + $0x30] sm:$0xff] %v3376_v45  ;;  %v4233_v38 = vshll.u32 %v14891_v6, 16  ;;  %v8041_v19 = vshrl.u32 %v14892_v37, 16  ;;  %v8044_v41 = vshll.u32 %v14892_v37, 16  ;;  %v8426_v20 = vld [vmem:[#allocation2 + $0x488] sm:$0xff]  ;;  %10964 = vmatprep.subr.bf16.mxu0 %v20267_v12  ;;  %14648 = vmatprep.subr.bf16.mxu1 %v20267_v12 }
 0x120   : > { %v16553_v63 = vpop.permute.xlu1 %8200  ;;  %v16560_v16 = vpop.permute.xlu0 %3281  ;;  %3703 = vst [vmem:[#allocation2 + $0x498] sm:$0x1] %v3702_v51  ;;  %v8291_v14 = vld [vmem:[#allocation2 + $0x8] sm:$0xff]  ;;  %v3132_v60 = vor.u32 %v3131_v56, %v3127_v54  ;;  %v7731_v57 = vor.u32 %v7729_v24, %v7728_v26  ;;  %v3510_v62 = vld [vmem:[#allocation2 + $0x4b0] sm:$0xff]  ;;  %v4232_v35 = vrot.slane %v4230_v10, 7  ;;  %v14897_v50 = vld [vmem:[%s15659_s19 + $0x40] sm:$0xff]  }
 0x121   : > { %v7225_v18 = vld [vmem:[#allocation2 + $0x4a0] sm:$0x1]  ;;  %v8292_v15 = vsel %vm16606_vm8, %v16535_v23, %v8291_v14  ;;  %v5756_v23 = vld [vmem:[#allocation2 + $0x4b8] sm:$0x80]  ;;  %v8427_v34 = vsel %vm16606_vm8, %v16553_v63, %v8426_v20  ;;  %v3511_v30 = vsel %vm16474_vm15, %v16560_v16, %v3510_v62  ;;  %v8043_v17 = vrot.slane %v8041_v19, 7  ;;  %v14896_v51 = vld [vmem:[#allocation6 + $0x68] sm:$0xff]  }
 0x122   : > { %v2310_v3 = vld [vmem:[#allocation2 + $0x4c8] sm:$0x80]  ;;  %v7226_v22 = vsel %vm16520_vm12, 0, %v7225_v18  ;;  %8293 = vst [vmem:[#allocation2 + $0x8] sm:$0xff] %v8292_v15  ;;  %v5757_v8 = vsel %vm16435_vm13, 0, %v5756_v23  ;;  %3291 = vrot.lane.b32.xlu1 %v3132_v60, %s15471_s20  ;;  %8120 = vrot.lane.b32.xlu0 %v7731_v57, %s15471_s20  ;;  %8428 = vst [vmem:[#allocation2 + $0x488] sm:$0xff] %v8427_v34 }
 0x123   : > { %v2311_v59 = vsel %vm16187_vm10, 0, %v2310_v3  ;;  %7227 = vst [vmem:[#allocation2 + $0x4a0] sm:$0x1] %v7226_v22  ;;  %v7090_v40 = vld [vmem:[#allocation2 + $0x20] sm:$0x1]  ;;  %v14894_v3 = vld [vmem:[%s15659_s19 + $0x1a8] sm:$0xff]   ;;  %v8046_v16 = vor.u32 %v8044_v41, %v8043_v17  ;;  %10965 = vmatpush1.bf16.msra.mxu0 %v14896_v51  ;;  %14664 = vmatpush1.bf16.msra.mxu1 %v14896_v51 }
 0x124   : > { %v16576_v31 = vpop.permute.xlu1 %8896  ;;  %v16578_v2 = vpop.permute.xlu0 %4642  ;;  %2312 = vst [vmem:[#allocation2 + $0x4c8] sm:$0x80] %v2311_v59  ;;  %v1460_v11 = vld [vmem:[#allocation2 + $0x4e0] sm:$0xff]  ;;  %v7091_v0 = vsel %vm16520_vm12, 0, %v7090_v40  ;;  %5758 = vst [vmem:[#allocation2 + $0x4b8] sm:$0x80] %v5757_v8  ;;  %v4235_v59 = vor.u32 %v4233_v38, %v4232_v35  ;;  %10966 = vmatprep.subr.bf16.mxu0 %v20267_v12  ;;  %14649 = vmatprep.subr.bf16.mxu1 %v20267_v12 }
 0x125   : > { %v1461_v46 = vsel %vm15906_vm6, %v1175_v39, %v1460_v11  ;;  %7092 = vst [vmem:[#allocation2 + $0x20] sm:$0x1] %v7091_v0  ;;  %9076 = vst.msk [vmem:[#allocation2 + $0x8] sm:$0xff] %vm4834_vm3, %v16576_v31  ;;  %v4566_v63 = vshrl.u32 %v14894_v3, 16  ;;  %v4569_v43 = vshll.u32 %v14894_v3, 16  ;;  %v14895_v39 = vld [vmem:[%s15659_s19 + $0x30] sm:$0xff]  }
 0x126   : > { %1462 = vst [vmem:[#allocation2 + $0x4e0] sm:$0xff] %v1461_v46  ;;  %3512 = vst [vmem:[#allocation2 + $0x4b0] sm:$0xff] %v3511_v30  ;;  %v3554_v53 = vld [vmem:[#allocation2] sm:$0x1]  ;;  %v3560_v54 = vld [vmem:[#allocation2 + $0x30] sm:$0x1]  ;;  %4652 = vrot.lane.b32.xlu1 %v4235_v59, %s15472_s22  ;;  %8210 = vrot.lane.b32.xlu0 %v8046_v16, %s15471_s20 }
 0x127   : > { %2149 = vst.msk [vmem:[#allocation2 + $0x4e0] sm:$0xff] %vm20266_vm1, %v16516_v21  ;;  %v6894_v21 = vld [vmem:[#allocation2 + $0x38] sm:$0xff]  ;;  %v4568_v61 = vrot.slane %v4566_v63, 7  ;;  %v3555_v25 = vsel %vm16542_vm2, 0, %v3554_v53  ;;  %v6303_v14 = vshrl.u32 %v14897_v50, 16  ;;  %v6305_v0 = vshll.u32 %v14897_v50, 16 }
 0x128   : > { %v16590_v55 = vpop.permute.xlu1 %8986  ;;  %v16594_v27 = vpop.permute.xlu0 %4738  ;;  %v6895_v31 = vsel %vm16456_vm14, %v16495_v4, %v6894_v21  ;;  %3556 = vst [vmem:[#allocation2] sm:$0x1] %v3555_v25  ;;  %v14899_v44 = vld [vmem:[#allocation6 + $0x70] sm:$0xff]   ;;  %v3698_v37 = vld [vmem:[#allocation2 + $0x480] sm:$0x1]  ;;  %v14900_v21 = vld [vmem:[%s15659_s19 + $0x1c8] sm:$0xff]  }
 0x129   : > { %6896 = vst [vmem:[#allocation2 + $0x38] sm:$0xff] %v6895_v31  ;;  %9121 = vst.msk [vmem:[#allocation2 + $0x488] sm:$0xff] %vm4834_vm3, %v16590_v55  ;;  %v3561_v55 = vsel %vm16542_vm2, 0, %v3560_v54  ;;  %v4571_v56 = vor.u32 %v4569_v43, %v4568_v61  ;;  %v6307_v6 = vrot.slane %v6305_v0, 1  ;;  %v14898_v23 = vld [vmem:[%s15659_s19 + $0x1b0] sm:$0xff]   ;;  %10967 = vmatpush1.bf16.msra.mxu0 %v14899_v44  ;;  %v3699_v10 = vsel %vm16542_vm2, 0, %v3698_v37  ;;  %14665 = vmatpush1.bf16.msra.mxu1 %v14899_v44 }
 0x12a   : > { %3562 = vst [vmem:[#allocation2 + $0x30] sm:$0x1] %v3561_v55  ;;  %8906 = vrot.lane.b32.xlu0 %v14895_v39, %s15472_s22  ;;  %v14901_v38 = vld [vmem:[%s15659_s19 + $0x1c0] sm:$0xff]   ;;  %3700 = vst [vmem:[#allocation2 + $0x480] sm:$0x1] %v3699_v10  ;;  %10968 = vmatprep.subr.bf16.mxu0 %v20267_v12  ;;  %v14902_v62 = vld [vmem:[#allocation6 + $0x78] sm:$0xff]  }
 0x12b   : > { %v7038_v11 = vld [vmem:[#allocation2 + $0x4b8] sm:$0xff]  ;;  %4748 = vrot.lane.b32.xlu1 %v4571_v56, %s15472_s22  ;;  %v6308_v28 = vor.u32 %v6307_v6, %v6303_v14  ;;  %14650 = vmatprep.subr.bf16.mxu1 %v20267_v12  ;;  %v6639_v41 = vshrl.u32 %v14901_v38, 16  ;;  %v6641_v20 = vshll.u32 %v14901_v38, 16  ;;  %v14907_v50 = vld [vmem:[%s15659_s19 + $0x1a0] sm:$0xff]  }
 0x12c   : > { %v16610_v7 = vpop.permute.xlu1 %6796  ;;  %v16614_v5 = vpop.permute.xlu0 %6700  ;;  %v7039_v26 = vsel %vm16456_vm14, %v16527_v32, %v7038_v11  ;;  %v10404_v34 = vld [vmem:[#allocation2 + $0x8] sm:$0xff]  ;;  %v14903_v17 = vld [vmem:[%s15659_s19 + $0x198] sm:$0xff]   ;;  %v1180_v44 = vshll.u32 %v14907_v50, 16 }
 0x12d   : > { %7040 = vst [vmem:[#allocation2 + $0x4b8] sm:$0xff] %v7039_v26  ;;  %v3704_v15 = vld [vmem:[#allocation2 + $0x4b0] sm:$0x1]  ;;  %v6643_v3 = vrot.slane %v6641_v20, 1  ;;  %10969 = vmatpush1.bf16.msra.mxu0 %v14902_v62  ;;  %10970 = vmatprep.mubr.bf16.mxu0 %v10404_v34  ;;  %v14904_v63 = vld [vmem:[%s15659_s19 + $0x18] sm:$0xff]   ;;  %5591 = vst.msk [vmem:[#allocation2 + $0x4d0] sm:$0xff] %vm221_vm0, %v14903_v17 }
 0x12e   : > { %v2313_v18 = vld [vmem:[#allocation2 + $0x4e0] sm:$0x80]  ;;  %v3705_v45 = vsel %vm16542_vm2, 0, %v3704_v15  ;;  %8996 = vrot.lane.b32.xlu0 %v14898_v23, %s15472_s22  ;;  %14666 = vmatpush1.bf16.msra.mxu1 %v14902_v62  ;;  %v14905_v16 = vld [vmem:[%s15659_s19 + $0x38] sm:$0xff]   ;;  %5543 = vst.msk [vmem:[#allocation2 + $0x50] sm:$0xff] %vm221_vm0, %v14904_v63  ;;  %v1177_v15 = vshrl.u32 %v14907_v50, 16 }
 0x12f   : > { %v2314_v22 = vsel %vm16187_vm10, 0, %v2313_v18  ;;  %3706 = vst [vmem:[#allocation2 + $0x4b0] sm:$0x1] %v3705_v45  ;;  %v4836_v19 = vld [vmem:[#allocation2] sm:$0xff]  ;;  %6710 = vrot.lane.b32.xlu1 %v6308_v28, %s15469_s24  ;;  %v6644_v43 = vor.u32 %v6643_v3, %v6639_v41  ;;  %v14906_v53 = vld [vmem:[%s15659_s19 + $0x38] sm:$0xff]   ;;  %v3378_v18 = vld [vmem:[#allocation2 + $0x48] sm:$0xff] }
 0x130   : > { %v16629_v42 = vpop.permute.xlu1 %3193  ;;  %v16636_v36 = vpop.permute.xlu0 %2019  ;;  %2315 = vst [vmem:[#allocation2 + $0x4e0] sm:$0x80] %v2314_v22  ;;  %v7093_v46 = vld [vmem:[#allocation2 + $0x38] sm:$0x1]  ;;  %v4837_v35 = vsel %vm16689_vm11, %v16578_v2, %v4836_v19  ;;  %v7733_v25 = vshrl.u32 %v14905_v16, 16  ;;  %v7736_v22 = vshll.u32 %v14905_v16, 16 }
 0x131   : > { %v7094_v57 = vsel %vm16520_vm12, 0, %v7093_v46  ;;  %4838 = vst [vmem:[#allocation2] sm:$0xff] %v4837_v35  ;;  %10971 = vmatmul.mubr.bf16.vlgmr.msra.gmra.mrb[0].mxu0 %v4837_v35  ;;  %v4980_v61 = vld [vmem:[#allocation2 + $0x480] sm:$0xff]  ;;  %v3379_v55 = vsel %vm16474_vm15, %v16629_v42, %v3378_v18  ;;  %v377_v39 = vld [vmem:[#allocation2 + $0x4f8] sm:$0x1]  ;;  %v2819_v56 = vshrl.u32 %v14906_v53, 16 }
 0x132   : > { %7095 = vst [vmem:[#allocation2 + $0x38] sm:$0x1] %v7094_v57  ;;  %6806 = vrot.lane.b32.xlu0 %v6644_v43, %s15469_s24  ;;  %v4981_v11 = vsel %vm16689_vm11, %v16594_v27, %v4980_v61  ;;  %v2821_v26 = vshll.u32 %v14906_v53, 16  ;;  %3380 = vst [vmem:[#allocation2 + $0x48] sm:$0xff] %v3379_v55  ;;  %v378_v14 = vsel %vm15873_vm5, 0, %v377_v39  ;;  %v10548_v0 = vld [vmem:[#allocation2 + $0x488] sm:$0xff] }
 0x133   : > { %2029 = vrot.lane.b32.xlu1 %v14900_v21, %s15469_s24  ;;  %4982 = vst [vmem:[#allocation2 + $0x480] sm:$0xff] %v4981_v11  ;;  %v7735_v46 = vrot.slane %v7733_v25, 7  ;;  %379 = vst [vmem:[#allocation2 + $0x4f8] sm:$0x1] %v378_v14  ;;  %11354 = vmatprep.mubr.bf16.mxu1 %v10548_v0  ;;  %v14908_v42 = vld [vmem:[%s15659_s19 + $0x1b8] sm:$0xff]   ;;  %v1179_v37 = vrot.slane %v1177_v15, 7 }
 0x134   : > { %v16652_v9 = vpop.permute.xlu1 %3283  ;;  %v16656_v4 = vpop.permute.xlu0 %8112  ;;  %v7228_v59 = vld [vmem:[#allocation2 + $0x4b8] sm:$0x1]  ;;  %v2823_v45 = vrot.slane %v2821_v26, 1  ;;  %11355 = vmatmul.mubr.bf16.vlgmr.msra.gmra.mrb[0].mxu1 %v4981_v11  ;;  %v8048_v10 = vshrl.u32 %v14908_v42, 16  ;;  %v8051_v38 = vshll.u32 %v14908_v42, 16  ;;  %v3513_v28 = vld [vmem:[#allocation2 + $0x4c8] sm:$0xff] }
 0x135   : > { %v7229_v2 = vsel %vm16520_vm12, 0, %v7228_v59  ;;  %v14909_v6 = vld [vmem:[%s15659_s19 + $0x1b8] sm:$0xff]   ;;  %v7738_v23 = vor.u32 %v7736_v22, %v7735_v46  ;;  %v5759_v21 = vld [vmem:[#allocation2 + $0x4d0] sm:$0x80]  ;;  %v3514_v62 = vsel %vm16474_vm15, %v16652_v9, %v3513_v28  ;;  %v1182_v3 = vor.u32 %v1180_v44, %v1179_v37  ;;  %v8294_v59 = vld [vmem:[#allocation2 + $0x20] sm:$0xff] }
 0x136   : > { %7230 = vst [vmem:[#allocation2 + $0x4b8] sm:$0x1] %v7229_v2  ;;  %v2824_v19 = vor.u32 %v2823_v45, %v2819_v56  ;;  %v3134_v41 = vshrl.u32 %v14909_v6, 16  ;;  %v3136_v20 = vshll.u32 %v14909_v6, 16  ;;  %v5760_v35 = vsel %vm16435_vm13, 0, %v5759_v21  ;;  %3515 = vst [vmem:[#allocation2 + $0x4c8] sm:$0xff] %v3514_v62 }
 0x137   : > { %v5615_v34 = vld [vmem:[#allocation2 + $0x50] sm:$0x80]  ;;  %8122 = vrot.lane.b32.xlu1 %v7738_v23, %s15471_s20  ;;  %v8050_v17 = vrot.slane %v8048_v10, 7  ;;  %5761 = vst [vmem:[#allocation2 + $0x4d0] sm:$0x80] %v5760_v35  ;;  %v8295_v43 = vsel %vm16606_vm8, %v16656_v4, %v8294_v59  ;;  %v14910_v61 = vld [vmem:[%s15659_s19 + $0x38] sm:$0xff]  }
 0x138   : > { %v16663_v24 = vpop.permute.xlu1 %4644  ;;  %v16672_v40 = vpop.permute.xlu0 %8202  ;;  %v5616_v2 = vsel %vm16435_vm13, 0, %v5615_v34  ;;  %3203 = vrot.lane.b32.xlu0 %v2824_v19, %s15471_s20  ;;  %v3138_v9 = vrot.slane %v3136_v20, 1  ;;  %8296 = vst [vmem:[#allocation2 + $0x20] sm:$0xff] %v8295_v43  ;;  %v14911_v39 = vld [vmem:[%s15659_s19 + $0x30] sm:$0xff]   ;;  %v4839_v50 = vld [vmem:[#allocation2 + $0x18] sm:$0xff]  ;;  %v8429_v56 = vld [vmem:[#allocation2 + $0x4a0] sm:$0xff] }
 0x139   : > { %5617 = vst [vmem:[#allocation2 + $0x50] sm:$0x80] %v5616_v2  ;;  %v3563_v53 = vld [vmem:[#allocation2 + $0x48] sm:$0x1]  ;;  %v8053_v18 = vor.u32 %v8051_v38, %v8050_v17  ;;  %v16768_v11 = vsel %vm16689_vm11, %v16663_v24, %v4839_v50  ;;  %v4240_v14 = vshll.u32 %v14911_v39, 16  ;;  %v8430_v0 = vsel %vm16606_vm8, %v16672_v40, %v8429_v56  ;;  %v14913_v46 = vld [vmem:[%s15659_s19 + $0x1b0] sm:$0xff]  }
 0x13a   : > { %v3564_v25 = vsel %vm16542_vm2, 0, %v3563_v53  ;;  %v1463_v22 = vld [vmem:[#allocation2 + $0x4f8] sm:$0xff]  ;;  %v3139_v55 = vor.u32 %v3138_v9, %v3134_v41  ;;  %4841 = vst [vmem:[#allocation2 + $0x18] sm:$0xff] %v16768_v11  ;;  %8431 = vst [vmem:[#allocation2 + $0x4a0] sm:$0xff] %v8430_v0  ;;  %v4573_v6 = vshrl.u32 %v14913_v46, 16  ;;  %v4576_v23 = vshll.u32 %v14913_v46, 16 }
 0x13b   : > { %3565 = vst [vmem:[#allocation2 + $0x48] sm:$0x1] %v3564_v25  ;;  %v1464_v4 = vsel %vm15906_vm6, %v1182_v3, %v1463_v22  ;;  %8212 = vrot.lane.b32.xlu1 %v8053_v18, %s15471_s20  ;;  %v14912_v24 = vld [vmem:[%s15659_s19 + $0x1b8] sm:$0xff]   ;;  %v14914_v40 = vld [vmem:[%s15659_s19 + $0x1c8] sm:$0xff]   ;;  %v14916_v34 = vld [vmem:[%s15659_s19 + $0x20] sm:$0xff]  }
 0x13c   : > { %v16680_v60 = vpop.permute.xlu1 %4740  ;;  %v16694_v8 = vpop.permute.xlu0 %8898  ;;  %1465 = vst [vmem:[#allocation2 + $0x4f8] sm:$0xff] %v1464_v4  ;;  %3293 = vrot.lane.b32.xlu0 %v3139_v55, %s15471_s20  ;;  %v4983_v44 = vld [vmem:[#allocation2 + $0x498] sm:$0xff]  ;;  %v4575_v19 = vrot.slane %v4573_v6, 7  ;;  %v14915_v41 = vld [vmem:[%s15659_s19 + $0x48] sm:$0xff]   ;;  %v6648_v35 = vshll.u32 %v14914_v40, 16  ;;  %5544 = vst.msk [vmem:[#allocation2 + $0x68] sm:$0xff] %vm221_vm0, %v14916_v34 }
 0x13d   : > { %9077 = vst.msk [vmem:[#allocation2 + $0x20] sm:$0xff] %vm4834_vm3, %v16694_v8  ;;  %v4237_v8 = vshrl.u32 %v14911_v39, 16  ;;  %v3707_v42 = vld [vmem:[#allocation2 + $0x4c8] sm:$0x1]  ;;  %v16786_v37 = vsel %vm16689_vm11, %v16680_v60, %v4983_v44  ;;  %v6310_v3 = vshrl.u32 %v14915_v41, 16  ;;  %v6312_v17 = vshll.u32 %v14915_v41, 16 }
 0x13e   : > { %2150 = vst.msk [vmem:[#allocation2 + $0x4f8] sm:$0xff] %vm20266_vm1, %v16636_v36  ;;  %v7041_v10 = vld [vmem:[#allocation2 + $0x4d0] sm:$0xff]  ;;  %v3708_v36 = vsel %vm16542_vm2, 0, %v3707_v42  ;;  %4985 = vst [vmem:[#allocation2 + $0x498] sm:$0xff] %v16786_v37  ;;  %v6650_v59 = vrot.slane %v6648_v35, 1  ;;  %v14917_v2 = vld [vmem:[%s15659_s19 + $0x40] sm:$0xff]  }
 0x13f   : > { %v4239_v45 = vrot.slane %v4237_v8, 7  ;;  %8908 = vrot.lane.b32.xlu1 %v14910_v61, %s15472_s22  ;;  %v7042_v60 = vsel %vm16456_vm14, %v16610_v7, %v7041_v10  ;;  %3709 = vst [vmem:[#allocation2 + $0x4c8] sm:$0x1] %v3708_v36  ;;  %v4578_v7 = vor.u32 %v4576_v23, %v4575_v19  ;;  %v380_v53 = vld [vmem:[#allocation2 + $0x510] sm:$0x1]  ;;  %v2826_v22 = vshrl.u32 %v14917_v2, 16 }
 0x140   : > { %v16702_v31 = vpop.permute.xlu1 %6702  ;;  %v16709_v30 = vpop.permute.xlu0 %8988  ;;  %v6897_v28 = vld [vmem:[#allocation2 + $0x50] sm:$0xff]  ;;  %7043 = vst [vmem:[#allocation2 + $0x4d0] sm:$0xff] %v7042_v60  ;;  %v2828_v55 = vshll.u32 %v14917_v2, 16  ;;  %v14919_v39 = vld [vmem:[%s15659_s19 + $0x1a8] sm:$0xff]   ;;  %v381_v4 = vsel %vm15873_vm5, 0, %v380_v53  ;;  %v14920_v56 = vld [vmem:[%s15659_s19 + $0x1a0] sm:$0xff]  }
 0x141   : > { %9122 = vst.msk [vmem:[#allocation2 + $0x4a0] sm:$0xff] %vm4834_vm3, %v16709_v30  ;;  %v4242_v21 = vor.u32 %v4240_v14, %v4239_v45  ;;  %v6646_v30 = vshrl.u32 %v14914_v40, 16  ;;  %v6898_v62 = vsel %vm16456_vm14, %v16614_v5, %v6897_v28  ;;  %v6314_v5 = vrot.slane %v6312_v17, 1  ;;  %382 = vst [vmem:[#allocation2 + $0x510] sm:$0x1] %v381_v4  ;;  %v14918_v42 = vld [vmem:[%s15659_s19 + $0x1d0] sm:$0xff]  }
 0x142   : > { %6899 = vst [vmem:[#allocation2 + $0x50] sm:$0xff] %v6898_v62  ;;  %v2830_v8 = vrot.slane %v2828_v55, 1  ;;  %v1184_v14 = vshrl.u32 %v14919_v39, 16  ;;  %v1187_v0 = vshll.u32 %v14919_v39, 16  ;;  %5592 = vst.msk [vmem:[#allocation2 + $0x4e8] sm:$0xff] %vm221_vm0, %v14920_v56  ;;  %v14921_v36 = vld [vmem:[%s15659_s19 + $0x1c0] sm:$0xff]  }
 0x143   : > { %4654 = vrot.lane.b32.xlu0 %v4242_v21, %s15472_s22  ;;  %8998 = vrot.lane.b32.xlu1 %v14912_v24, %s15472_s22  ;;  %v6651_v25 = vor.u32 %v6650_v59, %v6646_v30  ;;  %v6315_v50 = vor.u32 %v6314_v5, %v6310_v3  ;;  %v14922_v60 = vld [vmem:[%s15659_s19 + $0x40] sm:$0xff]   ;;  %v5618_v21 = vld [vmem:[#allocation2 + $0x68] sm:$0x80]  ;;  %v8297_v19 = vld [vmem:[#allocation2 + $0x38] sm:$0xff]  ;;  %v3141_v62 = vshrl.u32 %v14921_v36, 16  ;;  %v3143_v35 = vshll.u32 %v14921_v36, 16 }
 0x144   : > { %v16717_v51 = vpop.permute.xlu1 %2021  ;;  %v16722_v54 = vpop.permute.xlu0 %6798  ;;  %v10407_v46 = vld [vmem:[#allocation2 + $0x20] sm:$0xff]  ;;  %v2831_v40 = vor.u32 %v2830_v8, %v2826_v22  ;;  %v1186_v10 = vrot.slane %v1184_v14, 7  ;;  %v5619_v30 = vsel %vm16435_vm13, 0, %v5618_v21  ;;  %v7740_v34 = vshrl.u32 %v14922_v60, 16  ;;  %v14923_v2 = vld [vmem:[%s15659_s19 + $0x38] sm:$0xff]  }
 0x145   : > { %v2316_v43 = vld [vmem:[#allocation2 + $0x4f8] sm:$0x80]  ;;  %10978 = vmatprep.mubr.bf16.mxu0 %v10407_v46  ;;  %5620 = vst [vmem:[#allocation2 + $0x68] sm:$0x80] %v5619_v30  ;;  %v14924_v5 = vld [vmem:[%s15659_s19 + $0x1c0] sm:$0xff]   ;;  %v4244_v22 = vshrl.u32 %v14923_v2, 16 }
 0x146   : > { %v2317_v61 = vsel %vm16187_vm10, 0, %v2316_v43  ;;  %10979 = vmatmul.mubr.bf16.gmra.mrb[4].mxu0 %v16768_v11  ;;  %v1189_v41 = vor.u32 %v1187_v0, %v1186_v10  ;;  %v3381_v11 = vld [vmem:[#allocation2 + $0x60] sm:$0xff]  ;;  %v3145_v43 = vrot.slane %v3143_v35, 1  ;;  %v4247_v55 = vshll.u32 %v14923_v2, 16  ;;  %v8432_v8 = vld [vmem:[#allocation2 + $0x4b8] sm:$0xff]  ;;  %v4986_v35 = vld [vmem:[#allocation2 + $0x4b0] sm:$0xff] }
 0x147   : > { %2318 = vst [vmem:[#allocation2 + $0x4f8] sm:$0x80] %v2317_v61  ;;  %4750 = vrot.lane.b32.xlu0 %v4578_v7, %s15472_s22  ;;  %6808 = vrot.lane.b32.xlu1 %v6651_v25, %s15469_s24  ;;  %v7231_v44 = vld [vmem:[#allocation2 + $0x4d0] sm:$0x1]  ;;  %v7743_v7 = vshll.u32 %v14922_v60, 16  ;;  %v7742_v25 = vrot.slane %v7740_v34, 7 }
 0x148   : > { %v16735_v57 = vpop.permute.xlu1 %8114  ;;  %v16738_v27 = vpop.permute.xlu0 %3195  ;;  %v7232_v6 = vsel %vm16520_vm12, 0, %v7231_v44  ;;  %v10551_v59 = vld [vmem:[#allocation2 + $0x4a0] sm:$0xff]  ;;  %v1466_v61 = vld [vmem:[#allocation2 + $0x510] sm:$0xff]  ;;  %v8055_v4 = vshrl.u32 %v14924_v5, 16  ;;  %v8058_v56 = vshll.u32 %v14924_v5, 16  ;;  %v4246_v46 = vrot.slane %v4244_v22, 7 }
 0x149   : > { %v7096_v23 = vld [vmem:[#allocation2 + $0x50] sm:$0x1]  ;;  %7233 = vst [vmem:[#allocation2 + $0x4d0] sm:$0x1] %v7232_v6  ;;  %v8298_v3 = vsel %vm16606_vm8, %v16735_v57, %v8297_v19  ;;  %v3382_v17 = vsel %vm16474_vm15, %v16738_v27, %v3381_v11  ;;  %11362 = vmatprep.mubr.bf16.mxu1 %v10551_v59  ;;  %v1467_v27 = vsel %vm15906_vm6, %v1189_v41, %v1466_v61  ;;  %v5762_v39 = vld [vmem:[#allocation2 + $0x4e8] sm:$0x80] }
 0x14a   : > { %v7097_v28 = vsel %vm16520_vm12, 0, %v7096_v23  ;;  %8299 = vst [vmem:[#allocation2 + $0x38] sm:$0xff] %v8298_v3  ;;  %3383 = vst [vmem:[#allocation2 + $0x60] sm:$0xff] %v3382_v17  ;;  %11363 = vmatmul.mubr.bf16.gmra.mrb[4].mxu1 %v16786_v37  ;;  %v3516_v14 = vld [vmem:[#allocation2 + $0x4e0] sm:$0xff]  ;;  %v5763_v0 = vsel %vm16435_vm13, 0, %v5762_v39  ;;  %v7745_v37 = vor.u32 %v7743_v7, %v7742_v25  ;;  %v8057_v44 = vrot.slane %v8055_v4, 7 }
 0x14b   : > { %6712 = vrot.lane.b32.xlu0 %v6315_v50, %s15469_s24  ;;  %7098 = vst [vmem:[#allocation2 + $0x50] sm:$0x1] %v7097_v28  ;;  %3205 = vrot.lane.b32.xlu1 %v2831_v40, %s15471_s20  ;;  %v3146_v50 = vor.u32 %v3145_v43, %v3141_v62  ;;  %1468 = vst [vmem:[#allocation2 + $0x510] sm:$0xff] %v1467_v27  ;;  %v14925_v6 = vld [vmem:[%s15659_s19 + $0x1b8] sm:$0xff]   ;;  %v4249_v23 = vor.u32 %v4247_v55, %v4246_v46  ;;  %v4842_v40 = vld [vmem:[#allocation2 + $0x30] sm:$0xff] }
 0x14c   : > { %v16746_v63 = vpop.permute.xlu1 %8204  ;;  %v16754_v16 = vpop.permute.xlu0 %3285  ;;  %2151 = vst.msk [vmem:[#allocation2 + $0x510] sm:$0xff] %vm20266_vm1, %v16717_v51  ;;  %5764 = vst [vmem:[#allocation2 + $0x4e8] sm:$0x80] %v5763_v0  ;;  %v6900_v51 = vld [vmem:[#allocation2 + $0x68] sm:$0xff]  ;;  %v4580_v10 = vshrl.u32 %v14925_v6, 16  ;;  %v4583_v36 = vshll.u32 %v14925_v6, 16 }
 0x14d   : > { %v14927_v28 = vld [vmem:[%s15659_s19 + $0x50] sm:$0xff]   ;;  %v6901_v21 = vsel %vm16456_vm14, %v16702_v31, %v6900_v51  ;;  %v14926_v31 = vld [vmem:[%s15659_s19 + $0x40] sm:$0xff]   ;;  %v14931_v39 = vld [vmem:[%s15659_s19 + $0x1a8] sm:$0xff]  }
 0x14e   : > { %6902 = vst [vmem:[#allocation2 + $0x68] sm:$0xff] %v6901_v21  ;;  %v6317_v41 = vshrl.u32 %v14927_v28, 16  ;;  %v6319_v62 = vshll.u32 %v14927_v28, 16  ;;  %v14930_v3 = vld [vmem:[%s15659_s19 + $0x1d0] sm:$0xff]   ;;  %v14928_v2 = vld [vmem:[%s15659_s19 + $0x1c0] sm:$0xff]   ;;  %v14929_v4 = vld [vmem:[%s15659_s19 + $0x1d8] sm:$0xff]  }
 0x14f   : > { %2031 = vrot.lane.b32.xlu0 %v14918_v42, %s15469_s24  ;;  %3295 = vrot.lane.b32.xlu1 %v3146_v50, %s15471_s20  ;;  %v3517_v42 = vsel %vm16474_vm15, %v16754_v16, %v3516_v14  ;;  %v6653_v25 = vshrl.u32 %v14930_v3, 16  ;;  %v6655_v27 = vshll.u32 %v14930_v3, 16  ;;  %v14932_v50 = vld [vmem:[%s15659_s19 + $0x28] sm:$0xff]   ;;  %5593 = vst.msk [vmem:[#allocation2 + $0x500] sm:$0xff] %vm221_vm0, %v14931_v39  ;;  %v3384_v6 = vld [vmem:[#allocation2 + $0x78] sm:$0xff] }
 0x150   : > { %v16770_v26 = vpop.permute.xlu1 %8900  ;;  %v16778_v15 = vpop.permute.xlu0 %4646  ;;  %3518 = vst [vmem:[#allocation2 + $0x4e0] sm:$0xff] %v3517_v42  ;;  %v6321_v7 = vrot.slane %v6319_v62, 1  ;;  %5545 = vst.msk [vmem:[#allocation2 + $0x80] sm:$0xff] %vm221_vm0, %v14932_v50  ;;  %v14933_v0 = vld [vmem:[%s15659_s19 + $0x48] sm:$0xff]  }
 0x151   : > { %9078 = vst.msk [vmem:[#allocation2 + $0x38] sm:$0xff] %vm4834_vm3, %v16770_v26  ;;  %v8433_v26 = vsel %vm16606_vm8, %v16746_v63, %v8432_v8  ;;  %v8060_v63 = vor.u32 %v8058_v56, %v8057_v44  ;;  %v4843_v60 = vsel %vm16689_vm11, %v16778_v15, %v4842_v40  ;;  %v3566_v19 = vld [vmem:[#allocation2 + $0x60] sm:$0x1]  ;;  %v4582_v15 = vrot.slane %v4580_v10, 7  ;;  %v14934_v46 = vld [vmem:[%s15659_s19 + $0x48] sm:$0xff]   ;;  %v14935_v40 = vld [vmem:[%s15659_s19 + $0x1b0] sm:$0xff]  }
 0x152   : > { %8434 = vst [vmem:[#allocation2 + $0x4b8] sm:$0xff] %v8433_v26  ;;  %4844 = vst [vmem:[#allocation2 + $0x30] sm:$0xff] %v4843_v60  ;;  %v3567_v30 = vsel %vm16542_vm2, 0, %v3566_v19  ;;  %v6657_v14 = vrot.slane %v6655_v27, 1  ;;  %v7747_v44 = vshrl.u32 %v14933_v0, 16  ;;  %v7750_v42 = vshll.u32 %v14933_v0, 16 }
 0x153   : > { %8124 = vrot.lane.b32.xlu0 %v7745_v37, %s15471_s20  ;;  %4656 = vrot.lane.b32.xlu1 %v4249_v23, %s15472_s22  ;;  %3568 = vst [vmem:[#allocation2 + $0x60] sm:$0x1] %v3567_v30  ;;  %v4585_v34 = vor.u32 %v4583_v36, %v4582_v15  ;;  %v2319_v17 = vld [vmem:[#allocation2 + $0x510] sm:$0x80]  ;;  %v7044_v59 = vld [vmem:[#allocation2 + $0x4e8] sm:$0xff]  ;;  %v2833_v51 = vshrl.u32 %v14934_v46, 16 }
 0x154   : > { %v16795_v38 = vpop.permute.xlu1 %8990  ;;  %v16801_v20 = vpop.permute.xlu0 %4742  ;;  %v2320_v43 = vsel %vm16187_vm10, 0, %v2319_v17  ;;  %v7045_v5 = vsel %vm16456_vm14, %v16722_v54, %v7044_v59  ;;  %v6658_v26 = vor.u32 %v6657_v14, %v6653_v25  ;;  %v383_v23 = vld [vmem:[#allocation2 + $0x528] sm:$0x1]  ;;  %v7749_v21 = vrot.slane %v7747_v44, 7  ;;  %v3519_v17 = vld [vmem:[#allocation2 + $0x4f8] sm:$0xff]  ;;  %v8300_v27 = vld [vmem:[#allocation2 + $0x50] sm:$0xff] }
 0x155   : > { %9123 = vst.msk [vmem:[#allocation2 + $0x4b8] sm:$0xff] %vm4834_vm3, %v16795_v38  ;;  %v4987_v11 = vsel %vm16689_vm11, %v16801_v20, %v4986_v35  ;;  %v6322_v20 = vor.u32 %v6321_v7, %v6317_v41  ;;  %2321 = vst [vmem:[#allocation2 + $0x510] sm:$0x80] %v2320_v43  ;;  %v7099_v8 = vld [vmem:[#allocation2 + $0x68] sm:$0x1]  ;;  %v384_v36 = vsel %vm15873_vm5, 0, %v383_v23 }
 0x156   : > { %4988 = vst [vmem:[#allocation2 + $0x4b0] sm:$0xff] %v4987_v11  ;;  %7046 = vst [vmem:[#allocation2 + $0x4e8] sm:$0xff] %v7045_v5  ;;  %v7100_v37 = vsel %vm16520_vm12, 0, %v7099_v8  ;;  %v1191_v19 = vshrl.u32 %v14935_v40, 16  ;;  %v1194_v30 = vshll.u32 %v14935_v40, 16  ;;  %v14936_v15 = vld [vmem:[%s15659_s19 + $0x1c8] sm:$0xff]  }
 0x157   : > { %8214 = vrot.lane.b32.xlu0 %v8060_v63, %s15471_s20  ;;  %v3710_v61 = vld [vmem:[#allocation2 + $0x4e0] sm:$0x1]  ;;  %4752 = vrot.lane.b32.xlu1 %v4585_v34, %s15472_s22  ;;  %7101 = vst [vmem:[#allocation2 + $0x68] sm:$0x1] %v7100_v37  ;;  %v2835_v63 = vshll.u32 %v14934_v46, 16  ;;  %v7752_v34 = vor.u32 %v7750_v42, %v7749_v21  ;;  %v8062_v3 = vshrl.u32 %v14936_v15, 16 }
 0x158   : > { %v16811_v9 = vpop.permute.xlu1 %6800  ;;  %v16813_v18 = vpop.permute.xlu0 %6704  ;;  %v3711_v55 = vsel %vm16542_vm2, 0, %v3710_v61  ;;  %v10410_v56 = vld [vmem:[#allocation2 + $0x38] sm:$0xff]  ;;  %385 = vst [vmem:[#allocation2 + $0x528] sm:$0x1] %v384_v36  ;;  %v1193_v7 = vrot.slane %v1191_v19, 7  ;;  %v8065_v5 = vshll.u32 %v14936_v15, 16 }
 0x159   : > { %3712 = vst [vmem:[#allocation2 + $0x4e0] sm:$0x1] %v3711_v55  ;;  %10986 = vmatprep.mubr.bf16.mxu0 %v10410_v56  ;;  %v2837_v35 = vrot.slane %v2835_v63, 1  ;;  %v5765_v59 = vld [vmem:[#allocation2 + $0x500] sm:$0x80]  ;;  %v8064_v55 = vrot.slane %v8062_v3, 7 }
 0x15a   : > { %10987 = vmatmul.mubr.bf16.gmra.mrb[8].mxu0 %v4843_v60  ;;  %v1196_v25 = vor.u32 %v1194_v30, %v1193_v7  ;;  %v14939_v46 = vld [vmem:[%s15659_s19 + $0x40] sm:$0xff]   ;;  %v14938_v44 = vld [vmem:[%s15659_s19 + $0x48] sm:$0xff]   ;;  %v14942_v15 = vld [vmem:[%s15659_s19 + $0x1d8] sm:$0xff]  }
 0x15b   : > { %8910 = vrot.lane.b32.xlu0 %v14926_v31, %s15472_s22  ;;  %6714 = vrot.lane.b32.xlu1 %v6322_v20, %s15469_s24  ;;  %v2838_v43 = vor.u32 %v2837_v35, %v2833_v51  ;;  %v8067_v56 = vor.u32 %v8065_v5, %v8064_v55  ;;  %v4845_v42 = vld [vmem:[#allocation2 + $0x48] sm:$0xff]  ;;  %v4251_v23 = vshrl.u32 %v14939_v46, 16  ;;  %v4254_v40 = vshll.u32 %v14939_v46, 16  ;;  %v8435_v51 = vld [vmem:[#allocation2 + $0x4d0] sm:$0xff]  ;;  %v14941_v63 = vld [vmem:[%s15659_s19 + $0x1c0] sm:$0xff]  }
 0x15c   : > { %v16823_v24 = vpop.permute.xlu1 %3197  ;;  %v16827_v45 = vpop.permute.xlu0 %2023  ;;  %v10554_v60 = vld [vmem:[#allocation2 + $0x4b8] sm:$0xff]  ;;  %v4989_v36 = vld [vmem:[#allocation2 + $0x4c8] sm:$0xff]  ;;  %v4590_v30 = vshll.u32 %v14941_v63, 16  ;;  %v14944_v5 = vld [vmem:[%s15659_s19 + $0x30] sm:$0xff]  }
 0x15d   : > { %v3385_v10 = vsel %vm16474_vm15, %v16823_v24, %v3384_v6  ;;  %11370 = vmatprep.mubr.bf16.mxu1 %v10554_v60  ;;  %v7234_v62 = vld [vmem:[#allocation2 + $0x4e8] sm:$0x1]  ;;  %v4253_v21 = vrot.slane %v4251_v23, 7  ;;  %5546 = vst.msk [vmem:[#allocation2 + $0x98] sm:$0xff] %vm221_vm0, %v14944_v5  ;;  %v386_v46 = vld [vmem:[#allocation2 + $0x540] sm:$0x1] }
 0x15e   : > { %3386 = vst [vmem:[#allocation2 + $0x78] sm:$0xff] %v3385_v10  ;;  %v14937_v24 = vld [vmem:[%s15659_s19 + $0x1c8] sm:$0xff]   ;;  %11371 = vmatmul.mubr.bf16.gmra.mrb[8].mxu1 %v4987_v11  ;;  %v7235_v31 = vsel %vm16520_vm12, 0, %v7234_v62  ;;  %v5766_v11 = vsel %vm16435_vm13, 0, %v5765_v59  ;;  %v6662_v59 = vshll.u32 %v14942_v15, 16 }
 0x15f   : > { %9000 = vrot.lane.b32.xlu0 %v14928_v2, %s15472_s22  ;;  %2033 = vrot.lane.b32.xlu1 %v14929_v4, %s15469_s24  ;;  %7236 = vst [vmem:[#allocation2 + $0x4e8] sm:$0x1] %v7235_v31  ;;  %v5621_v2 = vld [vmem:[#allocation2 + $0x80] sm:$0x80]  ;;  %5767 = vst [vmem:[#allocation2 + $0x500] sm:$0x80] %v5766_v11  ;;  %v4256_v7 = vor.u32 %v4254_v40, %v4253_v21 }
 0x160   : > { %v16848_v53 = vpop.permute.xlu1 %3287  ;;  %v16854_v57 = vpop.permute.xlu0 %8116  ;;  %v5622_v20 = vsel %vm16435_vm13, 0, %v5621_v2  ;;  %v3148_v39 = vshrl.u32 %v14937_v24, 16  ;;  %v3150_v50 = vshll.u32 %v14937_v24, 16  ;;  %v1469_v0 = vld [vmem:[#allocation2 + $0x528] sm:$0xff]  ;;  %v14946_v40 = vld [vmem:[%s15659_s19 + $0x1e0] sm:$0xff]  }
 0x161   : > { %v3520_v61 = vsel %vm16474_vm15, %v16848_v53, %v3519_v17  ;;  %5623 = vst [vmem:[#allocation2 + $0x80] sm:$0x80] %v5622_v20  ;;  %v8301_v53 = vsel %vm16606_vm8, %v16854_v57, %v8300_v27  ;;  %v1470_v57 = vsel %vm15906_vm6, %v1196_v25, %v1469_v0  ;;  %v14940_v19 = vld [vmem:[%s15659_s19 + $0x1c8] sm:$0xff]   ;;  %v14943_v17 = vld [vmem:[%s15659_s19 + $0x58] sm:$0xff]  }
 0x162   : > { %3521 = vst [vmem:[#allocation2 + $0x4f8] sm:$0xff] %v3520_v61  ;;  %8302 = vst [vmem:[#allocation2 + $0x50] sm:$0xff] %v8301_v53  ;;  %v3152_v37 = vrot.slane %v3150_v50, 1  ;;  %v14945_v61 = vld [vmem:[%s15659_s19 + $0x50] sm:$0xff]   ;;  %v14947_v27 = vld [vmem:[%s15659_s19 + $0x1b8] sm:$0xff]  }
 0x163   : > { %6810 = vrot.lane.b32.xlu0 %v6658_v26, %s15469_s24  ;;  %8126 = vrot.lane.b32.xlu1 %v7752_v34, %s15471_s20  ;;  %1471 = vst [vmem:[#allocation2 + $0x528] sm:$0xff] %v1470_v57  ;;  %v2840_v25 = vshrl.u32 %v14945_v61, 16  ;;  %v2842_v55 = vshll.u32 %v14945_v61, 16  ;;  %v387_v57 = vsel %vm15873_vm5, 0, %v386_v46 }
 0x164   : > { %v16877_v16 = vpop.permute.xlu1 %4648  ;;  %v16882_v38 = vpop.permute.xlu0 %8206  ;;  %v3153_v6 = vor.u32 %v3152_v37, %v3148_v39  ;;  %2152 = vst.msk [vmem:[#allocation2 + $0x528] sm:$0xff] %vm20266_vm1, %v16827_v45  ;;  %388 = vst [vmem:[#allocation2 + $0x540] sm:$0x1] %v387_v57  ;;  %v4848_v57 = vld [vmem:[#allocation2 + $0x60] sm:$0xff] }
 0x165   : > { %v3569_v14 = vld [vmem:[#allocation2 + $0x78] sm:$0x1]  ;;  %v8436_v10 = vsel %vm16606_vm8, %v16882_v38, %v8435_v51  ;;  %v2844_v37 = vrot.slane %v2842_v55, 1 }
 0x166   : > { %v3570_v26 = vsel %vm16542_vm2, 0, %v3569_v14  ;;  %8437 = vst [vmem:[#allocation2 + $0x4d0] sm:$0xff] %v8436_v10  ;;  %v7047_v35 = vld [vmem:[#allocation2 + $0x500] sm:$0xff] }
 0x167   : > { %3207 = vrot.lane.b32.xlu0 %v2838_v43, %s15471_s20  ;;  %3571 = vst [vmem:[#allocation2 + $0x78] sm:$0x1] %v3570_v26  ;;  %8216 = vrot.lane.b32.xlu1 %v8067_v56, %s15471_s20  ;;  %v6326_v43 = vshll.u32 %v14943_v17, 16  ;;  %v14948_v56 = vld [vmem:[%s15659_s19 + $0x1b0] sm:$0xff]   ;;  %v1198_v26 = vshrl.u32 %v14947_v27, 16  ;;  %v2845_v23 = vor.u32 %v2844_v37, %v2840_v25  ;;  %v8438_v25 = vld [vmem:[#allocation2 + $0x4e8] sm:$0xff] }
 0x168   : > { %v16900_v22 = vpop.permute.xlu1 %4744  ;;  %v16907_v54 = vpop.permute.xlu0 %8902  ;;  %v6903_v38 = vld [vmem:[#allocation2 + $0x80] sm:$0xff]  ;;  %5594 = vst.msk [vmem:[#allocation2 + $0x518] sm:$0xff] %vm221_vm0, %v14948_v56  ;;  %v3522_v56 = vld [vmem:[#allocation2 + $0x510] sm:$0xff] }
 0x169   : > { %9079 = vst.msk [vmem:[#allocation2 + $0x50] sm:$0xff] %vm4834_vm3, %v16907_v54  ;;  %v16962_v54 = vsel %vm16689_vm11, %v16877_v16, %v4845_v42  ;;  %v3713_v60 = vld [vmem:[#allocation2 + $0x4f8] sm:$0x1]  ;;  %v4587_v16 = vshrl.u32 %v14941_v63, 16  ;;  %v16976_v45 = vsel %vm16689_vm11, %v16900_v22, %v4989_v36  ;;  %v7048_v22 = vsel %vm16456_vm14, %v16811_v9, %v7047_v35 }
 0x16a   : > { %4847 = vst [vmem:[#allocation2 + $0x48] sm:$0xff] %v16962_v54  ;;  %v3714_v24 = vsel %vm16542_vm2, 0, %v3713_v60  ;;  %4991 = vst [vmem:[#allocation2 + $0x4c8] sm:$0xff] %v16976_v45  ;;  %v6904_v34 = vsel %vm16456_vm14, %v16813_v18, %v6903_v38  ;;  %v6324_v9 = vshrl.u32 %v14943_v17, 16  ;;  %v6664_v18 = vrot.slane %v6662_v59, 1  ;;  %v14949_v60 = vld [vmem:[%s15659_s19 + $0x1d0] sm:$0xff]  }
 0x16b   : > { %3297 = vrot.lane.b32.xlu0 %v3153_v6, %s15471_s20  ;;  %3715 = vst [vmem:[#allocation2 + $0x4f8] sm:$0x1] %v3714_v24  ;;  %8912 = vrot.lane.b32.xlu1 %v14938_v44, %s15472_s22  ;;  %v4589_v3 = vrot.slane %v4587_v16, 7  ;;  %7049 = vst [vmem:[#allocation2 + $0x500] sm:$0xff] %v7048_v22  ;;  %v2322_v11 = vld [vmem:[#allocation2 + $0x528] sm:$0x80] }
 0x16c   : > { %v16924_v28 = vpop.permute.xlu1 %6706  ;;  %v16927_v41 = vpop.permute.xlu0 %8992  ;;  %6905 = vst [vmem:[#allocation2 + $0x80] sm:$0xff] %v6904_v34  ;;  %v6328_v20 = vrot.slane %v6326_v43, 1  ;;  %v2323_v50 = vsel %vm16187_vm10, 0, %v2322_v11  ;;  %v1201_v44 = vshll.u32 %v14947_v27, 16  ;;  %v1200_v51 = vrot.slane %v1198_v26, 7  ;;  %v14950_v16 = vld [vmem:[%s15659_s19 + $0x50] sm:$0xff]  }
 0x16d   : > { %9124 = vst.msk [vmem:[#allocation2 + $0x4d0] sm:$0xff] %vm4834_vm3, %v16927_v41  ;;  %v6660_v41 = vshrl.u32 %v14942_v15, 16  ;;  %v4592_v2 = vor.u32 %v4590_v30, %v4589_v3  ;;  %2324 = vst [vmem:[#allocation2 + $0x528] sm:$0x80] %v2323_v50  ;;  %v3155_v38 = vshrl.u32 %v14949_v60, 16  ;;  %v3157_v24 = vshll.u32 %v14949_v60, 16 }
 0x16e   : > { %v6329_v0 = vor.u32 %v6328_v20, %v6324_v9  ;;  %v1203_v35 = vor.u32 %v1201_v44, %v1200_v51  ;;  %v8303_v22 = vld [vmem:[#allocation2 + $0x68] sm:$0xff]  ;;  %v3387_v34 = vld [vmem:[#allocation2 + $0x90] sm:$0xff]  ;;  %v7754_v3 = vshrl.u32 %v14950_v16, 16  ;;  %v1472_v43 = vld [vmem:[#allocation2 + $0x540] sm:$0xff] }
 0x16f   : > { %4658 = vrot.lane.b32.xlu0 %v4256_v7, %s15472_s22  ;;  %9002 = vrot.lane.b32.xlu1 %v14940_v19, %s15472_s22  ;;  %v6665_v53 = vor.u32 %v6664_v18, %v6660_v41  ;;  %v5624_v19 = vld [vmem:[#allocation2 + $0x98] sm:$0x80]  ;;  %v14951_v9 = vld [vmem:[%s15659_s19 + $0x48] sm:$0xff]  }
 0x170   : > { %v16945_v4 = vpop.permute.xlu1 %2025  ;;  %v16948_v8 = vpop.permute.xlu0 %6802  ;;  %v10413_v63 = vld [vmem:[#allocation2 + $0x50] sm:$0xff]  ;;  %v5625_v15 = vsel %vm16435_vm13, 0, %v5624_v19  ;;  %v5768_v59 = vld [vmem:[#allocation2 + $0x518] sm:$0x80]  ;;  %v7756_v61 = vrot.slane %v7754_v3, 7  ;;  %v4258_v11 = vshrl.u32 %v14951_v9, 16 }
 0x171   : > { %10994 = vmatprep.mubr.bf16.mxu0 %v10413_v63  ;;  %5626 = vst [vmem:[#allocation2 + $0x98] sm:$0x80] %v5625_v15  ;;  %v5769_v5 = vsel %vm16435_vm13, 0, %v5768_v59  ;;  %v4261_v20 = vshll.u32 %v14951_v9, 16  ;;  %v4992_v19 = vld [vmem:[#allocation2 + $0x4e0] sm:$0xff]  ;;  %v14954_v15 = vld [vmem:[%s15659_s19 + $0x50] sm:$0xff]  }
 0x172   : > { %v7237_v42 = vld [vmem:[#allocation2 + $0x500] sm:$0x1]  ;;  %10995 = vmatmul.mubr.bf16.gmra.mrb[12].mxu0 %v16962_v54  ;;  %v7757_v54 = vshll.u32 %v14950_v16, 16  ;;  %5770 = vst [vmem:[#allocation2 + $0x518] sm:$0x80] %v5769_v5  ;;  %v4260_v46 = vrot.slane %v4258_v11, 7 }
 0x173   : > { %4754 = vrot.lane.b32.xlu0 %v4592_v2, %s15472_s22  ;;  %v7102_v6 = vld [vmem:[#allocation2 + $0x80] sm:$0x1]  ;;  %6812 = vrot.lane.b32.xlu1 %v6665_v53, %s15469_s24  ;;  %v7238_v10 = vsel %vm16520_vm12, 0, %v7237_v42  ;;  %v3159_v2 = vrot.slane %v3157_v24, 1  ;;  %v14956_v3 = vld [vmem:[%s15659_s19 + $0x1d0] sm:$0xff]   ;;  %v14957_v5 = vld [vmem:[%s15659_s19 + $0x1e8] sm:$0xff]  }
 0x174   : > { %v16979_v62 = vpop.permute.xlu1 %8118  ;;  %v16986_v31 = vpop.permute.xlu0 %3199  ;;  %v7103_v36 = vsel %vm16520_vm12, 0, %v7102_v6  ;;  %7239 = vst [vmem:[#allocation2 + $0x500] sm:$0x1] %v7238_v10  ;;  %v10557_v7 = vld [vmem:[#allocation2 + $0x4d0] sm:$0xff]  ;;  %v14961_v11 = vld [vmem:[%s15659_s19 + $0x58] sm:$0xff]  }
 0x175   : > { %7104 = vst [vmem:[#allocation2 + $0x80] sm:$0x1] %v7103_v36  ;;  %v8304_v17 = vsel %vm16606_vm8, %v16979_v62, %v8303_v22  ;;  %v3388_v41 = vsel %vm16474_vm15, %v16986_v31, %v3387_v34  ;;  %11378 = vmatprep.mubr.bf16.mxu1 %v10557_v7  ;;  %v14952_v62 = vld [vmem:[%s15659_s19 + $0x1d0] sm:$0xff]   ;;  %v1473_v31 = vsel %vm15906_vm6, %v1203_v35, %v1472_v43  ;;  %v14958_v34 = vld [vmem:[%s15659_s19 + $0x1e0] sm:$0xff]   ;;  %v14960_v43 = vld [vmem:[%s15659_s19 + $0x38] sm:$0xff]  }
 0x176   : > { %8305 = vst [vmem:[#allocation2 + $0x68] sm:$0xff] %v8304_v17  ;;  %3389 = vst [vmem:[#allocation2 + $0x90] sm:$0xff] %v3388_v41  ;;  %11379 = vmatmul.mubr.bf16.gmra.mrb[12].mxu1 %v16976_v45  ;;  %v3160_v18 = vor.u32 %v3159_v2, %v3155_v38  ;;  %v7759_v45 = vor.u32 %v7757_v54, %v7756_v61  ;;  %v8069_v27 = vshrl.u32 %v14952_v62, 16  ;;  %v8072_v50 = vshll.u32 %v14952_v62, 16 }
 0x177   : > { %6716 = vrot.lane.b32.xlu0 %v6329_v0, %s15469_s24  ;;  %3209 = vrot.lane.b32.xlu1 %v2845_v23, %s15471_s20  ;;  %1474 = vst [vmem:[#allocation2 + $0x540] sm:$0xff] %v1473_v31  ;;  %v14953_v0 = vld [vmem:[%s15659_s19 + $0x1c8] sm:$0xff]   ;;  %v14955_v23 = vld [vmem:[%s15659_s19 + $0x60] sm:$0xff]   ;;  %v6667_v59 = vshrl.u32 %v14958_v34, 16  ;;  %v6669_v2 = vshll.u32 %v14958_v34, 16  ;;  %5547 = vst.msk [vmem:[#allocation2 + $0xb0] sm:$0xff] %vm221_vm0, %v14960_v43 }
 0x178   : > { %v17002_v39 = vpop.permute.xlu1 %8208  ;;  %v17007_v14 = vpop.permute.xlu0 %3289  ;;  %2153 = vst.msk [vmem:[#allocation2 + $0x540] sm:$0xff] %vm20266_vm1, %v16945_v4  ;;  %v8071_v44 = vrot.slane %v8069_v27, 7  ;;  %v4597_v42 = vshll.u32 %v14953_v0, 16  ;;  %v6906_v4 = vld [vmem:[#allocation2 + $0x98] sm:$0xff]  ;;  %v6331_v60 = vshrl.u32 %v14955_v23, 16 }
 0x179   : > { %v8439_v53 = vsel %vm16606_vm8, %v17002_v39, %v8438_v25  ;;  %v3523_v26 = vsel %vm16474_vm15, %v17007_v14, %v3522_v56  ;;  %v4594_v39 = vshrl.u32 %v14953_v0, 16  ;;  %v6907_v14 = vsel %vm16456_vm14, %v16924_v28, %v6906_v4  ;;  %v389_v0 = vld [vmem:[#allocation2 + $0x558] sm:$0x1] }
 0x17a   : > { %8440 = vst [vmem:[#allocation2 + $0x4e8] sm:$0xff] %v8439_v53  ;;  %3524 = vst [vmem:[#allocation2 + $0x510] sm:$0xff] %v3523_v26  ;;  %v8074_v63 = vor.u32 %v8072_v50, %v8071_v44  ;;  %v6671_v61 = vrot.slane %v6669_v2, 1  ;;  %v7761_v50 = vshrl.u32 %v14961_v11, 16  ;;  %v7764_v53 = vshll.u32 %v14961_v11, 16  ;;  %v14963_v44 = vld [vmem:[%s15659_s19 + $0x1c0] sm:$0xff]  }
 0x17b   : > { %2035 = vrot.lane.b32.xlu0 %v14946_v40, %s15469_s24  ;;  %3299 = vrot.lane.b32.xlu1 %v3160_v18, %s15471_s20  ;;  %v4263_v40 = vor.u32 %v4261_v20, %v4260_v46  ;;  %v4596_v10 = vrot.slane %v4594_v39, 7  ;;  %6908 = vst [vmem:[#allocation2 + $0x98] sm:$0xff] %v6907_v14  ;;  %v1208_v14 = vshll.u32 %v14963_v44, 16  ;;  %v4851_v11 = vld [vmem:[#allocation2 + $0x78] sm:$0xff] }
 0x17c   : > { %v8905_v21 = vpop.permute.xlu1 %8904  ;;  %v6672_v27 = vor.u32 %v6671_v61, %v6667_v59 }
 0x17d   : > { %9080 = vst.msk [vmem:[#allocation2 + $0x68] sm:$0xff] %vm4834_vm3, %v8905_v21  ;;  %v3572_v51 = vld [vmem:[#allocation2 + $0x90] sm:$0x1]  ;;  %v6333_v21 = vshll.u32 %v14955_v23, 16  ;;  %v4599_v28 = vor.u32 %v4597_v42, %v4596_v10  ;;  %v7763_v42 = vrot.slane %v7761_v50, 7  ;;  %v14964_v23 = vld [vmem:[%s15659_s19 + $0x1d8] sm:$0xff]  }
 0x17e   : > { %v3573_v36 = vsel %vm16542_vm2, 0, %v3572_v51  ;;  %v14965_v51 = vld [vmem:[%s15659_s19 + $0x1d8] sm:$0xff]  }
 0x17f   : > { %v4651_v30 = vpop.permute.xlu0 %4650  ;;  %8128 = vrot.lane.b32.xlu0 %v7759_v45, %s15471_s20  ;;  %4660 = vrot.lane.b32.xlu1 %v4263_v40, %s15472_s22  ;;  %3574 = vst [vmem:[#allocation2 + $0x90] sm:$0x1] %v3573_v36  ;;  %v6335_v22 = vrot.slane %v6333_v21, 1  ;;  %v2325_v7 = vld [vmem:[#allocation2 + $0x540] sm:$0x80]  ;;  %v3390_v45 = vld [vmem:[#allocation2 + $0xa8] sm:$0xff]  ;;  %v7766_v36 = vor.u32 %v7764_v53, %v7763_v42 }
 0x180   : > { %v8995_v55 = vpop.permute.xlu1 %8994  ;;  %v4849_v6 = vsel %vm16689_vm11, %v4651_v30, %v4848_v57  ;;  %v7050_v30 = vld [vmem:[#allocation2 + $0x518] sm:$0xff]  ;;  %v2326_v54 = vsel %vm16187_vm10, 0, %v2325_v7  ;;  %v390_v57 = vsel %vm15873_vm5, 0, %v389_v0  ;;  %v1205_v40 = vshrl.u32 %v14963_v44, 16 }
 0x181   : > { %9125 = vst.msk [vmem:[#allocation2 + $0x4e8] sm:$0xff] %vm4834_vm3, %v8995_v55  ;;  %4850 = vst [vmem:[#allocation2 + $0x60] sm:$0xff] %v4849_v6  ;;  %v7051_v24 = vsel %vm16456_vm14, %v16948_v8, %v7050_v30  ;;  %v3716_v17 = vld [vmem:[#allocation2 + $0x510] sm:$0x1]  ;;  %v6336_v41 = vor.u32 %v6335_v22, %v6331_v60  ;;  %v14959_v8 = vld [vmem:[%s15659_s19 + $0x1b8] sm:$0xff]   ;;  %v8076_v60 = vshrl.u32 %v14964_v23, 16 }
 0x182   : > { %7052 = vst [vmem:[#allocation2 + $0x518] sm:$0xff] %v7051_v24  ;;  %2327 = vst [vmem:[#allocation2 + $0x540] sm:$0x80] %v2326_v54  ;;  %v3717_v9 = vsel %vm16542_vm2, 0, %v3716_v17  ;;  %v7105_v18 = vld [vmem:[#allocation2 + $0x98] sm:$0x1] }
 0x183   : > { %v4747_v37 = vpop.permute.xlu0 %4746  ;;  %8218 = vrot.lane.b32.xlu0 %v8074_v63, %s15471_s20  ;;  %4756 = vrot.lane.b32.xlu1 %v4599_v28, %s15472_s22  ;;  %3718 = vst [vmem:[#allocation2 + $0x510] sm:$0x1] %v3717_v9  ;;  %5595 = vst.msk [vmem:[#allocation2 + $0x530] sm:$0xff] %vm221_vm0, %v14959_v8  ;;  %v7106_v25 = vsel %vm16520_vm12, 0, %v7105_v18  ;;  %v14962_v55 = vld [vmem:[%s15659_s19 + $0x58] sm:$0xff]   ;;  %v8079_v21 = vshll.u32 %v14964_v23, 16 }
 0x184   : > { %v17068_v35 = vsel %vm16689_vm11, %v4747_v37, %v4992_v19  ;;  %v10416_v62 = vld [vmem:[#allocation2 + $0x68] sm:$0xff]  ;;  %7107 = vst [vmem:[#allocation2 + $0x98] sm:$0x1] %v7106_v25  ;;  %v2847_v46 = vshrl.u32 %v14962_v55, 16  ;;  %v2849_v26 = vshll.u32 %v14962_v55, 16  ;;  %v1207_v24 = vrot.slane %v1205_v40, 7 }
 0x185   : > { %4994 = vst [vmem:[#allocation2 + $0x4e0] sm:$0xff] %v17068_v35  ;;  %11002 = vmatprep.mubr.bf16.mxu0 %v10416_v62  ;;  %391 = vst [vmem:[#allocation2 + $0x558] sm:$0x1] %v390_v57  ;;  %v5627_v28 = vld [vmem:[#allocation2 + $0xb0] sm:$0x80]  ;;  %v8078_v34 = vrot.slane %v8076_v60, 7 }
 0x186   : > { %v17062_v16 = vpop.permute.xlu1 %6804  ;;  %11003 = vmatmul.mubr.bf16.gmra.mrb[16].mxu0 %v4849_v6  ;;  %v2851_v4 = vrot.slane %v2849_v26, 1  ;;  %v5628_v22 = vsel %vm16435_vm13, 0, %v5627_v28  ;;  %v3162_v7 = vshrl.u32 %v14965_v51, 16  ;;  %v1210_v54 = vor.u32 %v1208_v14, %v1207_v24  ;;  %v3525_v17 = vld [vmem:[#allocation2 + $0x528] sm:$0xff]  ;;  %v14967_v18 = vld [vmem:[%s15659_s19 + $0x50] sm:$0xff]   ;;  %v8441_v25 = vld [vmem:[#allocation2 + $0x500] sm:$0xff] }
 0x187   : > { %8914 = vrot.lane.b32.xlu0 %v14954_v15, %s15472_s22  ;;  %6718 = vrot.lane.b32.xlu1 %v6336_v41, %s15469_s24  ;;  %5629 = vst [vmem:[#allocation2 + $0xb0] sm:$0x80] %v5628_v22  ;;  %v8081_v59 = vor.u32 %v8079_v21, %v8078_v34  ;;  %v4265_v53 = vshrl.u32 %v14967_v18, 16  ;;  %v4995_v57 = vld [vmem:[#allocation2 + $0x4f8] sm:$0xff]  ;;  %v14971_v14 = vld [vmem:[%s15659_s19 + $0x68] sm:$0xff]   ;;  %v14973_v24 = vld [vmem:[%s15659_s19 + $0x60] sm:$0xff]  }
 0x188   : > { %v17070_v38 = vpop.permute.xlu0 %6708  ;;  %v10560_v6 = vld [vmem:[#allocation2 + $0x4e8] sm:$0xff]  ;;  %v2852_v15 = vor.u32 %v2851_v4, %v2847_v46  ;;  %v14969_v46 = vld [vmem:[%s15659_s19 + $0x1d0] sm:$0xff]   ;;  %v6338_v21 = vshrl.u32 %v14971_v14, 16 }
 0x189   : > { %v7240_v37 = vld [vmem:[#allocation2 + $0x518] sm:$0x1]  ;;  %11386 = vmatprep.mubr.bf16.mxu1 %v10560_v6  ;;  %v4601_v4 = vshrl.u32 %v14969_v46, 16  ;;  %v4604_v40 = vshll.u32 %v14969_v46, 16 }
 0x18a   : > { %v7241_v39 = vsel %vm16520_vm12, 0, %v7240_v37  ;;  %v5771_v10 = vld [vmem:[#allocation2 + $0x530] sm:$0x80]  ;;  %11387 = vmatmul.mubr.bf16.gmra.mrb[16].mxu1 %v17068_v35  ;;  %v8306_v35 = vld [vmem:[#allocation2 + $0x80] sm:$0xff]  ;;  %v14968_v37 = vld [vmem:[%s15659_s19 + $0x1d8] sm:$0xff]  }
 0x18b   : > { %9004 = vrot.lane.b32.xlu0 %v14956_v3, %s15472_s22  ;;  %7242 = vst [vmem:[#allocation2 + $0x518] sm:$0x1] %v7241_v39  ;;  %2037 = vrot.lane.b32.xlu1 %v14957_v5, %s15469_s24  ;;  %v5772_v30 = vsel %vm16435_vm13, 0, %v5771_v10  ;;  %v3164_v3 = vshll.u32 %v14965_v51, 16 }
 0x18c   : > { %v17090_v20 = vpop.permute.xlu0 %2027  ;;  %5773 = vst [vmem:[#allocation2 + $0x530] sm:$0x80] %v5772_v30  ;;  %v1475_v5 = vld [vmem:[#allocation2 + $0x558] sm:$0xff]  ;;  %v14972_v30 = vld [vmem:[%s15659_s19 + $0x40] sm:$0xff]  }
 0x18d   : > { %v3202_v31 = vpop.permute.xlu1 %3201  ;;  %v3166_v2 = vrot.slane %v3164_v3, 1  ;;  %v1476_v62 = vsel %vm15906_vm6, %v1210_v54, %v1475_v5  ;;  %5548 = vst.msk [vmem:[#allocation2 + $0xc8] sm:$0xff] %vm221_vm0, %v14972_v30 }
 0x18e   : > { %v3391_v56 = vsel %vm16474_vm15, %v3202_v31, %v3390_v45  ;;  %1477 = vst [vmem:[#allocation2 + $0x558] sm:$0xff] %v1476_v62  ;;  %v14966_v45 = vld [vmem:[%s15659_s19 + $0x58] sm:$0xff]   ;;  %v6909_v39 = vld [vmem:[#allocation2 + $0xb0] sm:$0xff] }
 0x18f   : > { %3392 = vst [vmem:[#allocation2 + $0xa8] sm:$0xff] %v3391_v56  ;;  %6814 = vrot.lane.b32.xlu0 %v6672_v27, %s15469_s24  ;;  %8130 = vrot.lane.b32.xlu1 %v7766_v36, %s15471_s20  ;;  %v3167_v31 = vor.u32 %v3166_v2, %v3162_v7  ;;  %2154 = vst.msk [vmem:[#allocation2 + $0x558] sm:$0xff] %vm20266_vm1, %v17090_v20  ;;  %v4268_v56 = vshll.u32 %v14967_v18, 16  ;;  %v4267_v20 = vrot.slane %v4265_v53, 7  ;;  %v4603_v36 = vrot.slane %v4601_v4, 7  ;;  %v14979_v4 = vld [vmem:[%s15659_s19 + $0x58] sm:$0xff]  }
 0x190   : > { %v6910_v23 = vsel %vm16456_vm14, %v17070_v38, %v6909_v39 }
 0x191   : > { %6911 = vst [vmem:[#allocation2 + $0xb0] sm:$0xff] %v6910_v23  ;;  %v4606_v34 = vor.u32 %v4604_v40, %v4603_v36 }
 0x193   : > { %3211 = vrot.lane.b32.xlu0 %v2852_v15, %s15471_s20  ;;  %8220 = vrot.lane.b32.xlu1 %v8081_v59, %s15471_s20  ;;  %v7053_v0 = vld [vmem:[#allocation2 + $0x530] sm:$0xff] }
 0x194   : > { %v3292_v63 = vpop.permute.xlu1 %3291  ;;  %v8121_v19 = vpop.permute.xlu0 %8120  ;;  %v7054_v44 = vsel %vm16456_vm14, %v17062_v16, %v7053_v0  ;;  %v14970_v16 = vld [vmem:[%s15659_s19 + $0x1e8] sm:$0xff]   ;;  %v392_v59 = vld [vmem:[#allocation2 + $0x570] sm:$0x1]  ;;  %v14977_v0 = vld [vmem:[%s15659_s19 + $0x1e0] sm:$0xff]  }
 0x195   : > { %v3526_v8 = vsel %vm16474_vm15, %v3292_v63, %v3525_v17  ;;  %v8307_v9 = vsel %vm16606_vm8, %v8121_v19, %v8306_v35  ;;  %7055 = vst [vmem:[#allocation2 + $0x530] sm:$0xff] %v7054_v44  ;;  %v4270_v63 = vor.u32 %v4268_v56, %v4267_v20  ;;  %v6674_v38 = vshrl.u32 %v14970_v16, 16 }
 0x196   : > { %v3575_v41 = vld [vmem:[#allocation2 + $0xa8] sm:$0x1]  ;;  %3527 = vst [vmem:[#allocation2 + $0x528] sm:$0xff] %v3526_v8  ;;  %8308 = vst [vmem:[#allocation2 + $0x80] sm:$0xff] %v8307_v9  ;;  %v6676_v60 = vshll.u32 %v14970_v16, 16  ;;  %v6340_v19 = vshll.u32 %v14971_v14, 16 }
 0x197   : > { %v3576_v43 = vsel %vm16542_vm2, 0, %v3575_v41  ;;  %3301 = vrot.lane.b32.xlu0 %v3167_v31, %s15471_s20  ;;  %8916 = vrot.lane.b32.xlu1 %v14966_v45, %s15472_s22  ;;  %v2328_v22 = vld [vmem:[#allocation2 + $0x558] sm:$0x80]  ;;  %v2854_v17 = vshrl.u32 %v14973_v24, 16  ;;  %v2856_v35 = vshll.u32 %v14973_v24, 16  ;;  %v14975_v31 = vld [vmem:[%s15659_s19 + $0x1c8] sm:$0xff]  }
 0x198   : > { %v4653_v61 = vpop.permute.xlu1 %4652  ;;  %3577 = vst [vmem:[#allocation2 + $0xa8] sm:$0x1] %v3576_v43  ;;  %v8211_v55 = vpop.permute.xlu0 %8210  ;;  %v6678_v7 = vrot.slane %v6676_v60, 1  ;;  %v2329_v3 = vsel %vm16187_vm10, 0, %v2328_v22  ;;  %v6342_v54 = vrot.slane %v6340_v19, 1  ;;  %v393_v43 = vsel %vm15873_vm5, 0, %v392_v59 }
 0x199   : > { %v17128_v27 = vsel %vm16689_vm11, %v4653_v61, %v4851_v11  ;;  %v8442_v50 = vsel %vm16606_vm8, %v8211_v55, %v8441_v25  ;;  %2330 = vst [vmem:[#allocation2 + $0x558] sm:$0x80] %v2329_v3  ;;  %v2858_v9 = vrot.slane %v2856_v35, 1  ;;  %v7108_v61 = vld [vmem:[#allocation2 + $0xb0] sm:$0x1]  ;;  %v14976_v55 = vld [vmem:[%s15659_s19 + $0x1c0] sm:$0xff]  }
 0x19a   : > { %4853 = vst [vmem:[#allocation2 + $0x78] sm:$0xff] %v17128_v27  ;;  %8443 = vst [vmem:[#allocation2 + $0x500] sm:$0xff] %v8442_v50  ;;  %v6679_v41 = vor.u32 %v6678_v7, %v6674_v38  ;;  %v6343_v8 = vor.u32 %v6342_v54, %v6338_v21  ;;  %v7109_v18 = vsel %vm16520_vm12, 0, %v7108_v61  ;;  %v14974_v25 = vld [vmem:[%s15659_s19 + $0x1f0] sm:$0xff]   ;;  %v1212_v53 = vshrl.u32 %v14975_v31, 16  ;;  %v14981_v35 = vld [vmem:[%s15659_s19 + $0x1d8] sm:$0xff]  }
 0x19b   : > { %4662 = vrot.lane.b32.xlu0 %v4270_v63, %s15472_s22  ;;  %9006 = vrot.lane.b32.xlu1 %v14968_v37, %s15472_s22  ;;  %394 = vst [vmem:[#allocation2 + $0x570] sm:$0x1] %v393_v43  ;;  %v2859_v11 = vor.u32 %v2858_v9, %v2854_v17  ;;  %7110 = vst [vmem:[#allocation2 + $0xb0] sm:$0x1] %v7109_v18  ;;  %v1215_v56 = vshll.u32 %v14975_v31, 16  ;;  %v3169_v39 = vshrl.u32 %v14977_v0, 16 }
 0x19c   : > { %v8907_v6 = vpop.permute.xlu0 %8906  ;;  %v7243_v2 = vld [vmem:[#allocation2 + $0x530] sm:$0x1]  ;;  %5596 = vst.msk [vmem:[#allocation2 + $0x548] sm:$0xff] %vm221_vm0, %v14976_v55  ;;  %v5630_v37 = vld [vmem:[#allocation2 + $0xc8] sm:$0x80]  ;;  %v1214_v46 = vrot.slane %v1212_v53, 7 }
 0x19d   : > { %v4749_v26 = vpop.permute.xlu1 %4748  ;;  %9081 = vst.msk [vmem:[#allocation2 + $0x80] sm:$0xff] %vm4834_vm3, %v8907_v6  ;;  %v3719_v51 = vld [vmem:[#allocation2 + $0x528] sm:$0x1]  ;;  %v7244_v5 = vsel %vm16520_vm12, 0, %v7243_v2  ;;  %v5631_v44 = vsel %vm16435_vm13, 0, %v5630_v37  ;;  %v3171_v20 = vshll.u32 %v14977_v0, 16 }
 0x19e   : > { %v17143_v42 = vsel %vm16689_vm11, %v4749_v26, %v4995_v57  ;;  %v3720_v10 = vsel %vm16542_vm2, 0, %v3719_v51  ;;  %7245 = vst [vmem:[#allocation2 + $0x530] sm:$0x1] %v7244_v5  ;;  %v14978_v26 = vld [vmem:[%s15659_s19 + $0x60] sm:$0xff]   ;;  %v8309_v57 = vld [vmem:[#allocation2 + $0x98] sm:$0xff]  ;;  %v1217_v40 = vor.u32 %v1215_v56, %v1214_v46  ;;  %v4272_v38 = vshrl.u32 %v14979_v4, 16 }
 0x19f   : > { %4997 = vst [vmem:[#allocation2 + $0x4f8] sm:$0xff] %v17143_v42  ;;  %3721 = vst [vmem:[#allocation2 + $0x528] sm:$0x1] %v3720_v10  ;;  %4758 = vrot.lane.b32.xlu0 %v4606_v34, %s15472_s22  ;;  %6816 = vrot.lane.b32.xlu1 %v6679_v41, %s15469_s24  ;;  %v3393_v6 = vld [vmem:[#allocation2 + $0xc0] sm:$0xff]  ;;  %v7768_v16 = vshrl.u32 %v14978_v26, 16  ;;  %v7771_v14 = vshll.u32 %v14978_v26, 16 }
 0x1a0   : > { %v8997_v15 = vpop.permute.xlu0 %8996  ;;  %5632 = vst [vmem:[#allocation2 + $0xc8] sm:$0x80] %v5631_v44  ;;  %v3173_v63 = vrot.slane %v3171_v20, 1  ;;  %v4275_v60 = vshll.u32 %v14979_v4, 16  ;;  %v4274_v22 = vrot.slane %v4272_v38, 7  ;;  %v8444_v17 = vld [vmem:[#allocation2 + $0x518] sm:$0xff] }
 0x1a1   : > { %v17157_v28 = vpop.permute.xlu1 %6710  ;;  %9126 = vst.msk [vmem:[#allocation2 + $0x500] sm:$0xff] %vm4834_vm3, %v8997_v15  ;;  %v7770_v19 = vrot.slane %v7768_v16, 7  ;;  %v14980_v15 = vld [vmem:[%s15659_s19 + $0x1e0] sm:$0xff]   ;;  %v4608_v61 = vshrl.u32 %v14981_v35, 16  ;;  %v14983_v31 = vld [vmem:[%s15659_s19 + $0x70] sm:$0xff]   ;;  %v14985_v37 = vld [vmem:[%s15659_s19 + $0x68] sm:$0xff]  }
 0x1a2   : > { %v1478_v51 = vld [vmem:[#allocation2 + $0x570] sm:$0xff]  ;;  %v3174_v24 = vor.u32 %v3173_v63, %v3169_v39  ;;  %v8083_v3 = vshrl.u32 %v14980_v15, 16  ;;  %v4277_v59 = vor.u32 %v4275_v60, %v4274_v22  ;;  %v3528_v9 = vld [vmem:[#allocation2 + $0x540] sm:$0xff]  ;;  %v6345_v56 = vshrl.u32 %v14983_v31, 16  ;;  %v14987_v38 = vld [vmem:[%s15659_s19 + $0x1c8] sm:$0xff]  }
 0x1a3   : > { %6720 = vrot.lane.b32.xlu0 %v6343_v8, %s15469_s24  ;;  %3213 = vrot.lane.b32.xlu1 %v2859_v11, %s15471_s20  ;;  %v1479_v21 = vsel %vm15906_vm6, %v1217_v40, %v1478_v51  ;;  %v5774_v34 = vld [vmem:[#allocation2 + $0x548] sm:$0x80]  ;;  %v7773_v7 = vor.u32 %v7771_v14, %v7770_v19  ;;  %v4610_v55 = vrot.slane %v4608_v61, 7  ;;  %v6347_v0 = vshll.u32 %v14983_v31, 16  ;;  %v4854_v39 = vld [vmem:[#allocation2 + $0x90] sm:$0xff]  ;;  %v14984_v40 = vld [vmem:[%s15659_s19 + $0x1e0] sm:$0xff]  }
 0x1a4   : > { %v17176_v45 = vpop.permute.xlu0 %6806  ;;  %v10419_v50 = vld [vmem:[#allocation2 + $0x80] sm:$0xff]  ;;  %1480 = vst [vmem:[#allocation2 + $0x570] sm:$0xff] %v1479_v21  ;;  %v5775_v41 = vsel %vm16435_vm13, 0, %v5774_v34  ;;  %v8085_v43 = vrot.slane %v8083_v3, 7  ;;  %v14986_v14 = vld [vmem:[%s15659_s19 + $0x1f0] sm:$0xff]   ;;  %5597 = vst.msk [vmem:[#allocation2 + $0x560] sm:$0xff] %vm221_vm0, %v14987_v38 }
 0x1a5   : > { %v2030_v62 = vpop.permute.xlu1 %2029  ;;  %11010 = vmatprep.mubr.bf16.mxu0 %v10419_v50  ;;  %5776 = vst [vmem:[#allocation2 + $0x548] sm:$0x80] %v5775_v41  ;;  %v14982_v50 = vld [vmem:[%s15659_s19 + $0x60] sm:$0xff]   ;;  %v6349_v20 = vrot.slane %v6347_v0, 1  ;;  %v4998_v63 = vld [vmem:[#allocation2 + $0x510] sm:$0xff]  ;;  %v6681_v19 = vshrl.u32 %v14986_v14, 16 }
 0x1a6   : > { %11011 = vmatmul.mubr.bf16.gmra.mrb[20].mxu0 %v17128_v27  ;;  %2155 = vst.msk [vmem:[#allocation2 + $0x570] sm:$0xff] %vm20266_vm1, %v2030_v62  ;;  %v4611_v62 = vshll.u32 %v14981_v35, 16  ;;  %v14988_v22 = vld [vmem:[%s15659_s19 + $0x48] sm:$0xff]   ;;  %v3531_v38 = vld [vmem:[#allocation2 + $0x558] sm:$0xff] }
 0x1a7   : > { %2039 = vrot.lane.b32.xlu0 %v14974_v25, %s15469_s24  ;;  %3303 = vrot.lane.b32.xlu1 %v3174_v24, %s15471_s20  ;;  %v6912_v18 = vld [vmem:[#allocation2 + $0xc8] sm:$0xff]  ;;  %v6350_v51 = vor.u32 %v6349_v20, %v6345_v56  ;;  %5549 = vst.msk [vmem:[#allocation2 + $0xe0] sm:$0xff] %vm221_vm0, %v14988_v22 }
 0x1a8   : > { %v10563_v23 = vld [vmem:[#allocation2 + $0x500] sm:$0xff]  ;;  %v6913_v11 = vsel %vm16456_vm14, %v17157_v28, %v6912_v18  ;;  %v4613_v26 = vor.u32 %v4611_v62, %v4610_v55  ;;  %v14990_v41 = vld [vmem:[%s15659_s19 + $0x68] sm:$0xff]  }
 0x1a9   : > { %v8123_v27 = vpop.permute.xlu1 %8122  ;;  %11394 = vmatprep.mubr.bf16.mxu1 %v10563_v23  ;;  %6914 = vst [vmem:[#allocation2 + $0xc8] sm:$0xff] %v6913_v11  ;;  %v7775_v62 = vshrl.u32 %v14990_v41, 16  ;;  %v7778_v31 = vshll.u32 %v14990_v41, 16  ;;  %v14992_v11 = vld [vmem:[%s15659_s19 + $0x60] sm:$0xff]   ;;  %v14996_v41 = vld [vmem:[%s15659_s19 + $0x70] sm:$0xff]  }
 0x1aa   : > { %v8310_v10 = vsel %vm16606_vm8, %v8123_v27, %v8309_v57  ;;  %v3204_v36 = vpop.permute.xlu0 %3203  ;;  %11395 = vmatmul.mubr.bf16.gmra.mrb[20].mxu1 %v17143_v42  ;;  %v8086_v42 = vshll.u32 %v14980_v15, 16 }
 0x1ab   : > { %8311 = vst [vmem:[#allocation2 + $0x98] sm:$0xff] %v8310_v10  ;;  %v3394_v30 = vsel %vm16474_vm15, %v3204_v36, %v3393_v6  ;;  %8132 = vrot.lane.b32.xlu0 %v7773_v7, %s15471_s20  ;;  %4664 = vrot.lane.b32.xlu1 %v4277_v59, %s15472_s22  ;;  %v2863_v6 = vshll.u32 %v14985_v37, 16  ;;  %v2861_v10 = vshrl.u32 %v14985_v37, 16  ;;  %v7777_v0 = vrot.slane %v7775_v62, 7  ;;  %v8447_v62 = vld [vmem:[#allocation2 + $0x530] sm:$0xff] }
 0x1ac   : > { %3395 = vst [vmem:[#allocation2 + $0xc0] sm:$0xff] %v3394_v30  ;;  %v8088_v25 = vor.u32 %v8086_v42, %v8085_v43  ;;  %v7056_v27 = vld [vmem:[#allocation2 + $0x548] sm:$0xff]  ;;  %v6683_v30 = vshll.u32 %v14986_v14, 16 }
 0x1ad   : > { %v8213_v54 = vpop.permute.xlu1 %8212  ;;  %v2331_v57 = vld [vmem:[#allocation2 + $0x570] sm:$0x80]  ;;  %v2865_v36 = vrot.slane %v2863_v6, 1  ;;  %v7057_v60 = vsel %vm16456_vm14, %v17176_v45, %v7056_v27  ;;  %v395_v43 = vld [vmem:[#allocation2 + $0x588] sm:$0x1] }
 0x1ae   : > { %v8445_v2 = vsel %vm16606_vm8, %v8213_v54, %v8444_v17  ;;  %v3294_v8 = vpop.permute.xlu0 %3293  ;;  %v2332_v23 = vsel %vm16187_vm10, 0, %v2331_v57  ;;  %7058 = vst [vmem:[#allocation2 + $0x548] sm:$0xff] %v7057_v60  ;;  %v6685_v7 = vrot.slane %v6683_v30, 1  ;;  %v14989_v54 = vld [vmem:[%s15659_s19 + $0x1e8] sm:$0xff]   ;;  %v396_v18 = vsel %vm15873_vm5, 0, %v395_v43 }
 0x1af   : > { %8446 = vst [vmem:[#allocation2 + $0x518] sm:$0xff] %v8445_v2  ;;  %v3529_v5 = vsel %vm16474_vm15, %v3294_v8, %v3528_v9  ;;  %8222 = vrot.lane.b32.xlu0 %v8088_v25, %s15471_s20  ;;  %2333 = vst [vmem:[#allocation2 + $0x570] sm:$0x80] %v2332_v23  ;;  %4760 = vrot.lane.b32.xlu1 %v4613_v26, %s15472_s22  ;;  %v2866_v35 = vor.u32 %v2865_v36, %v2861_v10  ;;  %v3176_v2 = vshrl.u32 %v14989_v54, 16  ;;  %v3396_v9 = vld [vmem:[#allocation2 + $0xd8] sm:$0xff]  ;;  %v14995_v43 = vld [vmem:[%s15659_s19 + $0x68] sm:$0xff]  }
 0x1b0   : > { %3530 = vst [vmem:[#allocation2 + $0x540] sm:$0xff] %v3529_v5  ;;  %v7111_v34 = vld [vmem:[#allocation2 + $0xc8] sm:$0x1]  ;;  %v6686_v59 = vor.u32 %v6685_v7, %v6681_v19  ;;  %v3178_v8 = vshll.u32 %v14989_v54, 16  ;;  %v14991_v5 = vld [vmem:[%s15659_s19 + $0x1d0] sm:$0xff]   ;;  %v7780_v23 = vor.u32 %v7778_v31, %v7777_v0 }
 0x1b1   : > { %v8909_v53 = vpop.permute.xlu1 %8908  ;;  %v7112_v17 = vsel %vm16520_vm12, 0, %v7111_v34  ;;  %397 = vst [vmem:[#allocation2 + $0x588] sm:$0x1] %v396_v18  ;;  %v5777_v57 = vld [vmem:[#allocation2 + $0x560] sm:$0x80]  ;;  %v4857_v54 = vld [vmem:[#allocation2 + $0xa8] sm:$0xff] }
 0x1b2   : > { %9082 = vst.msk [vmem:[#allocation2 + $0x98] sm:$0xff] %vm4834_vm3, %v8909_v53  ;;  %7113 = vst [vmem:[#allocation2 + $0xc8] sm:$0x1] %v7112_v17  ;;  %v3180_v25 = vrot.slane %v3178_v8, 1  ;;  %v1222_v53 = vshll.u32 %v14991_v5, 16  ;;  %v5778_v6 = vsel %vm16435_vm13, 0, %v5777_v57 }
 0x1b3   : > { %v3578_v46 = vld [vmem:[#allocation2 + $0xc0] sm:$0x1]  ;;  %8918 = vrot.lane.b32.xlu0 %v14982_v50, %s15472_s22  ;;  %6722 = vrot.lane.b32.xlu1 %v6350_v51, %s15469_s24  ;;  %v1219_v50 = vshrl.u32 %v14991_v5, 16  ;;  %5779 = vst [vmem:[#allocation2 + $0x560] sm:$0x80] %v5778_v6  ;;  %v2868_v18 = vshrl.u32 %v14996_v41, 16 }
 0x1b4   : > { %v3579_v28 = vsel %vm16542_vm2, 0, %v3578_v46  ;;  %v4279_v46 = vshrl.u32 %v14992_v11, 16  ;;  %v5633_v14 = vld [vmem:[#allocation2 + $0xe0] sm:$0x80] }
 0x1b5   : > { %v4655_v44 = vpop.permute.xlu0 %4654  ;;  %3580 = vst [vmem:[#allocation2 + $0xc0] sm:$0x1] %v3579_v28  ;;  %v8999_v16 = vpop.permute.xlu1 %8998  ;;  %v7246_v26 = vld [vmem:[#allocation2 + $0x548] sm:$0x1]  ;;  %v3181_v28 = vor.u32 %v3180_v25, %v3176_v2  ;;  %v5634_v51 = vsel %vm16435_vm13, 0, %v5633_v14 }
 0x1b6   : > { %v4855_v4 = vsel %vm16689_vm11, %v4655_v44, %v4854_v39  ;;  %9127 = vst.msk [vmem:[#allocation2 + $0x518] sm:$0xff] %vm4834_vm3, %v8999_v16  ;;  %v1221_v44 = vrot.slane %v1219_v50, 7  ;;  %v4282_v39 = vshll.u32 %v14992_v11, 16  ;;  %v7247_v20 = vsel %vm16520_vm12, 0, %v7246_v26  ;;  %v14993_v16 = vld [vmem:[%s15659_s19 + $0x1e8] sm:$0xff]  }
 0x1b7   : > { %4856 = vst [vmem:[#allocation2 + $0x90] sm:$0xff] %v4855_v4  ;;  %v3722_v21 = vld [vmem:[#allocation2 + $0x540] sm:$0x1]  ;;  %9008 = vrot.lane.b32.xlu0 %v14984_v40, %s15472_s22  ;;  %3215 = vrot.lane.b32.xlu1 %v2866_v35, %s15471_s20  ;;  %v4281_v40 = vrot.slane %v4279_v46, 7  ;;  %7248 = vst [vmem:[#allocation2 + $0x548] sm:$0x1] %v7247_v20 }
 0x1b8   : > { %v3723_v15 = vsel %vm16542_vm2, 0, %v3722_v21  ;;  %v1224_v27 = vor.u32 %v1222_v53, %v1221_v44  ;;  %v8090_v10 = vshrl.u32 %v14993_v16, 16  ;;  %v8093_v36 = vshll.u32 %v14993_v16, 16  ;;  %5635 = vst [vmem:[#allocation2 + $0xe0] sm:$0x80] %v5634_v51  ;;  %v14994_v21 = vld [vmem:[%s15659_s19 + $0x1e0] sm:$0xff]  }
 0x1b9   : > { %v4751_v24 = vpop.permute.xlu0 %4750  ;;  %3724 = vst [vmem:[#allocation2 + $0x540] sm:$0x1] %v3723_v15  ;;  %v17236_v3 = vpop.permute.xlu1 %6808  ;;  %v10422_v42 = vld [vmem:[#allocation2 + $0x98] sm:$0xff]  ;;  %v1481_v19 = vld [vmem:[#allocation2 + $0x588] sm:$0xff]  ;;  %v4615_v7 = vshrl.u32 %v14994_v21, 16  ;;  %v2870_v11 = vshll.u32 %v14996_v41, 16 }
 0x1ba   : > { %v4999_v45 = vsel %vm16689_vm11, %v4751_v24, %v4998_v63  ;;  %11018 = vmatprep.mubr.bf16.mxu0 %v10422_v42  ;;  %v4284_v63 = vor.u32 %v4282_v39, %v4281_v40  ;;  %v8092_v30 = vrot.slane %v8090_v10, 7  ;;  %v8312_v24 = vld [vmem:[#allocation2 + $0xb0] sm:$0xff]  ;;  %v1482_v34 = vsel %vm15906_vm6, %v1224_v27, %v1481_v19  ;;  %v5001_v53 = vld [vmem:[#allocation2 + $0x528] sm:$0xff] }
 0x1bb   : > { %5000 = vst [vmem:[#allocation2 + $0x510] sm:$0xff] %v4999_v45  ;;  %11019 = vmatmul.mubr.bf16.gmra.mrb[24].mxu0 %v4855_v4  ;;  %6818 = vrot.lane.b32.xlu0 %v6686_v59, %s15469_s24  ;;  %v4618_v42 = vshll.u32 %v14994_v21, 16  ;;  %1483 = vst [vmem:[#allocation2 + $0x588] sm:$0xff] %v1482_v34  ;;  %v4617_v2 = vrot.slane %v4615_v7, 7  ;;  %v14997_v46 = vld [vmem:[%s15659_s19 + $0x1e8] sm:$0xff]   ;;  %v14999_v44 = vld [vmem:[%s15659_s19 + $0x70] sm:$0xff]  }
 0x1bc   : > { %3305 = vrot.lane.b32.xlu1 %v3181_v28, %s15471_s20  ;;  %v8095_v35 = vor.u32 %v8093_v36, %v8092_v30  ;;  %v15000_v39 = vld [vmem:[%s15659_s19 + $0x50] sm:$0xff]   ;;  %v7782_v16 = vshrl.u32 %v14999_v44, 16  ;;  %v7785_v14 = vshll.u32 %v14999_v44, 16  ;;  %v15001_v51 = vld [vmem:[%s15659_s19 + $0x68] sm:$0xff]   ;;  %v15003_v21 = vld [vmem:[%s15659_s19 + $0x1d8] sm:$0xff]  }
 0x1bd   : > { %v17246_v61 = vpop.permute.xlu0 %6712  ;;  %v3206_v55 = vpop.permute.xlu1 %3205  ;;  %v10566_v56 = vld [vmem:[#allocation2 + $0x518] sm:$0xff]  ;;  %5550 = vst.msk [vmem:[#allocation2 + $0xf8] sm:$0xff] %vm221_vm0, %v15000_v39  ;;  %v4286_v30 = vshrl.u32 %v15001_v51, 16  ;;  %v1226_v41 = vshrl.u32 %v15003_v21, 16 }
 0x1be   : > { %v3397_v37 = vsel %vm16474_vm15, %v3206_v55, %v3396_v9  ;;  %11402 = vmatprep.mubr.bf16.mxu1 %v10566_v56  ;;  %v7059_v9 = vld [vmem:[#allocation2 + $0x560] sm:$0xff]  ;;  %v4620_v55 = vor.u32 %v4618_v42, %v4617_v2  ;;  %v14998_v56 = vld [vmem:[%s15659_s19 + $0x1f0] sm:$0xff]   ;;  %v7784_v36 = vrot.slane %v7782_v16, 7 }
 0x1bf   : > { %3398 = vst [vmem:[#allocation2 + $0xd8] sm:$0xff] %v3397_v37  ;;  %11403 = vmatmul.mubr.bf16.gmra.mrb[24].mxu1 %v4999_v45  ;;  %8134 = vrot.lane.b32.xlu0 %v7780_v23, %s15471_s20  ;;  %v7060_v25 = vsel %vm16456_vm14, %v17236_v3, %v7059_v9  ;;  %v6915_v0 = vld [vmem:[#allocation2 + $0xe0] sm:$0xff]  ;;  %v2872_v37 = vrot.slane %v2870_v11, 1  ;;  %v3183_v57 = vshrl.u32 %v14998_v56, 16  ;;  %v3185_v28 = vshll.u32 %v14998_v56, 16 }
 0x1c0   : > { %4666 = vrot.lane.b32.xlu1 %v4284_v63, %s15472_s22  ;;  %7061 = vst [vmem:[#allocation2 + $0x560] sm:$0xff] %v7060_v25  ;;  %v6916_v26 = vsel %vm16456_vm14, %v17246_v61, %v6915_v0  ;;  %v7787_v34 = vor.u32 %v7785_v14, %v7784_v36  ;;  %v1228_v11 = vrot.slane %v1226_v41, 7  ;;  %v8450_v36 = vld [vmem:[#allocation2 + $0x548] sm:$0xff] }
 0x1c1   : > { %v2032_v4 = vpop.permute.xlu0 %2031  ;;  %v3296_v60 = vpop.permute.xlu1 %3295  ;;  %6917 = vst [vmem:[#allocation2 + $0xe0] sm:$0xff] %v6916_v26  ;;  %v2873_v6 = vor.u32 %v2872_v37, %v2868_v18  ;;  %v3187_v40 = vrot.slane %v3185_v28, 1  ;;  %v8315_v26 = vld [vmem:[#allocation2 + $0xc8] sm:$0xff] }
 0x1c2   : > { %v3532_v15 = vsel %vm16474_vm15, %v3296_v60, %v3531_v38  ;;  %2156 = vst.msk [vmem:[#allocation2 + $0x588] sm:$0xff] %vm20266_vm1, %v2032_v4  ;;  %v15002_v60 = vld [vmem:[%s15659_s19 + $0x1f0] sm:$0xff]  }
 0x1c3   : > { %3533 = vst [vmem:[#allocation2 + $0x558] sm:$0xff] %v3532_v15  ;;  %8224 = vrot.lane.b32.xlu0 %v8095_v35, %s15471_s20  ;;  %v3188_v10 = vor.u32 %v3187_v40, %v3183_v57  ;;  %v4289_v15 = vshll.u32 %v15001_v51, 16  ;;  %v8100_v7 = vshll.u32 %v15002_v60, 16  ;;  %v4288_v35 = vrot.slane %v4286_v30, 7  ;;  %v3399_v57 = vld [vmem:[#allocation2 + $0xf0] sm:$0xff] }
 0x1c4   : > { %4762 = vrot.lane.b32.xlu1 %v4620_v55, %s15472_s22 }
 0x1c5   : > { %v8125_v22 = vpop.permute.xlu0 %8124  ;;  %v4657_v8 = vpop.permute.xlu1 %4656  ;;  %v4291_v18 = vor.u32 %v4289_v15, %v4288_v35 }
 0x1c6   : > { %v8313_v45 = vsel %vm16606_vm8, %v8125_v22, %v8312_v24  ;;  %v3581_v17 = vld [vmem:[#allocation2 + $0xd8] sm:$0x1]  ;;  %v17280_v5 = vsel %vm16689_vm11, %v4657_v8, %v4857_v54  ;;  %v398_v24 = vld [vmem:[#allocation2 + $0x5a0] sm:$0x1]  ;;  %v15004_v54 = vld [vmem:[%s15659_s19 + $0x1d0] sm:$0xff]  }
 0x1c7   : > { %8314 = vst [vmem:[#allocation2 + $0xb0] sm:$0xff] %v8313_v45  ;;  %v3582_v59 = vsel %vm16542_vm2, 0, %v3581_v17  ;;  %4859 = vst [vmem:[#allocation2 + $0xa8] sm:$0xff] %v17280_v5  ;;  %8920 = vrot.lane.b32.xlu0 %v14995_v43, %s15472_s22  ;;  %v7249_v22 = vld [vmem:[#allocation2 + $0x560] sm:$0x1]  ;;  %v8097_v45 = vshrl.u32 %v15002_v60, 16 }
 0x1c8   : > { %3583 = vst [vmem:[#allocation2 + $0xd8] sm:$0x1] %v3582_v59  ;;  %3217 = vrot.lane.b32.xlu1 %v2873_v6, %s15471_s20  ;;  %v399_v42 = vsel %vm15873_vm5, 0, %v398_v24  ;;  %v7250_v17 = vsel %vm16520_vm12, 0, %v7249_v22  ;;  %v1229_v59 = vshll.u32 %v15003_v21, 16  ;;  %5598 = vst.msk [vmem:[#allocation2 + $0x578] sm:$0xff] %vm221_vm0, %v15004_v54 }
 0x1c9   : > { %v8215_v31 = vpop.permute.xlu0 %8214  ;;  %v4753_v3 = vpop.permute.xlu1 %4752  ;;  %v2334_v27 = vld [vmem:[#allocation2 + $0x588] sm:$0x80]  ;;  %400 = vst [vmem:[#allocation2 + $0x5a0] sm:$0x1] %v399_v42  ;;  %7251 = vst [vmem:[#allocation2 + $0x560] sm:$0x1] %v7250_v17 }
 0x1ca   : > { %v8448_v50 = vsel %vm16606_vm8, %v8215_v31, %v8447_v62  ;;  %v3725_v20 = vld [vmem:[#allocation2 + $0x558] sm:$0x1]  ;;  %v17299_v23 = vsel %vm16689_vm11, %v4753_v3, %v5001_v53  ;;  %v2335_v63 = vsel %vm16187_vm10, 0, %v2334_v27  ;;  %v7114_v2 = vld [vmem:[#allocation2 + $0xe0] sm:$0x1]  ;;  %v8099_v8 = vrot.slane %v8097_v45, 7 }
 0x1cb   : > { %8449 = vst [vmem:[#allocation2 + $0x530] sm:$0xff] %v8448_v50  ;;  %v3726_v61 = vsel %vm16542_vm2, 0, %v3725_v20  ;;  %5003 = vst [vmem:[#allocation2 + $0x528] sm:$0xff] %v17299_v23  ;;  %9010 = vrot.lane.b32.xlu0 %v14997_v46, %s15472_s22  ;;  %v15005_v43 = vld [vmem:[%s15659_s19 + $0x1e8] sm:$0xff]   ;;  %v7115_v62 = vsel %vm16520_vm12, 0, %v7114_v2  ;;  %v1231_v56 = vor.u32 %v1229_v59, %v1228_v11  ;;  %v15006_v46 = vld [vmem:[%s15659_s19 + $0x70] sm:$0xff]  }
 0x1cc   : > { %3727 = vst [vmem:[#allocation2 + $0x558] sm:$0x1] %v3726_v61  ;;  %2336 = vst [vmem:[#allocation2 + $0x588] sm:$0x80] %v2335_v63  ;;  %3307 = vrot.lane.b32.xlu1 %v3188_v10, %s15471_s20  ;;  %v5636_v31 = vld [vmem:[#allocation2 + $0xf8] sm:$0x80]  ;;  %v8102_v50 = vor.u32 %v8100_v7, %v8099_v8 }
 0x1cd   : > { %v8911_v4 = vpop.permute.xlu0 %8910  ;;  %v17310_v38 = vpop.permute.xlu1 %6714  ;;  %7116 = vst [vmem:[#allocation2 + $0xe0] sm:$0x1] %v7115_v62  ;;  %v5637_v55 = vsel %vm16435_vm13, 0, %v5636_v31  ;;  %v4622_v0 = vshrl.u32 %v15005_v43, 16  ;;  %v4625_v37 = vshll.u32 %v15005_v43, 16  ;;  %v15008_v63 = vld [vmem:[%s15659_s19 + $0x1f0] sm:$0xff]  }
 0x1ce   : > { %9083 = vst.msk [vmem:[#allocation2 + $0xb0] sm:$0xff] %vm4834_vm3, %v8911_v4  ;;  %5638 = vst [vmem:[#allocation2 + $0xf8] sm:$0x80] %v5637_v55  ;;  %v15009_v60 = vld [vmem:[%s15659_s19 + $0x1f8] sm:$0xff]   ;;  %v3534_v21 = vld [vmem:[#allocation2 + $0x570] sm:$0xff] }
 0x1cf   : > { %8136 = vrot.lane.b32.xlu0 %v7787_v34, %s15471_s20  ;;  %v4624_v28 = vrot.slane %v4622_v0, 7  ;;  %v5780_v40 = vld [vmem:[#allocation2 + $0x578] sm:$0x80]  ;;  %v8104_v24 = vshrl.u32 %v15009_v60, 16  ;;  %v8107_v22 = vshll.u32 %v15009_v60, 16  ;;  %v4860_v59 = vld [vmem:[#allocation2 + $0xc0] sm:$0xff] }
 0x1d0   : > { %4668 = vrot.lane.b32.xlu1 %v4291_v18, %s15472_s22  ;;  %v1484_v6 = vld [vmem:[#allocation2 + $0x5a0] sm:$0xff]  ;;  %v5781_v14 = vsel %vm16435_vm13, 0, %v5780_v40  ;;  %v15010_v7 = vld [vmem:[%s15659_s19 + $0x78] sm:$0xff]   ;;  %v15012_v2 = vld [vmem:[%s15659_s19 + $0x70] sm:$0xff]  }
 0x1d1   : > { %v9001_v19 = vpop.permute.xlu0 %9000  ;;  %v2034_v9 = vpop.permute.xlu1 %2033  ;;  %v1485_v61 = vsel %vm15906_vm6, %v1231_v56, %v1484_v6  ;;  %v4627_v16 = vor.u32 %v4625_v37, %v4624_v28  ;;  %5782 = vst [vmem:[#allocation2 + $0x578] sm:$0x80] %v5781_v14  ;;  %v8106_v54 = vrot.slane %v8104_v24, 7  ;;  %v7789_v35 = vshrl.u32 %v15010_v7, 16  ;;  %v5004_v0 = vld [vmem:[#allocation2 + $0x540] sm:$0xff]  ;;  %v15015_v28 = vld [vmem:[%s15659_s19 + $0x1d8] sm:$0xff]  }
 0x1d2   : > { %9128 = vst.msk [vmem:[#allocation2 + $0x530] sm:$0xff] %vm4834_vm3, %v9001_v19  ;;  %1486 = vst [vmem:[#allocation2 + $0x5a0] sm:$0xff] %v1485_v61  ;;  %v7792_v41 = vshll.u32 %v15010_v7, 16  ;;  %v4293_v18 = vshrl.u32 %v15012_v2, 16  ;;  %v15018_v60 = vld [vmem:[%s15659_s19 + $0x88] sm:$0xff]   ;;  %v15019_v7 = vld [vmem:[%s15659_s19 + $0x1e0] sm:$0xff]  }
 0x1d3   : > { %8226 = vrot.lane.b32.xlu0 %v8102_v50, %s15471_s20  ;;  %2157 = vst.msk [vmem:[#allocation2 + $0x5a0] sm:$0xff] %vm20266_vm1, %v2034_v9  ;;  %v7791_v62 = vrot.slane %v7789_v35, 7  ;;  %v15011_v50 = vld [vmem:[%s15659_s19 + $0x78] sm:$0xff]   ;;  %v6366_v24 = vshrl.u32 %v15018_v60, 16 }
 0x1d4   : > { %4764 = vrot.lane.b32.xlu1 %v4627_v16, %s15472_s22  ;;  %5599 = vst.msk [vmem:[#allocation2 + $0x590] sm:$0xff] %vm221_vm0, %v15015_v28  ;;  %v15013_v16 = vld [vmem:[%s15659_s19 + $0x1f8] sm:$0xff]  }
 0x1d5   : > { %v17327_v25 = vpop.permute.xlu0 %6810  ;;  %v10425_v53 = vld [vmem:[#allocation2 + $0xb0] sm:$0xff]  ;;  %v8127_v3 = vpop.permute.xlu1 %8126  ;;  %v6918_v19 = vld [vmem:[#allocation2 + $0xf8] sm:$0xff] }
 0x1d6   : > { %11026 = vmatprep.mubr.bf16.mxu0 %v10425_v53  ;;  %v8316_v44 = vsel %vm16606_vm8, %v8127_v3, %v8315_v26  ;;  %v6919_v34 = vsel %vm16456_vm14, %v17310_v38, %v6918_v19  ;;  %v8109_v38 = vor.u32 %v8107_v22, %v8106_v54  ;;  %v4296_v53 = vshll.u32 %v15012_v2, 16 }
 0x1d7   : > { %11027 = vmatmul.mubr.bf16.gmra.mrb[28].mxu0 %v17280_v5  ;;  %8317 = vst [vmem:[#allocation2 + $0xc8] sm:$0xff] %v8316_v44  ;;  %v15007_v5 = vld [vmem:[%s15659_s19 + $0x80] sm:$0xff]   ;;  %8922 = vrot.lane.b32.xlu0 %v15006_v46, %s15472_s22  ;;  %6920 = vst [vmem:[#allocation2 + $0xf8] sm:$0xff] %v6919_v34  ;;  %v7794_v26 = vor.u32 %v7792_v41, %v7791_v62  ;;  %v4295_v3 = vrot.slane %v4293_v18, 7  ;;  %v6368_v22 = vshll.u32 %v15018_v60, 16 }
 0x1d8   : > { %v6359_v27 = vshrl.u32 %v15007_v5, 16  ;;  %v6361_v51 = vshll.u32 %v15007_v5, 16  ;;  %v7062_v55 = vld [vmem:[#allocation2 + $0x578] sm:$0xff] }
 0x1d9   : > { %v3208_v39 = vpop.permute.xlu0 %3207  ;;  %v10569_v20 = vld [vmem:[#allocation2 + $0x530] sm:$0xff]  ;;  %v8217_v10 = vpop.permute.xlu1 %8216  ;;  %v7063_v46 = vsel %vm16456_vm14, %v17327_v25, %v7062_v55  ;;  %v4298_v6 = vor.u32 %v4296_v53, %v4295_v3  ;;  %v6370_v2 = vrot.slane %v6368_v22, 1  ;;  %v15021_v55 = vld [vmem:[%s15659_s19 + $0x80] sm:$0xff]  }
 0x1da   : > { %v3400_v4 = vsel %vm16474_vm15, %v3208_v39, %v3399_v57  ;;  %11410 = vmatprep.mubr.bf16.mxu1 %v10569_v20  ;;  %v6363_v30 = vrot.slane %v6361_v51, 1  ;;  %v2337_v11 = vld [vmem:[#allocation2 + $0x5a0] sm:$0x80]  ;;  %v15014_v57 = vld [vmem:[%s15659_s19 + $0x1f0] sm:$0xff]   ;;  %7064 = vst [vmem:[#allocation2 + $0x578] sm:$0xff] %v7063_v46  ;;  %v2875_v3 = vshrl.u32 %v15021_v55, 16 }
 0x1db   : > { %3401 = vst [vmem:[#allocation2 + $0xf0] sm:$0xff] %v3400_v4  ;;  %11411 = vmatmul.mubr.bf16.gmra.mrb[28].mxu1 %v17299_v23  ;;  %v8451_v23 = vsel %vm16606_vm8, %v8217_v10, %v8450_v36  ;;  %9012 = vrot.lane.b32.xlu0 %v15008_v63, %s15472_s22  ;;  %v2338_v37 = vsel %vm16187_vm10, 0, %v2337_v11  ;;  %v4629_v4 = vshrl.u32 %v15014_v57, 16  ;;  %v4632_v5 = vshll.u32 %v15014_v57, 16  ;;  %v15017_v10 = vld [vmem:[%s15659_s19 + $0x78] sm:$0xff]  }
 0x1dc   : > { %8452 = vst [vmem:[#allocation2 + $0x548] sm:$0xff] %v8451_v23  ;;  %v6364_v42 = vor.u32 %v6363_v30, %v6359_v27  ;;  %2339 = vst [vmem:[#allocation2 + $0x5a0] sm:$0x80] %v2338_v37  ;;  %v15016_v27 = vld [vmem:[%s15659_s19 + $0x58] sm:$0xff]   ;;  %v3402_v23 = vld [vmem:[#allocation2 + $0x108] sm:$0xff]  ;;  %v6352_v19 = vshrl.u32 %v15017_v10, 16  ;;  %v6371_v18 = vor.u32 %v6370_v2, %v6366_v24 }
 0x1dd   : > { %v3298_v15 = vpop.permute.xlu0 %3297  ;;  %v8913_v17 = vpop.permute.xlu1 %8912  ;;  %v4631_v63 = vrot.slane %v4629_v4, 7  ;;  %5551 = vst.msk [vmem:[#allocation2 + $0x110] sm:$0xff] %vm221_vm0, %v15016_v27  ;;  %v6354_v30 = vshll.u32 %v15017_v10, 16  ;;  %v15022_v37 = vld [vmem:[%s15659_s19 + $0x1f8] sm:$0xff]   ;;  %v2877_v57 = vshll.u32 %v15021_v55, 16 }
 0x1de   : > { %v3535_v45 = vsel %vm16474_vm15, %v3298_v15, %v3534_v21  ;;  %9084 = vst.msk [vmem:[#allocation2 + $0xc8] sm:$0xff] %vm4834_vm3, %v8913_v17  ;;  %6726 = vrot.lane.b32.xlu1 %v6364_v42, %s15469_s24  ;;  %v7117_v39 = vld [vmem:[#allocation2 + $0xf8] sm:$0x1]  ;;  %v4636_v4 = vshrl.u32 %v15022_v37, 16 }
 0x1df   : > { %3536 = vst [vmem:[#allocation2 + $0x570] sm:$0xff] %v3535_v45  ;;  %8138 = vrot.lane.b32.xlu0 %v7794_v26, %s15471_s20  ;;  %v7118_v61 = vsel %vm16520_vm12, 0, %v7117_v39  ;;  %v4634_v21 = vor.u32 %v4632_v5, %v4631_v63  ;;  %v401_v15 = vld [vmem:[#allocation2 + $0x5b8] sm:$0x1]  ;;  %v6356_v54 = vrot.slane %v6354_v30, 1  ;;  %v4639_v5 = vshll.u32 %v15022_v37, 16 }
 0x1e0   : > { %7119 = vst [vmem:[#allocation2 + $0xf8] sm:$0x1] %v7118_v61  ;;  %v402_v45 = vsel %vm15873_vm5, 0, %v401_v15  ;;  %v4863_v27 = vld [vmem:[#allocation2 + $0xd8] sm:$0xff]  ;;  %v4638_v60 = vrot.slane %v4636_v4, 7 }
 0x1e1   : > { %v4659_v9 = vpop.permute.xlu0 %4658  ;;  %v9003_v56 = vpop.permute.xlu1 %9002  ;;  %v7252_v42 = vld [vmem:[#allocation2 + $0x578] sm:$0x1]  ;;  %403 = vst [vmem:[#allocation2 + $0x5b8] sm:$0x1] %v402_v45  ;;  %v6357_v62 = vor.u32 %v6356_v54, %v6352_v19  ;;  %v15024_v19 = vld [vmem:[%s15659_s19 + $0x88] sm:$0xff]  }
 0x1e2   : > { %v3584_v8 = vld [vmem:[#allocation2 + $0xf0] sm:$0x1]  ;;  %v4861_v31 = vsel %vm16689_vm11, %v4659_v9, %v4860_v59  ;;  %9129 = vst.msk [vmem:[#allocation2 + $0x548] sm:$0xff] %vm4834_vm3, %v9003_v56  ;;  %8228 = vrot.lane.b32.xlu1 %v8109_v38, %s15471_s20  ;;  %v7253_v41 = vsel %vm16520_vm12, 0, %v7252_v42  ;;  %v5783_v59 = vld [vmem:[#allocation2 + $0x590] sm:$0x80]  ;;  %v4641_v45 = vor.u32 %v4639_v5, %v4638_v60 }
 0x1e3   : > { %v3585_v43 = vsel %vm16542_vm2, 0, %v3584_v8  ;;  %4862 = vst [vmem:[#allocation2 + $0xc0] sm:$0xff] %v4861_v31  ;;  %4670 = vrot.lane.b32.xlu0 %v4298_v6, %s15472_s22  ;;  %v1233_v38 = vshrl.u32 %v15019_v7, 16  ;;  %v1236_v9 = vshll.u32 %v15019_v7, 16  ;;  %7254 = vst [vmem:[#allocation2 + $0x578] sm:$0x1] %v7253_v41 }
 0x1e4   : > { %3586 = vst [vmem:[#allocation2 + $0xf0] sm:$0x1] %v3585_v43  ;;  %v5784_v43 = vsel %vm16435_vm13, 0, %v5783_v59  ;;  %v8318_v6 = vld [vmem:[#allocation2 + $0xe0] sm:$0xff]  ;;  %v2884_v2 = vshll.u32 %v15024_v19, 16  ;;  %v15029_v4 = vld [vmem:[%s15659_s19 + $0x98] sm:$0xff]  }
 0x1e5   : > { %v4755_v44 = vpop.permute.xlu0 %4754  ;;  %v17385_v14 = vpop.permute.xlu1 %6812  ;;  %v10428_v51 = vld [vmem:[#allocation2 + $0xc8] sm:$0xff]  ;;  %5785 = vst [vmem:[#allocation2 + $0x590] sm:$0x80] %v5784_v43  ;;  %v1235_v11 = vrot.slane %v1233_v38, 7 }
 0x1e6   : > { %v3728_v20 = vld [vmem:[#allocation2 + $0x570] sm:$0x1]  ;;  %v5005_v25 = vsel %vm16689_vm11, %v4755_v44, %v5004_v0  ;;  %11034 = vmatprep.mubr.bf16.mxu0 %v10428_v51  ;;  %8924 = vrot.lane.b32.xlu1 %v15011_v50, %s15472_s22  ;;  %v5639_v50 = vld [vmem:[#allocation2 + $0x110] sm:$0x80]  ;;  %v3537_v0 = vld [vmem:[#allocation2 + $0x588] sm:$0xff] }
 0x1e7   : > { %v3729_v40 = vsel %vm16542_vm2, 0, %v3728_v20  ;;  %5006 = vst [vmem:[#allocation2 + $0x540] sm:$0xff] %v5005_v25  ;;  %11035 = vmatmul.mubr.bf16.gmra.mrb[32].mxu0 %v4861_v31  ;;  %4766 = vrot.lane.b32.xlu0 %v4634_v21, %s15472_s22  ;;  %v15020_v31 = vld [vmem:[%s15659_s19 + $0x1f8] sm:$0xff]   ;;  %v5640_v46 = vsel %vm16435_vm13, 0, %v5639_v50  ;;  %v1238_v26 = vor.u32 %v1236_v9, %v1235_v11  ;;  %v8453_v21 = vld [vmem:[#allocation2 + $0x560] sm:$0xff]  ;;  %v2886_v11 = vrot.slane %v2884_v2, 1 }
 0x1e8   : > { %3730 = vst [vmem:[#allocation2 + $0x570] sm:$0x1] %v3729_v40  ;;  %v6688_v53 = vshrl.u32 %v15020_v31, 16  ;;  %v6690_v56 = vshll.u32 %v15020_v31, 16  ;;  %v15023_v44 = vld [vmem:[%s15659_s19 + $0x78] sm:$0xff]   ;;  %v2879_v40 = vrot.slane %v2877_v57, 1 }
 0x1e9   : > { %v17391_v36 = vpop.permute.xlu0 %6716  ;;  %v3210_v34 = vpop.permute.xlu1 %3209  ;;  %v10572_v35 = vld [vmem:[#allocation2 + $0x548] sm:$0xff]  ;;  %5641 = vst [vmem:[#allocation2 + $0x110] sm:$0x80] %v5640_v46  ;;  %v1487_v61 = vld [vmem:[#allocation2 + $0x5b8] sm:$0xff]  ;;  %v4303_v24 = vshll.u32 %v15023_v44, 16  ;;  %v15028_v57 = vld [vmem:[%s15659_s19 + $0x60] sm:$0xff]  }
 0x1ea   : > { %v3403_v17 = vsel %vm16474_vm15, %v3210_v34, %v3402_v23  ;;  %9014 = vrot.lane.b32.xlu1 %v15013_v16, %s15472_s22  ;;  %11418 = vmatprep.mubr.bf16.mxu1 %v10572_v35  ;;  %v6692_v39 = vrot.slane %v6690_v56, 1  ;;  %v1488_v63 = vsel %vm15906_vm6, %v1238_v26, %v1487_v61  ;;  %v4300_v23 = vshrl.u32 %v15023_v44, 16  ;;  %v15025_v35 = vld [vmem:[%s15659_s19 + $0x90] sm:$0xff]   ;;  %v15027_v31 = vld [vmem:[%s15659_s19 + $0x88] sm:$0xff]   ;;  %5552 = vst.msk [vmem:[#allocation2 + $0x128] sm:$0xff] %vm221_vm0, %v15028_v57 }
 0x1eb   : > { %3404 = vst [vmem:[#allocation2 + $0x108] sm:$0xff] %v3403_v17  ;;  %11419 = vmatmul.mubr.bf16.gmra.mrb[32].mxu1 %v5005_v25  ;;  %6728 = vrot.lane.b32.xlu0 %v6371_v18, %s15469_s24  ;;  %1489 = vst [vmem:[#allocation2 + $0x5b8] sm:$0xff] %v1488_v63  ;;  %v2880_v15 = vor.u32 %v2879_v40, %v2875_v3  ;;  %v2882_v17 = vshrl.u32 %v15024_v19, 16  ;;  %v6373_v9 = vshrl.u32 %v15025_v35, 16  ;;  %v6375_v43 = vshll.u32 %v15025_v35, 16  ;;  %v15032_v19 = vld [vmem:[%s15659_s19 + $0x1e0] sm:$0xff]  }
 0x1ec   : > { %v6693_v10 = vor.u32 %v6692_v39, %v6688_v53  ;;  %v7065_v34 = vld [vmem:[#allocation2 + $0x590] sm:$0xff]  ;;  %v4302_v7 = vrot.slane %v4300_v23, 7  ;;  %v7796_v3 = vshrl.u32 %v15027_v31, 16  ;;  %v7799_v39 = vshll.u32 %v15027_v31, 16  ;;  %v15031_v23 = vld [vmem:[%s15659_s19 + $0x1e8] sm:$0xff]   ;;  %5600 = vst.msk [vmem:[#allocation2 + $0x5a8] sm:$0xff] %vm221_vm0, %v15032_v19 }
 0x1ed   : > { %v2036_v8 = vpop.permute.xlu0 %2035  ;;  %v3300_v28 = vpop.permute.xlu1 %3299  ;;  %v7066_v41 = vsel %vm16456_vm14, %v17385_v14, %v7065_v34  ;;  %v6377_v53 = vrot.slane %v6375_v43, 1  ;;  %v2887_v26 = vor.u32 %v2886_v11, %v2882_v17  ;;  %v6380_v63 = vshrl.u32 %v15029_v4, 16  ;;  %v8321_v31 = vld [vmem:[#allocation2 + $0xf8] sm:$0xff] }
 0x1ee   : > { %6724 = vrot.lane.b32.xlu1 %v6357_v62, %s15469_s24  ;;  %v3538_v20 = vsel %vm16474_vm15, %v3300_v28, %v3537_v0  ;;  %2158 = vst.msk [vmem:[#allocation2 + $0x5b8] sm:$0xff] %vm20266_vm1, %v2036_v8  ;;  %v5007_v8 = vld [vmem:[#allocation2 + $0x558] sm:$0xff]  ;;  %7067 = vst [vmem:[#allocation2 + $0x590] sm:$0xff] %v7066_v41  ;;  %v4305_v38 = vor.u32 %v4303_v24, %v4302_v7  ;;  %v15026_v62 = vld [vmem:[%s15659_s19 + $0x80] sm:$0xff]   ;;  %v1243_v34 = vshll.u32 %v15031_v23, 16 }
 0x1ef   : > { %3539 = vst [vmem:[#allocation2 + $0x588] sm:$0xff] %v3538_v20  ;;  %3219 = vrot.lane.b32.xlu0 %v2880_v15, %s15471_s20  ;;  %v4307_v37 = vshrl.u32 %v15026_v62, 16  ;;  %v6378_v28 = vor.u32 %v6377_v53, %v6373_v9  ;;  %v15030_v15 = vld [vmem:[%s15659_s19 + $0x88] sm:$0xff]  }
 0x1f0   : > { %v6921_v18 = vld [vmem:[#allocation2 + $0x110] sm:$0xff] }
 0x1f1   : > { %v8129_v25 = vpop.permute.xlu0 %8128  ;;  %v4661_v22 = vpop.permute.xlu1 %4660  ;;  %v6922_v14 = vsel %vm16456_vm14, %v17391_v36, %v6921_v18  ;;  %v4310_v36 = vshll.u32 %v15026_v62, 16  ;;  %v4309_v44 = vrot.slane %v4307_v37, 7  ;;  %v5642_v2 = vld [vmem:[#allocation2 + $0x128] sm:$0x80]  ;;  %v15034_v62 = vld [vmem:[%s15659_s19 + $0x90] sm:$0xff]  }
 0x1f2   : > { %v8319_v16 = vsel %vm16606_vm8, %v8129_v25, %v8318_v6  ;;  %v3587_v51 = vld [vmem:[#allocation2 + $0x108] sm:$0x1]  ;;  %6820 = vrot.lane.b32.xlu1 %v6693_v10, %s15469_s24  ;;  %v17427_v42 = vsel %vm16689_vm11, %v4661_v22, %v4863_v27  ;;  %6923 = vst [vmem:[#allocation2 + $0x110] sm:$0xff] %v6922_v14  ;;  %v7798_v6 = vrot.slane %v7796_v3, 7  ;;  %v6382_v10 = vshll.u32 %v15029_v4, 16 }
 0x1f3   : > { %8320 = vst [vmem:[#allocation2 + $0xe0] sm:$0xff] %v8319_v16  ;;  %v3588_v30 = vsel %vm16542_vm2, 0, %v3587_v51  ;;  %4865 = vst [vmem:[#allocation2 + $0xd8] sm:$0xff] %v17427_v42  ;;  %4672 = vrot.lane.b32.xlu0 %v4305_v38, %s15472_s22  ;;  %v4312_v61 = vor.u32 %v4310_v36, %v4309_v44  ;;  %v404_v16 = vld [vmem:[#allocation2 + $0x5d0] sm:$0x1]  ;;  %v1240_v22 = vshrl.u32 %v15031_v23, 16 }
 0x1f4   : > { %3589 = vst [vmem:[#allocation2 + $0x108] sm:$0x1] %v3588_v30  ;;  %v7801_v51 = vor.u32 %v7799_v39, %v7798_v6  ;;  %v405_v60 = vsel %vm15873_vm5, 0, %v404_v16  ;;  %v6384_v30 = vrot.slane %v6382_v10, 1  ;;  %v5643_v9 = vsel %vm16435_vm13, 0, %v5642_v2  ;;  %v15036_v44 = vld [vmem:[%s15659_s19 + $0x88] sm:$0xff]  }
 0x1f5   : > { %v8219_v54 = vpop.permute.xlu0 %8218  ;;  %v4757_v55 = vpop.permute.xlu1 %4756  ;;  %v2340_v20 = vld [vmem:[#allocation2 + $0x5b8] sm:$0x80]  ;;  %v7255_v27 = vld [vmem:[#allocation2 + $0x590] sm:$0x1]  ;;  %406 = vst [vmem:[#allocation2 + $0x5d0] sm:$0x1] %v405_v60 }
 0x1f6   : > { %v8454_v59 = vsel %vm16606_vm8, %v8219_v54, %v8453_v21  ;;  %v3731_v50 = vld [vmem:[#allocation2 + $0x588] sm:$0x1]  ;;  %4768 = vrot.lane.b32.xlu1 %v4641_v45, %s15472_s22  ;;  %v17445_v56 = vsel %vm16689_vm11, %v4757_v55, %v5007_v8  ;;  %v2341_v5 = vsel %vm16187_vm10, 0, %v2340_v20  ;;  %v7256_v21 = vsel %vm16520_vm12, 0, %v7255_v27  ;;  %v15033_v45 = vld [vmem:[%s15659_s19 + $0x90] sm:$0xff]   ;;  %v15037_v10 = vld [vmem:[%s15659_s19 + $0x98] sm:$0xff]  }
 0x1f7   : > { %8455 = vst [vmem:[#allocation2 + $0x560] sm:$0xff] %v8454_v59  ;;  %v3732_v46 = vsel %vm16542_vm2, 0, %v3731_v50  ;;  %5009 = vst [vmem:[#allocation2 + $0x558] sm:$0xff] %v17445_v56  ;;  %6730 = vrot.lane.b32.xlu0 %v6378_v28, %s15469_s24  ;;  %v6385_v41 = vor.u32 %v6384_v30, %v6380_v63  ;;  %v1242_v59 = vrot.slane %v1240_v22, 7  ;;  %v7803_v8 = vshrl.u32 %v15033_v45, 16  ;;  %v15035_v28 = vld [vmem:[%s15659_s19 + $0x90] sm:$0xff]  }
 0x1f8   : > { %3733 = vst [vmem:[#allocation2 + $0x588] sm:$0x1] %v3732_v46  ;;  %2342 = vst [vmem:[#allocation2 + $0x5b8] sm:$0x80] %v2341_v5  ;;  %v7806_v38 = vshll.u32 %v15033_v45, 16  ;;  %v2889_v46 = vshrl.u32 %v15034_v62, 16 }
 0x1f9   : > { %v8915_v0 = vpop.permute.xlu0 %8914  ;;  %v17454_v25 = vpop.permute.xlu1 %6718  ;;  %7257 = vst [vmem:[#allocation2 + $0x590] sm:$0x1] %v7256_v21  ;;  %v7120_v7 = vld [vmem:[#allocation2 + $0x110] sm:$0x1]  ;;  %v1245_v43 = vor.u32 %v1243_v34, %v1242_v59  ;;  %5644 = vst [vmem:[#allocation2 + $0x128] sm:$0x80] %v5643_v9 }
 0x1fa   : > { %9085 = vst.msk [vmem:[#allocation2 + $0xe0] sm:$0xff] %vm4834_vm3, %v8915_v0  ;;  %3221 = vrot.lane.b32.xlu1 %v2887_v26, %s15471_s20  ;;  %v7121_v35 = vsel %vm16520_vm12, 0, %v7120_v7  ;;  %v7805_v55 = vrot.slane %v7803_v8, 7  ;;  %v2891_v26 = vshll.u32 %v15034_v62, 16  ;;  %v5786_v20 = vld [vmem:[#allocation2 + $0x5a8] sm:$0x80] }
 0x1fb   : > { %8140 = vrot.lane.b32.xlu0 %v7801_v51, %s15471_s20  ;;  %7122 = vst [vmem:[#allocation2 + $0x110] sm:$0x1] %v7121_v35  ;;  %v8456_v5 = vld [vmem:[#allocation2 + $0x578] sm:$0xff]  ;;  %v5787_v16 = vsel %vm16435_vm13, 0, %v5786_v20  ;;  %v4317_v27 = vshll.u32 %v15036_v44, 16  ;;  %v2896_v19 = vshrl.u32 %v15037_v10, 16 }
 0x1fc   : > { %v1490_v37 = vld [vmem:[#allocation2 + $0x5d0] sm:$0xff]  ;;  %v7808_v57 = vor.u32 %v7806_v38, %v7805_v55  ;;  %v2893_v6 = vrot.slane %v2891_v26, 1  ;;  %5788 = vst [vmem:[#allocation2 + $0x5a8] sm:$0x80] %v5787_v16  ;;  %v2898_v30 = vshll.u32 %v15037_v10, 16  ;;  %v15040_v9 = vld [vmem:[%s15659_s19 + $0x98] sm:$0xff]  }
 0x1fd   : > { %v9005_v40 = vpop.permute.xlu0 %9004  ;;  %v2038_v24 = vpop.permute.xlu1 %2037  ;;  %v1491_v3 = vsel %vm15906_vm6, %v1245_v43, %v1490_v37  ;;  %v7813_v26 = vshll.u32 %v15040_v9, 16 }
 0x1fe   : > { %9130 = vst.msk [vmem:[#allocation2 + $0x560] sm:$0xff] %vm4834_vm3, %v9005_v40  ;;  %4674 = vrot.lane.b32.xlu1 %v4312_v61, %s15472_s22  ;;  %1492 = vst [vmem:[#allocation2 + $0x5d0] sm:$0xff] %v1491_v3  ;;  %v3540_v61 = vld [vmem:[#allocation2 + $0x5a0] sm:$0xff]  ;;  %v2894_v60 = vor.u32 %v2893_v6, %v2889_v46  ;;  %v2900_v35 = vrot.slane %v2898_v30, 1 }
 0x1ff   : > { %8926 = vrot.lane.b32.xlu0 %v15030_v15, %s15472_s22  ;;  %2159 = vst.msk [vmem:[#allocation2 + $0x5d0] sm:$0xff] %vm20266_vm1, %v2038_v24  ;;  %v15038_v15 = vld [vmem:[%s15659_s19 + $0xa0] sm:$0xff]   ;;  %v15039_v24 = vld [vmem:[%s15659_s19 + $0x90] sm:$0xff]  }
 0x200   : > { %v6924_v22 = vld [vmem:[#allocation2 + $0x128] sm:$0xff]  ;;  %v6389_v2 = vshll.u32 %v15038_v15, 16  ;;  %v4321_v8 = vshrl.u32 %v15039_v24, 16  ;;  %v4324_v38 = vshll.u32 %v15039_v24, 16  ;;  %v2901_v62 = vor.u32 %v2900_v35, %v2896_v19  ;;  %v15042_v19 = vld [vmem:[%s15659_s19 + $0x98] sm:$0xff]  }
 0x201   : > { %v17472_v54 = vpop.permute.xlu0 %6814  ;;  %v10431_v17 = vld [vmem:[#allocation2 + $0xe0] sm:$0xff]  ;;  %v8131_v18 = vpop.permute.xlu1 %8130  ;;  %v6925_v7 = vsel %vm16456_vm14, %v17454_v25, %v6924_v22  ;;  %v4866_v25 = vld [vmem:[#allocation2 + $0xf0] sm:$0xff] }
 0x202   : > { %11042 = vmatprep.mubr.bf16.mxu0 %v10431_v17  ;;  %6732 = vrot.lane.b32.xlu1 %v6385_v41, %s15469_s24  ;;  %v8322_v14 = vsel %vm16606_vm8, %v8131_v18, %v8321_v31  ;;  %v6387_v41 = vshrl.u32 %v15038_v15, 16  ;;  %6926 = vst [vmem:[#allocation2 + $0x128] sm:$0xff] %v6925_v7  ;;  %v6391_v55 = vrot.slane %v6389_v2, 1  ;;  %v15045_v22 = vld [vmem:[%s15659_s19 + $0xa0] sm:$0xff]   ;;  %v407_v2 = vld [vmem:[#allocation2 + $0x5e8] sm:$0x1] }
 0x203   : > { %11043 = vmatmul.mubr.bf16.gmra.mrb[36].mxu0 %v17427_v42  ;;  %v3405_v42 = vld [vmem:[#allocation2 + $0x120] sm:$0xff]  ;;  %8323 = vst [vmem:[#allocation2 + $0xf8] sm:$0xff] %v8322_v14  ;;  %3223 = vrot.lane.b32.xlu0 %v2894_v60, %s15471_s20  ;;  %v7068_v46 = vld [vmem:[#allocation2 + $0x5a8] sm:$0xff]  ;;  %v7817_v35 = vshrl.u32 %v15045_v22, 16 }
 0x204   : > { %v17481_v11 = vpop.f32.mrb[0].mxu0  ;;  %v7069_v3 = vsel %vm16456_vm14, %v17472_v54, %v7068_v46  ;;  %v15048_v46 = vld [vmem:[%s15659_s19 + $0xa0] sm:$0xff]  }
 0x205   : > { %v3212_v50 = vpop.permute.xlu0 %3211  ;;  %v10575_v53 = vld [vmem:[#allocation2 + $0x560] sm:$0xff]  ;;  %v10974_v0 = vpop.f32.mrb[1].mxu0  ;;  %7070 = vst [vmem:[#allocation2 + $0x5a8] sm:$0xff] %v7069_v3 }
 0x206   : > { %v3406_v36 = vsel %vm16474_vm15, %v3212_v50, %v3405_v42  ;;  %11426 = vmatprep.mubr.bf16.mxu1 %v10575_v53  ;;  %v17494_v39 = vpop.f32.mrb[2].mxu0  ;;  %v8221_v4 = vpop.permute.xlu1 %8220  ;;  %8142 = vrot.lane.b32.xlu1 %v7808_v57, %s15471_s20  ;;  %v2343_v18 = vld [vmem:[#allocation2 + $0x5d0] sm:$0x80]  ;;  %v4323_v50 = vrot.slane %v4321_v8, 7  ;;  %v7810_v42 = vshrl.u32 %v15040_v9, 16  ;;  %v15041_v0 = vld [vmem:[%s15659_s19 + $0xa8] sm:$0xff]  }
 0x207   : > { %3407 = vst [vmem:[#allocation2 + $0x120] sm:$0xff] %v3406_v36  ;;  %11427 = vmatmul.mubr.bf16.gmra.mrb[36].mxu1 %v17445_v56  ;;  %v10977_v40 = vpop.f32.mrb[3].mxu0  ;;  %v4314_v56 = vshrl.u32 %v15036_v44, 16  ;;  %v8457_v51 = vsel %vm16606_vm8, %v8221_v4, %v8456_v5  ;;  %v17508_v45 = vpop.f32.mrb[0].mxu1  ;;  %v2344_v37 = vsel %vm16187_vm10, 0, %v2343_v18  ;;  %v5010_v36 = vld [vmem:[#allocation2 + $0x570] sm:$0xff] }
 0x208   : > { %8458 = vst [vmem:[#allocation2 + $0x578] sm:$0xff] %v8457_v51  ;;  %20303 = vst [vmem:[#allocation12_spill] sm:$0xff] %v17508_v45  ;;  %v4326_v44 = vor.u32 %v4324_v38, %v4323_v50  ;;  %v7812_v20 = vrot.slane %v7810_v42, 7  ;;  %v11358_v6 = vpop.f32.mrb[1].mxu1  ;;  %v6396_v40 = vshll.u32 %v15041_v0, 16 }
 0x209   : > { %v3302_v63 = vpop.permute.xlu0 %3301  ;;  %v4316_v21 = vrot.slane %v4314_v56, 7  ;;  %2345 = vst [vmem:[#allocation2 + $0x5d0] sm:$0x80] %v2344_v37  ;;  %v17531_v16 = vpop.f32.mrb[2].mxu1  ;;  %v7123_v10 = vld [vmem:[#allocation2 + $0x128] sm:$0x1] }
 0x20a   : > { %v3541_v23 = vsel %vm16474_vm15, %v3302_v63, %v3540_v61  ;;  %v8917_v34 = vpop.permute.xlu1 %8916  ;;  %8928 = vrot.lane.b32.xlu1 %v15035_v28, %s15472_s22  ;;  %v6392_v28 = vor.u32 %v6391_v55, %v6387_v41  ;;  %v6394_v61 = vshrl.u32 %v15041_v0, 16  ;;  %20304 = vst [vmem:[#allocation13_spill] sm:$0xff] %v17531_v16  ;;  %v7815_v54 = vor.u32 %v7813_v26, %v7812_v20  ;;  %v11361_v63 = vpop.f32.mrb[3].mxu1 }
 0x20b   : > { %3542 = vst [vmem:[#allocation2 + $0x5a0] sm:$0xff] %v3541_v23  ;;  %v4319_v17 = vor.u32 %v4317_v27, %v4316_v21  ;;  %9086 = vst.msk [vmem:[#allocation2 + $0xf8] sm:$0xff] %vm4834_vm3, %v8917_v34  ;;  %v15043_v27 = vld [vmem:[%s15659_s19 + $0x1e8] sm:$0xff]   ;;  %v6398_v60 = vrot.slane %v6396_v40, 1  ;;  %v7124_v21 = vsel %vm16520_vm12, 0, %v7123_v10  ;;  %v15046_v34 = vld [vmem:[%s15659_s19 + $0xa0] sm:$0xff]  }
 0x20c   : > { %v15044_v23 = vld [vmem:[%s15659_s19 + $0x68] sm:$0xff]   ;;  %5601 = vst.msk [vmem:[#allocation2 + $0x5c0] sm:$0xff] %vm221_vm0, %v15043_v27  ;;  %7125 = vst [vmem:[#allocation2 + $0x128] sm:$0x1] %v7124_v21  ;;  %v7820_v41 = vshll.u32 %v15045_v22, 16  ;;  %v2903_v38 = vshrl.u32 %v15046_v34, 16 }
 0x20d   : > { %v4663_v31 = vpop.permute.xlu0 %4662  ;;  %4676 = vrot.lane.b32.xlu0 %v4319_v17, %s15472_s22  ;;  %v6399_v15 = vor.u32 %v6398_v60, %v6394_v61  ;;  %5553 = vst.msk [vmem:[#allocation2 + $0x140] sm:$0xff] %vm221_vm0, %v15044_v23  ;;  %v3408_v17 = vld [vmem:[#allocation2 + $0x138] sm:$0xff]  ;;  %v7258_v8 = vld [vmem:[#allocation2 + $0x5a8] sm:$0x1]  ;;  %v2905_v9 = vshll.u32 %v15046_v34, 16  ;;  %v15051_v21 = vld [vmem:[%s15659_s19 + $0xb0] sm:$0xff]  }
 0x20e   : > { %v3590_v59 = vld [vmem:[#allocation2 + $0x120] sm:$0x1]  ;;  %v4867_v14 = vsel %vm16689_vm11, %v4663_v31, %v4866_v25  ;;  %v9007_v53 = vpop.permute.xlu1 %9006  ;;  %3225 = vrot.lane.b32.xlu1 %v2901_v62, %s15471_s20  ;;  %v15047_v62 = vld [vmem:[%s15659_s19 + $0x1f0] sm:$0xff]   ;;  %v7259_v31 = vsel %vm16520_vm12, 0, %v7258_v8  ;;  %v7819_v25 = vrot.slane %v7817_v35, 7  ;;  %v15050_v61 = vld [vmem:[%s15659_s19 + $0xa8] sm:$0xff]  }
 0x20f   : > { %v3591_v43 = vsel %vm16542_vm2, 0, %v3590_v59  ;;  %4868 = vst [vmem:[#allocation2 + $0xf0] sm:$0xff] %v4867_v14  ;;  %9131 = vst.msk [vmem:[#allocation2 + $0x578] sm:$0xff] %vm4834_vm3, %v9007_v53  ;;  %v1247_v50 = vshrl.u32 %v15047_v62, 16  ;;  %v1250_v42 = vshll.u32 %v15047_v62, 16  ;;  %v15049_v53 = vld [vmem:[%s15659_s19 + $0x98] sm:$0xff]  }
 0x210   : > { %3592 = vst [vmem:[#allocation2 + $0x120] sm:$0x1] %v3591_v43  ;;  %v408_v43 = vsel %vm15873_vm5, 0, %v407_v2  ;;  %7260 = vst [vmem:[#allocation2 + $0x5a8] sm:$0x1] %v7259_v31  ;;  %v7822_v37 = vor.u32 %v7820_v41, %v7819_v25  ;;  %v4331_v20 = vshll.u32 %v15049_v53, 16 }
 0x211   : > { %v4759_v5 = vpop.permute.xlu0 %4758  ;;  %6734 = vrot.lane.b32.xlu0 %v6392_v28, %s15469_s24  ;;  %409 = vst [vmem:[#allocation2 + $0x5e8] sm:$0x1] %v408_v43  ;;  %v2910_v60 = vshrl.u32 %v15050_v61, 16  ;;  %v2912_v23 = vshll.u32 %v15050_v61, 16  ;;  %v6401_v35 = vshrl.u32 %v15051_v21, 16  ;;  %v15052_v2 = vld [vmem:[%s15659_s19 + $0xa0] sm:$0xff]  }
 0x212   : > { %v3734_v57 = vld [vmem:[#allocation2 + $0x5a0] sm:$0x1]  ;;  %v5011_v56 = vsel %vm16689_vm11, %v4759_v5, %v5010_v36  ;;  %v17537_v51 = vpop.permute.xlu1 %6816  ;;  %4678 = vrot.lane.b32.xlu1 %v4326_v44, %s15472_s22  ;;  %v10434_v30 = vld [vmem:[#allocation2 + $0xf8] sm:$0xff]  ;;  %v4328_v44 = vshrl.u32 %v15049_v53, 16  ;;  %v8324_v5 = vld [vmem:[#allocation2 + $0x110] sm:$0xff]  ;;  %v6403_v8 = vshll.u32 %v15051_v21, 16 }
 0x213   : > { %v3735_v4 = vsel %vm16542_vm2, 0, %v3734_v57  ;;  %5012 = vst [vmem:[#allocation2 + $0x570] sm:$0xff] %v5011_v56  ;;  %11050 = vmatprep.mubr.bf16.mxu0 %v10434_v30  ;;  %v5789_v0 = vld [vmem:[#allocation2 + $0x5c0] sm:$0x80]  ;;  %v1249_v57 = vrot.slane %v1247_v50, 7  ;;  %v15053_v43 = vld [vmem:[%s15659_s19 + $0xa8] sm:$0xff]  }
 0x214   : > { %3736 = vst [vmem:[#allocation2 + $0x5a0] sm:$0x1] %v3735_v4  ;;  %11051 = vmatmul.mubr.bf16.gmra.mrb[40].mxu0 %v4867_v14  ;;  %v2907_v14 = vrot.slane %v2905_v9, 1  ;;  %v5790_v26 = vsel %vm16435_vm13, 0, %v5789_v0  ;;  %v5645_v36 = vld [vmem:[#allocation2 + $0x140] sm:$0x80] }
 0x215   : > { %v17546_v24 = vpop.permute.xlu0 %6720  ;;  %8144 = vrot.lane.b32.xlu0 %v7815_v54, %s15471_s20  ;;  %5791 = vst [vmem:[#allocation2 + $0x5c0] sm:$0x80] %v5790_v26  ;;  %v5646_v28 = vsel %vm16435_vm13, 0, %v5645_v36  ;;  %v3543_v4 = vld [vmem:[#allocation2 + $0x5b8] sm:$0xff]  ;;  %v1252_v40 = vor.u32 %v1250_v42, %v1249_v57  ;;  %v4330_v63 = vrot.slane %v4328_v44, 7  ;;  %v4335_v25 = vshrl.u32 %v15052_v2, 16 }
 0x216   : > { %v3214_v7 = vpop.permute.xlu1 %3213  ;;  %6736 = vrot.lane.b32.xlu1 %v6399_v15, %s15469_s24  ;;  %v10578_v55 = vld [vmem:[#allocation2 + $0x578] sm:$0xff]  ;;  %v2908_v3 = vor.u32 %v2907_v14, %v2903_v38  ;;  %5647 = vst [vmem:[#allocation2 + $0x140] sm:$0x80] %v5646_v28  ;;  %v4869_v15 = vld [vmem:[#allocation2 + $0x108] sm:$0xff]  ;;  %v6405_v53 = vrot.slane %v6403_v8, 1  ;;  %v7824_v0 = vshrl.u32 %v15053_v43, 16 }
 0x217   : > { %v3409_v59 = vsel %vm16474_vm15, %v3214_v7, %v3408_v17  ;;  %11434 = vmatprep.mubr.bf16.mxu1 %v10578_v55  ;;  %v4333_v7 = vor.u32 %v4331_v20, %v4330_v63  ;;  %v2914_v17 = vrot.slane %v2912_v23, 1  ;;  %v4338_v55 = vshll.u32 %v15052_v2, 16  ;;  %v5013_v14 = vld [vmem:[#allocation2 + $0x588] sm:$0xff]  ;;  %v15054_v50 = vld [vmem:[%s15659_s19 + $0xb8] sm:$0xff]   ;;  %v15057_v21 = vld [vmem:[%s15659_s19 + $0xb0] sm:$0xff]  }
 0x218   : > { %3410 = vst [vmem:[#allocation2 + $0x138] sm:$0xff] %v3409_v59  ;;  %11435 = vmatmul.mubr.bf16.gmra.mrb[40].mxu1 %v5011_v56  ;;  %v1493_v30 = vld [vmem:[#allocation2 + $0x5e8] sm:$0xff]  ;;  %v8459_v59 = vld [vmem:[#allocation2 + $0x590] sm:$0xff]  ;;  %v4337_v26 = vrot.slane %v4335_v25, 7  ;;  %v6410_v57 = vshll.u32 %v15054_v50, 16  ;;  %v6406_v20 = vor.u32 %v6405_v53, %v6401_v35 }
 0x219   : > { %v2040_v18 = vpop.permute.xlu0 %2039  ;;  %8930 = vrot.lane.b32.xlu0 %v15042_v19, %s15472_s22  ;;  %v17576_v22 = vpop.f32.mrb[4].mxu0  ;;  %v1494_v34 = vsel %vm15906_vm6, %v1252_v40, %v1493_v30  ;;  %v2915_v62 = vor.u32 %v2914_v17, %v2910_v60  ;;  %v15055_v30 = vld [vmem:[%s15659_s19 + $0xa8] sm:$0xff]   ;;  %v7834_v17 = vshll.u32 %v15057_v21, 16  ;;  %v15058_v35 = vld [vmem:[%s15659_s19 + $0xb0] sm:$0xff]  }
 0x21a   : > { %8146 = vrot.lane.b32.xlu1 %v7822_v37, %s15471_s20  ;;  %v3304_v6 = vpop.permute.xlu1 %3303  ;;  %1495 = vst [vmem:[#allocation2 + $0x5e8] sm:$0xff] %v1494_v34  ;;  %v7827_v37 = vshll.u32 %v15053_v43, 16  ;;  %v4340_v61 = vor.u32 %v4338_v55, %v4337_v26  ;;  %v10982_v40 = vpop.f32.mrb[5].mxu0  ;;  %v15059_v8 = vld [vmem:[%s15659_s19 + $0x1f0] sm:$0xff]  }
 0x21b   : > { %v3544_v54 = vsel %vm16474_vm15, %v3304_v6, %v3543_v4  ;;  %2160 = vst.msk [vmem:[#allocation2 + $0x5e8] sm:$0xff] %vm20266_vm1, %v2040_v18  ;;  %v7826_v6 = vrot.slane %v7824_v0, 7  ;;  %v15060_v26 = vld [vmem:[%s15659_s19 + $0xb0] sm:$0xff]   ;;  %vm17876_vm1 = vmand %vm9140_vm4, %vm2167_vm9  ;;  %vm20316_vm9 = vsmask.f32 7424 }
 0x21c   : > { %3545 = vst [vmem:[#allocation2 + $0x5b8] sm:$0xff] %v3544_v54  ;;  %v7071_v42 = vld [vmem:[#allocation2 + $0x5c0] sm:$0xff]  ;;  %v15056_v54 = vld [vmem:[%s15659_s19 + $0x70] sm:$0xff]   ;;  %5602 = vst.msk [vmem:[#allocation2 + $0x5d8] sm:$0xff] %vm221_vm0, %v15059_v8 }
 0x21d   : > { %3227 = vrot.lane.b32.xlu0 %v2908_v3, %s15471_s20  ;;  %v8133_v56 = vpop.permute.xlu0 %8132  ;;  %v7072_v18 = vsel %vm16456_vm14, %v17537_v51, %v7071_v42  ;;  %v6408_v3 = vshrl.u32 %v15054_v50, 16  ;;  %v17612_v63 = vpop.f32.mrb[4].mxu1  ;;  %5554 = vst.msk [vmem:[#allocation2 + $0x158] sm:$0xff] %vm221_vm0, %v15056_v54  ;;  %vm17919_vm4 = vmand %vm221_vm0, %vm20316_vm9  ;;  %vm20333_vm9 = vcmask 523520  }
 0x21e   : > { %v8325_v10 = vsel %vm16606_vm8, %v8133_v56, %v8324_v5  ;;  %8932 = vrot.lane.b32.xlu1 %v15048_v46, %s15472_s22  ;;  %v4665_v41 = vpop.permute.xlu1 %4664  ;;  %v6927_v46 = vld [vmem:[#allocation2 + $0x140] sm:$0xff]  ;;  %7073 = vst [vmem:[#allocation2 + $0x5c0] sm:$0xff] %v7072_v18  ;;  %v7829_v56 = vor.u32 %v7827_v37, %v7826_v6  ;;  %20305 = vst [vmem:[#allocation14_spill] sm:$0xff] %v17612_v63 }
 0x21f   : > { %v3593_v27 = vld [vmem:[#allocation2 + $0x138] sm:$0x1]  ;;  %8326 = vst [vmem:[#allocation2 + $0x110] sm:$0xff] %v8325_v10  ;;  %v17584_v38 = vsel %vm16689_vm11, %v4665_v41, %v4869_v15  ;;  %v6928_v28 = vsel %vm16456_vm14, %v17546_v24, %v6927_v46  ;;  %v6412_v24 = vrot.slane %v6410_v57, 1  ;;  %v11366_v41 = vpop.f32.mrb[5].mxu1 }
 0x220   : > { %v3594_v19 = vsel %vm16542_vm2, 0, %v3593_v27  ;;  %4871 = vst [vmem:[#allocation2 + $0x108] sm:$0xff] %v17584_v38  ;;  %6929 = vst [vmem:[#allocation2 + $0x140] sm:$0xff] %v6928_v28  ;;  %v17610_v27 = vpop.f32.mrb[6].mxu0  ;;  %v17625_v2 = vpop.f32.mrb[6].mxu1 }
 0x221   : > { %3595 = vst [vmem:[#allocation2 + $0x138] sm:$0x1] %v3594_v19  ;;  %v8223_v9 = vpop.permute.xlu0 %8222  ;;  %4680 = vrot.lane.b32.xlu0 %v4333_v7, %s15472_s22  ;;  %v6413_v10 = vor.u32 %v6412_v24, %v6408_v3  ;;  %v10985_v23 = vpop.f32.mrb[7].mxu0  ;;  %v7831_v7 = vshrl.u32 %v15057_v21, 16  ;;  %20306 = vst [vmem:[#allocation15_spill] sm:$0xff] %v17625_v2 }
 0x222   : > { %v8460_v31 = vsel %vm16606_vm8, %v8223_v9, %v8459_v59  ;;  %3229 = vrot.lane.b32.xlu1 %v2915_v62, %s15471_s20  ;;  %v4761_v36 = vpop.permute.xlu1 %4760  ;;  %v2346_v19 = vld [vmem:[#allocation2 + $0x5e8] sm:$0x80]  ;;  %v3411_v59 = vld [vmem:[#allocation2 + $0x150] sm:$0xff]  ;;  %v2917_v62 = vshrl.u32 %v15058_v35, 16  ;;  %v11369_v55 = vpop.f32.mrb[7].mxu1 }
 0x223   : > { %8461 = vst [vmem:[#allocation2 + $0x590] sm:$0xff] %v8460_v31  ;;  %v3737_v44 = vld [vmem:[#allocation2 + $0x5b8] sm:$0x1]  ;;  %v17602_v4 = vsel %vm16689_vm11, %v4761_v36, %v5013_v14  ;;  %v2347_v34 = vsel %vm16187_vm10, 0, %v2346_v19  ;;  %v7833_v43 = vrot.slane %v7831_v7, 7  ;;  %v2919_v31 = vshll.u32 %v15058_v35, 16 }
 0x224   : > { %v3738_v5 = vsel %vm16542_vm2, 0, %v3737_v44  ;;  %5015 = vst [vmem:[#allocation2 + $0x588] sm:$0xff] %v17602_v4  ;;  %2348 = vst [vmem:[#allocation2 + $0x5e8] sm:$0x80] %v2347_v34  ;;  %v15061_v36 = vld [vmem:[%s15659_s19 + $0xa8] sm:$0xff]   ;;  %v15063_v19 = vld [vmem:[%s15659_s19 + $0xc0] sm:$0xff]  }
 0x225   : > { %v8919_v51 = vpop.permute.xlu0 %8918  ;;  %3739 = vst [vmem:[#allocation2 + $0x5b8] sm:$0x1] %v3738_v5  ;;  %6738 = vrot.lane.b32.xlu0 %v6406_v20, %s15469_s24  ;;  %v7261_v9 = vld [vmem:[#allocation2 + $0x5c0] sm:$0x1]  ;;  %v7836_v18 = vor.u32 %v7834_v17, %v7833_v43  ;;  %v2921_v46 = vrot.slane %v2919_v31, 1  ;;  %v4342_v44 = vshrl.u32 %v15061_v36, 16 }
 0x226   : > { %9087 = vst.msk [vmem:[#allocation2 + $0x110] sm:$0xff] %vm4834_vm3, %v8919_v51  ;;  %4682 = vrot.lane.b32.xlu1 %v4340_v61, %s15472_s22  ;;  %v17616_v60 = vpop.permute.xlu1 %6722  ;;  %v7262_v14 = vsel %vm16520_vm12, 0, %v7261_v9  ;;  %v5648_v3 = vld [vmem:[#allocation2 + $0x158] sm:$0x80]  ;;  %v4345_v20 = vshll.u32 %v15061_v36, 16  ;;  %v3546_v51 = vld [vmem:[#allocation2 + $0x5d0] sm:$0xff] }
 0x227   : > { %v7126_v50 = vld [vmem:[#allocation2 + $0x140] sm:$0x1]  ;;  %7263 = vst [vmem:[#allocation2 + $0x5c0] sm:$0x1] %v7262_v14  ;;  %v5649_v57 = vsel %vm16435_vm13, 0, %v5648_v3  ;;  %v2922_v28 = vor.u32 %v2921_v46, %v2917_v62  ;;  %v8327_v5 = vld [vmem:[#allocation2 + $0x128] sm:$0xff] }
 0x228   : > { %v7127_v37 = vsel %vm16520_vm12, 0, %v7126_v50  ;;  %v15062_v61 = vld [vmem:[%s15659_s19 + $0xb8] sm:$0xff]   ;;  %5650 = vst [vmem:[#allocation2 + $0x158] sm:$0x80] %v5649_v57  ;;  %v6415_v41 = vshrl.u32 %v15063_v19, 16  ;;  %v15064_v9 = vld [vmem:[%s15659_s19 + $0xb0] sm:$0xff]  }
 0x229   : > { %v9009_v15 = vpop.permute.xlu0 %9008  ;;  %8148 = vrot.lane.b32.xlu0 %v7829_v56, %s15471_s20  ;;  %7128 = vst [vmem:[#allocation2 + $0x140] sm:$0x1] %v7127_v37  ;;  %v4344_v56 = vrot.slane %v4342_v44, 7  ;;  %v2924_v23 = vshrl.u32 %v15062_v61, 16  ;;  %v2926_v21 = vshll.u32 %v15062_v61, 16  ;;  %v15065_v31 = vld [vmem:[%s15659_s19 + $0xb8] sm:$0xff]  }
 0x22a   : > { %9132 = vst.msk [vmem:[#allocation2 + $0x590] sm:$0xff] %vm4834_vm3, %v9009_v15  ;;  %6740 = vrot.lane.b32.xlu1 %v6413_v10, %s15469_s24  ;;  %v3216_v25 = vpop.permute.xlu1 %3215  ;;  %v5792_v7 = vld [vmem:[#allocation2 + $0x5d8] sm:$0x80]  ;;  %v8462_v50 = vld [vmem:[#allocation2 + $0x5a8] sm:$0xff]  ;;  %v7838_v46 = vshrl.u32 %v15065_v31, 16  ;;  %v7841_v57 = vshll.u32 %v15065_v31, 16 }
 0x22b   : > { %v3412_v42 = vsel %vm16474_vm15, %v3216_v25, %v3411_v59  ;;  %v4347_v17 = vor.u32 %v4345_v20, %v4344_v56  ;;  %v2928_v35 = vrot.slane %v2926_v21, 1  ;;  %v6417_v59 = vshll.u32 %v15063_v19, 16  ;;  %v3414_v21 = vld [vmem:[#allocation2 + $0x168] sm:$0xff]  ;;  %v15068_v19 = vld [vmem:[%s15659_s19 + $0xc0] sm:$0xff]  }
 0x22c   : > { %3413 = vst [vmem:[#allocation2 + $0x150] sm:$0xff] %v3412_v42  ;;  %v5793_v62 = vsel %vm16435_vm13, 0, %v5792_v7 }
 0x22d   : > { %v17634_v53 = vpop.permute.xlu0 %6818  ;;  %v10437_v0 = vld [vmem:[#allocation2 + $0x110] sm:$0xff]  ;;  %8934 = vrot.lane.b32.xlu0 %v15055_v30, %s15472_s22  ;;  %v4872_v30 = vld [vmem:[#allocation2 + $0x120] sm:$0xff]  ;;  %5794 = vst [vmem:[#allocation2 + $0x5d8] sm:$0x80] %v5793_v62  ;;  %v2929_v55 = vor.u32 %v2928_v35, %v2924_v23  ;;  %v6419_v14 = vrot.slane %v6417_v59, 1  ;;  %v7848_v59 = vshll.u32 %v15068_v19, 16 }
 0x22e   : > { %11058 = vmatprep.mubr.bf16.mxu0 %v10437_v0  ;;  %8150 = vrot.lane.b32.xlu1 %v7836_v18, %s15471_s20  ;;  %v3306_v6 = vpop.permute.xlu1 %3305  ;;  %v4349_v0 = vshrl.u32 %v15064_v9, 16  ;;  %v4352_v18 = vshll.u32 %v15064_v9, 16  ;;  %v15067_v9 = vld [vmem:[%s15659_s19 + $0xb8] sm:$0xff]  }
 0x22f   : > { %11059 = vmatmul.mubr.bf16.gmra.mrb[44].mxu0 %v17584_v38  ;;  %v3547_v24 = vsel %vm16474_vm15, %v3306_v6, %v3546_v51  ;;  %v17648_v38 = vpop.f32.mrb[8].mxu0  ;;  %v6420_v36 = vor.u32 %v6419_v14, %v6415_v41  ;;  %v7840_v6 = vrot.slane %v7838_v46, 7  ;;  %v7845_v41 = vshrl.u32 %v15068_v19, 16 }
 0x230   : > { %3548 = vst [vmem:[#allocation2 + $0x5d0] sm:$0xff] %v3547_v24  ;;  %v10990_v15 = vpop.f32.mrb[9].mxu0  ;;  %v4351_v3 = vrot.slane %v4349_v0, 7 }
 0x231   : > { %v8135_v40 = vpop.permute.xlu0 %8134  ;;  %v10581_v54 = vld [vmem:[#allocation2 + $0x590] sm:$0xff]  ;;  %3231 = vrot.lane.b32.xlu0 %v2922_v28, %s15471_s20  ;;  %v17655_v34 = vpop.f32.mrb[8].mxu1  ;;  %v15066_v28 = vld [vmem:[%s15659_s19 + $0xc8] sm:$0xff]   ;;  %v15069_v15 = vld [vmem:[%s15659_s19 + $0xc0] sm:$0xff]  }
 0x232   : > { %v8328_v10 = vsel %vm16606_vm8, %v8135_v40, %v8327_v5  ;;  %11442 = vmatprep.mubr.bf16.mxu1 %v10581_v54  ;;  %20307 = vst [vmem:[#allocation16_spill] sm:$0xff] %v17655_v34  ;;  %8936 = vrot.lane.b32.xlu1 %v15060_v26, %s15472_s22  ;;  %v4667_v8 = vpop.permute.xlu1 %4666  ;;  %v6930_v26 = vld [vmem:[#allocation2 + $0x158] sm:$0xff]  ;;  %v5016_v5 = vld [vmem:[#allocation2 + $0x5a0] sm:$0xff]  ;;  %v4354_v24 = vor.u32 %v4352_v18, %v4351_v3  ;;  %v6422_v56 = vshrl.u32 %v15066_v28, 16  ;;  %v17686_v23 = vpop.f32.mrb[10].mxu0  ;;  %v2931_v31 = vshrl.u32 %v15069_v15, 16 }
 0x233   : > { %8329 = vst [vmem:[#allocation2 + $0x128] sm:$0xff] %v8328_v10  ;;  %11443 = vmatmul.mubr.bf16.gmra.mrb[44].mxu1 %v17602_v4  ;;  %v3596_v43 = vld [vmem:[#allocation2 + $0x150] sm:$0x1]  ;;  %v17663_v4 = vsel %vm16689_vm11, %v4667_v8, %v4872_v30  ;;  %v6931_v44 = vsel %vm16456_vm14, %v17616_v60, %v6930_v26  ;;  %v7843_v60 = vor.u32 %v7841_v57, %v7840_v6  ;;  %v6424_v10 = vshll.u32 %v15066_v28, 16  ;;  %v10993_v30 = vpop.f32.mrb[11].mxu0  ;;  %v3549_v26 = vld [vmem:[#allocation2 + $0x5e8] sm:$0xff] }
 0x234   : > { %v3597_v25 = vsel %vm16542_vm2, 0, %v3596_v43  ;;  %4874 = vst [vmem:[#allocation2 + $0x120] sm:$0xff] %v17663_v4  ;;  %6932 = vst [vmem:[#allocation2 + $0x158] sm:$0xff] %v6931_v44  ;;  %v7074_v7 = vld [vmem:[#allocation2 + $0x5d8] sm:$0xff]  ;;  %v8330_v28 = vld [vmem:[#allocation2 + $0x140] sm:$0xff] }
 0x235   : > { %v8225_v42 = vpop.permute.xlu0 %8224  ;;  %3598 = vst [vmem:[#allocation2 + $0x150] sm:$0x1] %v3597_v25  ;;  %4684 = vrot.lane.b32.xlu0 %v4347_v17, %s15472_s22  ;;  %v6426_v17 = vrot.slane %v6424_v10, 1  ;;  %v7075_v8 = vsel %vm16456_vm14, %v17634_v53, %v7074_v7  ;;  %v2933_v25 = vshll.u32 %v15069_v15, 16  ;;  %v15074_v15 = vld [vmem:[%s15659_s19 + $0xc8] sm:$0xff]  }
 0x236   : > { %v8463_v37 = vsel %vm16606_vm8, %v8225_v42, %v8462_v50  ;;  %3233 = vrot.lane.b32.xlu1 %v2929_v55, %s15471_s20  ;;  %v4763_v51 = vpop.permute.xlu1 %4762  ;;  %v11374_v55 = vpop.f32.mrb[9].mxu1  ;;  %7076 = vst [vmem:[#allocation2 + $0x5d8] sm:$0xff] %v7075_v8  ;;  %v7847_v50 = vrot.slane %v7845_v41, 7 }
 0x237   : > { %8464 = vst [vmem:[#allocation2 + $0x5a8] sm:$0xff] %v8463_v37  ;;  %v3740_v20 = vld [vmem:[#allocation2 + $0x5d0] sm:$0x1]  ;;  %v17681_v40 = vsel %vm16689_vm11, %v4763_v51, %v5016_v5  ;;  %v6427_v14 = vor.u32 %v6426_v17, %v6422_v56  ;;  %v17699_v42 = vpop.f32.mrb[10].mxu1  ;;  %v2935_v53 = vrot.slane %v2933_v25, 1  ;;  %v15070_v5 = vld [vmem:[%s15659_s19 + $0xc0] sm:$0xff]  }
 0x238   : > { %v3741_v61 = vsel %vm16542_vm2, 0, %v3740_v20  ;;  %5018 = vst [vmem:[#allocation2 + $0x5a0] sm:$0xff] %v17681_v40  ;;  %20308 = vst [vmem:[#allocation17_spill] sm:$0xff] %v17699_v42  ;;  %v11377_v0 = vpop.f32.mrb[11].mxu1  ;;  %v7850_v18 = vor.u32 %v7848_v59, %v7847_v50  ;;  %v15073_v56 = vld [vmem:[%s15659_s19 + $0xd0] sm:$0xff]   ;;  %v7852_v55 = vshrl.u32 %v15074_v15, 16 }
 0x239   : > { %v8921_v54 = vpop.permute.xlu0 %8920  ;;  %3742 = vst [vmem:[#allocation2 + $0x5d0] sm:$0x1] %v3741_v61  ;;  %6742 = vrot.lane.b32.xlu0 %v6420_v36, %s15469_s24  ;;  %v15071_v36 = vld [vmem:[%s15659_s19 + $0xb8] sm:$0xff]   ;;  %v2936_v6 = vor.u32 %v2935_v53, %v2931_v31  ;;  %v6429_v19 = vshrl.u32 %v15073_v56, 16  ;;  %v6431_v30 = vshll.u32 %v15073_v56, 16  ;;  %v15075_v50 = vld [vmem:[%s15659_s19 + $0xc8] sm:$0xff]  }
 0x23a   : > { %9088 = vst.msk [vmem:[#allocation2 + $0x128] sm:$0xff] %vm4834_vm3, %v8921_v54  ;;  %4686 = vrot.lane.b32.xlu1 %v4354_v24, %s15472_s22  ;;  %v3218_v35 = vpop.permute.xlu1 %3217  ;;  %v4356_v61 = vshrl.u32 %v15071_v36, 16  ;;  %v4359_v24 = vshll.u32 %v15071_v36, 16  ;;  %v4875_v54 = vld [vmem:[#allocation2 + $0x138] sm:$0xff]  ;;  %v15076_v53 = vld [vmem:[%s15659_s19 + $0x80] sm:$0xff]   ;;  %v7854_v36 = vrot.slane %v7852_v55, 7 }
 0x23b   : > { %v3415_v43 = vsel %vm16474_vm15, %v3218_v35, %v3414_v21  ;;  %v7129_v37 = vld [vmem:[#allocation2 + $0x158] sm:$0x1]  ;;  %v6433_v25 = vrot.slane %v6431_v30, 1  ;;  %5556 = vst.msk [vmem:[#allocation2 + $0x188] sm:$0xff] %vm221_vm0, %v15076_v53  ;;  %v15077_v30 = vld [vmem:[%s15659_s19 + $0xc8] sm:$0xff]  }
 0x23c   : > { %3416 = vst [vmem:[#allocation2 + $0x168] sm:$0xff] %v3415_v43  ;;  %v7130_v3 = vsel %vm16520_vm12, 0, %v7129_v37  ;;  %v4358_v10 = vrot.slane %v4356_v61, 7  ;;  %v15072_v31 = vld [vmem:[%s15659_s19 + $0xd8] sm:$0xff]  }
 0x23d   : > { %v9011_v62 = vpop.permute.xlu0 %9010  ;;  %8152 = vrot.lane.b32.xlu0 %v7843_v60, %s15471_s20  ;;  %7131 = vst [vmem:[#allocation2 + $0x158] sm:$0x1] %v7130_v3  ;;  %v8465_v60 = vld [vmem:[#allocation2 + $0x5c0] sm:$0xff]  ;;  %v7264_v7 = vld [vmem:[#allocation2 + $0x5d8] sm:$0x1]  ;;  %v2938_v3 = vshrl.u32 %v15075_v50, 16 }
 0x23e   : > { %9133 = vst.msk [vmem:[#allocation2 + $0x5a8] sm:$0xff] %vm4834_vm3, %v9011_v62  ;;  %6744 = vrot.lane.b32.xlu1 %v6427_v14, %s15469_s24  ;;  %v3308_v46 = vpop.permute.xlu1 %3307  ;;  %v4361_v43 = vor.u32 %v4359_v24, %v4358_v10  ;;  %v7855_v14 = vshll.u32 %v15074_v15, 16  ;;  %v15079_v24 = vld [vmem:[#allocation6 + $0x80] sm:$0xff]   ;;  %v15081_v15 = vld [vmem:[%s15659_s19 + $0xd8] sm:$0xff]  }
 0x23f   : > { %v3550_v57 = vsel %vm16474_vm15, %v3308_v46, %v3549_v26  ;;  %v5019_v46 = vld [vmem:[#allocation2 + $0x5b8] sm:$0xff]  ;;  %14503 = vmatprep.subr.bf16.mxu1 %v15079_v24 }
 0x240   : > { %3551 = vst [vmem:[#allocation2 + $0x5e8] sm:$0xff] %v3550_v57  ;;  %v2940_v57 = vshll.u32 %v15075_v50, 16  ;;  %14504 = vmatpush3.bf16.msra.mxu1 %v15079_v24  ;;  %v6436_v50 = vshrl.u32 %v15081_v15, 16  ;;  %v15085_v24 = vld [vmem:[%s15659_s19 + $0xc8] sm:$0xff]   ;;  %v15150_v42 = vld [vmem:[%s15659_s19 + $0x118] sm:$0xff]  }
 0x241   : > { %v8137_v44 = vpop.permute.xlu0 %8136  ;;  %v10440_v20 = vld [vmem:[#allocation2 + $0x128] sm:$0xff]  ;;  %8938 = vrot.lane.b32.xlu0 %v15067_v9, %s15472_s22 }
 0x242   : > { %v8331_v51 = vsel %vm16606_vm8, %v8137_v44, %v8330_v28  ;;  %11066 = vmatprep.mubr.bf16.mxu0 %v10440_v20  ;;  %8154 = vrot.lane.b32.xlu1 %v7850_v18, %s15471_s20  ;;  %v4669_v21 = vpop.permute.xlu1 %4668  ;;  %v15078_v20 = vld [vmem:[%s15659_s19 + $0xc0] sm:$0xff]  }
 0x243   : > { %8332 = vst [vmem:[#allocation2 + $0x140] sm:$0xff] %v8331_v51  ;;  %11067 = vmatmul.mubr.bf16.gmra.mrb[48].mxu0 %v17663_v4  ;;  %v3599_v17 = vld [vmem:[#allocation2 + $0x168] sm:$0x1]  ;;  %v17717_v35 = vsel %vm16689_vm11, %v4669_v21, %v4875_v54  ;;  %v7265_v4 = vsel %vm16520_vm12, 0, %v7264_v7  ;;  %v7857_v51 = vor.u32 %v7855_v14, %v7854_v36  ;;  %v4366_v21 = vshll.u32 %v15078_v20, 16 }
 0x244   : > { %v3600_v9 = vsel %vm16542_vm2, 0, %v3599_v17  ;;  %4877 = vst [vmem:[#allocation2 + $0x138] sm:$0xff] %v17717_v35  ;;  %7266 = vst [vmem:[#allocation2 + $0x5d8] sm:$0x1] %v7265_v4  ;;  %v5654_v4 = vld [vmem:[#allocation2 + $0x188] sm:$0x80] }
 0x245   : > { %v8227_v41 = vpop.permute.xlu0 %8226  ;;  %v10584_v59 = vld [vmem:[#allocation2 + $0x5a8] sm:$0xff]  ;;  %v17719_v8 = vpop.f32.mrb[12].mxu0  ;;  %3235 = vrot.lane.b32.xlu0 %v2936_v6, %s15471_s20  ;;  %3601 = vst [vmem:[#allocation2 + $0x168] sm:$0x1] %v3600_v9  ;;  %v2942_v6 = vrot.slane %v2940_v57, 1  ;;  %v8333_v9 = vld [vmem:[#allocation2 + $0x158] sm:$0xff] }
 0x246   : > { %v8466_v62 = vsel %vm16606_vm8, %v8227_v41, %v8465_v60  ;;  %11450 = vmatprep.mubr.bf16.mxu1 %v10584_v59  ;;  %8940 = vrot.lane.b32.xlu1 %v15070_v5, %s15472_s22  ;;  %v10998_v0 = vpop.f32.mrb[13].mxu0  ;;  %v4765_v18 = vpop.permute.xlu1 %4764  ;;  %v4363_v5 = vshrl.u32 %v15078_v20, 16  ;;  %v15082_v41 = vld [vmem:[%s15659_s19 + $0xd0] sm:$0xff]  }
 0x247   : > { %8467 = vst [vmem:[#allocation2 + $0x5c0] sm:$0xff] %v8466_v62  ;;  %11451 = vmatmul.mubr.bf16.gmra.mrb[48].mxu1 %v17681_v40  ;;  %v3743_v37 = vld [vmem:[#allocation2 + $0x5e8] sm:$0x1]  ;;  %v6434_v40 = vor.u32 %v6433_v25, %v6429_v19  ;;  %v17739_v44 = vsel %vm16689_vm11, %v4765_v18, %v5019_v46  ;;  %v17746_v54 = vpop.f32.mrb[14].mxu0  ;;  %v2943_v56 = vor.u32 %v2942_v6, %v2938_v3  ;;  %v6438_v62 = vshll.u32 %v15081_v15, 16  ;;  %v15080_v46 = vld [vmem:[%s15659_s19 + $0xe0] sm:$0xff]  }
 0x248   : > { %v3744_v28 = vsel %vm16542_vm2, 0, %v3743_v37  ;;  %5021 = vst [vmem:[#allocation2 + $0x5b8] sm:$0xff] %v17739_v44  ;;  %v4365_v10 = vrot.slane %v4363_v5, 7  ;;  %v11001_v19 = vpop.f32.mrb[15].mxu0  ;;  %v5655_v25 = vsel %vm16435_vm13, 0, %v5654_v4  ;;  %v7859_v53 = vshrl.u32 %v15082_v41, 16 }
 0x249   : > { %v8923_v26 = vpop.permute.xlu0 %8922  ;;  %4688 = vrot.lane.b32.xlu0 %v4361_v43, %s15472_s22  ;;  %3745 = vst [vmem:[#allocation2 + $0x5e8] sm:$0x1] %v3744_v28  ;;  %v17754_v7 = vpop.f32.mrb[12].mxu1  ;;  %5656 = vst [vmem:[#allocation2 + $0x188] sm:$0x80] %v5655_v25  ;;  %v7862_v36 = vshll.u32 %v15082_v41, 16 }
 0x24a   : > { %9089 = vst.msk [vmem:[#allocation2 + $0x140] sm:$0xff] %vm4834_vm3, %v8923_v26  ;;  %1973 = vrot.lane.b32.xlu1 %v15072_v31, %s15469_s24  ;;  %20309 = vst [vmem:[#allocation18_spill] sm:$0xff] %v17754_v7  ;;  %v11382_v59 = vpop.f32.mrb[13].mxu1  ;;  %v15083_v31 = vld [vmem:[%s15659_s19 + $0xd0] sm:$0xff]   ;;  %v4368_v55 = vor.u32 %v4366_v21, %v4365_v10  ;;  %v6440_v26 = vrot.slane %v6438_v62, 1  ;;  %v7861_v28 = vrot.slane %v7859_v53, 7 }
 0x24b   : > { %v8468_v17 = vld [vmem:[#allocation2 + $0x5d8] sm:$0xff]  ;;  %v17762_v0 = vpop.f32.mrb[14].mxu1  ;;  %v2947_v3 = vshll.u32 %v15083_v31, 16  ;;  %v4878_v20 = vld [vmem:[#allocation2 + $0x150] sm:$0xff]  ;;  %v4373_v15 = vshll.u32 %v15085_v24, 16 }
 0x24c   : > { %20310 = vst [vmem:[#allocation19_spill] sm:$0xff] %v17762_v0  ;;  %v15086_v10 = vld [vmem:[%s15659_s19 + $0x78] sm:$0xff]   ;;  %v7864_v19 = vor.u32 %v7862_v36, %v7861_v28  ;;  %v5022_v41 = vld [vmem:[#allocation2 + $0x5d0] sm:$0xff] }
 0x24d   : > { %v9013_v61 = vpop.permute.xlu0 %9012  ;;  %6746 = vrot.lane.b32.xlu0 %v6434_v40, %s15469_s24  ;;  %v11385_v40 = vpop.f32.mrb[15].mxu1  ;;  %5555 = vst.msk [vmem:[#allocation2 + $0x170] sm:$0xff] %vm221_vm0, %v15086_v10  ;;  %v15084_v53 = vld [vmem:[%s15659_s19 + $0xd0] sm:$0xff]   ;;  %v15092_v28 = vld [vmem:[%s15659_s19 + $0xd8] sm:$0xff]  }
 0x24e   : > { %9134 = vst.msk [vmem:[#allocation2 + $0x5c0] sm:$0xff] %vm4834_vm3, %v9013_v61  ;;  %8156 = vrot.lane.b32.xlu1 %v7857_v51, %s15471_s20  ;;  %v2945_v51 = vshrl.u32 %v15083_v31, 16  ;;  %v2949_v61 = vrot.slane %v2947_v3, 1  ;;  %v15094_v10 = vld [vmem:[%s15659_s19 + $0xd0] sm:$0xff]  }
 0x250   : > { %v17749_v60 = vpop.permute.xlu1 %6726  ;;  %v6936_v59 = vld [vmem:[#allocation2 + $0x188] sm:$0xff] }
 0x251   : > { %v10443_v43 = vld [vmem:[#allocation2 + $0x140] sm:$0xff]  ;;  %3237 = vrot.lane.b32.xlu0 %v2943_v56, %s15471_s20  ;;  %v8139_v18 = vpop.permute.xlu0 %8138  ;;  %v6937_v31 = vsel %vm16456_vm14, %v17749_v60, %v6936_v59 }
 0x252   : > { %11074 = vmatprep.mubr.bf16.mxu0 %v10443_v43  ;;  %8942 = vrot.lane.b32.xlu1 %v15077_v30, %s15472_s22  ;;  %v8334_v57 = vsel %vm16606_vm8, %v8139_v18, %v8333_v9  ;;  %v4370_v30 = vshrl.u32 %v15085_v24, 16  ;;  %v15089_v43 = vld [vmem:[%s15659_s19 + $0xe0] sm:$0xff]   ;;  %6938 = vst [vmem:[#allocation2 + $0x188] sm:$0xff] %v6937_v31  ;;  %v15091_v18 = vld [vmem:[%s15659_s19 + $0xd8] sm:$0xff]  }
 0x253   : > { %11075 = vmatmul.mubr.bf16.gmra.mrb[52].mxu0 %v17717_v35  ;;  %8335 = vst [vmem:[#allocation2 + $0x158] sm:$0xff] %v8334_v57  ;;  %v6441_v35 = vor.u32 %v6440_v26, %v6436_v50  ;;  %v6443_v36 = vshrl.u32 %v15089_v43, 16  ;;  %v7866_v57 = vshrl.u32 %v15091_v18, 16 }
 0x254   : > { %v8229_v14 = vpop.permute.xlu1 %8228  ;;  %v4372_v9 = vrot.slane %v4370_v30, 7 }
 0x255   : > { %v8469_v37 = vsel %vm16606_vm8, %v8229_v14, %v8468_v17  ;;  %v10587_v6 = vld [vmem:[#allocation2 + $0x5c0] sm:$0xff]  ;;  %4690 = vrot.lane.b32.xlu0 %v4368_v55, %s15472_s22  ;;  %v4671_v56 = vpop.permute.xlu0 %4670  ;;  %v15087_v17 = vld [vmem:[%s15659_s19 + $0x88] sm:$0xff]   ;;  %v15090_v55 = vld [vmem:[%s15659_s19 + $0x1f8] sm:$0xff]  }
 0x256   : > { %8470 = vst [vmem:[#allocation2 + $0x5d8] sm:$0xff] %v8469_v37  ;;  %11458 = vmatprep.mubr.bf16.mxu1 %v10587_v6  ;;  %1975 = vrot.lane.b32.xlu1 %v15080_v46, %s15469_s24  ;;  %v4879_v21 = vsel %vm16689_vm11, %v4671_v56, %v4878_v20  ;;  %5557 = vst.msk [vmem:[#allocation2 + $0x1a0] sm:$0xff] %vm221_vm0, %v15087_v17  ;;  %v6445_v37 = vshll.u32 %v15089_v43, 16  ;;  %v4375_v60 = vor.u32 %v4373_v15, %v4372_v9  ;;  %v5651_v6 = vld [vmem:[#allocation2 + $0x170] sm:$0x80] }
 0x257   : > { %11459 = vmatmul.mubr.bf16.gmra.mrb[52].mxu1 %v17739_v44  ;;  %4880 = vst [vmem:[#allocation2 + $0x150] sm:$0xff] %v4879_v21  ;;  %v2950_v44 = vor.u32 %v2949_v61, %v2945_v51  ;;  %5603 = vst.msk [vmem:[#allocation2 + $0x5f0] sm:$0xff] %vm221_vm0, %v15090_v55  ;;  %v15088_v51 = vld [vmem:[%s15659_s19 + $0xe8] sm:$0xff]   ;;  %v2954_v61 = vshll.u32 %v15092_v28, 16  ;;  %v5652_v24 = vsel %vm16435_vm13, 0, %v5651_v6  ;;  %v2952_v17 = vshrl.u32 %v15092_v28, 16 }
 0x258   : > { %v8925_v5 = vpop.permute.xlu1 %8924  ;;  %v6447_v3 = vrot.slane %v6445_v37, 1  ;;  %5653 = vst [vmem:[#allocation2 + $0x170] sm:$0x80] %v5652_v24  ;;  %v15095_v55 = vld [vmem:[%s15659_s19 + $0x90] sm:$0xff]   ;;  %v5025_v37 = vld [vmem:[#allocation2 + $0x5e8] sm:$0xff] }
 0x259   : > { %9090 = vst.msk [vmem:[#allocation2 + $0x158] sm:$0xff] %vm4834_vm3, %v8925_v5  ;;  %6748 = vrot.lane.b32.xlu0 %v6441_v35, %s15469_s24  ;;  %v17784_v62 = vpop.f32.mrb[16].mxu0  ;;  %v4767_v25 = vpop.permute.xlu0 %4766  ;;  %v7868_v35 = vrot.slane %v7866_v57, 7  ;;  %v7869_v5 = vshll.u32 %v15091_v18, 16  ;;  %v4380_v18 = vshll.u32 %v15094_v10, 16 }
 0x25a   : > { %v11006_v14 = vpop.f32.mrb[17].mxu0  ;;  %8158 = vrot.lane.b32.xlu1 %v7864_v19, %s15471_s20  ;;  %v5023_v50 = vsel %vm16689_vm11, %v4767_v25, %v5022_v41  ;;  %v6448_v30 = vor.u32 %v6447_v3, %v6443_v36  ;;  %v2956_v41 = vrot.slane %v2954_v61, 1  ;;  %v15093_v3 = vld [vmem:[%s15659_s19 + $0xd8] sm:$0xff]   ;;  %5558 = vst.msk [vmem:[#allocation2 + $0x1b8] sm:$0xff] %vm221_vm0, %v15095_v55 }
 0x25b   : > { %5024 = vst [vmem:[#allocation2 + $0x5d0] sm:$0xff] %v5023_v50  ;;  %v17803_v20 = vpop.f32.mrb[18].mxu0  ;;  %v7871_v25 = vor.u32 %v7869_v5, %v7868_v35  ;;  %v3602_v5 = vld [vmem:[#allocation2 + $0x180] sm:$0x1] }
 0x25c   : > { %v9015_v4 = vpop.permute.xlu1 %9014  ;;  %20311 = vst [vmem:[#allocation20_spill] sm:$0xff] %v17803_v20  ;;  %v2957_v36 = vor.u32 %v2956_v41, %v2952_v17  ;;  %v15098_v41 = vld [vmem:[%s15659_s19 + $0xe0] sm:$0xff]  }
 0x25d   : > { %9135 = vst.msk [vmem:[#allocation2 + $0x5d8] sm:$0xff] %vm4834_vm3, %v9015_v4  ;;  %3239 = vrot.lane.b32.xlu0 %v2950_v44, %s15471_s20  ;;  %v17801_v40 = vpop.permute.xlu0 %6728  ;;  %v5657_v56 = vld [vmem:[#allocation2 + $0x1a0] sm:$0x80]  ;;  %v3417_v44 = vld [vmem:[#allocation2 + $0x198] sm:$0xff]  ;;  %v4377_v4 = vshrl.u32 %v15094_v10, 16 }
 0x25e   : > { %8944 = vrot.lane.b32.xlu1 %v15084_v53, %s15472_s22  ;;  %v5658_v19 = vsel %vm16435_vm13, 0, %v5657_v56  ;;  %v5795_v43 = vld [vmem:[#allocation2 + $0x5f0] sm:$0x80]  ;;  %v3603_v56 = vsel %vm16542_vm2, 0, %v3602_v5 }
 0x25f   : > { %5659 = vst [vmem:[#allocation2 + $0x1a0] sm:$0x80] %v5658_v19  ;;  %v5796_v14 = vsel %vm16435_vm13, 0, %v5795_v43  ;;  %v4379_v57 = vrot.slane %v4377_v4, 7  ;;  %v6933_v19 = vld [vmem:[#allocation2 + $0x170] sm:$0xff] }
 0x260   : > { %v17798_v46 = vpop.permute.xlu1 %6724  ;;  %v10446_v26 = vld [vmem:[#allocation2 + $0x158] sm:$0xff]  ;;  %5797 = vst [vmem:[#allocation2 + $0x5f0] sm:$0x80] %v5796_v14  ;;  %3604 = vst [vmem:[#allocation2 + $0x180] sm:$0x1] %v3603_v56  ;;  %v7873_v14 = vshrl.u32 %v15098_v41, 16 }
 0x261   : > { %11082 = vmatprep.mubr.bf16.mxu0 %v10446_v26  ;;  %4692 = vrot.lane.b32.xlu0 %v4375_v60, %s15472_s22  ;;  %v3220_v31 = vpop.permute.xlu0 %3219  ;;  %v11009_v60 = vpop.f32.mrb[19].mxu0  ;;  %v4382_v4 = vor.u32 %v4380_v18, %v4379_v57  ;;  %v15096_v18 = vld [vmem:[%s15659_s19 + $0xf0] sm:$0xff]  }
 0x262   : > { %11083 = vmatmul.mubr.bf16.gmra.mrb[56].mxu0 %v4879_v21  ;;  %v7132_v21 = vld [vmem:[#allocation2 + $0x188] sm:$0x1]  ;;  %1977 = vrot.lane.b32.xlu1 %v15088_v51, %s15469_s24  ;;  %v3418_v53 = vsel %vm16474_vm15, %v3220_v31, %v3417_v44  ;;  %v17823_v26 = vpop.f32.mrb[16].mxu1  ;;  %v7876_v60 = vshll.u32 %v15098_v41, 16 }
 0x263   : > { %v7133_v9 = vsel %vm16520_vm12, 0, %v7132_v21  ;;  %20312 = vst [vmem:[#allocation21_spill] sm:$0xff] %v17823_v26  ;;  %3419 = vst [vmem:[#allocation2 + $0x198] sm:$0xff] %v3418_v53  ;;  %v11390_v28 = vpop.f32.mrb[17].mxu1  ;;  %v15097_v51 = vld [vmem:[%s15659_s19 + $0xe8] sm:$0xff]   ;;  %v6934_v21 = vsel %vm16456_vm14, %v17798_v46, %v6933_v19  ;;  %v15100_v53 = vld [vmem:[%s15659_s19 + $0x98] sm:$0xff]  }
 0x264   : > { %v10590_v15 = vld [vmem:[#allocation2 + $0x5d8] sm:$0xff]  ;;  %v17813_v59 = vpop.permute.xlu1 %6820  ;;  %7134 = vst [vmem:[#allocation2 + $0x188] sm:$0x1] %v7133_v9  ;;  %v17829_v35 = vpop.f32.mrb[18].mxu1  ;;  %v6452_v17 = vshll.u32 %v15097_v51, 16  ;;  %v15099_v9 = vld [vmem:[%s15659_s19 + $0xe0] sm:$0xff]  }
 0x265   : > { %11466 = vmatprep.mubr.bf16.mxu1 %v10590_v15  ;;  %6750 = vrot.lane.b32.xlu0 %v6448_v30, %s15469_s24  ;;  %20313 = vst [vmem:[#allocation22_spill] sm:$0xff] %v17829_v35  ;;  %v4673_v24 = vpop.permute.xlu0 %4672  ;;  %v11393_v10 = vpop.f32.mrb[19].mxu1  ;;  %v6450_v15 = vshrl.u32 %v15097_v51, 16  ;;  %6935 = vst [vmem:[#allocation2 + $0x170] sm:$0xff] %v6934_v21  ;;  %v5660_v28 = vld [vmem:[#allocation2 + $0x1b8] sm:$0x80] }
 0x266   : > { %11467 = vmatmul.mubr.bf16.gmra.mrb[56].mxu1 %v5023_v50  ;;  %v4881_v50 = vld [vmem:[#allocation2 + $0x168] sm:$0xff]  ;;  %8160 = vrot.lane.b32.xlu1 %v7871_v25, %s15471_s20  ;;  %v6939_v44 = vld [vmem:[#allocation2 + $0x1a0] sm:$0xff]  ;;  %v3420_v25 = vld [vmem:[#allocation2 + $0x1b0] sm:$0xff]  ;;  %v6454_v55 = vrot.slane %v6452_v17, 1  ;;  %7081 = vst.msk [vmem:[#allocation2 + $0x170] sm:$0xff] %vm2161_vm7, %v20267_v12  ;;  %v7875_v51 = vrot.slane %v7873_v14, 7 }
 0x267   : > { %v17841_v30 = vsel %vm16689_vm11, %v4673_v24, %v4881_v50  ;;  %v6940_v43 = vsel %vm16456_vm14, %v17801_v40, %v6939_v44  ;;  %v2961_v40 = vshll.u32 %v15099_v9, 16  ;;  %8472 = vst.msk [vmem:[#allocation2 + $0x170] sm:$0xff] %vm4834_vm3, %v20267_v12  ;;  %v7077_v50 = vld [vmem:[#allocation2 + $0x5f0] sm:$0xff]  ;;  %v5661_v24 = vsel %vm16435_vm13, 0, %v5660_v28  ;;  %v15102_v19 = vld [vmem:[%s15659_s19 + $0xd8] sm:$0xff]   ;;  %v4884_v17 = vld [vmem:[#allocation2 + $0x180] sm:$0xff] }
 0x268   : > { %v4769_v6 = vpop.permute.xlu1 %4768  ;;  %4883 = vst [vmem:[#allocation2 + $0x168] sm:$0xff] %v17841_v30  ;;  %6941 = vst [vmem:[#allocation2 + $0x1a0] sm:$0xff] %v6940_v43  ;;  %v7878_v21 = vor.u32 %v7876_v60, %v7875_v51  ;;  %v4384_v44 = vshrl.u32 %v15102_v19, 16  ;;  %v15101_v14 = vld [vmem:[%s15659_s19 + $0xe0] sm:$0xff]  }
 0x269   : > { %v17834_v61 = vsel %vm16689_vm11, %v4769_v6, %v5025_v37  ;;  %3241 = vrot.lane.b32.xlu0 %v2957_v36, %s15471_s20  ;;  %v17859_v37 = vpop.permute.xlu0 %6730  ;;  %v2959_v36 = vshrl.u32 %v15099_v9, 16  ;;  %v6455_v6 = vor.u32 %v6454_v55, %v6450_v15  ;;  %5559 = vst.msk [vmem:[#allocation2 + $0x1d0] sm:$0xff] %vm221_vm0, %v15100_v53  ;;  %v2963_v10 = vrot.slane %v2961_v40, 1  ;;  %5662 = vst [vmem:[#allocation2 + $0x1b8] sm:$0x80] %v5661_v24  ;;  %v15104_v40 = vld [vmem:[%s15659_s19 + $0x8] sm:$0xff]  }
 0x26a   : > { %5027 = vst [vmem:[#allocation2 + $0x5e8] sm:$0xff] %v17834_v61  ;;  %8946 = vrot.lane.b32.xlu1 %v15093_v3, %s15472_s22  ;;  %v3605_v57 = vld [vmem:[#allocation2 + $0x198] sm:$0x1]  ;;  %v7078_v3 = vsel %vm16456_vm14, %v17813_v59, %v7077_v50  ;;  %v4386_v53 = vrot.slane %v4384_v44, 7  ;;  %v9745_v24 = vshll.u32 %v15104_v40, 16  ;;  %v15106_v44 = vld [vmem:[%s15659_s19 + $0xf0] sm:$0xff]  }
 0x26b   : > { %v3606_v5 = vsel %vm16542_vm2, 0, %v3605_v57  ;;  %v8336_v56 = vld [vmem:[#allocation2 + $0x188] sm:$0xff]  ;;  %7079 = vst [vmem:[#allocation2 + $0x5f0] sm:$0xff] %v7078_v3  ;;  %v2964_v55 = vor.u32 %v2963_v10, %v2959_v36 }
 0x26c   : > { %v3222_v31 = vpop.permute.xlu1 %3221  ;;  %3607 = vst [vmem:[#allocation2 + $0x198] sm:$0x1] %v3606_v5  ;;  %7084 = vst.msk [vmem:[#allocation2 + $0x5f0] sm:$0xff] %vm2161_vm7, %v20267_v12  ;;  %v9743_v5 = vshrl.u32 %v15104_v40, 16 }
 0x26d   : > { %v3421_v46 = vsel %vm16474_vm15, %v3222_v31, %v3420_v25  ;;  %4694 = vrot.lane.b32.xlu0 %v4382_v4, %s15472_s22  ;;  %v8141_v41 = vpop.permute.xlu0 %8140  ;;  %v15103_v4 = vld [vmem:[#allocation6 + $0x88] sm:$0xff]   ;;  %8475 = vst.msk [vmem:[#allocation2 + $0x5f0] sm:$0xff] %vm4834_vm3, %v20267_v12  ;;  %v4387_v31 = vshll.u32 %v15102_v19, 16  ;;  %v9142_v25 = vld [vmem:[#allocation2 + $0x10] sm:$0x80] }
 0x26e   : > { %3422 = vst [vmem:[#allocation2 + $0x1b0] sm:$0xff] %v3421_v46  ;;  %1979 = vrot.lane.b32.xlu1 %v15096_v18, %s15469_s24  ;;  %v8337_v43 = vsel %vm16606_vm8, %v8141_v41, %v8336_v56  ;;  %14505 = vmatprep.subr.bf16.mxu1 %v15103_v4  ;;  %v9143_v46 = vsel %vm17876_vm1, 0, %v9142_v25  ;;  %v10449_v28 = vld [vmem:[#allocation2 + $0x170] sm:$0xff]  ;;  %v15105_v19 = vld [vmem:[%s15659_s19 + $0xe8] sm:$0xff]  }
 0x26f   : > { %8338 = vst [vmem:[#allocation2 + $0x188] sm:$0xff] %v8337_v43  ;;  %v7135_v18 = vld [vmem:[#allocation2 + $0x1a0] sm:$0x1]  ;;  %14506 = vmatpush3.bf16.msra.mxu1 %v15103_v4  ;;  %9144 = vst [vmem:[#allocation2 + $0x10] sm:$0x80] %v9143_v46  ;;  %11090 = vmatprep.mubr.bf16.mxu0 %v10449_v28  ;;  %v4389_v10 = vor.u32 %v4387_v31, %v4386_v53  ;;  %v2966_v31 = vshrl.u32 %v15105_v19, 16 }
 0x270   : > { %v4675_v59 = vpop.permute.xlu1 %4674  ;;  %v7136_v50 = vsel %vm16520_vm12, 0, %v7135_v18  ;;  %v5663_v36 = vld [vmem:[#allocation2 + $0x1d0] sm:$0x80]  ;;  %v6942_v56 = vld [vmem:[#allocation2 + $0x1b8] sm:$0xff]  ;;  %11091 = vmatmul.mubr.bf16.gmra.mrb[60].mxu0 %v17841_v30  ;;  %v9145_v4 = vld [vmem:[#allocation2 + $0x28] sm:$0x80] }
 0x271   : > { %v17887_v9 = vsel %vm16689_vm11, %v4675_v59, %v4884_v17  ;;  %6752 = vrot.lane.b32.xlu0 %v6455_v6, %s15469_s24  ;;  %v8927_v6 = vpop.permute.xlu0 %8926  ;;  %7137 = vst [vmem:[#allocation2 + $0x1a0] sm:$0x1] %v7136_v50  ;;  %v5664_v3 = vsel %vm16435_vm13, 0, %v5663_v36  ;;  %v6943_v17 = vsel %vm16456_vm14, %v17859_v37, %v6942_v56  ;;  %v2968_v25 = vshll.u32 %v15105_v19, 16 }
 0x272   : > { %4886 = vst [vmem:[#allocation2 + $0x180] sm:$0xff] %v17887_v9  ;;  %8162 = vrot.lane.b32.xlu1 %v7878_v21, %s15471_s20  ;;  %9091 = vst.msk [vmem:[#allocation2 + $0x188] sm:$0xff] %vm4834_vm3, %v8927_v6  ;;  %v9747_v21 = vrot.slane %v9745_v24, 1  ;;  %v9146_v37 = vsel %vm17876_vm1, 0, %v9145_v4  ;;  %v6457_v46 = vshrl.u32 %v15106_v44, 16  ;;  %v6459_v18 = vshll.u32 %v15106_v44, 16 }
 0x273   : > { %5665 = vst [vmem:[#allocation2 + $0x1d0] sm:$0x80] %v5664_v3  ;;  %6944 = vst [vmem:[#allocation2 + $0x1b8] sm:$0xff] %v6943_v17  ;;  %v15109_v24 = vld [vmem:[%s15659_s19 + $0xe8] sm:$0xff]   ;;  %v4887_v19 = vld [vmem:[#allocation2 + $0x198] sm:$0xff] }
 0x274   : > { %v17896_v60 = vpop.permute.xlu1 %6732  ;;  %v10593_v43 = vld [vmem:[#allocation2 + $0x5f0] sm:$0xff]  ;;  %v9748_v53 = vor.u32 %v9747_v21, %v9743_v5  ;;  %9147 = vst [vmem:[#allocation2 + $0x28] sm:$0x80] %v9146_v37  ;;  %v6461_v6 = vrot.slane %v6459_v18, 1  ;;  %v15108_v5 = vld [vmem:[%s15659_s19 + $0xe0] sm:$0xff]  }
 0x275   : > { %v3608_v57 = vld [vmem:[#allocation2 + $0x1b0] sm:$0x1]  ;;  %3243 = vrot.lane.b32.xlu0 %v2964_v55, %s15471_s20  ;;  %11474 = vmatprep.mubr.bf16.mxu1 %v10593_v43  ;;  %v3423_v55 = vld [vmem:[#allocation2 + $0x1c8] sm:$0xff]  ;;  %v3224_v40 = vpop.permute.xlu0 %3223  ;;  %v4394_v37 = vshll.u32 %v15108_v5, 16 }
 0x276   : > { %v3609_v51 = vsel %vm16542_vm2, 0, %v3608_v57  ;;  %8948 = vrot.lane.b32.xlu1 %v15101_v14, %s15472_s22  ;;  %v15107_v14 = vld [vmem:[%s15659_s19 + $0x10] sm:$0xff]   ;;  %11475 = vmatmul.mubr.bf16.gmra.mrb[60].mxu1 %v17834_v61  ;;  %v2970_v57 = vrot.slane %v2968_v25, 1  ;;  %v3424_v28 = vsel %vm16474_vm15, %v3224_v40, %v3423_v55  ;;  %v6462_v43 = vor.u32 %v6461_v6, %v6457_v46  ;;  %v3426_v55 = vld [vmem:[#allocation2 + $0x1e0] sm:$0xff] }
 0x277   : > { %3610 = vst [vmem:[#allocation2 + $0x1b0] sm:$0x1] %v3609_v51  ;;  %v10223_v50 = vld [vmem:[#allocation2 + $0x10] sm:$0xff]  ;;  %v9750_v51 = vshrl.u32 %v15107_v14, 16  ;;  %3425 = vst [vmem:[#allocation2 + $0x1c8] sm:$0xff] %v3424_v28  ;;  %v4391_v25 = vshrl.u32 %v15108_v5, 16 }
 0x278   : > { %v8143_v41 = vpop.permute.xlu1 %8142  ;;  %v10224_v36 = vsel %vm17919_vm4, %v9748_v53, %v10223_v50  ;;  %v8339_v56 = vld [vmem:[#allocation2 + $0x1a0] sm:$0xff]  ;;  %v2971_v61 = vor.u32 %v2970_v57, %v2966_v31  ;;  %v7883_v40 = vshll.u32 %v15109_v24, 16 }
 0x279   : > { %v17910_v59 = vpop.f32.mrb[20].mxu0  ;;  %4696 = vrot.lane.b32.xlu0 %v4389_v10, %s15472_s22  ;;  %10225 = vst [vmem:[#allocation2 + $0x10] sm:$0xff] %v10224_v36  ;;  %14507 = vmatprep.mubr.msk.bf16.mxu1 %vm221_vm0, %v10224_v36  ;;  %v9752_v10 = vshll.u32 %v15107_v14, 16  ;;  %v10452_v17 = vld [vmem:[#allocation2 + $0x188] sm:$0xff]  ;;  %v8340_v4 = vsel %vm16606_vm8, %v8143_v41, %v8339_v56  ;;  %v7880_v14 = vshrl.u32 %v15109_v24, 16  ;;  %v15110_v41 = vld [vmem:[%s15659_s19 + $0xa0] sm:$0xff]  }
 0x27a   : > { %v11014_v21 = vpop.f32.mrb[21].mxu0  ;;  %v6945_v44 = vld [vmem:[#allocation2 + $0x1d0] sm:$0xff]  ;;  %11098 = vmatprep.mubr.bf16.mxu0 %v10452_v17  ;;  %8341 = vst [vmem:[#allocation2 + $0x1a0] sm:$0xff] %v8340_v4  ;;  %3245 = vrot.lane.b32.xlu1 %v2971_v61, %s15471_s20  ;;  %v7138_v46 = vld [vmem:[#allocation2 + $0x1b8] sm:$0x1]  ;;  %v4393_v50 = vrot.slane %v4391_v25, 7 }
 0x27b   : > { %v6946_v53 = vsel %vm16456_vm14, %v17896_v60, %v6945_v44  ;;  %v9754_v31 = vrot.slane %v9752_v10, 1  ;;  %11099 = vmatmul.mubr.bf16.gmra.mrb[64].mxu0 %v17887_v9  ;;  %v9148_v28 = vld [vmem:[#allocation2 + $0x40] sm:$0x80]  ;;  %v15111_v36 = vld [vmem:[%s15659_s19 + $0x18] sm:$0xff]   ;;  %v7139_v6 = vsel %vm16520_vm12, 0, %v7138_v46  ;;  %v10226_v9 = vld [vmem:[#allocation2 + $0x28] sm:$0xff] }
 0x27c   : > { %v8929_v3 = vpop.permute.xlu1 %8928  ;;  %6947 = vst [vmem:[#allocation2 + $0x1d0] sm:$0xff] %v6946_v53  ;;  %v7882_v24 = vrot.slane %v7880_v14, 7  ;;  %5560 = vst.msk [vmem:[#allocation2 + $0x1e8] sm:$0xff] %vm221_vm0, %v15110_v41  ;;  %v9149_v61 = vsel %vm17876_vm1, 0, %v9148_v28  ;;  %v9757_v10 = vshrl.u32 %v15111_v36, 16  ;;  %v15112_v17 = vld [vmem:[%s15659_s19 + $0x100] sm:$0xff]  }
 0x27d   : > { %6754 = vrot.lane.b32.xlu0 %v6462_v43, %s15469_s24  ;;  %9092 = vst.msk [vmem:[#allocation2 + $0x1a0] sm:$0xff] %vm4834_vm3, %v8929_v3  ;;  %v9755_v5 = vor.u32 %v9754_v31, %v9750_v51  ;;  %7140 = vst [vmem:[#allocation2 + $0x1b8] sm:$0x1] %v7139_v6  ;;  %v4396_v3 = vor.u32 %v4394_v37, %v4393_v50  ;;  %v15113_v4 = vld [vmem:[%s15659_s19 + $0xe8] sm:$0xff]   ;;  %v15114_v37 = vld [vmem:[%s15659_s19 + $0x20] sm:$0xff]  }
 0x27e   : > { %v7885_v21 = vor.u32 %v7883_v40, %v7882_v24  ;;  %9150 = vst [vmem:[#allocation2 + $0x40] sm:$0x80] %v9149_v61  ;;  %v3611_v43 = vld [vmem:[#allocation2 + $0x1c8] sm:$0x1]  ;;  %v9151_v31 = vld [vmem:[#allocation2 + $0x58] sm:$0x80] }
 0x27f   : > { %v4677_v18 = vpop.permute.xlu0 %4676  ;;  %v10227_v51 = vsel %vm17919_vm4, %v9755_v5, %v10226_v9  ;;  %4698 = vrot.lane.b32.xlu1 %v4396_v3, %s15472_s22  ;;  %v3612_v53 = vsel %vm16542_vm2, 0, %v3611_v43  ;;  %v9152_v14 = vsel %vm17876_vm1, 0, %v9151_v31  ;;  %v9764_v40 = vshrl.u32 %v15114_v37, 16  ;;  %v4890_v46 = vld [vmem:[#allocation2 + $0x1b0] sm:$0xff]  ;;  %v17979_v3 = vpop.f32.mrb[20].mxu1 }
 0x280   : > { %v4888_v60 = vsel %vm16689_vm11, %v4677_v18, %v4887_v19  ;;  %v3226_v57 = vpop.permute.xlu1 %3225  ;;  %v9759_v19 = vshll.u32 %v15111_v36, 16  ;;  %10228 = vst [vmem:[#allocation2 + $0x28] sm:$0xff] %v10227_v51  ;;  %14508 = vmatmul.mubr.msk.bf16.vlgmr.msra.gmra.mrb[64].mxu1 %vm221_vm0, %v10227_v51  ;;  %v17967_v18 = vpop.f32.mrb[22].mxu0  ;;  %3613 = vst [vmem:[#allocation2 + $0x1c8] sm:$0x1] %v3612_v53  ;;  %v9766_v41 = vshll.u32 %v15114_v37, 16 }
 0x281   : > { %4889 = vst [vmem:[#allocation2 + $0x198] sm:$0xff] %v4888_v60  ;;  %v3427_v56 = vsel %vm16474_vm15, %v3226_v57, %v3426_v55  ;;  %8164 = vrot.lane.b32.xlu0 %v7885_v21, %s15471_s20  ;;  %20319 = vst [vmem:[#allocation23_spill] sm:$0xff] %v17967_v18  ;;  %v11017_v6 = vpop.f32.mrb[23].mxu0  ;;  %v15115_v61 = vld [vmem:[%s15659_s19 + $0xf0] sm:$0xff]  }
 0x282   : > { %3428 = vst [vmem:[#allocation2 + $0x1e0] sm:$0xff] %v3427_v56  ;;  %v9761_v25 = vrot.slane %v9759_v19, 1  ;;  %9153 = vst [vmem:[#allocation2 + $0x58] sm:$0x80] %v9152_v14  ;;  %v9768_v56 = vrot.slane %v9766_v41, 1  ;;  %v7887_v37 = vshrl.u32 %v15115_v61, 16 }
 0x283   : > { %v17958_v44 = vpop.permute.xlu0 %6734  ;;  %v7141_v50 = vld [vmem:[#allocation2 + $0x1d0] sm:$0x1]  ;;  %v5666_v24 = vld [vmem:[#allocation2 + $0x1e8] sm:$0x80]  ;;  %1981 = vrot.lane.b32.xlu1 %v15112_v17, %s15469_s24  ;;  %20320 = vst [vmem:[#allocation24_spill] sm:$0xff] %v17979_v3  ;;  %v11398_v14 = vpop.f32.mrb[21].mxu1 }
 0x284   : > { %v4679_v55 = vpop.permute.xlu1 %4678  ;;  %v9762_v57 = vor.u32 %v9761_v25, %v9757_v10  ;;  %v10455_v5 = vld [vmem:[#allocation2 + $0x1a0] sm:$0xff]  ;;  %v7142_v9 = vsel %vm16520_vm12, 0, %v7141_v50  ;;  %v5667_v51 = vsel %vm16435_vm13, 0, %v5666_v24  ;;  %v8342_v21 = vld [vmem:[#allocation2 + $0x1b8] sm:$0xff]  ;;  %v9769_v31 = vor.u32 %v9768_v56, %v9764_v40  ;;  %v15117_v6 = vld [vmem:[%s15659_s19 + $0xa8] sm:$0xff]  }
 0x285   : > { %v17973_v28 = vsel %vm16689_vm11, %v4679_v55, %v4890_v46  ;;  %11106 = vmatprep.mubr.bf16.mxu0 %v10455_v5  ;;  %7143 = vst [vmem:[#allocation2 + $0x1d0] sm:$0x1] %v7142_v9  ;;  %8950 = vrot.lane.b32.xlu0 %v15113_v4, %s15472_s22  ;;  %5668 = vst [vmem:[#allocation2 + $0x1e8] sm:$0x80] %v5667_v51  ;;  %v10229_v43 = vld [vmem:[#allocation2 + $0x40] sm:$0xff]  ;;  %v15116_v55 = vld [vmem:[%s15659_s19 + $0xf0] sm:$0xff]  }
 0x286   : > { %4892 = vst [vmem:[#allocation2 + $0x1b0] sm:$0xff] %v17973_v28  ;;  %11107 = vmatmul.mubr.bf16.gmra.mrb[68].mxu0 %v4888_v60  ;;  %v10230_v53 = vsel %vm17919_vm4, %v9762_v57, %v10229_v43  ;;  %v7890_v4 = vshll.u32 %v15115_v61, 16  ;;  %v7889_v41 = vrot.slane %v7887_v37, 7  ;;  %v2973_v46 = vshrl.u32 %v15116_v55, 16  ;;  %v9154_v57 = vld [vmem:[#allocation2 + $0x70] sm:$0x80] }
 0x287   : > { %v8145_v36 = vpop.permute.xlu0 %8144  ;;  %10231 = vst [vmem:[#allocation2 + $0x40] sm:$0xff] %v10230_v53  ;;  %14511 = vmatprep.mubr.msk.bf16.mxu1 %vm221_vm0, %v10230_v53  ;;  %v2975_v50 = vshll.u32 %v15116_v55, 16  ;;  %v9155_v56 = vsel %vm17876_vm1, 0, %v9154_v57  ;;  %v15118_v61 = vld [vmem:[%s15659_s19 + $0x28] sm:$0xff]   ;;  %5561 = vst.msk [vmem:[#allocation2 + $0x200] sm:$0xff] %vm221_vm0, %v15117_v6  ;;  %v15140_v3 = vld [vmem:[%s15659_s19 + $0x110] sm:$0xff]  }
 0x288   : > { %v17982_v10 = vpop.permute.xlu1 %6736  ;;  %v8343_v25 = vsel %vm16606_vm8, %v8145_v36, %v8342_v21  ;;  %v17995_v36 = vpop.f32.mrb[22].mxu1  ;;  %v7892_v9 = vor.u32 %v7890_v4, %v7889_v41  ;;  %9156 = vst [vmem:[#allocation2 + $0x70] sm:$0x80] %v9155_v56  ;;  %v15119_v21 = vld [vmem:[%s15659_s19 + $0xf0] sm:$0xff]   ;;  %v9771_v37 = vshrl.u32 %v15118_v61, 16  ;;  %v9773_v55 = vshll.u32 %v15118_v61, 16 }
 0x289   : > { %v3614_v19 = vld [vmem:[#allocation2 + $0x1e0] sm:$0x1]  ;;  %8344 = vst [vmem:[#allocation2 + $0x1b8] sm:$0xff] %v8343_v25  ;;  %20321 = vst [vmem:[#allocation25_spill] sm:$0xff] %v17995_v36  ;;  %v11401_v5 = vpop.f32.mrb[23].mxu1  ;;  %v10232_v40 = vld [vmem:[#allocation2 + $0x58] sm:$0xff] }
 0x28a   : > { %v3615_v17 = vsel %vm16542_vm2, 0, %v3614_v19  ;;  %v2977_v24 = vrot.slane %v2975_v50, 1  ;;  %v10233_v51 = vsel %vm17919_vm4, %v9769_v31, %v10232_v40  ;;  %8166 = vrot.lane.b32.xlu1 %v7892_v9, %s15471_s20  ;;  %v15120_v4 = vld [vmem:[%s15659_s19 + $0xe8] sm:$0xff]   ;;  %v9775_v50 = vrot.slane %v9773_v55, 1  ;;  %v15121_v40 = vld [vmem:[%s15659_s19 + $0x30] sm:$0xff]  }
 0x28b   : > { %3616 = vst [vmem:[#allocation2 + $0x1e0] sm:$0x1] %v3615_v17  ;;  %v8931_v60 = vpop.permute.xlu0 %8930  ;;  %10234 = vst [vmem:[#allocation2 + $0x58] sm:$0xff] %v10233_v51  ;;  %14512 = vmatmul.mubr.msk.bf16.gmra.mrb[68].mxu1 %vm221_vm0, %v10233_v51  ;;  %v9157_v14 = vld [vmem:[#allocation2 + $0x88] sm:$0x80]  ;;  %v4398_v5 = vshrl.u32 %v15120_v4, 16 }
 0x28c   : > { %9093 = vst.msk [vmem:[#allocation2 + $0x1b8] sm:$0xff] %vm4834_vm3, %v8931_v60  ;;  %v8147_v19 = vpop.permute.xlu1 %8146  ;;  %v2978_v25 = vor.u32 %v2977_v24, %v2973_v46  ;;  %v6948_v53 = vld [vmem:[#allocation2 + $0x1e8] sm:$0xff]  ;;  %v9158_v46 = vsel %vm17876_vm1, 0, %v9157_v14  ;;  %v4401_v57 = vshll.u32 %v15120_v4, 16  ;;  %v8345_v9 = vld [vmem:[#allocation2 + $0x1d0] sm:$0xff]  ;;  %v3429_v24 = vld [vmem:[#allocation2 + $0x1f8] sm:$0xff]  ;;  %v9776_v61 = vor.u32 %v9775_v50, %v9771_v37 }
 0x28d   : > { %v6949_v41 = vsel %vm16456_vm14, %v17958_v44, %v6948_v53  ;;  %9159 = vst [vmem:[#allocation2 + $0x88] sm:$0x80] %v9158_v46  ;;  %v8346_v44 = vsel %vm16606_vm8, %v8147_v19, %v8345_v9  ;;  %v4400_v4 = vrot.slane %v4398_v5, 7  ;;  %v9778_v14 = vshrl.u32 %v15121_v40, 16 }
 0x28e   : > { %v18006_v43 = vpop.f32.mrb[24].mxu0  ;;  %3247 = vrot.lane.b32.xlu0 %v2978_v25, %s15471_s20  ;;  %6950 = vst [vmem:[#allocation2 + $0x1e8] sm:$0xff] %v6949_v41  ;;  %8952 = vrot.lane.b32.xlu1 %v15119_v21, %s15472_s22  ;;  %v15122_v25 = vld [vmem:[%s15659_s19 + $0x108] sm:$0xff]   ;;  %8347 = vst [vmem:[#allocation2 + $0x1d0] sm:$0xff] %v8346_v44  ;;  %v15123_v41 = vld [vmem:[%s15659_s19 + $0x100] sm:$0xff]  }
 0x28f   : > { %v3228_v17 = vpop.permute.xlu0 %3227  ;;  %20322 = vst [vmem:[#allocation26_spill] sm:$0xff] %v18006_v43  ;;  %v11022_v31 = vpop.f32.mrb[25].mxu0  ;;  %v5669_v46 = vld [vmem:[#allocation2 + $0x200] sm:$0x80]  ;;  %v10235_v12 = vld [vmem:[#allocation2 + $0x70] sm:$0xff]  ;;  %v4403_v50 = vor.u32 %v4401_v57, %v4400_v4  ;;  %v6473_v44 = vshll.u32 %v15123_v41, 16 }
 0x290   : > { %v8933_v6 = vpop.permute.xlu1 %8932  ;;  %v18020_v56 = vpop.f32.mrb[26].mxu0  ;;  %v3430_v51 = vsel %vm16474_vm15, %v3228_v17, %v3429_v24  ;;  %v9780_v31 = vshll.u32 %v15121_v40, 16  ;;  %v5670_v19 = vsel %vm16435_vm13, 0, %v5669_v46  ;;  %v10236_v17 = vsel %vm17919_vm4, %v9776_v61, %v10235_v12  ;;  %v4893_v40 = vld [vmem:[#allocation2 + $0x1c8] sm:$0xff]  ;;  %v9160_v24 = vld [vmem:[#allocation2 + $0xa0] sm:$0x80] }
 0x291   : > { %20324 = vst [vmem:[#allocation28_spill] sm:$0xff] %v18020_v56  ;;  %v11025_v53 = vpop.f32.mrb[27].mxu0  ;;  %3431 = vst [vmem:[#allocation2 + $0x1f8] sm:$0xff] %v3430_v51  ;;  %14515 = vmatprep.mubr.msk.bf16.mxu1 %vm221_vm0, %v10236_v17  ;;  %v9161_v12 = vsel %vm17876_vm1, 0, %v9160_v24  ;;  %v15124_v57 = vld [vmem:[%s15659_s19 + $0x38] sm:$0xff]   ;;  %v15177_v43 = vld [vmem:[%s15659_s19 + $0x120] sm:$0xff]  }
 0x292   : > { %v18011_v60 = vpop.f32.mrb[24].mxu1  ;;  %9094 = vst.msk [vmem:[#allocation2 + $0x1d0] sm:$0xff] %vm4834_vm3, %v8933_v6  ;;  %v9782_v5 = vrot.slane %v9780_v31, 1  ;;  %5671 = vst [vmem:[#allocation2 + $0x200] sm:$0x80] %v5670_v19  ;;  %1983 = vrot.lane.b32.xlu1 %v15122_v25, %s15469_s24  ;;  %v6471_v6 = vshrl.u32 %v15123_v41, 16  ;;  %4700 = vrot.lane.b32.xlu0 %v4403_v50, %s15472_s22 }
 0x293   : > { %20323 = vst [vmem:[#allocation27_spill] sm:$0xff] %v18011_v60  ;;  %v4681_v55 = vpop.permute.xlu0 %4680  ;;  %v11406_v37 = vpop.f32.mrb[25].mxu1  ;;  %v10458_v9 = vld [vmem:[#allocation2 + $0x1b8] sm:$0xff]  ;;  %10237 = vst [vmem:[#allocation2 + $0x70] sm:$0xff] %v10236_v17  ;;  %v6475_v31 = vrot.slane %v6473_v44, 1  ;;  %v9787_v41 = vshll.u32 %v15124_v57, 16 }
 0x294   : > { %v18030_v21 = vpop.permute.xlu1 %3229  ;;  %v18040_v51 = vsel %vm16689_vm11, %v4681_v55, %v4893_v40  ;;  %v9783_v61 = vor.u32 %v9782_v5, %v9778_v14  ;;  %11114 = vmatprep.mubr.bf16.mxu0 %v10458_v9  ;;  %9162 = vst [vmem:[#allocation2 + $0xa0] sm:$0x80] %v9161_v12  ;;  %v10238_v4 = vld [vmem:[#allocation2 + $0x88] sm:$0xff]  ;;  %v9785_v55 = vshrl.u32 %v15124_v57, 16  ;;  %v15125_v19 = vld [vmem:[%s15659_s19 + $0xf0] sm:$0xff]   ;;  %v15126_v40 = vld [vmem:[%s15659_s19 + $0xf8] sm:$0xff]  }
 0x295   : > { %4895 = vst [vmem:[#allocation2 + $0x1c8] sm:$0xff] %v18040_v51  ;;  %v7144_v25 = vld [vmem:[#allocation2 + $0x1e8] sm:$0x1]  ;;  %11115 = vmatmul.mubr.bf16.gmra.mrb[72].mxu0 %v17973_v28  ;;  %v6476_v50 = vor.u32 %v6475_v31, %v6471_v6  ;;  %v9789_v5 = vrot.slane %v9787_v41, 1  ;;  %v9163_v9 = vld [vmem:[#allocation2 + $0xb8] sm:$0x80] }
 0x296   : > { %v7145_v37 = vsel %vm16520_vm12, 0, %v7144_v25  ;;  %v10239_v14 = vsel %vm17919_vm4, %v9783_v61, %v10238_v4  ;;  %v4405_v24 = vshrl.u32 %v15125_v19, 16  ;;  %v4408_v44 = vshll.u32 %v15125_v19, 16  ;;  %v15127_v4 = vld [vmem:[%s15659_s19 + $0x40] sm:$0xff]   ;;  %v3432_v31 = vld [vmem:[#allocation2 + $0x210] sm:$0xff] }
 0x297   : > { %v18047_v53 = vpop.permute.xlu0 %6738  ;;  %7146 = vst [vmem:[#allocation2 + $0x1e8] sm:$0x1] %v7145_v37  ;;  %10240 = vst [vmem:[#allocation2 + $0x88] sm:$0xff] %v10239_v14  ;;  %14516 = vmatmul.mubr.msk.bf16.gmra.mrb[72].mxu1 %vm221_vm0, %v10239_v14  ;;  %v9164_v12 = vsel %vm17876_vm1, 0, %v9163_v9  ;;  %6758 = vrot.lane.b32.xlu0 %v6476_v50, %s15469_s24  ;;  %v9790_v61 = vor.u32 %v9789_v5, %v9785_v55  ;;  %v7894_v25 = vshrl.u32 %v15126_v40, 16  ;;  %v7897_v6 = vshll.u32 %v15126_v40, 16 }
 0x298   : > { %v4683_v46 = vpop.permute.xlu1 %4682  ;;  %v3617_v17 = vld [vmem:[#allocation2 + $0x1f8] sm:$0x1]  ;;  %9165 = vst [vmem:[#allocation2 + $0xb8] sm:$0x80] %v9164_v12  ;;  %v4407_v14 = vrot.slane %v4405_v24, 7  ;;  %v3433_v19 = vsel %vm16474_vm15, %v18030_v21, %v3432_v31  ;;  %v9792_v5 = vshrl.u32 %v15127_v4, 16 }
 0x299   : > { %v3618_v28 = vsel %vm16542_vm2, 0, %v3617_v17  ;;  %v6951_v37 = vld [vmem:[#allocation2 + $0x200] sm:$0xff]  ;;  %v7896_v50 = vrot.slane %v7894_v25, 7  ;;  %v9794_v40 = vshll.u32 %v15127_v4, 16  ;;  %3434 = vst [vmem:[#allocation2 + $0x210] sm:$0xff] %v3433_v19  ;;  %v15128_v9 = vld [vmem:[%s15659_s19 + $0xb0] sm:$0xff]  }
 0x29a   : > { %3619 = vst [vmem:[#allocation2 + $0x1f8] sm:$0x1] %v3618_v28  ;;  %v6952_v17 = vsel %vm16456_vm14, %v17982_v10, %v6951_v37  ;;  %v15129_v28 = vld [vmem:[%s15659_s19 + $0x108] sm:$0xff]   ;;  %v4410_v12 = vor.u32 %v4408_v44, %v4407_v14  ;;  %5562 = vst.msk [vmem:[#allocation2 + $0x218] sm:$0xff] %vm221_vm0, %v15128_v9  ;;  %v15130_v4 = vld [vmem:[%s15659_s19 + $0xf8] sm:$0xff]   ;;  %v18081_v44 = vpop.f32.mrb[26].mxu1 }
 0x29b   : > { %v8149_v57 = vpop.permute.xlu0 %8148  ;;  %v10241_v55 = vld [vmem:[#allocation2 + $0xa0] sm:$0xff]  ;;  %6953 = vst [vmem:[#allocation2 + $0x200] sm:$0xff] %v6952_v17  ;;  %v7899_v21 = vor.u32 %v7897_v6, %v7896_v50  ;;  %v9796_v31 = vrot.slane %v9794_v40, 1  ;;  %v6478_v10 = vshrl.u32 %v15129_v28, 16  ;;  %v6480_v25 = vshll.u32 %v15129_v28, 16  ;;  %20325 = vst [vmem:[#allocation29_spill] sm:$0xff] %v18081_v44 }
 0x29c   : > { %v18063_v41 = vpop.permute.xlu1 %6740  ;;  %v10242_v24 = vsel %vm17919_vm4, %v9790_v61, %v10241_v55  ;;  %4702 = vrot.lane.b32.xlu1 %v4410_v12, %s15472_s22  ;;  %v4896_v19 = vld [vmem:[#allocation2 + $0x1e0] sm:$0xff]  ;;  %v10461_v61 = vld [vmem:[#allocation2 + $0x1d0] sm:$0xff]  ;;  %v15131_v9 = vld [vmem:[%s15659_s19 + $0x48] sm:$0xff]  }
 0x29d   : > { %10243 = vst [vmem:[#allocation2 + $0xa0] sm:$0xff] %v10242_v24  ;;  %14519 = vmatprep.mubr.msk.bf16.mxu1 %vm221_vm0, %v10242_v24  ;;  %8168 = vrot.lane.b32.xlu0 %v7899_v21, %s15471_s20  ;;  %v9797_v14 = vor.u32 %v9796_v31, %v9792_v5  ;;  %v6482_v6 = vrot.slane %v6480_v25, 1  ;;  %v18086_v55 = vsel %vm16689_vm11, %v4683_v46, %v4896_v19  ;;  %v9166_v40 = vld [vmem:[#allocation2 + $0xd0] sm:$0x80]  ;;  %v9801_v21 = vshll.u32 %v15131_v9, 16  ;;  %v15132_v31 = vld [vmem:[%s15659_s19 + $0xf8] sm:$0xff]  }
 0x29e   : > { %v8348_v17 = vld [vmem:[#allocation2 + $0x1e8] sm:$0xff]  ;;  %11122 = vmatprep.mubr.bf16.mxu0 %v10461_v61  ;;  %4898 = vst [vmem:[#allocation2 + $0x1e0] sm:$0xff] %v18086_v55  ;;  %v9167_v5 = vsel %vm17876_vm1, 0, %v9166_v40  ;;  %v15133_v25 = vld [vmem:[%s15659_s19 + $0x110] sm:$0xff]  }
 0x29f   : > { %v8935_v60 = vpop.permute.xlu0 %8934  ;;  %v8349_v50 = vsel %vm16606_vm8, %v8149_v57, %v8348_v17  ;;  %v10244_v28 = vld [vmem:[#allocation2 + $0xb8] sm:$0xff]  ;;  %11123 = vmatmul.mubr.bf16.gmra.mrb[76].mxu0 %v18040_v51  ;;  %v6483_v12 = vor.u32 %v6482_v6, %v6478_v10  ;;  %9168 = vst [vmem:[#allocation2 + $0xd0] sm:$0x80] %v9167_v5  ;;  %v9799_v57 = vshrl.u32 %v15131_v9, 16  ;;  %v9803_v10 = vrot.slane %v9801_v21, 1  ;;  %v15134_v9 = vld [vmem:[%s15659_s19 + $0x50] sm:$0xff]  }
 0x2a0   : > { %v18078_v37 = vpop.permute.xlu1 %8150  ;;  %8350 = vst [vmem:[#allocation2 + $0x1e8] sm:$0xff] %v8349_v50  ;;  %v10245_v46 = vsel %vm17919_vm4, %v9797_v14, %v10244_v28  ;;  %v3620_v17 = vld [vmem:[#allocation2 + $0x210] sm:$0x1]  ;;  %v6464_v14 = vshrl.u32 %v15132_v31, 16  ;;  %v6466_v6 = vshll.u32 %v15132_v31, 16  ;;  %v15135_v21 = vld [vmem:[%s15659_s19 + $0xb8] sm:$0xff]  }
 0x2a1   : > { %9095 = vst.msk [vmem:[#allocation2 + $0x1e8] sm:$0xff] %vm4834_vm3, %v8935_v60  ;;  %10246 = vst [vmem:[#allocation2 + $0xb8] sm:$0xff] %v10245_v46  ;;  %14520 = vmatmul.mubr.msk.bf16.gmra.mrb[76].mxu1 %vm221_vm0, %v10245_v46  ;;  %v3621_v61 = vsel %vm16542_vm2, 0, %v3620_v17  ;;  %6760 = vrot.lane.b32.xlu1 %v6483_v12, %s15469_s24  ;;  %v5672_v50 = vld [vmem:[#allocation2 + $0x218] sm:$0x80]  ;;  %v9804_v46 = vor.u32 %v9803_v10, %v9799_v57  ;;  %v9806_v17 = vshrl.u32 %v15134_v9, 16 }
 0x2a2   : > { %v7147_v51 = vld [vmem:[#allocation2 + $0x200] sm:$0x1]  ;;  %8954 = vrot.lane.b32.xlu0 %v15130_v4, %s15472_s22  ;;  %3622 = vst [vmem:[#allocation2 + $0x210] sm:$0x1] %v3621_v61  ;;  %v9169_v40 = vld [vmem:[#allocation2 + $0xe8] sm:$0x80] }
 0x2a3   : > { %v3232_v24 = vpop.permute.xlu0 %3231  ;;  %v7148_v60 = vsel %vm16520_vm12, 0, %v7147_v51  ;;  %v5673_v5 = vsel %vm16435_vm13, 0, %v5672_v50  ;;  %v6468_v12 = vrot.slane %v6466_v6, 1  ;;  %v9170_v4 = vsel %vm17876_vm1, 0, %v9169_v40  ;;  %5563 = vst.msk [vmem:[#allocation2 + $0x230] sm:$0xff] %vm221_vm0, %v15135_v21  ;;  %v15136_v50 = vld [vmem:[%s15659_s19 + $0xf8] sm:$0xff]  }
 0x2a4   : > { %v18100_v19 = vpop.permute.xlu1 %8936  ;;  %7149 = vst [vmem:[#allocation2 + $0x200] sm:$0x1] %v7148_v60  ;;  %5674 = vst [vmem:[#allocation2 + $0x218] sm:$0x80] %v5673_v5  ;;  %v9808_v51 = vshll.u32 %v15134_v9, 16  ;;  %v11409_v60 = vpop.f32.mrb[27].mxu1 }
 0x2a5   : > { %9171 = vst [vmem:[#allocation2 + $0xe8] sm:$0x80] %v9170_v4  ;;  %v6469_v61 = vor.u32 %v6468_v12, %v6464_v14  ;;  %v4412_v5 = vshrl.u32 %v15136_v50, 16  ;;  %v4415_v4 = vshll.u32 %v15136_v50, 16  ;;  %v15137_v9 = vld [vmem:[%s15659_s19 + $0x100] sm:$0xff]   ;;  %v3435_v14 = vld [vmem:[#allocation2 + $0x228] sm:$0xff] }
 0x2a6   : > { %1985 = vrot.lane.b32.xlu0 %v15133_v25, %s15469_s24  ;;  %v10247_v57 = vld [vmem:[#allocation2 + $0xd0] sm:$0xff]  ;;  %v9810_v10 = vrot.slane %v9808_v51, 1  ;;  %v3436_v21 = vsel %vm16474_vm15, %v3232_v24, %v3435_v14  ;;  %v9172_v51 = vld [vmem:[#allocation2 + $0x100] sm:$0x80]  ;;  %v15138_v50 = vld [vmem:[%s15659_s19 + $0x58] sm:$0xff]  }
 0x2a7   : > { %v18110_v28 = vpop.permute.xlu0 %4684  ;;  %v10248_v40 = vsel %vm17919_vm4, %v9804_v46, %v10247_v57  ;;  %6756 = vrot.lane.b32.xlu1 %v6469_v61, %s15469_s24  ;;  %v4414_v60 = vrot.slane %v4412_v5, 7  ;;  %v2980_v46 = vshrl.u32 %v15137_v9, 16  ;;  %v2982_v57 = vshll.u32 %v15137_v9, 16  ;;  %3437 = vst [vmem:[#allocation2 + $0x228] sm:$0xff] %v3436_v21  ;;  %v15139_v21 = vld [vmem:[%s15659_s19 + $0x118] sm:$0xff]  }
 0x2a8   : > { %v18117_v31 = vpop.permute.xlu1 %3233  ;;  %10249 = vst [vmem:[#allocation2 + $0xd0] sm:$0xff] %v10248_v40  ;;  %14523 = vmatprep.mubr.msk.bf16.mxu1 %vm221_vm0, %v10248_v40  ;;  %v9811_v25 = vor.u32 %v9810_v10, %v9806_v17  ;;  %v9173_v61 = vsel %vm17876_vm1, 0, %v9172_v51  ;;  %v9813_v9 = vshrl.u32 %v15138_v50, 16  ;;  %v9815_v26 = vshll.u32 %v15138_v50, 16 }
 0x2a9   : > { %9174 = vst [vmem:[#allocation2 + $0x100] sm:$0x80] %v9173_v61  ;;  %v4417_v24 = vor.u32 %v4415_v4, %v4414_v60  ;;  %v2984_v14 = vrot.slane %v2982_v57, 1  ;;  %v15141_v60 = vld [vmem:[%s15659_s19 + $0x60] sm:$0xff]   ;;  %v6485_v57 = vshrl.u32 %v15140_v3, 16  ;;  %v6487_v50 = vshll.u32 %v15140_v3, 16 }
 0x2aa   : > { %v18138_v40 = vpop.f32.mrb[28].mxu0  ;;  %v5675_v36 = vld [vmem:[#allocation2 + $0x230] sm:$0x80]  ;;  %v15142_v3 = vld [vmem:[%s15659_s19 + $0x108] sm:$0xff]  }
 0x2ab   : > { %v18122_v6 = vpop.permute.xlu0 %6742  ;;  %v8351_v44 = vld [vmem:[#allocation2 + $0x200] sm:$0xff]  ;;  %20326 = vst [vmem:[#allocation30_spill] sm:$0xff] %v18138_v40  ;;  %v6954_v17 = vld [vmem:[#allocation2 + $0x218] sm:$0xff]  ;;  %4704 = vrot.lane.b32.xlu1 %v4417_v24, %s15472_s22 }
 0x2ac   : > { %v18128_v12 = vpop.permute.xlu1 %4686  ;;  %v10250_v10 = vld [vmem:[#allocation2 + $0xe8] sm:$0xff]  ;;  %v8352_v5 = vsel %vm16606_vm8, %v18078_v37, %v8351_v44  ;;  %v6955_v51 = vsel %vm16456_vm14, %v18047_v53, %v6954_v17  ;;  %v5676_v37 = vsel %vm16435_vm13, 0, %v5675_v36  ;;  %v2985_v44 = vor.u32 %v2984_v14, %v2980_v46  ;;  %v9175_v53 = vld [vmem:[#allocation2 + $0x118] sm:$0x80] }
 0x2ad   : > { %v10251_v61 = vsel %vm17919_vm4, %v9811_v25, %v10250_v10  ;;  %8353 = vst [vmem:[#allocation2 + $0x200] sm:$0xff] %v8352_v5  ;;  %6956 = vst [vmem:[#allocation2 + $0x218] sm:$0xff] %v6955_v51  ;;  %v9817_v25 = vrot.slane %v9815_v26, 1  ;;  %v9176_v17 = vsel %vm17876_vm1, 0, %v9175_v53  ;;  %v9820_v36 = vshrl.u32 %v15141_v60, 16  ;;  %v4899_v24 = vld [vmem:[#allocation2 + $0x1f8] sm:$0xff] }
 0x2ae   : > { %10252 = vst [vmem:[#allocation2 + $0xe8] sm:$0xff] %v10251_v61  ;;  %14524 = vmatmul.mubr.msk.bf16.gmra.mrb[80].mxu1 %vm221_vm0, %v10251_v61  ;;  %9096 = vst.msk [vmem:[#allocation2 + $0x200] sm:$0xff] %vm4834_vm3, %v18100_v19  ;;  %3249 = vrot.lane.b32.xlu0 %v2985_v44, %s15471_s20  ;;  %v9822_v46 = vshll.u32 %v15141_v60, 16  ;;  %v10464_v14 = vld [vmem:[#allocation2 + $0x1e8] sm:$0xff]  ;;  %v6489_v51 = vrot.slane %v6487_v50, 1  ;;  %v18167_v26 = vsel %vm16689_vm11, %v18110_v28, %v4899_v24  ;;  %v7904_v50 = vshll.u32 %v15142_v3, 16 }
 0x2af   : > { %v18136_v35 = vpop.permute.xlu0 %8152  ;;  %5677 = vst [vmem:[#allocation2 + $0x230] sm:$0x80] %v5676_v37  ;;  %9177 = vst [vmem:[#allocation2 + $0x118] sm:$0x80] %v9176_v17  ;;  %v3623_v5 = vld [vmem:[#allocation2 + $0x228] sm:$0x1]  ;;  %v9818_v19 = vor.u32 %v9817_v25, %v9813_v9  ;;  %11130 = vmatprep.mubr.bf16.mxu0 %v10464_v14  ;;  %1987 = vrot.lane.b32.xlu1 %v15139_v21, %s15469_s24 }
 0x2b0   : > { %v18150_v4 = vpop.permute.xlu1 %6744  ;;  %v3624_v37 = vsel %vm16542_vm2, 0, %v3623_v5  ;;  %v10253_v44 = vld [vmem:[#allocation2 + $0x100] sm:$0xff]  ;;  %v9824_v53 = vrot.slane %v9822_v46, 1  ;;  %4901 = vst [vmem:[#allocation2 + $0x1f8] sm:$0xff] %v18167_v26  ;;  %v15143_v9 = vld [vmem:[%s15659_s19 + $0x108] sm:$0xff]   ;;  %11131 = vmatmul.mubr.bf16.gmra.mrb[80].mxu0 %v18086_v55  ;;  %v6490_v60 = vor.u32 %v6489_v51, %v6485_v57  ;;  %v7901_v25 = vshrl.u32 %v15142_v3, 16 }
 0x2b1   : > { %3625 = vst [vmem:[#allocation2 + $0x228] sm:$0x1] %v3624_v37  ;;  %v10254_v28 = vsel %vm17919_vm4, %v9818_v19, %v10253_v44  ;;  %v3438_v17 = vld [vmem:[#allocation2 + $0x240] sm:$0xff]  ;;  %v2987_v46 = vshrl.u32 %v15143_v9, 16  ;;  %v2989_v5 = vshll.u32 %v15143_v9, 16  ;;  %v15145_v51 = vld [vmem:[%s15659_s19 + $0x68] sm:$0xff]  }
 0x2b2   : > { %v15144_v24 = vld [vmem:[%s15659_s19 + $0xc0] sm:$0xff]   ;;  %10255 = vst [vmem:[#allocation2 + $0x100] sm:$0xff] %v10254_v28  ;;  %14527 = vmatprep.mubr.msk.bf16.mxu1 %vm221_vm0, %v10254_v28  ;;  %v9825_v21 = vor.u32 %v9824_v53, %v9820_v36  ;;  %v3439_v55 = vsel %vm16474_vm15, %v18117_v31, %v3438_v17  ;;  %6762 = vrot.lane.b32.xlu0 %v6490_v60, %s15469_s24  ;;  %v7903_v57 = vrot.slane %v7901_v25, 7  ;;  %v9178_v19 = vld [vmem:[#allocation2 + $0x130] sm:$0x80]  ;;  %v9827_v25 = vshrl.u32 %v15145_v51, 16 }
 0x2b3   : > { %v18161_v10 = vpop.permute.xlu0 %8938  ;;  %3440 = vst [vmem:[#allocation2 + $0x240] sm:$0xff] %v3439_v55  ;;  %5564 = vst.msk [vmem:[#allocation2 + $0x248] sm:$0xff] %vm221_vm0, %v15144_v24  ;;  %v2991_v53 = vrot.slane %v2989_v5, 1  ;;  %v9179_v31 = vsel %vm17876_vm1, 0, %v9178_v19  ;;  %v9829_v17 = vshll.u32 %v15145_v51, 16  ;;  %v15146_v24 = vld [vmem:[%s15659_s19 + $0x108] sm:$0xff]  }
 0x2b4   : > { %v18170_v61 = vpop.permute.xlu1 %8154  ;;  %v7150_v37 = vld [vmem:[#allocation2 + $0x218] sm:$0x1]  ;;  %v7906_v60 = vor.u32 %v7904_v50, %v7903_v57  ;;  %9180 = vst [vmem:[#allocation2 + $0x130] sm:$0x80] %v9179_v31  ;;  %v15147_v19 = vld [vmem:[%s15659_s19 + $0x100] sm:$0xff]  }
 0x2b5   : > { %v7151_v36 = vsel %vm16520_vm12, 0, %v7150_v37  ;;  %v2992_v37 = vor.u32 %v2991_v53, %v2987_v46  ;;  %v9181_v50 = vld [vmem:[#allocation2 + $0x148] sm:$0x80]  ;;  %v4419_v31 = vshrl.u32 %v15147_v19, 16  ;;  %v4902_v46 = vld [vmem:[#allocation2 + $0x210] sm:$0xff]  ;;  %v10467_v53 = vld [vmem:[#allocation2 + $0x200] sm:$0xff] }
 0x2b6   : > { %v6957_v44 = vld [vmem:[#allocation2 + $0x230] sm:$0xff]  ;;  %7152 = vst [vmem:[#allocation2 + $0x218] sm:$0x1] %v7151_v36  ;;  %v10256_v28 = vld [vmem:[#allocation2 + $0x118] sm:$0xff]  ;;  %8170 = vrot.lane.b32.xlu1 %v7906_v60, %s15471_s20  ;;  %v9182_v51 = vsel %vm17876_vm1, 0, %v9181_v50  ;;  %11138 = vmatprep.mubr.bf16.mxu0 %v10467_v53  ;;  %v15149_v50 = vld [vmem:[%s15659_s19 + $0x120] sm:$0xff]  }
 0x2b7   : > { %v18181_v14 = vpop.permute.xlu0 %3235  ;;  %v6958_v9 = vsel %vm16456_vm14, %v18063_v41, %v6957_v44  ;;  %v10257_v5 = vsel %vm17919_vm4, %v9825_v21, %v10256_v28  ;;  %v9831_v41 = vrot.slane %v9829_v17, 1  ;;  %3251 = vrot.lane.b32.xlu0 %v2992_v37, %s15471_s20  ;;  %v15148_v36 = vld [vmem:[%s15659_s19 + $0x70] sm:$0xff]   ;;  %v4422_v21 = vshll.u32 %v15147_v19, 16  ;;  %9183 = vst [vmem:[#allocation2 + $0x148] sm:$0x80] %v9182_v51  ;;  %v11030_v53 = vpop.f32.mrb[29].mxu0 }
 0x2b8   : > { %v18190_v3 = vpop.permute.xlu1 %8940  ;;  %6959 = vst [vmem:[#allocation2 + $0x230] sm:$0xff] %v6958_v9  ;;  %10258 = vst [vmem:[#allocation2 + $0x118] sm:$0xff] %v10257_v5  ;;  %14528 = vmatmul.mubr.msk.bf16.gmra.mrb[84].mxu1 %vm221_vm0, %v10257_v5  ;;  %v9834_v17 = vshrl.u32 %v15148_v36, 16  ;;  %v9836_v5 = vshll.u32 %v15148_v36, 16  ;;  %v18218_v37 = vsel %vm16689_vm11, %v18128_v12, %v4902_v46  ;;  %v4421_v19 = vrot.slane %v4419_v31, 7  ;;  %11139 = vmatmul.mubr.bf16.gmra.mrb[84].mxu0 %v18167_v26  ;;  %v18236_v26 = vpop.f32.mrb[30].mxu0 }
 0x2b9   : > { %v9832_v44 = vor.u32 %v9831_v41, %v9827_v25  ;;  %4904 = vst [vmem:[#allocation2 + $0x210] sm:$0xff] %v18218_v37  ;;  %20327 = vst [vmem:[#allocation31_spill] sm:$0xff] %v18236_v26  ;;  %v15152_v53 = vld [vmem:[%s15659_s19 + $0x78] sm:$0xff]  }
 0x2ba   : > { %v3626_v28 = vld [vmem:[#allocation2 + $0x240] sm:$0x1]  ;;  %v5678_v60 = vld [vmem:[#allocation2 + $0x248] sm:$0x80]  ;;  %8956 = vrot.lane.b32.xlu1 %v15146_v24, %s15472_s22  ;;  %v9838_v36 = vrot.slane %v9836_v5, 1 }
 0x2bb   : > { %v18200_v55 = vpop.permute.xlu0 %4688  ;;  %v3627_v25 = vsel %vm16542_vm2, 0, %v3626_v28  ;;  %v5679_v41 = vsel %vm16435_vm13, 0, %v5678_v60  ;;  %v10259_v12 = vld [vmem:[#allocation2 + $0x130] sm:$0xff]  ;;  %v4424_v60 = vor.u32 %v4422_v21, %v4421_v19  ;;  %v11033_v21 = vpop.f32.mrb[31].mxu0 }
 0x2bc   : > { %v18207_v57 = vpop.permute.xlu1 %1973  ;;  %3628 = vst [vmem:[#allocation2 + $0x240] sm:$0x1] %v3627_v25  ;;  %5680 = vst [vmem:[#allocation2 + $0x248] sm:$0x80] %v5679_v41  ;;  %v10260_v24 = vsel %vm17919_vm4, %v9832_v44, %v10259_v12  ;;  %v9839_v5 = vor.u32 %v9838_v36, %v9834_v17  ;;  %v15151_v41 = vld [vmem:[%s15659_s19 + $0xc8] sm:$0xff]   ;;  %v6494_v44 = vshll.u32 %v15150_v42, 16 }
 0x2bd   : > { %v8354_v46 = vld [vmem:[#allocation2 + $0x218] sm:$0xff]  ;;  %10261 = vst [vmem:[#allocation2 + $0x130] sm:$0xff] %v10260_v24  ;;  %14531 = vmatprep.mubr.msk.bf16.mxu1 %vm221_vm0, %v10260_v24  ;;  %4706 = vrot.lane.b32.xlu0 %v4424_v60, %s15472_s22  ;;  %v18248_v19 = vpop.f32.mrb[28].mxu1  ;;  %v9184_v12 = vld [vmem:[#allocation2 + $0x160] sm:$0x80]  ;;  %5565 = vst.msk [vmem:[#allocation2 + $0x260] sm:$0xff] %vm221_vm0, %v15151_v41 }
 0x2be   : > { %v8355_v31 = vsel %vm16606_vm8, %v18136_v35, %v8354_v46  ;;  %1989 = vrot.lane.b32.xlu1 %v15149_v50, %s15469_s24  ;;  %v6492_v35 = vshrl.u32 %v15150_v42, 16  ;;  %20328 = vst [vmem:[#allocation32_spill] sm:$0xff] %v18248_v19  ;;  %v10262_v46 = vld [vmem:[#allocation2 + $0x148] sm:$0xff]  ;;  %v9185_v17 = vsel %vm17876_vm1, 0, %v9184_v12  ;;  %v6496_v50 = vrot.slane %v6494_v44, 1  ;;  %v11414_v24 = vpop.f32.mrb[29].mxu1 }
 0x2bf   : > { %v18213_v9 = vpop.permute.xlu0 %6746  ;;  %v7153_v28 = vld [vmem:[#allocation2 + $0x230] sm:$0x1]  ;;  %8356 = vst [vmem:[#allocation2 + $0x218] sm:$0xff] %v8355_v31  ;;  %v10263_v42 = vsel %vm17919_vm4, %v9839_v5, %v10262_v46  ;;  %9186 = vst [vmem:[#allocation2 + $0x160] sm:$0x80] %v9185_v17  ;;  %v9843_v41 = vshll.u32 %v15152_v53, 16 }
 0x2c0   : > { %v18228_v51 = vpop.permute.xlu1 %8156  ;;  %v7154_v25 = vsel %vm16520_vm12, 0, %v7153_v28  ;;  %9097 = vst.msk [vmem:[#allocation2 + $0x218] sm:$0xff] %vm4834_vm3, %v18161_v10  ;;  %10264 = vst [vmem:[#allocation2 + $0x148] sm:$0xff] %v10263_v42  ;;  %14532 = vmatmul.mubr.msk.bf16.gmra.mrb[88].mxu1 %vm221_vm0, %v10263_v42  ;;  %v15153_v28 = vld [vmem:[%s15659_s19 + $0x110] sm:$0xff]   ;;  %v6497_v31 = vor.u32 %v6496_v50, %v6492_v35  ;;  %v18263_v12 = vpop.f32.mrb[30].mxu1  ;;  %v3441_v17 = vld [vmem:[#allocation2 + $0x258] sm:$0xff] }
 0x2c1   : > { %7155 = vst [vmem:[#allocation2 + $0x230] sm:$0x1] %v7154_v25  ;;  %v9841_v25 = vshrl.u32 %v15152_v53, 16  ;;  %v15154_v21 = vld [vmem:[%s15659_s19 + $0x110] sm:$0xff]   ;;  %20329 = vst [vmem:[#allocation33_spill] sm:$0xff] %v18263_v12  ;;  %v7908_v44 = vshrl.u32 %v15153_v28, 16  ;;  %v3442_v53 = vsel %vm16474_vm15, %v18181_v14, %v3441_v17 }
 0x2c2   : > { %v7911_v46 = vshll.u32 %v15153_v28, 16  ;;  %v11417_v19 = vpop.f32.mrb[31].mxu1  ;;  %6764 = vrot.lane.b32.xlu0 %v6497_v31, %s15469_s24  ;;  %v9845_v35 = vrot.slane %v9843_v41, 1  ;;  %v2994_v42 = vshrl.u32 %v15154_v21, 16  ;;  %v2996_v50 = vshll.u32 %v15154_v21, 16  ;;  %v10450_v28 = vld [vmem:[#allocation2 + $0x178] sm:$0xff] }
 0x2c3   : > { %v18238_v0 = vpop.permute.xlu0 %3237  ;;  %v6960_v60 = vld [vmem:[#allocation2 + $0x248] sm:$0xff]  ;;  %3443 = vst [vmem:[#allocation2 + $0x258] sm:$0xff] %v3442_v53 }
 0x2c4   : > { %v18253_v36 = vpop.permute.xlu1 %8942  ;;  %v6961_v5 = vsel %vm16456_vm14, %v18122_v6, %v6960_v60  ;;  %v7910_v6 = vrot.slane %v7908_v44, 7  ;;  %v5681_v19 = vld [vmem:[#allocation2 + $0x260] sm:$0x80]  ;;  %v9846_v12 = vor.u32 %v9845_v35, %v9841_v25  ;;  %v2998_v7 = vrot.slane %v2996_v50, 1  ;;  %v15156_v41 = vld [vmem:[%s15659_s19 + $0x108] sm:$0xff]   ;;  %v15155_v44 = vld [vmem:[%s15659_s19 + $0x110] sm:$0xff]  }
 0x2c5   : > { %6962 = vst [vmem:[#allocation2 + $0x248] sm:$0xff] %v6961_v5  ;;  %v4905_v21 = vld [vmem:[#allocation2 + $0x228] sm:$0xff]  ;;  %v18280_v5 = vpop.f32.mrb[32].mxu0  ;;  %v5682_v14 = vsel %vm16435_vm13, 0, %v5681_v19  ;;  %v9187_v50 = vld [vmem:[#allocation2 + $0x190] sm:$0x80] }
 0x2c6   : > { %20330 = vst [vmem:[#allocation34_spill] sm:$0xff] %v18280_v5  ;;  %v10265_v17 = vld [vmem:[#allocation2 + $0x160] sm:$0xff]  ;;  %v7913_v16 = vor.u32 %v7911_v46, %v7910_v6  ;;  %v18288_v25 = vsel %vm16689_vm11, %v18200_v55, %v4905_v21  ;;  %5683 = vst [vmem:[#allocation2 + $0x260] sm:$0x80] %v5682_v14  ;;  %v2999_v19 = vor.u32 %v2998_v7, %v2994_v42  ;;  %v4426_v2 = vshrl.u32 %v15156_v41, 16  ;;  %v15160_v14 = vld [vmem:[%s15659_s19 + $0x90] sm:$0xff]  }
 0x2c7   : > { %v18258_v10 = vpop.permute.xlu0 %4690  ;;  %v10470_v35 = vld [vmem:[#allocation2 + $0x218] sm:$0xff]  ;;  %v4429_v46 = vshll.u32 %v15156_v41, 16  ;;  %4907 = vst [vmem:[#allocation2 + $0x228] sm:$0xff] %v18288_v25  ;;  %v9188_v7 = vsel %vm17876_vm1, 0, %v9187_v50  ;;  %v15158_v41 = vld [vmem:[%s15659_s19 + $0x128] sm:$0xff]   ;;  %v15159_v21 = vld [vmem:[%s15659_s19 + $0x120] sm:$0xff]  }
 0x2c8   : > { %v18268_v34 = vpop.permute.xlu1 %1975  ;;  %v8357_v60 = vld [vmem:[#allocation2 + $0x230] sm:$0xff]  ;;  %11146 = vmatprep.mubr.bf16.mxu0 %v10470_v35  ;;  %8172 = vrot.lane.b32.xlu1 %v7913_v16, %s15471_s20  ;;  %9189 = vst [vmem:[#allocation2 + $0x190] sm:$0x80] %v9188_v7  ;;  %v6501_v7 = vshll.u32 %v15159_v21, 16  ;;  %v15174_v5 = vld [vmem:[%s15659_s19 + $0x120] sm:$0xff]  }
 0x2c9   : > { %v8358_v31 = vsel %vm16606_vm8, %v18170_v61, %v8357_v60  ;;  %v11038_v61 = vpop.f32.mrb[33].mxu0  ;;  %v10266_v60 = vsel %vm17919_vm4, %v9846_v12, %v10265_v17  ;;  %v15157_v12 = vld [vmem:[%s15659_s19 + $0x88] sm:$0xff]   ;;  %3253 = vrot.lane.b32.xlu0 %v2999_v19, %s15471_s20  ;;  %11147 = vmatmul.mubr.bf16.gmra.mrb[88].mxu0 %v18218_v37  ;;  %v6499_v37 = vshrl.u32 %v15159_v21, 16 }
 0x2ca   : > { %8359 = vst [vmem:[#allocation2 + $0x230] sm:$0xff] %v8358_v31  ;;  %10267 = vst [vmem:[#allocation2 + $0x160] sm:$0xff] %v10266_v60  ;;  %14535 = vmatprep.mubr.msk.bf16.mxu1 %vm221_vm0, %v10266_v60  ;;  %v9848_v6 = vshrl.u32 %v15157_v12, 16  ;;  %v9850_v31 = vshll.u32 %v15157_v12, 16  ;;  %v3629_v35 = vld [vmem:[#allocation2 + $0x258] sm:$0x1] }
 0x2cb   : > { %v18274_v24 = vpop.permute.xlu0 %6748  ;;  %9098 = vst.msk [vmem:[#allocation2 + $0x230] sm:$0xff] %vm4834_vm3, %v18190_v3  ;;  %14536 = vmatmul.mubr.msk.bf16.gmra.mrb[92].mxu1 %vm221_vm0, %v10450_v28  ;;  %v4428_v3 = vrot.slane %v4426_v2, 7  ;;  %v9190_v61 = vld [vmem:[#allocation2 + $0x1a8] sm:$0x80]  ;;  %v15161_v60 = vld [vmem:[%s15659_s19 + $0xd8] sm:$0xff]   ;;  %v3630_v2 = vsel %vm16542_vm2, 0, %v3629_v35 }
 0x2cc   : > { %v18290_v53 = vpop.permute.xlu1 %8158  ;;  %v7156_v42 = vld [vmem:[#allocation2 + $0x248] sm:$0x1]  ;;  %8958 = vrot.lane.b32.xlu1 %v15155_v44, %s15472_s22  ;;  %v9852_v19 = vrot.slane %v9850_v31, 1  ;;  %3631 = vst [vmem:[#allocation2 + $0x258] sm:$0x1] %v3630_v2  ;;  %v9855_v12 = vshrl.u32 %v15160_v14, 16 }
 0x2cd   : > { %v7157_v17 = vsel %vm16520_vm12, 0, %v7156_v42  ;;  %v4431_v50 = vor.u32 %v4429_v46, %v4428_v3  ;;  %v9191_v46 = vsel %vm17876_vm1, 0, %v9190_v61  ;;  %v9857_v3 = vshll.u32 %v15160_v14, 16  ;;  %v6963_v45 = vld [vmem:[#allocation2 + $0x260] sm:$0xff]  ;;  %v15162_v2 = vld [vmem:[%s15659_s19 + $0xd0] sm:$0xff]  }
 0x2ce   : > { %7158 = vst [vmem:[#allocation2 + $0x248] sm:$0x1] %v7157_v17  ;;  %v1016_v42 = vshrl.u32 %v15161_v60, 16  ;;  %v9853_v17 = vor.u32 %v9852_v19, %v9848_v6  ;;  %v6503_v63 = vrot.slane %v6501_v7, 1  ;;  %9192 = vst [vmem:[#allocation2 + $0x1a8] sm:$0x80] %v9191_v46  ;;  %v6964_v31 = vsel %vm16456_vm14, %v18150_v4, %v6963_v45 }
 0x2cf   : > { %v18297_v55 = vpop.permute.xlu0 %3239  ;;  %4708 = vrot.lane.b32.xlu0 %v4431_v50, %s15472_s22  ;;  %v308_v35 = vld [vmem:[#allocation2 + $0x2a0] sm:$0x1]  ;;  %v9859_v21 = vrot.slane %v9857_v3, 1  ;;  %6965 = vst [vmem:[#allocation2 + $0x260] sm:$0xff] %v6964_v31  ;;  %v10268_v6 = vld [vmem:[#allocation2 + $0x190] sm:$0xff]  ;;  %v1019_v7 = vshll.u32 %v15161_v60, 16 }
 0x2d0   : > { %v18310_v16 = vpop.permute.xlu1 %8944  ;;  %v309_v50 = vsel %vm15873_vm5, 0, %v308_v35  ;;  %v1018_v61 = vrot.slane %v1016_v42, 7  ;;  %1991 = vrot.lane.b32.xlu1 %v15158_v41, %s15469_s24  ;;  %v6504_v19 = vor.u32 %v6503_v63, %v6499_v37  ;;  %v10269_v46 = vsel %vm17919_vm4, %v9853_v17, %v10268_v6  ;;  %5566 = vst.msk [vmem:[#allocation2 + $0x278] sm:$0xff] %vm221_vm0, %v15162_v2  ;;  %v15163_v45 = vld [vmem:[%s15659_s19 + $0x118] sm:$0xff]   ;;  %v18338_v4 = vpop.f32.mrb[34].mxu0  ;;  %v3444_v17 = vld [vmem:[#allocation2 + $0x270] sm:$0xff] }
 0x2d1   : > { %310 = vst [vmem:[#allocation2 + $0x2a0] sm:$0x1] %v309_v50  ;;  %20331 = vst [vmem:[#allocation35_spill] sm:$0xff] %v18338_v4  ;;  %14539 = vmatprep.mubr.msk.bf16.mxu1 %vm221_vm0, %v10269_v46  ;;  %v9860_v3 = vor.u32 %v9859_v21, %v9855_v12  ;;  %v15164_v42 = vld [vmem:[%s15659_s19 + $0x118] sm:$0xff]   ;;  %v11041_v35 = vpop.f32.mrb[35].mxu0  ;;  %v7915_v60 = vshrl.u32 %v15163_v45, 16  ;;  %v3445_v21 = vsel %vm16474_vm15, %v18238_v0, %v3444_v17 }
 0x2d2   : > { %10270 = vst [vmem:[#allocation2 + $0x190] sm:$0xff] %v10269_v46  ;;  %v1021_v63 = vor.u32 %v1019_v7, %v1018_v61  ;;  %v7918_v37 = vshll.u32 %v15163_v45, 16  ;;  %v10473_v50 = vld [vmem:[#allocation2 + $0x230] sm:$0xff]  ;;  %v18345_v2 = vpop.f32.mrb[32].mxu1  ;;  %v3001_v4 = vshrl.u32 %v15164_v42, 16  ;;  %v3003_v46 = vshll.u32 %v15164_v42, 16 }
 0x2d3   : > { %v18315_v28 = vpop.permute.xlu0 %4692  ;;  %6766 = vrot.lane.b32.xlu0 %v6504_v19, %s15469_s24  ;;  %20332 = vst [vmem:[#allocation36_spill] sm:$0xff] %v18345_v2  ;;  %11154 = vmatprep.mubr.bf16.mxu0 %v10473_v50  ;;  %v9193_v61 = vld [vmem:[#allocation2 + $0x1c0] sm:$0x80]  ;;  %v7917_v7 = vrot.slane %v7915_v60, 7  ;;  %3446 = vst [vmem:[#allocation2 + $0x270] sm:$0xff] %v3445_v21  ;;  %v15165_v42 = vld [vmem:[%s15659_s19 + $0x98] sm:$0xff]  }
 0x2d4   : > { %v18323_v44 = vpop.permute.xlu1 %1977  ;;  %v9194_v45 = vsel %vm17876_vm1, 0, %v9193_v61  ;;  %11155 = vmatmul.mubr.bf16.gmra.mrb[92].mxu0 %v18288_v25  ;;  %v3005_v35 = vrot.slane %v3003_v46, 1  ;;  %v9862_v50 = vshrl.u32 %v15165_v42, 16  ;;  %v15166_v25 = vld [vmem:[%s15659_s19 + $0x118] sm:$0xff]   ;;  %v15167_v21 = vld [vmem:[%s15659_s19 + $0x110] sm:$0xff]  }
 0x2d5   : > { %v8360_v31 = vld [vmem:[#allocation2 + $0x248] sm:$0xff]  ;;  %9195 = vst [vmem:[#allocation2 + $0x1c0] sm:$0x80] %v9194_v45  ;;  %v7920_v17 = vor.u32 %v7918_v37, %v7917_v7  ;;  %v15168_v45 = vld [vmem:[%s15659_s19 + $0xa0] sm:$0xff]  }
 0x2d6   : > { %v8361_v12 = vsel %vm16606_vm8, %v18228_v51, %v8360_v31  ;;  %v10271_v19 = vld [vmem:[#allocation2 + $0x1a8] sm:$0xff]  ;;  %v7159_v60 = vld [vmem:[#allocation2 + $0x260] sm:$0x1] }
 0x2d7   : > { %v18331_v14 = vpop.permute.xlu0 %6750  ;;  %8362 = vst [vmem:[#allocation2 + $0x248] sm:$0xff] %v8361_v12  ;;  %v10272_v51 = vsel %vm17919_vm4, %v9860_v3, %v10271_v19  ;;  %v9864_v12 = vshll.u32 %v15165_v42, 16  ;;  %v7160_v3 = vsel %vm16520_vm12, 0, %v7159_v60  ;;  %v5684_v46 = vld [vmem:[#allocation2 + $0x278] sm:$0x80]  ;;  %v3006_v19 = vor.u32 %v3005_v35, %v3001_v4  ;;  %8174 = vrot.lane.b32.xlu1 %v7920_v17, %s15471_s20  ;;  %v4908_v17 = vld [vmem:[#allocation2 + $0x240] sm:$0xff] }
 0x2d8   : > { %v18343_v41 = vpop.permute.xlu1 %8160  ;;  %9099 = vst.msk [vmem:[#allocation2 + $0x248] sm:$0xff] %vm4834_vm3, %v18253_v36  ;;  %10273 = vst [vmem:[#allocation2 + $0x1a8] sm:$0xff] %v10272_v51  ;;  %14540 = vmatmul.mubr.msk.bf16.gmra.mrb[96].mxu1 %vm221_vm0, %v10272_v51  ;;  %v1394_v31 = vld [vmem:[#allocation2 + $0x2a0] sm:$0xff]  ;;  %v5685_v37 = vsel %vm16435_vm13, 0, %v5684_v46  ;;  %v4433_v42 = vshrl.u32 %v15167_v21, 16  ;;  %v4436_v51 = vshll.u32 %v15167_v21, 16 }
 0x2d9   : > { %v1395_v36 = vsel %vm15906_vm6, %v1021_v63, %v1394_v31  ;;  %7161 = vst [vmem:[#allocation2 + $0x260] sm:$0x1] %v7160_v3  ;;  %v9866_v7 = vrot.slane %v9864_v12, 1  ;;  %5686 = vst [vmem:[#allocation2 + $0x278] sm:$0x80] %v5685_v37  ;;  %3255 = vrot.lane.b32.xlu0 %v3006_v19, %s15471_s20  ;;  %v9869_v3 = vshrl.u32 %v15168_v45, 16 }
 0x2da   : > { %1396 = vst [vmem:[#allocation2 + $0x2a0] sm:$0xff] %v1395_v36  ;;  %v9196_v63 = vld [vmem:[#allocation2 + $0x1d8] sm:$0x80]  ;;  %v4435_v60 = vrot.slane %v4433_v42, 7  ;;  %v3632_v21 = vld [vmem:[#allocation2 + $0x270] sm:$0x1]  ;;  %v18390_v36 = vsel %vm16689_vm11, %v18258_v10, %v4908_v17 }
 0x2db   : > { %v18347_v6 = vpop.permute.xlu0 %3241  ;;  %2127 = vst.msk [vmem:[#allocation2 + $0x2a0] sm:$0xff] %vm20333_vm9, %v18207_v57  ;;  %v9867_v35 = vor.u32 %v9866_v7, %v9862_v50  ;;  %v9197_v31 = vsel %vm17876_vm1, 0, %v9196_v63  ;;  %v9871_v57 = vshll.u32 %v15168_v45, 16  ;;  %v15169_v46 = vld [vmem:[%s15659_s19 + $0x130] sm:$0xff]   ;;  %v3633_v50 = vsel %vm16542_vm2, 0, %v3632_v21  ;;  %8960 = vrot.lane.b32.xlu1 %v15166_v25, %s15472_s22  ;;  %4910 = vst [vmem:[#allocation2 + $0x240] sm:$0xff] %v18390_v36 }
 0x2dc   : > { %v18363_v0 = vpop.permute.xlu1 %8946  ;;  %9198 = vst [vmem:[#allocation2 + $0x1d8] sm:$0x80] %v9197_v31  ;;  %v10274_v19 = vld [vmem:[#allocation2 + $0x1c0] sm:$0xff]  ;;  %v4438_v37 = vor.u32 %v4436_v51, %v4435_v60  ;;  %3634 = vst [vmem:[#allocation2 + $0x270] sm:$0x1] %v3633_v50  ;;  %v15170_v42 = vld [vmem:[%s15659_s19 + $0x128] sm:$0xff]  }
 0x2dd   : > { %v10275_v7 = vsel %vm17919_vm4, %v9867_v35, %v10274_v19  ;;  %v9873_v45 = vrot.slane %v9871_v57, 1  ;;  %v11422_v63 = vpop.f32.mrb[33].mxu1  ;;  %v311_v31 = vld [vmem:[#allocation2 + $0x2b8] sm:$0x1]  ;;  %v15171_v10 = vld [vmem:[%s15659_s19 + $0xe0] sm:$0xff]   ;;  %v6506_v35 = vshrl.u32 %v15170_v42, 16 }
 0x2de   : > { %10276 = vst [vmem:[#allocation2 + $0x1c0] sm:$0xff] %v10275_v7  ;;  %14543 = vmatprep.mubr.msk.bf16.mxu1 %vm221_vm0, %v10275_v7  ;;  %4710 = vrot.lane.b32.xlu0 %v4438_v37, %s15472_s22  ;;  %v18405_v25 = vpop.f32.mrb[34].mxu1  ;;  %v312_v51 = vsel %vm15873_vm5, 0, %v311_v31  ;;  %v6508_v21 = vshll.u32 %v15170_v42, 16  ;;  %v1023_v19 = vshrl.u32 %v15171_v10, 16  ;;  %v1026_v63 = vshll.u32 %v15171_v10, 16 }
 0x2df   : > { %v18368_v61 = vpop.permute.xlu0 %4694  ;;  %20334 = vst [vmem:[#allocation37_spill] sm:$0xff] %v18405_v25  ;;  %v9874_v60 = vor.u32 %v9873_v45, %v9869_v3  ;;  %313 = vst [vmem:[#allocation2 + $0x2b8] sm:$0x1] %v312_v51  ;;  %1993 = vrot.lane.b32.xlu1 %v15169_v46, %s15469_s24  ;;  %v15172_v7 = vld [vmem:[%s15659_s19 + $0xd8] sm:$0xff]   ;;  %v11425_v42 = vpop.f32.mrb[35].mxu1  ;;  %v15173_v51 = vld [vmem:[%s15659_s19 + $0xa8] sm:$0xff]  }
 0x2e0   : > { %v18381_v4 = vpop.permute.xlu1 %1979  ;;  %v6966_v50 = vld [vmem:[#allocation2 + $0x278] sm:$0xff]  ;;  %v6510_v45 = vrot.slane %v6508_v21, 1  ;;  %v9199_v31 = vld [vmem:[#allocation2 + $0x1f0] sm:$0x80]  ;;  %v1025_v25 = vrot.slane %v1023_v19, 7  ;;  %5567 = vst.msk [vmem:[#allocation2 + $0x290] sm:$0xff] %vm221_vm0, %v15172_v7 }
 0x2e1   : > { %v6967_v3 = vsel %vm16456_vm14, %v18213_v9, %v6966_v50  ;;  %v9200_v10 = vsel %vm17876_vm1, 0, %v9199_v31  ;;  %v9876_v9 = vshrl.u32 %v15173_v51, 16  ;;  %v9878_v21 = vshll.u32 %v15173_v51, 16  ;;  %v15175_v42 = vld [vmem:[%s15659_s19 + $0x120] sm:$0xff]   ;;  %v9202_v31 = vld [vmem:[#allocation2 + $0x208] sm:$0x80] }
 0x2e2   : > { %v2247_v57 = vld [vmem:[#allocation2 + $0x2a0] sm:$0x80]  ;;  %6968 = vst [vmem:[#allocation2 + $0x278] sm:$0xff] %v6967_v3  ;;  %v6511_v56 = vor.u32 %v6510_v45, %v6506_v35  ;;  %9201 = vst [vmem:[#allocation2 + $0x1f0] sm:$0x80] %v9200_v10  ;;  %v1028_v19 = vor.u32 %v1026_v63, %v1025_v25  ;;  %v7922_v7 = vshrl.u32 %v15174_v5, 16 }
 0x2e3   : > { %v18385_v12 = vpop.permute.xlu0 %6752  ;;  %v2248_v37 = vsel %vm16187_vm10, 0, %v2247_v57  ;;  %v10277_v46 = vld [vmem:[#allocation2 + $0x1d8] sm:$0xff]  ;;  %v9880_v3 = vrot.slane %v9878_v21, 1  ;;  %v9203_v35 = vsel %vm17876_vm1, 0, %v9202_v31  ;;  %v15176_v45 = vld [vmem:[%s15659_s19 + $0xb0] sm:$0xff]   ;;  %v3008_v63 = vshrl.u32 %v15175_v42, 16 }
 0x2e4   : > { %v18401_v17 = vpop.permute.xlu1 %8162  ;;  %2249 = vst [vmem:[#allocation2 + $0x2a0] sm:$0x80] %v2248_v37  ;;  %v10278_v57 = vsel %vm17919_vm4, %v9874_v60, %v10277_v46  ;;  %v7925_v37 = vshll.u32 %v15174_v5, 16  ;;  %6768 = vrot.lane.b32.xlu0 %v6511_v56, %s15469_s24  ;;  %v7924_v60 = vrot.slane %v7922_v7, 7  ;;  %v3010_v5 = vshll.u32 %v15175_v42, 16  ;;  %v8363_v56 = vld [vmem:[#allocation2 + $0x260] sm:$0xff] }
 0x2e5   : > { %10279 = vst [vmem:[#allocation2 + $0x1d8] sm:$0xff] %v10278_v57  ;;  %14544 = vmatmul.mubr.msk.bf16.gmra.mrb[100].mxu1 %vm221_vm0, %v10278_v57  ;;  %v9881_v25 = vor.u32 %v9880_v3, %v9876_v9  ;;  %9204 = vst [vmem:[#allocation2 + $0x208] sm:$0x80] %v9203_v35  ;;  %v3447_v10 = vld [vmem:[#allocation2 + $0x288] sm:$0xff]  ;;  %v9883_v21 = vshrl.u32 %v15176_v45, 16  ;;  %v9885_v7 = vshll.u32 %v15176_v45, 16  ;;  %v8364_v31 = vsel %vm16606_vm8, %v18290_v53, %v8363_v56 }
 0x2e6   : > { %v1397_v26 = vld [vmem:[#allocation2 + $0x2b8] sm:$0xff]  ;;  %v7927_v57 = vor.u32 %v7925_v37, %v7924_v60  ;;  %v10476_v40 = vld [vmem:[#allocation2 + $0x248] sm:$0xff]  ;;  %v3012_v9 = vrot.slane %v3010_v5, 1  ;;  %8365 = vst [vmem:[#allocation2 + $0x260] sm:$0xff] %v8364_v31  ;;  %v9205_v5 = vld [vmem:[#allocation2 + $0x220] sm:$0x80] }
 0x2e7   : > { %v18411_v2 = vpop.permute.xlu0 %3243  ;;  %v1398_v46 = vsel %vm15906_vm6, %v1028_v19, %v1397_v26  ;;  %v5687_v26 = vld [vmem:[#allocation2 + $0x290] sm:$0x80]  ;;  %v3448_v19 = vsel %vm16474_vm15, %v18297_v55, %v3447_v10  ;;  %11162 = vmatprep.mubr.bf16.mxu0 %v10476_v40  ;;  %v15178_v37 = vld [vmem:[%s15659_s19 + $0x118] sm:$0xff]   ;;  %9100 = vst.msk [vmem:[#allocation2 + $0x260] sm:$0xff] %vm4834_vm3, %v18310_v16 }
 0x2e8   : > { %v18425_v50 = vpop.permute.xlu1 %8948  ;;  %1399 = vst [vmem:[#allocation2 + $0x2b8] sm:$0xff] %v1398_v46  ;;  %v5688_v42 = vsel %vm16435_vm13, 0, %v5687_v26  ;;  %8176 = vrot.lane.b32.xlu1 %v7927_v57, %s15471_s20  ;;  %3449 = vst [vmem:[#allocation2 + $0x288] sm:$0xff] %v3448_v19  ;;  %11163 = vmatmul.mubr.bf16.gmra.mrb[96].mxu0 %v18390_v36  ;;  %v4440_v55 = vshrl.u32 %v15178_v37, 16  ;;  %v4443_v35 = vshll.u32 %v15178_v37, 16  ;;  %v4911_v46 = vld [vmem:[#allocation2 + $0x258] sm:$0xff] }
 0x2e9   : > { %v7162_v18 = vld [vmem:[#allocation2 + $0x278] sm:$0x1]  ;;  %2128 = vst.msk [vmem:[#allocation2 + $0x2b8] sm:$0xff] %vm20333_vm9, %v18268_v34  ;;  %v10280_v60 = vld [vmem:[#allocation2 + $0x1f0] sm:$0xff]  ;;  %v9887_v34 = vrot.slane %v9885_v7, 1  ;;  %v18460_v36 = vpop.f32.mrb[36].mxu0 }
 0x2ea   : > { %v7163_v53 = vsel %vm16520_vm12, 0, %v7162_v18  ;;  %5689 = vst [vmem:[#allocation2 + $0x290] sm:$0x80] %v5688_v42  ;;  %v10281_v40 = vsel %vm17919_vm4, %v9881_v25, %v10280_v60  ;;  %v3013_v18 = vor.u32 %v3012_v9, %v3008_v63  ;;  %20335 = vst [vmem:[#allocation38_spill] sm:$0xff] %v18460_v36  ;;  %v4442_v16 = vrot.slane %v4440_v55, 7  ;;  %v15179_v10 = vld [vmem:[%s15659_s19 + $0xb8] sm:$0xff]  }
 0x2eb   : > { %v18433_v51 = vpop.permute.xlu0 %4696  ;;  %7164 = vst [vmem:[#allocation2 + $0x278] sm:$0x1] %v7163_v53  ;;  %10282 = vst [vmem:[#allocation2 + $0x1f0] sm:$0xff] %v10281_v40  ;;  %14547 = vmatprep.mubr.msk.bf16.mxu1 %vm221_vm0, %v10281_v40  ;;  %v9888_v45 = vor.u32 %v9887_v34, %v9883_v21  ;;  %v18468_v25 = vsel %vm16689_vm11, %v18315_v28, %v4911_v46  ;;  %v9206_v63 = vsel %vm17876_vm1, 0, %v9205_v5  ;;  %v15180_v57 = vld [vmem:[%s15659_s19 + $0x138] sm:$0xff]   ;;  %v11046_v7 = vpop.f32.mrb[37].mxu0 }
 0x2ec   : > { %v18447_v3 = vpop.permute.xlu1 %3245  ;;  %3257 = vrot.lane.b32.xlu0 %v3013_v18, %s15471_s20  ;;  %v10283_v21 = vld [vmem:[#allocation2 + $0x208] sm:$0xff]  ;;  %8962 = vrot.lane.b32.xlu1 %v15177_v43, %s15472_s22  ;;  %4913 = vst [vmem:[#allocation2 + $0x258] sm:$0xff] %v18468_v25  ;;  %9207 = vst [vmem:[#allocation2 + $0x220] sm:$0x80] %v9206_v63  ;;  %v4445_v26 = vor.u32 %v4443_v35, %v4442_v16  ;;  %v9890_v28 = vshrl.u32 %v15179_v10, 16  ;;  %v9892_v9 = vshll.u32 %v15179_v10, 16 }
 0x2ed   : > { %v10284_v31 = vsel %vm17919_vm4, %v9888_v45, %v10283_v21  ;;  %v15181_v53 = vld [vmem:[%s15659_s19 + $0x130] sm:$0xff]   ;;  %v9208_v42 = vld [vmem:[#allocation2 + $0x238] sm:$0x80]  ;;  %v18482_v43 = vpop.f32.mrb[38].mxu0  ;;  %v15182_v55 = vld [vmem:[%s15659_s19 + $0xc0] sm:$0xff]  }
 0x2ee   : > { %10285 = vst [vmem:[#allocation2 + $0x208] sm:$0xff] %v10284_v31  ;;  %14548 = vmatmul.mubr.msk.bf16.gmra.mrb[104].mxu1 %vm221_vm0, %v10284_v31  ;;  %20336 = vst [vmem:[#allocation39_spill] sm:$0xff] %v18482_v43  ;;  %v9894_v40 = vrot.slane %v9892_v9, 1  ;;  %v9209_v18 = vsel %vm17876_vm1, 0, %v9208_v42  ;;  %v6513_v46 = vshrl.u32 %v15181_v53, 16  ;;  %v6515_v5 = vshll.u32 %v15181_v53, 16 }
 0x2ef   : > { %v18462_v56 = vpop.permute.xlu0 %6754  ;;  %v3635_v34 = vld [vmem:[#allocation2 + $0x288] sm:$0x1]  ;;  %9210 = vst [vmem:[#allocation2 + $0x238] sm:$0x80] %v9209_v18  ;;  %v9897_v21 = vshrl.u32 %v15182_v55, 16  ;;  %v9899_v7 = vshll.u32 %v15182_v55, 16 }
 0x2f0   : > { %v2250_v37 = vld [vmem:[#allocation2 + $0x2b8] sm:$0x80]  ;;  %4712 = vrot.lane.b32.xlu0 %v4445_v26, %s15472_s22  ;;  %v3636_v45 = vsel %vm16542_vm2, 0, %v3635_v34  ;;  %1995 = vrot.lane.b32.xlu1 %v15180_v57, %s15469_s24  ;;  %v9895_v10 = vor.u32 %v9894_v40, %v9890_v28  ;;  %v314_v31 = vld [vmem:[#allocation2 + $0x2d0] sm:$0x1]  ;;  %v6517_v26 = vrot.slane %v6515_v5, 1 }
 0x2f1   : > { %v18478_v19 = vpop.permute.xlu1 %4698  ;;  %v2251_v60 = vsel %vm16187_vm10, 0, %v2250_v37  ;;  %v6969_v35 = vld [vmem:[#allocation2 + $0x290] sm:$0xff]  ;;  %3637 = vst [vmem:[#allocation2 + $0x288] sm:$0x1] %v3636_v45  ;;  %v315_v57 = vsel %vm15873_vm5, 0, %v314_v31  ;;  %v9901_v37 = vrot.slane %v9899_v7, 1 }
 0x2f2   : > { %2252 = vst [vmem:[#allocation2 + $0x2b8] sm:$0x80] %v2251_v60  ;;  %v6970_v63 = vsel %vm16456_vm14, %v18274_v24, %v6969_v35  ;;  %316 = vst [vmem:[#allocation2 + $0x2d0] sm:$0x1] %v315_v57  ;;  %v15183_v53 = vld [vmem:[%s15659_s19 + $0xe8] sm:$0xff]   ;;  %v11049_v42 = vpop.f32.mrb[39].mxu0  ;;  %v6518_v28 = vor.u32 %v6517_v26, %v6513_v46 }
 0x2f3   : > { %v18493_v16 = vpop.permute.xlu0 %8164  ;;  %6971 = vst [vmem:[#allocation2 + $0x290] sm:$0xff] %v6970_v63  ;;  %v10286_v9 = vld [vmem:[#allocation2 + $0x220] sm:$0xff]  ;;  %v18506_v40 = vpop.f32.mrb[36].mxu1  ;;  %v9902_v18 = vor.u32 %v9901_v37, %v9897_v21  ;;  %v1030_v55 = vshrl.u32 %v15183_v53, 16  ;;  %v1033_v35 = vshll.u32 %v15183_v53, 16  ;;  %v15185_v45 = vld [vmem:[%s15659_s19 + $0x128] sm:$0xff]  }
 0x2f4   : > { %v10287_v24 = vsel %vm17919_vm4, %v9895_v10, %v10286_v9  ;;  %v15184_v34 = vld [vmem:[%s15659_s19 + $0xe0] sm:$0xff]   ;;  %20337 = vst [vmem:[#allocation40_spill] sm:$0xff] %v18506_v40  ;;  %v15186_v5 = vld [vmem:[%s15659_s19 + $0x128] sm:$0xff]   ;;  %6770 = vrot.lane.b32.xlu0 %v6518_v28, %s15469_s24  ;;  %v8366_v63 = vld [vmem:[#allocation2 + $0x278] sm:$0xff]  ;;  %v11430_v7 = vpop.f32.mrb[37].mxu1  ;;  %v7929_v26 = vshrl.u32 %v15185_v45, 16 }
 0x2f5   : > { %v18501_v60 = vpop.permute.xlu1 %1981  ;;  %10288 = vst [vmem:[#allocation2 + $0x220] sm:$0xff] %v10287_v24  ;;  %14551 = vmatprep.mubr.msk.bf16.mxu1 %vm221_vm0, %v10287_v24  ;;  %5568 = vst.msk [vmem:[#allocation2 + $0x2a8] sm:$0xff] %vm221_vm0, %v15184_v34  ;;  %v1032_v10 = vrot.slane %v1030_v55, 7  ;;  %v7932_v57 = vshll.u32 %v15185_v45, 16  ;;  %v3015_v9 = vshrl.u32 %v15186_v5, 16  ;;  %v3450_v42 = vld [vmem:[#allocation2 + $0x2a0] sm:$0xff]  ;;  %v8367_v53 = vsel %vm16606_vm8, %v18343_v41, %v8366_v63 }
 0x2f6   : > { %v10289_v46 = vld [vmem:[#allocation2 + $0x238] sm:$0xff]  ;;  %v3017_v37 = vshll.u32 %v15186_v5, 16  ;;  %v3451_v24 = vsel %vm16474_vm15, %v18347_v6, %v3450_v42  ;;  %v10479_v28 = vld [vmem:[#allocation2 + $0x260] sm:$0xff]  ;;  %v9211_v34 = vld [vmem:[#allocation2 + $0x250] sm:$0x80]  ;;  %v7931_v7 = vrot.slane %v7929_v26, 7 }
 0x2f7   : > { %v18513_v31 = vpop.permute.xlu0 %8950  ;;  %v10290_v21 = vsel %vm17919_vm4, %v9902_v18, %v10289_v46  ;;  %v1035_v45 = vor.u32 %v1033_v35, %v1032_v10  ;;  %8368 = vst [vmem:[#allocation2 + $0x278] sm:$0xff] %v8367_v53  ;;  %3452 = vst [vmem:[#allocation2 + $0x2a0] sm:$0xff] %v3451_v24  ;;  %11170 = vmatprep.mubr.bf16.mxu0 %v10479_v28  ;;  %v9212_v41 = vsel %vm17876_vm1, 0, %v9211_v34  ;;  %v15187_v46 = vld [vmem:[%s15659_s19 + $0xc8] sm:$0xff]   ;;  %v18537_v42 = vpop.f32.mrb[38].mxu1  ;;  %v15190_v28 = vld [vmem:[%s15659_s19 + $0xd0] sm:$0xff]  }
 0x2f8   : > { %10291 = vst [vmem:[#allocation2 + $0x238] sm:$0xff] %v10290_v21  ;;  %14552 = vmatmul.mubr.msk.bf16.gmra.mrb[108].mxu1 %vm221_vm0, %v10290_v21  ;;  %v3019_v63 = vrot.slane %v3017_v37, 1  ;;  %9213 = vst [vmem:[#allocation2 + $0x250] sm:$0x80] %v9212_v41  ;;  %11171 = vmatmul.mubr.bf16.gmra.mrb[100].mxu0 %v18468_v25  ;;  %v7934_v10 = vor.u32 %v7932_v57, %v7931_v7  ;;  %v15188_v26 = vld [vmem:[%s15659_s19 + $0x128] sm:$0xff]   ;;  %v9904_v53 = vshrl.u32 %v15187_v46, 16 }
 0x2f9   : > { %v1400_v5 = vld [vmem:[#allocation2 + $0x2d0] sm:$0xff]  ;;  %9101 = vst.msk [vmem:[#allocation2 + $0x278] sm:$0xff] %vm4834_vm3, %v18363_v0  ;;  %20338 = vst [vmem:[#allocation41_spill] sm:$0xff] %v18537_v42  ;;  %v9906_v24 = vshll.u32 %v15187_v46, 16  ;;  %v15189_v37 = vld [vmem:[%s15659_s19 + $0x120] sm:$0xff]   ;;  %v9911_v41 = vshrl.u32 %v15190_v28, 16 }
 0x2fa   : > { %v7165_v55 = vld [vmem:[#allocation2 + $0x290] sm:$0x1]  ;;  %v1401_v35 = vsel %vm15906_vm6, %v1035_v45, %v1400_v5  ;;  %v3020_v21 = vor.u32 %v3019_v63, %v3015_v9  ;;  %8178 = vrot.lane.b32.xlu1 %v7934_v10, %s15471_s20  ;;  %v9214_v25 = vld [vmem:[#allocation2 + $0x268] sm:$0x80]  ;;  %v4450_v45 = vshll.u32 %v15189_v37, 16 }
 0x2fb   : > { %v7166_v6 = vsel %vm16520_vm12, 0, %v7165_v55  ;;  %1402 = vst [vmem:[#allocation2 + $0x2d0] sm:$0xff] %v1401_v35  ;;  %v9908_v9 = vrot.slane %v9906_v24, 1  ;;  %v4447_v55 = vshrl.u32 %v15189_v37, 16  ;;  %v9215_v7 = vsel %vm17876_vm1, 0, %v9214_v25 }
 0x2fc   : > { %v18526_v18 = vpop.permute.xlu1 %8166  ;;  %7167 = vst [vmem:[#allocation2 + $0x290] sm:$0x1] %v7166_v6  ;;  %2129 = vst.msk [vmem:[#allocation2 + $0x2d0] sm:$0xff] %vm20333_vm9, %v18323_v44  ;;  %v5690_v0 = vld [vmem:[#allocation2 + $0x2a8] sm:$0x80]  ;;  %3259 = vrot.lane.b32.xlu0 %v3020_v21, %s15471_s20  ;;  %v9913_v44 = vshll.u32 %v15190_v28, 16 }
 0x2fd   : > { %v5691_v57 = vsel %vm16435_vm13, 0, %v5690_v0  ;;  %v4914_v6 = vld [vmem:[#allocation2 + $0x270] sm:$0xff]  ;;  %v9909_v46 = vor.u32 %v9908_v9, %v9904_v53  ;;  %v4449_v35 = vrot.slane %v4447_v55, 7  ;;  %9216 = vst [vmem:[#allocation2 + $0x268] sm:$0x80] %v9215_v7  ;;  %v15191_v21 = vld [vmem:[%s15659_s19 + $0x140] sm:$0xff]  }
 0x2fe   : > { %5692 = vst [vmem:[#allocation2 + $0x2a8] sm:$0x80] %v5691_v57  ;;  %v3638_v63 = vld [vmem:[#allocation2 + $0x2a0] sm:$0x1]  ;;  %v18556_v10 = vsel %vm16689_vm11, %v18368_v61, %v4914_v6  ;;  %8964 = vrot.lane.b32.xlu1 %v15188_v26, %s15472_s22  ;;  %v9915_v28 = vrot.slane %v9913_v44, 1  ;;  %v15192_v0 = vld [vmem:[%s15659_s19 + $0x138] sm:$0xff]  }
 0x2ff   : > { %v3639_v24 = vsel %vm16542_vm2, 0, %v3638_v63  ;;  %v10292_v37 = vld [vmem:[#allocation2 + $0x250] sm:$0xff]  ;;  %4916 = vst [vmem:[#allocation2 + $0x270] sm:$0xff] %v18556_v10  ;;  %v4452_v25 = vor.u32 %v4450_v45, %v4449_v35  ;;  %v317_v57 = vld [vmem:[#allocation2 + $0x2e8] sm:$0x1]  ;;  %v6520_v9 = vshrl.u32 %v15192_v0, 16 }
 0x300   : > { %v18541_v34 = vpop.permute.xlu0 %3247  ;;  %v18551_v5 = vpop.permute.xlu1 %8952  ;;  %3640 = vst [vmem:[#allocation2 + $0x2a0] sm:$0x1] %v3639_v24  ;;  %v10293_v53 = vsel %vm17919_vm4, %v9909_v46, %v10292_v37  ;;  %v6522_v55 = vshll.u32 %v15192_v0, 16  ;;  %v318_v26 = vsel %vm15873_vm5, 0, %v317_v57  ;;  %v15193_v7 = vld [vmem:[%s15659_s19 + $0xf0] sm:$0xff]   ;;  %v9916_v6 = vor.u32 %v9915_v28, %v9911_v41  ;;  %v15194_v24 = vld [vmem:[%s15659_s19 + $0xe8] sm:$0xff]  }
 0x301   : > { %10294 = vst [vmem:[#allocation2 + $0x250] sm:$0xff] %v10293_v53  ;;  %14555 = vmatprep.mubr.msk.bf16.mxu1 %vm221_vm0, %v10293_v53  ;;  %4714 = vrot.lane.b32.xlu0 %v4452_v25, %s15472_s22  ;;  %319 = vst [vmem:[#allocation2 + $0x2e8] sm:$0x1] %v318_v26  ;;  %v1037_v46 = vshrl.u32 %v15193_v7, 16  ;;  %v1040_v35 = vshll.u32 %v15193_v7, 16  ;;  %v11433_v37 = vpop.f32.mrb[39].mxu1 }
 0x302   : > { %1997 = vrot.lane.b32.xlu1 %v15191_v21, %s15469_s24  ;;  %v6524_v63 = vrot.slane %v6522_v55, 1  ;;  %v9217_v57 = vld [vmem:[#allocation2 + $0x280] sm:$0x80]  ;;  %v18579_v25 = vpop.f32.mrb[40].mxu0  ;;  %5569 = vst.msk [vmem:[#allocation2 + $0x2c0] sm:$0xff] %vm221_vm0, %v15194_v24  ;;  %v15195_v7 = vld [vmem:[%s15659_s19 + $0xd8] sm:$0xff]  }
 0x303   : > { %v2253_v44 = vld [vmem:[#allocation2 + $0x2d0] sm:$0x80]  ;;  %20339 = vst [vmem:[#allocation42_spill] sm:$0xff] %v18579_v25  ;;  %v1039_v55 = vrot.slane %v1037_v46, 7  ;;  %v9218_v26 = vsel %vm17876_vm1, 0, %v9217_v57  ;;  %v11054_v37 = vpop.f32.mrb[41].mxu0 }
 0x304   : > { %v18566_v61 = vpop.permute.xlu0 %4700  ;;  %v2254_v45 = vsel %vm16187_vm10, 0, %v2253_v44  ;;  %v18577_v0 = vpop.permute.xlu1 %1983  ;;  %v10295_v28 = vld [vmem:[#allocation2 + $0x268] sm:$0xff]  ;;  %v6525_v21 = vor.u32 %v6524_v63, %v6520_v9  ;;  %9219 = vst [vmem:[#allocation2 + $0x280] sm:$0x80] %v9218_v26  ;;  %v9918_v9 = vshrl.u32 %v15195_v7, 16  ;;  %v9920_v63 = vshll.u32 %v15195_v7, 16 }
 0x305   : > { %2255 = vst [vmem:[#allocation2 + $0x2d0] sm:$0x80] %v2254_v45  ;;  %v6972_v53 = vld [vmem:[#allocation2 + $0x2a8] sm:$0xff]  ;;  %v10296_v44 = vsel %vm17919_vm4, %v9916_v6, %v10295_v28  ;;  %v15196_v45 = vld [vmem:[%s15659_s19 + $0x130] sm:$0xff]   ;;  %v9220_v57 = vld [vmem:[#allocation2 + $0x298] sm:$0x80] }
 0x306   : > { %v6973_v41 = vsel %vm16456_vm14, %v18331_v14, %v6972_v53  ;;  %10297 = vst [vmem:[#allocation2 + $0x268] sm:$0xff] %v10296_v44  ;;  %14556 = vmatmul.mubr.msk.bf16.gmra.mrb[112].mxu1 %vm221_vm0, %v10296_v44  ;;  %6772 = vrot.lane.b32.xlu0 %v6525_v21, %s15469_s24  ;;  %v1042_v14 = vor.u32 %v1040_v35, %v1039_v55  ;;  %v7936_v46 = vshrl.u32 %v15196_v45, 16  ;;  %v7939_v24 = vshll.u32 %v15196_v45, 16  ;;  %v15197_v53 = vld [vmem:[%s15659_s19 + $0x130] sm:$0xff]   ;;  %v10482_v43 = vld [vmem:[#allocation2 + $0x278] sm:$0xff] }
 0x307   : > { %6974 = vst [vmem:[#allocation2 + $0x2a8] sm:$0xff] %v6973_v41  ;;  %v15198_v41 = vld [vmem:[%s15659_s19 + $0xe0] sm:$0xff]   ;;  %v9922_v6 = vrot.slane %v9920_v63, 1  ;;  %v9221_v28 = vsel %vm17876_vm1, 0, %v9220_v57  ;;  %v3022_v21 = vshrl.u32 %v15197_v53, 16  ;;  %v3024_v35 = vshll.u32 %v15197_v53, 16  ;;  %11178 = vmatprep.mubr.bf16.mxu0 %v10482_v43 }
 0x308   : > { %v1403_v40 = vld [vmem:[#allocation2 + $0x2e8] sm:$0xff]  ;;  %v7938_v37 = vrot.slane %v7936_v46, 7  ;;  %9222 = vst [vmem:[#allocation2 + $0x298] sm:$0x80] %v9221_v28  ;;  %v8369_v55 = vld [vmem:[#allocation2 + $0x290] sm:$0xff]  ;;  %v9925_v45 = vshrl.u32 %v15198_v41, 16  ;;  %11179 = vmatmul.mubr.bf16.gmra.mrb[104].mxu0 %v18556_v10 }
 0x309   : > { %v18591_v42 = vpop.permute.xlu0 %6758  ;;  %v1404_v44 = vsel %vm15906_vm6, %v1042_v14, %v1403_v40  ;;  %v9923_v7 = vor.u32 %v9922_v6, %v9918_v9  ;;  %v9927_v25 = vshll.u32 %v15198_v41, 16  ;;  %v8370_v63 = vsel %vm16606_vm8, %v18401_v17, %v8369_v55  ;;  %v3453_v57 = vld [vmem:[#allocation2 + $0x2b8] sm:$0xff]  ;;  %v5693_v40 = vld [vmem:[#allocation2 + $0x2c0] sm:$0x80]  ;;  %v15199_v9 = vld [vmem:[%s15659_s19 + $0x130] sm:$0xff]  }
 0x30a   : > { %1405 = vst [vmem:[#allocation2 + $0x2e8] sm:$0xff] %v1404_v44  ;;  %v7941_v14 = vor.u32 %v7939_v24, %v7938_v37  ;;  %v3026_v46 = vrot.slane %v3024_v35, 1  ;;  %8371 = vst [vmem:[#allocation2 + $0x290] sm:$0xff] %v8370_v63  ;;  %v3454_v53 = vsel %vm16474_vm15, %v18411_v2, %v3453_v57  ;;  %v15200_v41 = vld [vmem:[%s15659_s19 + $0x128] sm:$0xff]   ;;  %v5694_v17 = vsel %vm16435_vm13, 0, %v5693_v40 }
 0x30b   : > { %2130 = vst.msk [vmem:[#allocation2 + $0x2e8] sm:$0xff] %vm20333_vm9, %v18381_v4  ;;  %v10298_v44 = vld [vmem:[#allocation2 + $0x280] sm:$0xff]  ;;  %v9929_v55 = vrot.slane %v9927_v25, 1  ;;  %3455 = vst [vmem:[#allocation2 + $0x2b8] sm:$0xff] %v3454_v53  ;;  %v4917_v4 = vld [vmem:[#allocation2 + $0x288] sm:$0xff]  ;;  %v4454_v37 = vshrl.u32 %v15200_v41, 16 }
 0x30c   : > { %9102 = vst.msk [vmem:[#allocation2 + $0x290] sm:$0xff] %vm4834_vm3, %v18425_v50  ;;  %5695 = vst [vmem:[#allocation2 + $0x2c0] sm:$0x80] %v5694_v17  ;;  %v10299_v43 = vsel %vm17919_vm4, %v9923_v7, %v10298_v44  ;;  %8180 = vrot.lane.b32.xlu1 %v7941_v14, %s15471_s20  ;;  %v3027_v24 = vor.u32 %v3026_v46, %v3022_v21  ;;  %v4457_v25 = vshll.u32 %v15200_v41, 16  ;;  %v9223_v35 = vld [vmem:[#allocation2 + $0x2b0] sm:$0x80] }
 0x30d   : > { %10300 = vst [vmem:[#allocation2 + $0x280] sm:$0xff] %v10299_v43  ;;  %14559 = vmatprep.mubr.msk.bf16.mxu1 %vm221_vm0, %v10299_v43  ;;  %v9930_v10 = vor.u32 %v9929_v55, %v9925_v45  ;;  %v18629_v50 = vsel %vm16689_vm11, %v18433_v51, %v4917_v4  ;;  %v15201_v63 = vld [vmem:[%s15659_s19 + $0xe8] sm:$0xff]   ;;  %v4456_v21 = vrot.slane %v4454_v37, 7  ;;  %v9224_v57 = vsel %vm17876_vm1, 0, %v9223_v35  ;;  %v15203_v41 = vld [vmem:[%s15659_s19 + $0x140] sm:$0xff]  }
 0x30e   : > { %v18599_v26 = vpop.permute.xlu1 %4702  ;;  %v7168_v28 = vld [vmem:[#allocation2 + $0x2a8] sm:$0x1]  ;;  %3261 = vrot.lane.b32.xlu0 %v3027_v24, %s15471_s20  ;;  %4919 = vst [vmem:[#allocation2 + $0x288] sm:$0xff] %v18629_v50  ;;  %9225 = vst [vmem:[#allocation2 + $0x2b0] sm:$0x80] %v9224_v57  ;;  %v9932_v40 = vshrl.u32 %v15201_v63, 16 }
 0x30f   : > { %v18613_v6 = vpop.permute.xlu0 %8168  ;;  %v7169_v2 = vsel %vm16520_vm12, 0, %v7168_v28  ;;  %v10301_v45 = vld [vmem:[#allocation2 + $0x298] sm:$0xff]  ;;  %v9934_v14 = vshll.u32 %v15201_v63, 16  ;;  %v15202_v51 = vld [vmem:[%s15659_s19 + $0x148] sm:$0xff]   ;;  %v4459_v53 = vor.u32 %v4457_v25, %v4456_v21  ;;  %v18643_v28 = vpop.f32.mrb[42].mxu0  ;;  %v6529_v37 = vshll.u32 %v15203_v41, 16 }
 0x310   : > { %7170 = vst [vmem:[#allocation2 + $0x2a8] sm:$0x1] %v7169_v2  ;;  %v10302_v46 = vsel %vm17919_vm4, %v9930_v10, %v10301_v45  ;;  %8966 = vrot.lane.b32.xlu1 %v15199_v9, %s15472_s22  ;;  %20340 = vst [vmem:[#allocation43_spill] sm:$0xff] %v18643_v28  ;;  %v9226_v4 = vld [vmem:[#allocation2 + $0x2c8] sm:$0x80]  ;;  %v15204_v2 = vld [vmem:[%s15659_s19 + $0xf0] sm:$0xff]  }
 0x311   : > { %10303 = vst [vmem:[#allocation2 + $0x298] sm:$0xff] %v10302_v46  ;;  %14560 = vmatmul.mubr.msk.bf16.gmra.mrb[116].mxu1 %vm221_vm0, %v10302_v46  ;;  %v9936_v55 = vrot.slane %v9934_v14, 1  ;;  %v6527_v9 = vshrl.u32 %v15203_v41, 16  ;;  %v9227_v10 = vsel %vm17876_vm1, 0, %v9226_v4  ;;  %v6531_v45 = vrot.slane %v6529_v37, 1  ;;  %v15205_v41 = vld [vmem:[%s15659_s19 + $0xf0] sm:$0xff]  }
 0x312   : > { %v2256_v44 = vld [vmem:[#allocation2 + $0x2e8] sm:$0x80]  ;;  %v3641_v24 = vld [vmem:[#allocation2 + $0x2b8] sm:$0x1]  ;;  %4716 = vrot.lane.b32.xlu0 %v4459_v53, %s15472_s22  ;;  %9228 = vst [vmem:[#allocation2 + $0x2c8] sm:$0x80] %v9227_v10 }
 0x313   : > { %v18632_v7 = vpop.permute.xlu1 %6760  ;;  %v2257_v43 = vsel %vm16187_vm10, 0, %v2256_v44  ;;  %v6975_v25 = vld [vmem:[#allocation2 + $0x2c0] sm:$0xff]  ;;  %v3642_v35 = vsel %vm16542_vm2, 0, %v3641_v24  ;;  %v9937_v63 = vor.u32 %v9936_v55, %v9932_v40  ;;  %v9939_v14 = vshrl.u32 %v15204_v2, 16  ;;  %v3456_v53 = vld [vmem:[#allocation2 + $0x2d0] sm:$0xff]  ;;  %v11057_v44 = vpop.f32.mrb[43].mxu0 }
 0x314   : > { %v18645_v17 = vpop.permute.xlu0 %8954  ;;  %2258 = vst [vmem:[#allocation2 + $0x2e8] sm:$0x80] %v2257_v43  ;;  %v6976_v57 = vsel %vm16456_vm14, %v18385_v12, %v6975_v25  ;;  %3643 = vst [vmem:[#allocation2 + $0x2b8] sm:$0x1] %v3642_v35  ;;  %1999 = vrot.lane.b32.xlu1 %v15202_v51, %s15469_s24  ;;  %v9941_v46 = vshll.u32 %v15204_v2, 16  ;;  %v3457_v40 = vsel %vm16474_vm15, %v18447_v3, %v3456_v53  ;;  %v15206_v12 = vld [vmem:[%s15659_s19 + $0x138] sm:$0xff]  }
 0x315   : > { %6977 = vst [vmem:[#allocation2 + $0x2c0] sm:$0xff] %v6976_v57  ;;  %v10304_v55 = vld [vmem:[#allocation2 + $0x2b0] sm:$0xff]  ;;  %v6532_v4 = vor.u32 %v6531_v45, %v6527_v9  ;;  %3458 = vst [vmem:[#allocation2 + $0x2d0] sm:$0xff] %v3457_v40  ;;  %v18667_v24 = vpop.f32.mrb[40].mxu1  ;;  %v15207_v37 = vld [vmem:[%s15659_s19 + $0x138] sm:$0xff]   ;;  %v7943_v9 = vshrl.u32 %v15206_v12, 16 }
 0x316   : > { %v9943_v43 = vrot.slane %v9941_v46, 1  ;;  %20341 = vst [vmem:[#allocation44_spill] sm:$0xff] %v18667_v24  ;;  %v10305_v2 = vsel %vm17919_vm4, %v9937_v63, %v10304_v55  ;;  %5570 = vst.msk [vmem:[#allocation2 + $0x2d8] sm:$0xff] %vm221_vm0, %v15205_v41  ;;  %v11438_v10 = vpop.f32.mrb[41].mxu1  ;;  %v7946_v25 = vshll.u32 %v15206_v12, 16  ;;  %v4920_v35 = vld [vmem:[#allocation2 + $0x2a0] sm:$0xff] }
 0x317   : > { %10306 = vst [vmem:[#allocation2 + $0x2b0] sm:$0xff] %v10305_v2  ;;  %14563 = vmatprep.mubr.msk.bf16.mxu1 %vm221_vm0, %v10305_v2  ;;  %6774 = vrot.lane.b32.xlu0 %v6532_v4, %s15469_s24  ;;  %v8372_v57 = vld [vmem:[#allocation2 + $0x2a8] sm:$0xff]  ;;  %v10485_v45 = vld [vmem:[#allocation2 + $0x290] sm:$0xff]  ;;  %v18677_v46 = vpop.f32.mrb[42].mxu1  ;;  %v3029_v53 = vshrl.u32 %v15207_v37, 16  ;;  %v3031_v63 = vshll.u32 %v15207_v37, 16  ;;  %v18682_v40 = vsel %vm16689_vm11, %v18478_v19, %v4920_v35 }
 0x318   : > { %v18669_v51 = vpop.permute.xlu0 %1985  ;;  %v9944_v3 = vor.u32 %v9943_v43, %v9939_v14  ;;  %20342 = vst [vmem:[#allocation45_spill] sm:$0xff] %v18677_v46  ;;  %v8373_v41 = vsel %vm16606_vm8, %v18493_v16, %v8372_v57  ;;  %11186 = vmatprep.mubr.bf16.mxu0 %v10485_v45  ;;  %v9229_v14 = vld [vmem:[#allocation2 + $0x2e0] sm:$0x80]  ;;  %v7945_v4 = vrot.slane %v7943_v9, 7  ;;  %4922 = vst [vmem:[#allocation2 + $0x2a0] sm:$0xff] %v18682_v40  ;;  %v15208_v12 = vld [vmem:[%s15659_s19 + $0xf8] sm:$0xff]  }
 0x319   : > { %v18656_v21 = vpop.permute.xlu1 %6756  ;;  %v10307_v55 = vld [vmem:[#allocation2 + $0x2c8] sm:$0xff]  ;;  %8374 = vst [vmem:[#allocation2 + $0x2a8] sm:$0xff] %v8373_v41  ;;  %v9230_v43 = vsel %vm17876_vm1, 0, %v9229_v14  ;;  %11187 = vmatmul.mubr.bf16.gmra.mrb[108].mxu0 %v18629_v50  ;;  %v3033_v16 = vrot.slane %v3031_v63, 1  ;;  %v9946_v10 = vshrl.u32 %v15208_v12, 16  ;;  %v9948_v9 = vshll.u32 %v15208_v12, 16 }
 0x31a   : > { %v10308_v19 = vsel %vm17919_vm4, %v9944_v3, %v10307_v55  ;;  %9231 = vst [vmem:[#allocation2 + $0x2e0] sm:$0x80] %v9230_v43  ;;  %9103 = vst.msk [vmem:[#allocation2 + $0x2a8] sm:$0xff] %vm4834_vm3, %v18513_v31  ;;  %v7948_v37 = vor.u32 %v7946_v25, %v7945_v4  ;;  %v15210_v45 = vld [vmem:[%s15659_s19 + $0x130] sm:$0xff]   ;;  %v15209_v14 = vld [vmem:[%s15659_s19 + $0x138] sm:$0xff]   ;;  %v11441_v12 = vpop.f32.mrb[43].mxu1 }
 0x31b   : > { %10309 = vst [vmem:[#allocation2 + $0x2c8] sm:$0xff] %v10308_v19  ;;  %14564 = vmatmul.mubr.msk.bf16.gmra.mrb[120].mxu1 %vm221_vm0, %v10308_v19  ;;  %v3034_v57 = vor.u32 %v3033_v16, %v3029_v53  ;;  %v9950_v41 = vrot.slane %v9948_v9, 1  ;;  %v15211_v25 = vld [vmem:[%s15659_s19 + $0x100] sm:$0xff]   ;;  %v4461_v4 = vshrl.u32 %v15210_v45, 16  ;;  %v4464_v53 = vshll.u32 %v15210_v45, 16  ;;  %v15212_v45 = vld [vmem:[%s15659_s19 + $0x150] sm:$0xff]  }
 0x31c   : > { %v7171_v2 = vld [vmem:[#allocation2 + $0x2c0] sm:$0x1]  ;;  %v3644_v3 = vld [vmem:[#allocation2 + $0x2d0] sm:$0x1]  ;;  %8182 = vrot.lane.b32.xlu1 %v7948_v37, %s15471_s20  ;;  %v320_v43 = vld [vmem:[#allocation2 + $0x318] sm:$0x1] }
 0x31d   : > { %v18687_v44 = vpop.permute.xlu1 %4704  ;;  %v7172_v50 = vsel %vm16520_vm12, 0, %v7171_v2  ;;  %v3645_v31 = vsel %vm16542_vm2, 0, %v3644_v3  ;;  %v5696_v63 = vld [vmem:[#allocation2 + $0x2d8] sm:$0x80]  ;;  %3263 = vrot.lane.b32.xlu0 %v3034_v57, %s15471_s20  ;;  %v9951_v16 = vor.u32 %v9950_v41, %v9946_v10  ;;  %v321_v37 = vsel %vm15873_vm5, 0, %v320_v43  ;;  %v3459_v43 = vld [vmem:[#allocation2 + $0x2e8] sm:$0xff] }
 0x31e   : > { %7173 = vst [vmem:[#allocation2 + $0x2c0] sm:$0x1] %v7172_v50  ;;  %3646 = vst [vmem:[#allocation2 + $0x2d0] sm:$0x1] %v3645_v31  ;;  %v5697_v55 = vsel %vm16435_vm13, 0, %v5696_v63  ;;  %v10498_v2 = vld [vmem:[#allocation2 + $0x2f8] sm:$0xff] }
 0x31f   : > { %5698 = vst [vmem:[#allocation2 + $0x2d8] sm:$0x80] %v5697_v55  ;;  %v1044_v9 = vshrl.u32 %v15211_v25, 16  ;;  %v4463_v50 = vrot.slane %v4461_v4, 7  ;;  %322 = vst [vmem:[#allocation2 + $0x318] sm:$0x1] %v321_v37 }
 0x320   : > { %v18699_v35 = vpop.permute.xlu0 %3249  ;;  %v1047_v3 = vshll.u32 %v15211_v25, 16  ;;  %8968 = vrot.lane.b32.xlu1 %v15209_v14, %s15472_s22  ;;  %v18718_v63 = vpop.f32.mrb[44].mxu0  ;;  %v15213_v55 = vld [vmem:[%s15659_s19 + $0x148] sm:$0xff]   ;;  %v3460_v14 = vsel %vm16474_vm15, %v18541_v34, %v3459_v43  ;;  %v9232_v25 = vld [vmem:[#allocation2 + $0x310] sm:$0x80]  ;;  %v15216_v43 = vld [vmem:[%s15659_s19 + $0x140] sm:$0xff]  }
 0x321   : > { %v18712_v19 = vpop.permute.xlu1 %1987  ;;  %v10310_v31 = vld [vmem:[#allocation2 + $0x2e0] sm:$0xff]  ;;  %v1046_v57 = vrot.slane %v1044_v9, 7  ;;  %20343 = vst [vmem:[#allocation46_spill] sm:$0xff] %v18718_v63  ;;  %v4466_v41 = vor.u32 %v4464_v53, %v4463_v50  ;;  %v11062_v4 = vpop.f32.mrb[45].mxu0  ;;  %v6536_v9 = vshll.u32 %v15213_v55, 16  ;;  %3461 = vst [vmem:[#allocation2 + $0x2e8] sm:$0xff] %v3460_v14 }
 0x322   : > { %v10311_v10 = vsel %vm17919_vm4, %v9951_v16, %v10310_v31  ;;  %v18725_v37 = vpop.f32.mrb[44].mxu1  ;;  %v6534_v16 = vshrl.u32 %v15213_v55, 16  ;;  %v9233_v31 = vsel %vm17876_vm1, 0, %v9232_v25  ;;  %v15214_v4 = vld [vmem:[%s15659_s19 + $0x108] sm:$0xff]  }
 0x323   : > { %20344 = vst [vmem:[#allocation47_spill] sm:$0xff] %v18725_v37  ;;  %10312 = vst [vmem:[#allocation2 + $0x2e0] sm:$0xff] %v10311_v10  ;;  %14567 = vmatprep.mubr.msk.bf16.mxu1 %vm221_vm0, %v10311_v10  ;;  %4718 = vrot.lane.b32.xlu0 %v4466_v41, %s15472_s22  ;;  %v1049_v53 = vor.u32 %v1047_v3, %v1046_v57  ;;  %v15215_v10 = vld [vmem:[%s15659_s19 + $0x140] sm:$0xff]   ;;  %v6538_v3 = vrot.slane %v6536_v9, 1  ;;  %v9953_v57 = vshrl.u32 %v15214_v4, 16  ;;  %v9955_v41 = vshll.u32 %v15214_v4, 16 }
 0x324   : > { %v18720_v12 = vpop.permute.xlu0 %6762  ;;  %14568 = vmatmul.mubr.msk.bf16.gmra.mrb[124].mxu1 %vm221_vm0, %v10498_v2  ;;  %2001 = vrot.lane.b32.xlu1 %v15212_v45, %s15469_s24  ;;  %9234 = vst [vmem:[#allocation2 + $0x310] sm:$0x80] %v9233_v31  ;;  %v7950_v55 = vshrl.u32 %v15215_v10, 16  ;;  %v7953_v24 = vshll.u32 %v15215_v10, 16  ;;  %v9235_v45 = vld [vmem:[#allocation2 + $0x328] sm:$0x80] }
 0x325   : > { %v8375_v50 = vld [vmem:[#allocation2 + $0x2c0] sm:$0xff]  ;;  %v9957_v31 = vrot.slane %v9955_v41, 1  ;;  %v3038_v37 = vshll.u32 %v15216_v43, 16  ;;  %v15217_v10 = vld [vmem:[%s15659_s19 + $0x110] sm:$0xff]   ;;  %v10488_v28 = vld [vmem:[#allocation2 + $0x2a8] sm:$0xff]  ;;  %v18765_v41 = vpop.f32.mrb[46].mxu0 }
 0x326   : > { %v8376_v34 = vsel %vm16606_vm8, %v18526_v18, %v8375_v50  ;;  %v6978_v2 = vld [vmem:[#allocation2 + $0x2d8] sm:$0xff]  ;;  %v6539_v50 = vor.u32 %v6538_v3, %v6534_v16  ;;  %v7952_v4 = vrot.slane %v7950_v55, 7  ;;  %11194 = vmatprep.mubr.bf16.mxu0 %v10488_v28  ;;  %v15218_v3 = vld [vmem:[%s15659_s19 + $0x140] sm:$0xff]   ;;  %20345 = vst [vmem:[#allocation48_spill] sm:$0xff] %v18765_v41 }
 0x327   : > { %8377 = vst [vmem:[#allocation2 + $0x2c0] sm:$0xff] %v8376_v34  ;;  %v6979_v14 = vsel %vm16456_vm14, %v18462_v56, %v6978_v2  ;;  %v1406_v25 = vld [vmem:[#allocation2 + $0x318] sm:$0xff]  ;;  %v3036_v34 = vshrl.u32 %v15216_v43, 16  ;;  %v9236_v56 = vsel %vm17876_vm1, 0, %v9235_v45  ;;  %11195 = vmatmul.mubr.bf16.gmra.mrb[112].mxu0 %v18682_v40 }
 0x328   : > { %v18737_v46 = vpop.permute.xlu1 %8170  ;;  %9104 = vst.msk [vmem:[#allocation2 + $0x2c0] sm:$0xff] %vm4834_vm3, %v18551_v5  ;;  %6980 = vst [vmem:[#allocation2 + $0x2d8] sm:$0xff] %v6979_v14  ;;  %v1407_v9 = vsel %vm15906_vm6, %v1049_v53, %v1406_v25  ;;  %v4923_v2 = vld [vmem:[#allocation2 + $0x2b8] sm:$0xff]  ;;  %6776 = vrot.lane.b32.xlu0 %v6539_v50, %s15469_s24  ;;  %v9958_v5 = vor.u32 %v9957_v31, %v9953_v57  ;;  %v7955_v53 = vor.u32 %v7953_v24, %v7952_v4  ;;  %v3647_v43 = vld [vmem:[#allocation2 + $0x2e8] sm:$0x1] }
 0x329   : > { %v18749_v18 = vpop.permute.xlu0 %3251  ;;  %1408 = vst [vmem:[#allocation2 + $0x318] sm:$0xff] %v1407_v9  ;;  %9237 = vst [vmem:[#allocation2 + $0x328] sm:$0x80] %v9236_v56  ;;  %v18762_v16 = vsel %vm16689_vm11, %v18566_v61, %v4923_v2  ;;  %v3040_v14 = vrot.slane %v3038_v37, 1  ;;  %v9960_v25 = vshrl.u32 %v15217_v10, 16  ;;  %v15219_v57 = vld [vmem:[%s15659_s19 + $0x138] sm:$0xff]  }
 0x32a   : > { %2131 = vst.msk [vmem:[#allocation2 + $0x318] sm:$0xff] %vm20333_vm9, %v18501_v60  ;;  %v9962_v60 = vshll.u32 %v15217_v10, 16  ;;  %4925 = vst [vmem:[#allocation2 + $0x2b8] sm:$0xff] %v18762_v16  ;;  %v3648_v61 = vsel %vm16542_vm2, 0, %v3647_v43  ;;  %8184 = vrot.lane.b32.xlu1 %v7955_v53, %s15471_s20  ;;  %v4468_v9 = vshrl.u32 %v15219_v57, 16  ;;  %v4471_v40 = vshll.u32 %v15219_v57, 16 }
 0x32b   : > { %v10313_v28 = vld [vmem:[#allocation2 + $0x310] sm:$0xff]  ;;  %3649 = vst [vmem:[#allocation2 + $0x2e8] sm:$0x1] %v3648_v61  ;;  %v3041_v37 = vor.u32 %v3040_v14, %v3036_v34  ;;  %v15220_v56 = vld [vmem:[%s15659_s19 + $0x108] sm:$0xff]   ;;  %v15221_v10 = vld [vmem:[%s15659_s19 + $0x100] sm:$0xff]  }
 0x32c   : > { %v18767_v55 = vpop.permute.xlu1 %8956  ;;  %v10314_v24 = vsel %vm17919_vm4, %v9958_v5, %v10313_v28  ;;  %v9964_v45 = vrot.slane %v9962_v60, 1  ;;  %v323_v50 = vld [vmem:[#allocation2 + $0x330] sm:$0x1]  ;;  %v4470_v5 = vrot.slane %v4468_v9, 7  ;;  %v15222_v53 = vld [vmem:[%s15659_s19 + $0x118] sm:$0xff]   ;;  %v1051_v14 = vshrl.u32 %v15220_v56, 16 }
 0x32d   : > { %10315 = vst [vmem:[#allocation2 + $0x310] sm:$0xff] %v10314_v24  ;;  %14571 = vmatprep.mubr.msk.bf16.mxu1 %vm221_vm0, %v10314_v24  ;;  %v324_v4 = vsel %vm15873_vm5, 0, %v323_v50  ;;  %3265 = vrot.lane.b32.xlu0 %v3041_v37, %s15471_s20  ;;  %v1054_v60 = vshll.u32 %v15220_v56, 16  ;;  %5572 = vst.msk [vmem:[#allocation2 + $0x308] sm:$0xff] %vm221_vm0, %v15221_v10  ;;  %v15223_v57 = vld [vmem:[%s15659_s19 + $0x158] sm:$0xff]   ;;  %v15224_v56 = vld [vmem:[%s15659_s19 + $0x150] sm:$0xff]  }
 0x32e   : > { %v9965_v34 = vor.u32 %v9964_v45, %v9960_v25  ;;  %325 = vst [vmem:[#allocation2 + $0x330] sm:$0x1] %v324_v4  ;;  %8970 = vrot.lane.b32.xlu1 %v15218_v3, %s15472_s22  ;;  %v4473_v24 = vor.u32 %v4471_v40, %v4470_v5  ;;  %v9238_v37 = vld [vmem:[#allocation2 + $0x340] sm:$0x80]  ;;  %v9967_v45 = vshrl.u32 %v15222_v53, 16  ;;  %v1053_v50 = vrot.slane %v1051_v14, 7 }
 0x32f   : > { %v18777_v31 = vpop.permute.xlu0 %4706  ;;  %v7174_v2 = vld [vmem:[#allocation2 + $0x2d8] sm:$0x1]  ;;  %v9239_v4 = vsel %vm17876_vm1, 0, %v9238_v37  ;;  %v9969_v40 = vshll.u32 %v15222_v53, 16  ;;  %v15225_v10 = vld [vmem:[%s15659_s19 + $0x120] sm:$0xff]   ;;  %v6543_v14 = vshll.u32 %v15224_v56, 16 }
 0x330   : > { %v7175_v43 = vsel %vm16520_vm12, 0, %v7174_v2  ;;  %v18791_v61 = vpop.permute.xlu1 %1989  ;;  %v10316_v25 = vld [vmem:[#allocation2 + $0x328] sm:$0xff]  ;;  %9240 = vst [vmem:[#allocation2 + $0x340] sm:$0x80] %v9239_v4  ;;  %v1056_v5 = vor.u32 %v1054_v60, %v1053_v50  ;;  %v9976_v60 = vshll.u32 %v15225_v10, 16  ;;  %v10491_v50 = vld [vmem:[#allocation2 + $0x2c0] sm:$0xff] }
 0x331   : > { %7176 = vst [vmem:[#allocation2 + $0x2d8] sm:$0x1] %v7175_v43  ;;  %v2259_v28 = vld [vmem:[#allocation2 + $0x318] sm:$0x80]  ;;  %v10317_v3 = vsel %vm17919_vm4, %v9965_v34, %v10316_v25  ;;  %4720 = vrot.lane.b32.xlu0 %v4473_v24, %s15472_s22  ;;  %v9971_v34 = vrot.slane %v9969_v40, 1  ;;  %v6541_v43 = vshrl.u32 %v15224_v56, 16  ;;  %11202 = vmatprep.mubr.bf16.mxu0 %v10491_v50 }
 0x332   : > { %v2260_v9 = vsel %vm16187_vm10, 0, %v2259_v28  ;;  %10318 = vst [vmem:[#allocation2 + $0x328] sm:$0xff] %v10317_v3  ;;  %14572 = vmatmul.mubr.msk.bf16.gmra.mrb[128].mxu1 %vm221_vm0, %v10317_v3  ;;  %2003 = vrot.lane.b32.xlu1 %v15223_v57, %s15469_s24  ;;  %v9241_v28 = vld [vmem:[#allocation2 + $0x358] sm:$0x80]  ;;  %v9974_v25 = vshrl.u32 %v15225_v10, 16  ;;  %v6545_v41 = vrot.slane %v6543_v14, 1 }
 0x333   : > { %2261 = vst [vmem:[#allocation2 + $0x318] sm:$0x80] %v2260_v9  ;;  %v9242_v9 = vsel %vm17876_vm1, 0, %v9241_v28  ;;  %v9972_v4 = vor.u32 %v9971_v34, %v9967_v45  ;;  %v4926_v57 = vld [vmem:[#allocation2 + $0x2d0] sm:$0xff]  ;;  %v9978_v10 = vrot.slane %v9976_v60, 1  ;;  %v15226_v34 = vld [vmem:[%s15659_s19 + $0x148] sm:$0xff]   ;;  %11203 = vmatmul.mubr.bf16.gmra.mrb[116].mxu0 %v18762_v16 }
 0x334   : > { %v18803_v2 = vpop.permute.xlu0 %6764  ;;  %v5702_v24 = vld [vmem:[#allocation2 + $0x308] sm:$0x80]  ;;  %9243 = vst [vmem:[#allocation2 + $0x358] sm:$0x80] %v9242_v9  ;;  %v18817_v40 = vsel %vm16689_vm11, %v18599_v26, %v4926_v57  ;;  %v6546_v45 = vor.u32 %v6545_v41, %v6541_v43  ;;  %v11446_v9 = vpop.f32.mrb[45].mxu1 }
 0x335   : > { %v1409_v37 = vld [vmem:[#allocation2 + $0x330] sm:$0xff]  ;;  %v5703_v56 = vsel %vm16435_vm13, 0, %v5702_v24  ;;  %4928 = vst [vmem:[#allocation2 + $0x2d0] sm:$0xff] %v18817_v40  ;;  %v9979_v43 = vor.u32 %v9978_v10, %v9974_v25  ;;  %v7960_v24 = vshll.u32 %v15226_v34, 16  ;;  %v15229_v16 = vld [vmem:[%s15659_s19 + $0x128] sm:$0xff]  }
 0x336   : > { %v1410_v53 = vsel %vm15906_vm6, %v1056_v5, %v1409_v37  ;;  %5704 = vst [vmem:[#allocation2 + $0x308] sm:$0x80] %v5703_v56  ;;  %v15227_v37 = vld [vmem:[%s15659_s19 + $0x148] sm:$0xff]   ;;  %6778 = vrot.lane.b32.xlu0 %v6546_v45, %s15469_s24  ;;  %v9244_v50 = vld [vmem:[#allocation2 + $0x370] sm:$0x80]  ;;  %v9983_v45 = vshll.u32 %v15229_v16, 16 }
 0x337   : > { %1411 = vst [vmem:[#allocation2 + $0x330] sm:$0xff] %v1410_v53  ;;  %v10319_v14 = vld [vmem:[#allocation2 + $0x340] sm:$0xff]  ;;  %v7957_v53 = vshrl.u32 %v15226_v34, 16  ;;  %v3043_v60 = vshrl.u32 %v15227_v37, 16  ;;  %v3045_v57 = vshll.u32 %v15227_v37, 16  ;;  %v9245_v25 = vsel %vm17876_vm1, 0, %v9244_v50 }
 0x338   : > { %v8378_v28 = vld [vmem:[#allocation2 + $0x2d8] sm:$0xff]  ;;  %2132 = vst.msk [vmem:[#allocation2 + $0x330] sm:$0xff] %vm20333_vm9, %v18577_v0  ;;  %v11065_v0 = vpop.f32.mrb[47].mxu0  ;;  %v10320_v41 = vsel %vm17919_vm4, %v9972_v4, %v10319_v14  ;;  %9246 = vst [vmem:[#allocation2 + $0x370] sm:$0x80] %v9245_v25  ;;  %v9985_v14 = vrot.slane %v9983_v45, 1 }
 0x339   : > { %v8379_v5 = vsel %vm16606_vm8, %v18613_v6, %v8378_v28  ;;  %v15228_v6 = vld [vmem:[%s15659_s19 + $0x108] sm:$0xff]   ;;  %10321 = vst [vmem:[#allocation2 + $0x340] sm:$0xff] %v10320_v41  ;;  %14575 = vmatprep.mubr.msk.bf16.mxu1 %vm221_vm0, %v10320_v41  ;;  %v7959_v4 = vrot.slane %v7957_v53, 7  ;;  %v9981_v28 = vshrl.u32 %v15229_v16, 16  ;;  %v3047_v10 = vrot.slane %v3045_v57, 1  ;;  %v18850_v16 = vpop.f32.mrb[46].mxu1 }
 0x33a   : > { %v18808_v3 = vpop.permute.xlu1 %8172  ;;  %8380 = vst [vmem:[#allocation2 + $0x2d8] sm:$0xff] %v8379_v5  ;;  %5573 = vst.msk [vmem:[#allocation2 + $0x320] sm:$0xff] %vm221_vm0, %v15228_v6  ;;  %v15230_v37 = vld [vmem:[%s15659_s19 + $0x148] sm:$0xff]   ;;  %v15231_v6 = vld [vmem:[%s15659_s19 + $0x140] sm:$0xff]   ;;  %v18852_v57 = vpop.f32.mrb[48].mxu0 }
 0x33b   : > { %v18827_v26 = vpop.permute.xlu0 %3253  ;;  %9105 = vst.msk [vmem:[#allocation2 + $0x2d8] sm:$0xff] %vm4834_vm3, %v18645_v17  ;;  %v10322_v17 = vld [vmem:[#allocation2 + $0x358] sm:$0xff]  ;;  %v7962_v34 = vor.u32 %v7960_v24, %v7959_v4  ;;  %v3048_v53 = vor.u32 %v3047_v10, %v3043_v60  ;;  %20346 = vst [vmem:[#allocation49_spill] sm:$0xff] %v18850_v16  ;;  %v9247_v50 = vld [vmem:[#allocation2 + $0x388] sm:$0x80]  ;;  %v9986_v60 = vor.u32 %v9985_v14, %v9981_v28  ;;  %v4475_v25 = vshrl.u32 %v15231_v6, 16 }
 0x33c   : > { %v10323_v5 = vsel %vm17919_vm4, %v9979_v43, %v10322_v17  ;;  %20347 = vst [vmem:[#allocation50_spill] sm:$0xff] %v18852_v57  ;;  %v15232_v4 = vld [vmem:[%s15659_s19 + $0x130] sm:$0xff]   ;;  %v4478_v45 = vshll.u32 %v15231_v6, 16  ;;  %v9248_v17 = vsel %vm17876_vm1, 0, %v9247_v50  ;;  %v15233_v10 = vld [vmem:[%s15659_s19 + $0xf8] sm:$0xff]   ;;  %v15235_v16 = vld [vmem:[%s15659_s19 + $0x160] sm:$0xff]  }
 0x33d   : > { %v6984_v41 = vld [vmem:[#allocation2 + $0x308] sm:$0xff]  ;;  %10324 = vst [vmem:[#allocation2 + $0x358] sm:$0xff] %v10323_v5  ;;  %14576 = vmatmul.mubr.msk.bf16.gmra.mrb[132].mxu1 %vm221_vm0, %v10323_v5  ;;  %8186 = vrot.lane.b32.xlu1 %v7962_v34, %s15471_s20  ;;  %9249 = vst [vmem:[#allocation2 + $0x388] sm:$0x80] %v9248_v17 }
 0x33e   : > { %v18838_v56 = vpop.permute.xlu1 %8958  ;;  %v6985_v24 = vsel %vm16456_vm14, %v18591_v42, %v6984_v41  ;;  %3267 = vrot.lane.b32.xlu0 %v3048_v53, %s15471_s20  ;;  %v9988_v42 = vshrl.u32 %v15232_v4, 16  ;;  %v4477_v41 = vrot.slane %v4475_v25, 7  ;;  %5571 = vst.msk [vmem:[#allocation2 + $0x2f0] sm:$0xff] %vm221_vm0, %v15233_v10  ;;  %v11449_v10 = vpop.f32.mrb[47].mxu1 }
 0x33f   : > { %v2262_v9 = vld [vmem:[#allocation2 + $0x330] sm:$0x80]  ;;  %6986 = vst [vmem:[#allocation2 + $0x308] sm:$0xff] %v6985_v24 }
 0x340   : > { %v2263_v43 = vsel %vm16187_vm10, 0, %v2262_v9  ;;  %v9990_v9 = vshll.u32 %v15232_v4, 16  ;;  %v15234_v24 = vld [vmem:[%s15659_s19 + $0x110] sm:$0xff]   ;;  %v4480_v4 = vor.u32 %v4478_v45, %v4477_v41  ;;  %v3462_v41 = vld [vmem:[#allocation2 + $0x318] sm:$0xff] }
 0x341   : > { %v18846_v0 = vpop.permute.xlu0 %4708  ;;  %2264 = vst [vmem:[#allocation2 + $0x330] sm:$0x80] %v2263_v43  ;;  %v5705_v34 = vld [vmem:[#allocation2 + $0x320] sm:$0x80]  ;;  %v326_v43 = vld [vmem:[#allocation2 + $0x348] sm:$0x1]  ;;  %8972 = vrot.lane.b32.xlu1 %v15230_v37, %s15472_s22 }
 0x342   : > { %v18865_v5 = vpop.permute.xlu1 %1991  ;;  %v5706_v28 = vsel %vm16435_vm13, 0, %v5705_v34  ;;  %v10325_v14 = vld [vmem:[#allocation2 + $0x370] sm:$0xff]  ;;  %v9992_v53 = vrot.slane %v9990_v9, 1  ;;  %v327_v6 = vsel %vm15873_vm5, 0, %v326_v43  ;;  %v1058_v25 = vshrl.u32 %v15234_v24, 16  ;;  %4722 = vrot.lane.b32.xlu0 %v4480_v4, %s15472_s22  ;;  %v15236_v34 = vld [vmem:[%s15659_s19 + $0x158] sm:$0xff]  }
 0x343   : > { %5707 = vst [vmem:[#allocation2 + $0x320] sm:$0x80] %v5706_v28  ;;  %v10326_v50 = vsel %vm17919_vm4, %v9986_v60, %v10325_v14  ;;  %328 = vst [vmem:[#allocation2 + $0x348] sm:$0x1] %v327_v6  ;;  %v1061_v17 = vshll.u32 %v15234_v24, 16  ;;  %v4929_v43 = vld [vmem:[#allocation2 + $0x2e8] sm:$0xff] }
 0x344   : > { %10327 = vst [vmem:[#allocation2 + $0x370] sm:$0xff] %v10326_v50  ;;  %14579 = vmatprep.mubr.msk.bf16.mxu1 %vm221_vm0, %v10326_v50  ;;  %v9993_v37 = vor.u32 %v9992_v53, %v9988_v42  ;;  %v1060_v9 = vrot.slane %v1058_v25, 7  ;;  %v11070_v28 = vpop.f32.mrb[49].mxu0  ;;  %v18888_v45 = vsel %vm16689_vm11, %v18687_v44, %v4929_v43  ;;  %v10494_v24 = vld [vmem:[#allocation2 + $0x2d8] sm:$0xff]  ;;  %v18892_v14 = vpop.f32.mrb[48].mxu1  ;;  %v10328_v6 = vld [vmem:[#allocation2 + $0x388] sm:$0xff]  ;;  %v3463_v43 = vsel %vm16474_vm15, %v18699_v35, %v3462_v41 }
 0x345   : > { %v18877_v57 = vpop.permute.xlu0 %6766  ;;  %2005 = vrot.lane.b32.xlu1 %v15235_v16, %s15469_s24  ;;  %v18890_v42 = vpop.f32.mrb[50].mxu0  ;;  %20349 = vst [vmem:[#allocation52_spill] sm:$0xff] %v18892_v14  ;;  %v6548_v4 = vshrl.u32 %v15236_v34, 16  ;;  %v6550_v25 = vshll.u32 %v15236_v34, 16  ;;  %4931 = vst [vmem:[#allocation2 + $0x2e8] sm:$0xff] %v18888_v45  ;;  %11210 = vmatprep.mubr.bf16.mxu0 %v10494_v24 }
 0x346   : > { %v7177_v60 = vld [vmem:[#allocation2 + $0x308] sm:$0x1]  ;;  %20348 = vst [vmem:[#allocation51_spill] sm:$0xff] %v18890_v42  ;;  %v1063_v50 = vor.u32 %v1061_v17, %v1060_v9  ;;  %v9250_v16 = vld [vmem:[#allocation2 + $0x3a0] sm:$0x80]  ;;  %v10329_v44 = vsel %vm17919_vm4, %v9993_v37, %v10328_v6  ;;  %11211 = vmatmul.mubr.bf16.gmra.mrb[120].mxu0 %v18817_v40  ;;  %3464 = vst [vmem:[#allocation2 + $0x318] sm:$0xff] %v3463_v43 }
 0x347   : > { %v7178_v53 = vsel %vm16520_vm12, 0, %v7177_v60  ;;  %v5699_v10 = vld [vmem:[#allocation2 + $0x2f0] sm:$0x80]  ;;  %v9251_v28 = vsel %vm17876_vm1, 0, %v9250_v16  ;;  %v15237_v60 = vld [vmem:[%s15659_s19 + $0x138] sm:$0xff]   ;;  %10330 = vst [vmem:[#allocation2 + $0x388] sm:$0xff] %v10329_v44  ;;  %14580 = vmatmul.mubr.msk.bf16.gmra.mrb[136].mxu1 %vm221_vm0, %v10329_v44 }
 0x348   : > { %7179 = vst [vmem:[#allocation2 + $0x308] sm:$0x1] %v7178_v53  ;;  %v5700_v17 = vsel %vm16435_vm13, 0, %v5699_v10  ;;  %v6552_v9 = vrot.slane %v6550_v25, 1  ;;  %9252 = vst [vmem:[#allocation2 + $0x3a0] sm:$0x80] %v9251_v28 }
 0x349   : > { %v18882_v63 = vpop.permute.xlu1 %8174  ;;  %5701 = vst [vmem:[#allocation2 + $0x2f0] sm:$0x80] %v5700_v17  ;;  %v9995_v41 = vshrl.u32 %v15237_v60, 16  ;;  %v9997_v24 = vshll.u32 %v15237_v60, 16  ;;  %v15238_v25 = vld [vmem:[%s15659_s19 + $0x150] sm:$0xff]   ;;  %v11073_v16 = vpop.f32.mrb[51].mxu0 }
 0x34a   : > { %v6987_v35 = vld [vmem:[#allocation2 + $0x320] sm:$0xff]  ;;  %v1412_v34 = vld [vmem:[#allocation2 + $0x348] sm:$0xff]  ;;  %v6553_v6 = vor.u32 %v6552_v9, %v6548_v4  ;;  %v15239_v43 = vld [vmem:[%s15659_s19 + $0x150] sm:$0xff]   ;;  %v7967_v60 = vshll.u32 %v15238_v25, 16  ;;  %v11454_v42 = vpop.f32.mrb[49].mxu1 }
 0x34b   : > { %v18909_v37 = vpop.permute.xlu0 %3255  ;;  %v6988_v40 = vsel %vm16456_vm14, %v18632_v7, %v6987_v35  ;;  %v1413_v53 = vsel %vm15906_vm6, %v1063_v50, %v1412_v34  ;;  %v9999_v10 = vrot.slane %v9997_v24, 1  ;;  %v9253_v28 = vld [vmem:[#allocation2 + $0x3b8] sm:$0x80]  ;;  %v7964_v7 = vshrl.u32 %v15238_v25, 16  ;;  %v15240_v4 = vld [vmem:[%s15659_s19 + $0x140] sm:$0xff]  }
 0x34c   : > { %6989 = vst [vmem:[#allocation2 + $0x320] sm:$0xff] %v6988_v40  ;;  %1414 = vst [vmem:[#allocation2 + $0x348] sm:$0xff] %v1413_v53  ;;  %6780 = vrot.lane.b32.xlu0 %v6553_v6, %s15469_s24  ;;  %v9254_v50 = vsel %vm17876_vm1, 0, %v9253_v28  ;;  %v3050_v9 = vshrl.u32 %v15239_v43, 16  ;;  %v3052_v35 = vshll.u32 %v15239_v43, 16  ;;  %v10002_v40 = vshrl.u32 %v15240_v4, 16 }
 0x34d   : > { %v18917_v44 = vpop.permute.xlu1 %8960  ;;  %2133 = vst.msk [vmem:[#allocation2 + $0x348] sm:$0xff] %vm20333_vm9, %v18669_v51  ;;  %v10000_v17 = vor.u32 %v9999_v10, %v9995_v41  ;;  %9255 = vst [vmem:[#allocation2 + $0x3b8] sm:$0x80] %v9254_v50  ;;  %v329_v34 = vld [vmem:[#allocation2 + $0x360] sm:$0x1]  ;;  %v7966_v24 = vrot.slane %v7964_v7, 7 }
 0x34e   : > { %v10004_v53 = vshll.u32 %v15240_v4, 16  ;;  %v330_v51 = vsel %vm15873_vm5, 0, %v329_v34  ;;  %v3653_v25 = vld [vmem:[#allocation2 + $0x318] sm:$0x1]  ;;  %v3054_v14 = vrot.slane %v3052_v35, 1  ;;  %v15242_v4 = vld [vmem:[%s15659_s19 + $0x110] sm:$0xff]  }
 0x34f   : > { %v10331_v16 = vld [vmem:[#allocation2 + $0x3a0] sm:$0xff]  ;;  %331 = vst [vmem:[#allocation2 + $0x360] sm:$0x1] %v330_v51  ;;  %v15241_v28 = vld [vmem:[%s15659_s19 + $0x118] sm:$0xff]   ;;  %v3654_v10 = vsel %vm16542_vm2, 0, %v3653_v25  ;;  %v7969_v7 = vor.u32 %v7967_v60, %v7966_v24  ;;  %5574 = vst.msk [vmem:[#allocation2 + $0x338] sm:$0xff] %vm221_vm0, %v15242_v4 }
 0x350   : > { %v18928_v6 = vpop.permute.xlu0 %4710  ;;  %v6981_v41 = vld [vmem:[#allocation2 + $0x2f0] sm:$0xff]  ;;  %v10332_v43 = vsel %vm17919_vm4, %v10000_v17, %v10331_v16  ;;  %v10006_v50 = vrot.slane %v10004_v53, 1  ;;  %3655 = vst [vmem:[#allocation2 + $0x318] sm:$0x1] %v3654_v10  ;;  %v3055_v42 = vor.u32 %v3054_v14, %v3050_v9  ;;  %v1065_v51 = vshrl.u32 %v15241_v28, 16  ;;  %v18945_v24 = vpop.f32.mrb[50].mxu1 }
 0x351   : > { %v18936_v34 = vpop.permute.xlu1 %1993  ;;  %v6982_v35 = vsel %vm16456_vm14, %v18656_v21, %v6981_v41  ;;  %10333 = vst [vmem:[#allocation2 + $0x3a0] sm:$0xff] %v10332_v43  ;;  %14583 = vmatprep.mubr.msk.bf16.mxu1 %vm221_vm0, %v10332_v43  ;;  %v1068_v25 = vshll.u32 %v15241_v28, 16  ;;  %8188 = vrot.lane.b32.xlu1 %v7969_v7, %s15471_s20  ;;  %v15243_v17 = vld [vmem:[%s15659_s19 + $0x150] sm:$0xff]   ;;  %20350 = vst [vmem:[#allocation53_spill] sm:$0xff] %v18945_v24  ;;  %v20351_v53 = vmov 0   ;;  %v15244_v28 = vld [vmem:[%s15659_s19 + $0x148] sm:$0xff]  }
 0x352   : > { %6983 = vst [vmem:[#allocation2 + $0x2f0] sm:$0xff] %v6982_v35  ;;  %v10007_v60 = vor.u32 %v10006_v50, %v10002_v40  ;;  %3269 = vrot.lane.b32.xlu0 %v3055_v42, %s15471_s20  ;;  %v1067_v9 = vrot.slane %v1065_v51, 7  ;;  %v11457_v41 = vpop.f32.mrb[51].mxu1  ;;  %v8381_v7 = vld [vmem:[#allocation2 + $0x308] sm:$0xff]  ;;  %v3465_v50 = vld [vmem:[#allocation2 + $0x330] sm:$0xff]  ;;  %v18961_v35 = vpop.f32.mrb[52].mxu0 }
 0x353   : > { %v7180_v36 = vld [vmem:[#allocation2 + $0x320] sm:$0x1]  ;;  %7082 = vst.msk [vmem:[#allocation2 + $0x2f0] sm:$0xff] %vm2161_vm7, %v20351_v53  ;;  %v9256_v4 = vld [vmem:[#allocation2 + $0x3d0] sm:$0x80]  ;;  %20352 = vst [vmem:[#allocation54_spill] sm:$0xff] %v18961_v35 }
 0x354   : > { %v7181_v21 = vsel %vm16520_vm12, 0, %v7180_v36  ;;  %v2265_v14 = vld [vmem:[#allocation2 + $0x348] sm:$0x80]  ;;  %8473 = vst.msk [vmem:[#allocation2 + $0x2f0] sm:$0xff] %vm4834_vm3, %v20351_v53  ;;  %v10334_v16 = vld [vmem:[#allocation2 + $0x3b8] sm:$0xff]  ;;  %v1070_v43 = vor.u32 %v1068_v25, %v1067_v9  ;;  %v18963_v42 = vpop.f32.mrb[52].mxu1  ;;  %v8382_v25 = vsel %vm16606_vm8, %v18737_v46, %v8381_v7 }
 0x355   : > { %7182 = vst [vmem:[#allocation2 + $0x320] sm:$0x1] %v7181_v21  ;;  %v2266_v40 = vsel %vm16187_vm10, 0, %v2265_v14  ;;  %v10335_v36 = vsel %vm17919_vm4, %v10007_v60, %v10334_v16  ;;  %20353 = vst [vmem:[#allocation55_spill] sm:$0xff] %v18963_v42  ;;  %8974 = vrot.lane.b32.xlu1 %v15243_v17, %s15472_s22  ;;  %v4482_v21 = vshrl.u32 %v15244_v28, 16  ;;  %v4485_v14 = vshll.u32 %v15244_v28, 16 }
 0x356   : > { %v18957_v10 = vpop.permute.xlu0 %6768  ;;  %2267 = vst [vmem:[#allocation2 + $0x348] sm:$0x80] %v2266_v40  ;;  %10336 = vst [vmem:[#allocation2 + $0x3b8] sm:$0xff] %v10335_v36  ;;  %14584 = vmatmul.mubr.msk.bf16.gmra.mrb[140].mxu1 %vm221_vm0, %v10335_v36  ;;  %v1415_v51 = vld [vmem:[#allocation2 + $0x360] sm:$0xff]  ;;  %v3466_v60 = vsel %vm16474_vm15, %v18749_v18, %v3465_v50  ;;  %v15245_v9 = vld [vmem:[%s15659_s19 + $0x148] sm:$0xff]   ;;  %v9257_v17 = vsel %vm17876_vm1, 0, %v9256_v4 }
 0x357   : > { %v1416_v16 = vsel %vm15906_vm6, %v1070_v43, %v1415_v51  ;;  %8383 = vst [vmem:[#allocation2 + $0x308] sm:$0xff] %v8382_v25  ;;  %3467 = vst [vmem:[#allocation2 + $0x330] sm:$0xff] %v3466_v60  ;;  %v15246_v28 = vld [vmem:[%s15659_s19 + $0x168] sm:$0xff]   ;;  %v4484_v41 = vrot.slane %v4482_v21, 7  ;;  %v10009_v46 = vshrl.u32 %v15245_v9, 16  ;;  %v10011_v36 = vshll.u32 %v15245_v9, 16 }
 0x358   : > { %1417 = vst [vmem:[#allocation2 + $0x360] sm:$0xff] %v1416_v16  ;;  %9258 = vst [vmem:[#allocation2 + $0x3d0] sm:$0x80] %v9257_v17  ;;  %v15247_v18 = vld [vmem:[%s15659_s19 + $0x160] sm:$0xff]   ;;  %v5708_v43 = vld [vmem:[#allocation2 + $0x338] sm:$0x80] }
 0x359   : > { %9106 = vst.msk [vmem:[#allocation2 + $0x308] sm:$0xff] %vm4834_vm3, %v18767_v55  ;;  %v5709_v7 = vsel %vm16435_vm13, 0, %v5708_v43  ;;  %v4487_v50 = vor.u32 %v4485_v14, %v4484_v41  ;;  %v10013_v4 = vrot.slane %v10011_v36, 1  ;;  %2007 = vrot.lane.b32.xlu1 %v15246_v28, %s15469_s24  ;;  %v6555_v51 = vshrl.u32 %v15247_v18, 16  ;;  %v9259_v21 = vld [vmem:[#allocation2 + $0x3e8] sm:$0x80] }
 0x35a   : > { %v18974_v40 = vpop.permute.xlu1 %8176  ;;  %2134 = vst.msk [vmem:[#allocation2 + $0x360] sm:$0xff] %vm20333_vm9, %v18712_v19  ;;  %v15248_v25 = vld [vmem:[%s15659_s19 + $0x150] sm:$0xff]   ;;  %5710 = vst [vmem:[#allocation2 + $0x338] sm:$0x80] %v5709_v7  ;;  %v6557_v9 = vshll.u32 %v15247_v18, 16  ;;  %v9260_v55 = vsel %vm17876_vm1, 0, %v9259_v21 }
 0x35b   : > { %v10497_v60 = vld [vmem:[#allocation2 + $0x2f0] sm:$0xff]  ;;  %v15249_v16 = vld [vmem:[%s15659_s19 + $0x158] sm:$0xff]   ;;  %4724 = vrot.lane.b32.xlu0 %v4487_v50, %s15472_s22  ;;  %v10014_v19 = vor.u32 %v10013_v4, %v10009_v46  ;;  %9261 = vst [vmem:[#allocation2 + $0x3e8] sm:$0x80] %v9260_v55  ;;  %v10016_v14 = vshrl.u32 %v15248_v25, 16  ;;  %v10018_v28 = vshll.u32 %v15248_v25, 16 }
 0x35c   : > { %11218 = vmatprep.mubr.bf16.mxu0 %v10497_v60  ;;  %v3650_v41 = vld [vmem:[#allocation2 + $0x300] sm:$0x1]  ;;  %v6559_v43 = vrot.slane %v6557_v9, 1  ;;  %v7971_v24 = vshrl.u32 %v15249_v16, 16  ;;  %v7974_v50 = vshll.u32 %v15249_v16, 16  ;;  %v15250_v42 = vld [vmem:[%s15659_s19 + $0x158] sm:$0xff]  }
 0x35d   : > { %11219 = vmatmul.mubr.bf16.gmra.mrb[124].mxu0 %v18888_v45  ;;  %v3651_v18 = vsel %vm16542_vm2, 0, %v3650_v41  ;;  %v10020_v21 = vrot.slane %v10018_v28, 1  ;;  %v3057_v41 = vshrl.u32 %v15250_v42, 16  ;;  %v332_v53 = vld [vmem:[#allocation2 + $0x378] sm:$0x1]  ;;  %v3059_v16 = vshll.u32 %v15250_v42, 16 }
 0x35e   : > { %v18993_v17 = vpop.permute.xlu0 %3257  ;;  %v18996_v36 = vpop.permute.xlu1 %8962  ;;  %v3656_v7 = vld [vmem:[#allocation2 + $0x330] sm:$0x1]  ;;  %3652 = vst [vmem:[#allocation2 + $0x300] sm:$0x1] %v3651_v18  ;;  %v6560_v25 = vor.u32 %v6559_v43, %v6555_v51  ;;  %v7973_v55 = vrot.slane %v7971_v24, 7  ;;  %v333_v51 = vsel %vm15873_vm5, 0, %v332_v53 }
 0x35f   : > { %v3657_v46 = vsel %vm16542_vm2, 0, %v3656_v7  ;;  %v10337_v4 = vld [vmem:[#allocation2 + $0x3d0] sm:$0xff]  ;;  %v10021_v9 = vor.u32 %v10020_v21, %v10016_v14  ;;  %v15251_v43 = vld [vmem:[%s15659_s19 + $0x120] sm:$0xff]   ;;  %334 = vst [vmem:[#allocation2 + $0x378] sm:$0x1] %v333_v51  ;;  %v11078_v14 = vpop.f32.mrb[53].mxu0 }
 0x360   : > { %3658 = vst [vmem:[#allocation2 + $0x330] sm:$0x1] %v3657_v46  ;;  %v10338_v45 = vsel %vm17919_vm4, %v10014_v19, %v10337_v4  ;;  %6782 = vrot.lane.b32.xlu0 %v6560_v25, %s15469_s24  ;;  %v7976_v19 = vor.u32 %v7974_v50, %v7973_v55  ;;  %v3061_v42 = vrot.slane %v3059_v16, 1  ;;  %v1072_v4 = vshrl.u32 %v15251_v43, 16  ;;  %v15252_v50 = vld [vmem:[%s15659_s19 + $0x118] sm:$0xff]  }
 0x361   : > { %v2268_v60 = vld [vmem:[#allocation2 + $0x360] sm:$0x80]  ;;  %10339 = vst [vmem:[#allocation2 + $0x3d0] sm:$0xff] %v10338_v45  ;;  %14587 = vmatprep.mubr.msk.bf16.mxu1 %vm221_vm0, %v10338_v45  ;;  %v6990_v24 = vld [vmem:[#allocation2 + $0x338] sm:$0xff]  ;;  %v1075_v53 = vshll.u32 %v15251_v43, 16  ;;  %v19024_v45 = vpop.f32.mrb[54].mxu0 }
 0x362   : > { %v2269_v28 = vsel %vm16187_vm10, 0, %v2268_v60  ;;  %v19013_v18 = vpop.permute.xlu0 %4712  ;;  %v19015_v7 = vpop.permute.xlu1 %1995  ;;  %v6991_v21 = vsel %vm16456_vm14, %v18720_v12, %v6990_v24  ;;  %v10340_v46 = vld [vmem:[#allocation2 + $0x3e8] sm:$0xff]  ;;  %8190 = vrot.lane.b32.xlu1 %v7976_v19, %s15471_s20  ;;  %v9262_v60 = vld [vmem:[#allocation2 + $0x400] sm:$0x80]  ;;  %20354 = vst [vmem:[#allocation56_spill] sm:$0xff] %v19024_v45  ;;  %v3062_v55 = vor.u32 %v3061_v42, %v3057_v41  ;;  %v15253_v51 = vld [vmem:[%s15659_s19 + $0x158] sm:$0xff]  }
 0x363   : > { %2270 = vst [vmem:[#allocation2 + $0x360] sm:$0x80] %v2269_v28  ;;  %6992 = vst [vmem:[#allocation2 + $0x338] sm:$0xff] %v6991_v21  ;;  %v10341_v25 = vsel %vm17919_vm4, %v10021_v9, %v10340_v46  ;;  %v1074_v28 = vrot.slane %v1072_v4, 7  ;;  %v9263_v16 = vsel %vm17876_vm1, 0, %v9262_v60  ;;  %v15254_v43 = vld [vmem:[%s15659_s19 + $0x158] sm:$0xff]  }
 0x364   : > { %10342 = vst [vmem:[#allocation2 + $0x3e8] sm:$0xff] %v10341_v25  ;;  %14588 = vmatmul.mubr.msk.bf16.gmra.mrb[144].mxu1 %vm221_vm0, %v10341_v25  ;;  %5575 = vst.msk [vmem:[#allocation2 + $0x350] sm:$0xff] %vm221_vm0, %v15252_v50  ;;  %v11081_v24 = vpop.f32.mrb[55].mxu0  ;;  %3271 = vrot.lane.b32.xlu0 %v3062_v55, %s15471_s20  ;;  %v10023_v19 = vshrl.u32 %v15253_v51, 16  ;;  %v10025_v14 = vshll.u32 %v15253_v51, 16  ;;  %v15255_v46 = vld [vmem:[%s15659_s19 + $0x150] sm:$0xff]  }
 0x365   : > { %v4932_v12 = vld [vmem:[#allocation2 + $0x300] sm:$0xff]  ;;  %9264 = vst [vmem:[#allocation2 + $0x400] sm:$0x80] %v9263_v16  ;;  %v1077_v41 = vor.u32 %v1075_v53, %v1074_v28  ;;  %v9265_v42 = vld [vmem:[#allocation2 + $0x418] sm:$0x80]  ;;  %v11462_v4 = vpop.f32.mrb[53].mxu1 }
 0x366   : > { %v4933_v9 = vsel %vm16689_vm11, %v18777_v31, %v4932_v12  ;;  %v19036_v21 = vpop.permute.xlu0 %6770  ;;  %8976 = vrot.lane.b32.xlu1 %v15254_v43, %s15472_s22  ;;  %v1418_v25 = vld [vmem:[#allocation2 + $0x378] sm:$0xff]  ;;  %v10027_v50 = vrot.slane %v10025_v14, 1  ;;  %v9266_v60 = vsel %vm17876_vm1, 0, %v9265_v42  ;;  %v15256_v12 = vld [vmem:[%s15659_s19 + $0x160] sm:$0xff]   ;;  %v4489_v55 = vshrl.u32 %v15255_v46, 16  ;;  %v3468_v51 = vld [vmem:[#allocation2 + $0x348] sm:$0xff] }
 0x367   : > { %4934 = vst [vmem:[#allocation2 + $0x300] sm:$0xff] %v4933_v9  ;;  %v1419_v53 = vsel %vm15906_vm6, %v1077_v41, %v1418_v25  ;;  %v4492_v28 = vshll.u32 %v15255_v46, 16  ;;  %9267 = vst [vmem:[#allocation2 + $0x418] sm:$0x80] %v9266_v60  ;;  %v8384_v16 = vld [vmem:[#allocation2 + $0x320] sm:$0xff]  ;;  %v10500_v43 = vld [vmem:[#allocation2 + $0x308] sm:$0xff]  ;;  %v3469_v25 = vsel %vm16474_vm15, %v18827_v26, %v3468_v51 }
 0x368   : > { %v19047_v24 = vpop.f32.mrb[54].mxu1  ;;  %1420 = vst [vmem:[#allocation2 + $0x378] sm:$0xff] %v1419_v53  ;;  %v10028_v14 = vor.u32 %v10027_v50, %v10023_v19  ;;  %v10030_v45 = vshrl.u32 %v15256_v12, 16  ;;  %v10032_v35 = vshll.u32 %v15256_v12, 16  ;;  %v8385_v42 = vsel %vm16606_vm8, %v18808_v3, %v8384_v16  ;;  %11226 = vmatprep.mubr.bf16.mxu0 %v10500_v43  ;;  %v15257_v19 = vld [vmem:[%s15659_s19 + $0x170] sm:$0xff]   ;;  %v15258_v50 = vld [vmem:[%s15659_s19 + $0x168] sm:$0xff]  }
 0x369   : > { %20355 = vst [vmem:[#allocation57_spill] sm:$0xff] %v19047_v24  ;;  %2135 = vst.msk [vmem:[#allocation2 + $0x378] sm:$0xff] %vm20333_vm9, %v18791_v61  ;;  %v4491_v46 = vrot.slane %v4489_v55, 7  ;;  %11227 = vmatmul.mubr.bf16.gmra.mrb[128].mxu0 %v4933_v9  ;;  %v6562_v55 = vshrl.u32 %v15258_v50, 16  ;;  %v4935_v9 = vld [vmem:[#allocation2 + $0x318] sm:$0xff]  ;;  %v15259_v16 = vld [vmem:[%s15659_s19 + $0x168] sm:$0xff]  }
 0x36a   : > { %v7183_v4 = vld [vmem:[#allocation2 + $0x338] sm:$0x1]  ;;  %8386 = vst [vmem:[#allocation2 + $0x320] sm:$0xff] %v8385_v42  ;;  %v10034_v12 = vrot.slane %v10032_v35, 1  ;;  %3470 = vst [vmem:[#allocation2 + $0x348] sm:$0xff] %v3469_v25  ;;  %2009 = vrot.lane.b32.xlu1 %v15257_v19, %s15469_s24  ;;  %v6564_v43 = vshll.u32 %v15258_v50, 16 }
 0x36b   : > { %v7184_v41 = vsel %vm16520_vm12, 0, %v7183_v4  ;;  %v5711_v60 = vld [vmem:[#allocation2 + $0x350] sm:$0x80]  ;;  %9107 = vst.msk [vmem:[#allocation2 + $0x320] sm:$0xff] %vm4834_vm3, %v18838_v56  ;;  %v4494_v26 = vor.u32 %v4492_v28, %v4491_v46  ;;  %v19077_v28 = vsel %vm16689_vm11, %v18846_v0, %v4935_v9  ;;  %v10039_v46 = vshll.u32 %v15259_v16, 16  ;;  %v15261_v25 = vld [vmem:[%s15659_s19 + $0x160] sm:$0xff]  }
 0x36c   : > { %v19040_v31 = vpop.permute.xlu1 %8178  ;;  %7185 = vst [vmem:[#allocation2 + $0x338] sm:$0x1] %v7184_v41  ;;  %v10343_v3 = vld [vmem:[#allocation2 + $0x400] sm:$0xff]  ;;  %v5712_v61 = vsel %vm16435_vm13, 0, %v5711_v60  ;;  %v10035_v56 = vor.u32 %v10034_v12, %v10030_v45  ;;  %v9268_v4 = vld [vmem:[#allocation2 + $0x430] sm:$0x80] }
 0x36d   : > { %v10344_v53 = vsel %vm17919_vm4, %v10028_v14, %v10343_v3  ;;  %5713 = vst [vmem:[#allocation2 + $0x350] sm:$0x80] %v5712_v61  ;;  %v15260_v14 = vld [vmem:[%s15659_s19 + $0x160] sm:$0xff]   ;;  %4726 = vrot.lane.b32.xlu0 %v4494_v26, %s15472_s22  ;;  %4937 = vst [vmem:[#allocation2 + $0x318] sm:$0xff] %v19077_v28  ;;  %v9269_v42 = vsel %vm17876_vm1, 0, %v9268_v4  ;;  %v10037_v41 = vshrl.u32 %v15259_v16, 16 }
 0x36e   : > { %v19069_v51 = vpop.permute.xlu0 %3259  ;;  %10345 = vst [vmem:[#allocation2 + $0x400] sm:$0xff] %v10344_v53  ;;  %14591 = vmatprep.mubr.msk.bf16.mxu1 %vm221_vm0, %v10344_v53  ;;  %v10346_v45 = vld [vmem:[#allocation2 + $0x418] sm:$0xff]  ;;  %v6566_v19 = vrot.slane %v6564_v43, 1  ;;  %9270 = vst [vmem:[#allocation2 + $0x430] sm:$0x80] %v9269_v42  ;;  %v10041_v50 = vrot.slane %v10039_v46, 1 }
 0x36f   : > { %v10347_v0 = vsel %vm17919_vm4, %v10035_v56, %v10346_v45  ;;  %v7978_v60 = vshrl.u32 %v15260_v14, 16  ;;  %v7981_v3 = vshll.u32 %v15260_v14, 16  ;;  %v15262_v12 = vld [vmem:[%s15659_s19 + $0x170] sm:$0xff]   ;;  %v3064_v26 = vshrl.u32 %v15261_v25, 16  ;;  %v9271_v24 = vld [vmem:[#allocation2 + $0x448] sm:$0x80] }
 0x370   : > { %v19071_v35 = vpop.permute.xlu1 %8964  ;;  %v2271_v61 = vld [vmem:[#allocation2 + $0x378] sm:$0x80]  ;;  %10348 = vst [vmem:[#allocation2 + $0x418] sm:$0xff] %v10347_v0  ;;  %14592 = vmatmul.mubr.msk.bf16.gmra.mrb[148].mxu1 %vm221_vm0, %v10347_v0  ;;  %v6567_v53 = vor.u32 %v6566_v19, %v6562_v55  ;;  %v3066_v9 = vshll.u32 %v15261_v25, 16  ;;  %v10042_v43 = vor.u32 %v10041_v50, %v10037_v41  ;;  %v9272_v46 = vsel %vm17876_vm1, 0, %v9271_v24 }
 0x371   : > { %v2272_v16 = vsel %vm16187_vm10, 0, %v2271_v61  ;;  %v3659_v4 = vld [vmem:[#allocation2 + $0x348] sm:$0x1]  ;;  %v7980_v42 = vrot.slane %v7978_v60, 7  ;;  %v10044_v25 = vshrl.u32 %v15262_v12, 16  ;;  %v10046_v19 = vshll.u32 %v15262_v12, 16 }
 0x372   : > { %2273 = vst [vmem:[#allocation2 + $0x378] sm:$0x80] %v2272_v16  ;;  %v3660_v14 = vsel %vm16542_vm2, 0, %v3659_v4  ;;  %6784 = vrot.lane.b32.xlu0 %v6567_v53, %s15469_s24  ;;  %v3068_v55 = vrot.slane %v3066_v9, 1  ;;  %9273 = vst [vmem:[#allocation2 + $0x448] sm:$0x80] %v9272_v46 }
 0x373   : > { %v19091_v20 = vpop.permute.xlu0 %4714  ;;  %3661 = vst [vmem:[#allocation2 + $0x348] sm:$0x1] %v3660_v14  ;;  %v7983_v41 = vor.u32 %v7981_v3, %v7980_v42  ;;  %v335_v0 = vld [vmem:[#allocation2 + $0x390] sm:$0x1]  ;;  %v15263_v53 = vld [vmem:[%s15659_s19 + $0x128] sm:$0xff]   ;;  %v10048_v3 = vrot.slane %v10046_v19, 1 }
 0x374   : > { %v19093_v56 = vpop.permute.xlu1 %1997  ;;  %v6993_v45 = vld [vmem:[#allocation2 + $0x350] sm:$0xff]  ;;  %v3069_v60 = vor.u32 %v3068_v55, %v3064_v26  ;;  %v336_v61 = vsel %vm15873_vm5, 0, %v335_v0  ;;  %v1079_v9 = vshrl.u32 %v15263_v53, 16  ;;  %v1082_v16 = vshll.u32 %v15263_v53, 16  ;;  %v15265_v26 = vld [vmem:[%s15659_s19 + $0x160] sm:$0xff]   ;;  %v15266_v46 = vld [vmem:[%s15659_s19 + $0x158] sm:$0xff]  }
 0x375   : > { %v6994_v50 = vsel %vm16456_vm14, %v18803_v2, %v6993_v45  ;;  %v10349_v24 = vld [vmem:[#allocation2 + $0x430] sm:$0xff]  ;;  %8192 = vrot.lane.b32.xlu1 %v7983_v41, %s15471_s20  ;;  %337 = vst [vmem:[#allocation2 + $0x390] sm:$0x1] %v336_v61  ;;  %v15264_v2 = vld [vmem:[%s15659_s19 + $0x120] sm:$0xff]   ;;  %v10049_v4 = vor.u32 %v10048_v3, %v10044_v25  ;;  %v8387_v45 = vld [vmem:[#allocation2 + $0x338] sm:$0xff]  ;;  %v11465_v41 = vpop.f32.mrb[55].mxu1 }
 0x376   : > { %6995 = vst [vmem:[#allocation2 + $0x350] sm:$0xff] %v6994_v50  ;;  %v10350_v12 = vsel %vm17919_vm4, %v10042_v43, %v10349_v24  ;;  %3273 = vrot.lane.b32.xlu0 %v3069_v60, %s15471_s20  ;;  %v1081_v55 = vrot.slane %v1079_v9, 7  ;;  %5576 = vst.msk [vmem:[#allocation2 + $0x368] sm:$0xff] %vm221_vm0, %v15264_v2  ;;  %v3471_v43 = vld [vmem:[#allocation2 + $0x360] sm:$0xff]  ;;  %v19119_v19 = vpop.f32.mrb[56].mxu0  ;;  %v8388_v25 = vsel %vm16606_vm8, %v18882_v63, %v8387_v45  ;;  %v4496_v3 = vshrl.u32 %v15266_v46, 16 }
 0x377   : > { %10351 = vst [vmem:[#allocation2 + $0x430] sm:$0xff] %v10350_v12  ;;  %14595 = vmatprep.mubr.msk.bf16.mxu1 %vm221_vm0, %v10350_v12  ;;  %20356 = vst [vmem:[#allocation58_spill] sm:$0xff] %v19119_v19  ;;  %v3472_v0 = vsel %vm16474_vm15, %v18909_v37, %v3471_v43  ;;  %v10503_v50 = vld [vmem:[#allocation2 + $0x320] sm:$0xff]  ;;  %v11086_v61 = vpop.f32.mrb[57].mxu0  ;;  %v4499_v12 = vshll.u32 %v15266_v46, 16  ;;  %v15267_v37 = vld [vmem:[%s15659_s19 + $0x178] sm:$0xff]  }
 0x378   : > { %v19113_v42 = vpop.permute.xlu0 %6772  ;;  %v9274_v60 = vld [vmem:[#allocation2 + $0x460] sm:$0x80]  ;;  %v1084_v24 = vor.u32 %v1082_v16, %v1081_v55  ;;  %8389 = vst [vmem:[#allocation2 + $0x338] sm:$0xff] %v8388_v25  ;;  %3473 = vst [vmem:[#allocation2 + $0x360] sm:$0xff] %v3472_v0  ;;  %11234 = vmatprep.mubr.bf16.mxu0 %v10503_v50  ;;  %v19136_v16 = vpop.f32.mrb[58].mxu0  ;;  %v4498_v55 = vrot.slane %v4496_v3, 7 }
 0x379   : > { %8978 = vrot.lane.b32.xlu1 %v15265_v26, %s15472_s22  ;;  %v10352_v53 = vld [vmem:[#allocation2 + $0x448] sm:$0xff]  ;;  %v9275_v9 = vsel %vm17876_vm1, 0, %v9274_v60  ;;  %11235 = vmatmul.mubr.bf16.gmra.mrb[132].mxu0 %v19077_v28  ;;  %9108 = vst.msk [vmem:[#allocation2 + $0x338] sm:$0xff] %vm4834_vm3, %v18917_v44  ;;  %20357 = vst [vmem:[#allocation59_spill] sm:$0xff] %v19136_v16  ;;  %v11089_v45 = vpop.f32.mrb[59].mxu0  ;;  %v10051_v28 = vshrl.u32 %v15267_v37, 16 }
 0x37a   : > { %v10353_v63 = vsel %vm17919_vm4, %v10049_v4, %v10352_v53  ;;  %9276 = vst [vmem:[#allocation2 + $0x460] sm:$0x80] %v9275_v9  ;;  %v15268_v46 = vld [vmem:[%s15659_s19 + $0x168] sm:$0xff]   ;;  %v10053_v41 = vshll.u32 %v15267_v37, 16  ;;  %v15269_v44 = vld [vmem:[%s15659_s19 + $0x170] sm:$0xff]   ;;  %v4501_v0 = vor.u32 %v4499_v12, %v4498_v55  ;;  %v10546_v55 = vld [vmem:[#allocation2 + $0x478] sm:$0xff] }
 0x37b   : > { %10354 = vst [vmem:[#allocation2 + $0x448] sm:$0xff] %v10353_v63  ;;  %14596 = vmatmul.mubr.msk.bf16.gmra.mrb[152].mxu1 %vm221_vm0, %v10353_v63  ;;  %v3071_v50 = vshrl.u32 %v15268_v46, 16  ;;  %v3073_v60 = vshll.u32 %v15268_v46, 16  ;;  %v4938_v61 = vld [vmem:[#allocation2 + $0x330] sm:$0xff]  ;;  %v6571_v63 = vshll.u32 %v15269_v44, 16 }
 0x37c   : > { %v1421_v26 = vld [vmem:[#allocation2 + $0x390] sm:$0xff]  ;;  %v10055_v9 = vrot.slane %v10053_v41, 1  ;;  %v19154_v37 = vsel %vm16689_vm11, %v18928_v6, %v4938_v61  ;;  %4728 = vrot.lane.b32.xlu0 %v4501_v0, %s15472_s22  ;;  %v15271_v41 = vld [vmem:[%s15659_s19 + $0x168] sm:$0xff]  }
 0x37d   : > { %v7186_v2 = vld [vmem:[#allocation2 + $0x350] sm:$0x1]  ;;  %v1422_v43 = vsel %vm15906_vm6, %v1084_v24, %v1421_v26  ;;  %v5714_v3 = vld [vmem:[#allocation2 + $0x368] sm:$0x80]  ;;  %v6569_v24 = vshrl.u32 %v15269_v44, 16  ;;  %v3075_v26 = vrot.slane %v3073_v60, 1 }
 0x37e   : > { %v19115_v14 = vpop.permute.xlu1 %8180  ;;  %v7187_v4 = vsel %vm16520_vm12, 0, %v7186_v2  ;;  %1423 = vst [vmem:[#allocation2 + $0x390] sm:$0xff] %v1422_v43  ;;  %v15270_v2 = vld [vmem:[%s15659_s19 + $0x160] sm:$0xff]   ;;  %v5715_v12 = vsel %vm16435_vm13, 0, %v5714_v3  ;;  %4940 = vst [vmem:[#allocation2 + $0x330] sm:$0xff] %v19154_v37  ;;  %v10056_v46 = vor.u32 %v10055_v9, %v10051_v28  ;;  %v6573_v45 = vrot.slane %v6571_v63, 1 }
 0x37f   : > { %7188 = vst [vmem:[#allocation2 + $0x350] sm:$0x1] %v7187_v4  ;;  %2136 = vst.msk [vmem:[#allocation2 + $0x390] sm:$0xff] %vm20333_vm9, %v18865_v5  ;;  %v3662_v5 = vld [vmem:[#allocation2 + $0x360] sm:$0x1]  ;;  %v4503_v4 = vshrl.u32 %v15270_v2, 16  ;;  %v3076_v61 = vor.u32 %v3075_v26, %v3071_v50 }
 0x380   : > { %v19145_v25 = vpop.permute.xlu0 %3261  ;;  %5716 = vst [vmem:[#allocation2 + $0x368] sm:$0x80] %v5715_v12  ;;  %v4506_v43 = vshll.u32 %v15270_v2, 16  ;;  %v3663_v6 = vsel %vm16542_vm2, 0, %v3662_v5  ;;  %v6574_v60 = vor.u32 %v6573_v45, %v6569_v24  ;;  %v7985_v12 = vshrl.u32 %v15271_v41, 16  ;;  %v15272_v50 = vld [vmem:[%s15659_s19 + $0x130] sm:$0xff]  }
 0x381   : > { %v10355_v44 = vld [vmem:[#allocation2 + $0x460] sm:$0xff]  ;;  %3664 = vst [vmem:[#allocation2 + $0x360] sm:$0x1] %v3663_v6  ;;  %v4505_v3 = vrot.slane %v4503_v4, 7  ;;  %v338_v16 = vld [vmem:[#allocation2 + $0x3a8] sm:$0x1]  ;;  %3275 = vrot.lane.b32.xlu1 %v3076_v61, %s15471_s20 }
 0x382   : > { %v19147_v53 = vpop.permute.xlu1 %8966  ;;  %v10356_v0 = vsel %vm17919_vm4, %v10056_v46, %v10355_v44  ;;  %v7988_v9 = vshll.u32 %v15271_v41, 16  ;;  %v339_v63 = vsel %vm15873_vm5, 0, %v338_v16  ;;  %v15273_v2 = vld [vmem:[%s15659_s19 + $0x128] sm:$0xff]   ;;  %6786 = vrot.lane.b32.xlu0 %v6574_v60, %s15469_s24  ;;  %v7987_v5 = vrot.slane %v7985_v12, 7  ;;  %v19178_v46 = vpop.f32.mrb[56].mxu1  ;;  %v15275_v12 = vld [vmem:[%s15659_s19 + $0x170] sm:$0xff]  }
 0x383   : > { %10357 = vst [vmem:[#allocation2 + $0x460] sm:$0xff] %v10356_v0  ;;  %14599 = vmatprep.mubr.msk.bf16.mxu1 %vm221_vm0, %v10356_v0  ;;  %v4508_v24 = vor.u32 %v4506_v43, %v4505_v3  ;;  %340 = vst [vmem:[#allocation2 + $0x3a8] sm:$0x1] %v339_v63  ;;  %v1086_v4 = vshrl.u32 %v15272_v50, 16  ;;  %v1089_v41 = vshll.u32 %v15272_v50, 16  ;;  %v15274_v0 = vld [vmem:[%s15659_s19 + $0x188] sm:$0xff]  }
 0x384   : > { %v19166_v28 = vpop.permute.xlu0 %4716  ;;  %14600 = vmatmul.mubr.msk.bf16.gmra.mrb[156].mxu1 %vm221_vm0, %v10546_v55  ;;  %20358 = vst [vmem:[#allocation60_spill] sm:$0xff] %v19178_v46  ;;  %5577 = vst.msk [vmem:[#allocation2 + $0x380] sm:$0xff] %vm221_vm0, %v15273_v2  ;;  %v9277_v16 = vld [vmem:[#allocation2 + $0x490] sm:$0x80]  ;;  %v7990_v44 = vor.u32 %v7988_v9, %v7987_v5  ;;  %v11470_v60 = vpop.f32.mrb[57].mxu1  ;;  %v10058_v2 = vshrl.u32 %v15274_v0, 16 }
 0x385   : > { %v9278_v55 = vsel %vm17876_vm1, 0, %v9277_v16  ;;  %4730 = vrot.lane.b32.xlu1 %v4508_v24, %s15472_s22  ;;  %v1088_v61 = vrot.slane %v1086_v4, 7  ;;  %v19192_v9 = vpop.f32.mrb[58].mxu1  ;;  %v10060_v5 = vshll.u32 %v15274_v0, 16  ;;  %v15276_v24 = vld [vmem:[%s15659_s19 + $0x168] sm:$0xff]   ;;  %v3078_v16 = vshrl.u32 %v15275_v12, 16 }
 0x386   : > { %v19174_v26 = vpop.permute.xlu1 %1999  ;;  %v2274_v45 = vld [vmem:[#allocation2 + $0x390] sm:$0x80]  ;;  %9279 = vst [vmem:[#allocation2 + $0x490] sm:$0x80] %v9278_v55  ;;  %8194 = vrot.lane.b32.xlu0 %v7990_v44, %s15471_s20  ;;  %20359 = vst [vmem:[#allocation61_spill] sm:$0xff] %v19192_v9  ;;  %v3474_v46 = vld [vmem:[#allocation2 + $0x378] sm:$0xff] }
 0x387   : > { %v2275_v6 = vsel %vm16187_vm10, 0, %v2274_v45  ;;  %v6996_v43 = vld [vmem:[#allocation2 + $0x368] sm:$0xff]  ;;  %v1091_v50 = vor.u32 %v1089_v41, %v1088_v61  ;;  %v15277_v45 = vld [vmem:[%s15659_s19 + $0x190] sm:$0xff]  }
 0x388   : > { %2276 = vst [vmem:[#allocation2 + $0x390] sm:$0x80] %v2275_v6  ;;  %v6997_v3 = vsel %vm16456_vm14, %v18877_v57, %v6996_v43  ;;  %v3080_v6 = vshll.u32 %v15275_v12, 16  ;;  %v9280_v55 = vld [vmem:[#allocation2 + $0x4a8] sm:$0x80]  ;;  %v10062_v57 = vrot.slane %v10060_v5, 1 }
 0x389   : > { %v19194_v63 = vpop.permute.xlu0 %6774  ;;  %6998 = vst [vmem:[#allocation2 + $0x368] sm:$0xff] %v6997_v3  ;;  %v9281_v44 = vsel %vm17876_vm1, 0, %v9280_v55  ;;  %v10065_v43 = vshrl.u32 %v15277_v45, 16  ;;  %v10067_v0 = vshll.u32 %v15277_v45, 16  ;;  %v8390_v9 = vld [vmem:[#allocation2 + $0x350] sm:$0xff] }
 0x38a   : > { %v1424_v60 = vld [vmem:[#allocation2 + $0x3a8] sm:$0xff]  ;;  %v3082_v61 = vrot.slane %v3080_v6, 1  ;;  %8980 = vrot.lane.b32.xlu0 %v15276_v24, %s15472_s22  ;;  %9282 = vst [vmem:[#allocation2 + $0x4a8] sm:$0x80] %v9281_v44  ;;  %v10063_v5 = vor.u32 %v10062_v57, %v10058_v2  ;;  %v8391_v55 = vsel %vm16606_vm8, %v18974_v40, %v8390_v9  ;;  %v11473_v6 = vpop.f32.mrb[59].mxu1  ;;  %v10506_v24 = vld [vmem:[#allocation2 + $0x338] sm:$0xff] }
 0x38b   : > { %v1425_v3 = vsel %vm15906_vm6, %v1091_v50, %v1424_v60  ;;  %v5717_v41 = vld [vmem:[#allocation2 + $0x380] sm:$0x80]  ;;  %v3475_v50 = vsel %vm16474_vm15, %v18993_v17, %v3474_v46  ;;  %v15278_v60 = vld [vmem:[%s15659_s19 + $0x168] sm:$0xff]   ;;  %8392 = vst [vmem:[#allocation2 + $0x350] sm:$0xff] %v8391_v55  ;;  %11242 = vmatprep.mubr.bf16.mxu0 %v10506_v24  ;;  %v15279_v9 = vld [vmem:[%s15659_s19 + $0x170] sm:$0xff]  }
 0x38c   : > { %1426 = vst [vmem:[#allocation2 + $0x3a8] sm:$0xff] %v1425_v3  ;;  %v5718_v12 = vsel %vm16435_vm13, 0, %v5717_v41  ;;  %v3083_v44 = vor.u32 %v3082_v61, %v3078_v16  ;;  %v10069_v3 = vrot.slane %v10067_v0, 1  ;;  %3476 = vst [vmem:[#allocation2 + $0x378] sm:$0xff] %v3475_v50  ;;  %v4510_v17 = vshrl.u32 %v15278_v60, 16  ;;  %11243 = vmatmul.mubr.bf16.gmra.mrb[136].mxu0 %v19154_v37 }
 0x38d   : > { %2137 = vst.msk [vmem:[#allocation2 + $0x3a8] sm:$0xff] %vm20333_vm9, %v18936_v34  ;;  %5719 = vst [vmem:[#allocation2 + $0x380] sm:$0x80] %v5718_v12  ;;  %v10358_v45 = vld [vmem:[#allocation2 + $0x490] sm:$0xff]  ;;  %v4513_v46 = vshll.u32 %v15278_v60, 16  ;;  %v4941_v34 = vld [vmem:[#allocation2 + $0x348] sm:$0xff] }
 0x38e   : > { %v19198_v4 = vpop.permute.xlu1 %8182  ;;  %v10359_v40 = vsel %vm17919_vm4, %v10063_v5, %v10358_v45  ;;  %9109 = vst.msk [vmem:[#allocation2 + $0x350] sm:$0xff] %vm4834_vm3, %v18996_v36  ;;  %3277 = vrot.lane.b32.xlu1 %v3083_v44, %s15471_s20  ;;  %v10070_v41 = vor.u32 %v10069_v3, %v10065_v43  ;;  %v19231_v61 = vsel %vm16689_vm11, %v19013_v18, %v4941_v34  ;;  %v9283_v37 = vld [vmem:[#allocation2 + $0x4c0] sm:$0x80]  ;;  %v4512_v0 = vrot.slane %v4510_v17, 7  ;;  %v15280_v43 = vld [vmem:[%s15659_s19 + $0x198] sm:$0xff]   ;;  %v19239_v60 = vpop.f32.mrb[60].mxu0 }
 0x38f   : > { %v19216_v2 = vpop.permute.xlu0 %3263  ;;  %10360 = vst [vmem:[#allocation2 + $0x490] sm:$0xff] %v10359_v40  ;;  %14603 = vmatprep.mubr.msk.bf16.mxu1 %vm221_vm0, %v10359_v40  ;;  %v7992_v12 = vshrl.u32 %v15279_v9, 16  ;;  %v7995_v5 = vshll.u32 %v15279_v9, 16  ;;  %4943 = vst [vmem:[#allocation2 + $0x348] sm:$0xff] %v19231_v61  ;;  %v9284_v55 = vsel %vm17876_vm1, 0, %v9283_v37  ;;  %v10072_v44 = vshrl.u32 %v15280_v43, 16 }
 0x390   : > { %v7189_v57 = vld [vmem:[#allocation2 + $0x368] sm:$0x1]  ;;  %v4515_v6 = vor.u32 %v4513_v46, %v4512_v0  ;;  %9285 = vst [vmem:[#allocation2 + $0x4c0] sm:$0x80] %v9284_v55  ;;  %v9286_v18 = vld [vmem:[#allocation2 + $0x4d8] sm:$0x80] }
 0x391   : > { %v7190_v36 = vsel %vm16520_vm12, 0, %v7189_v57  ;;  %v10361_v50 = vld [vmem:[#allocation2 + $0x4a8] sm:$0xff]  ;;  %v7994_v24 = vrot.slane %v7992_v12, 7  ;;  %20360 = vst [vmem:[#allocation62_spill] sm:$0xff] %v19239_v60  ;;  %v10074_v3 = vshll.u32 %v15280_v43, 16  ;;  %v9287_v40 = vsel %vm17876_vm1, 0, %v9286_v18 }
 0x392   : > { %v19224_v16 = vpop.permute.xlu1 %8968  ;;  %7191 = vst [vmem:[#allocation2 + $0x368] sm:$0x1] %v7190_v36  ;;  %v10362_v45 = vsel %vm17919_vm4, %v10070_v41, %v10361_v50  ;;  %v15282_v17 = vld [vmem:[%s15659_s19 + $0x1a0] sm:$0xff]   ;;  %4732 = vrot.lane.b32.xlu1 %v4515_v6, %s15472_s22  ;;  %v15281_v36 = vld [vmem:[%s15659_s19 + $0x170] sm:$0xff]   ;;  %9288 = vst [vmem:[#allocation2 + $0x4d8] sm:$0x80] %v9287_v40 }
 0x393   : > { %10363 = vst [vmem:[#allocation2 + $0x4a8] sm:$0xff] %v10362_v45  ;;  %14604 = vmatmul.mubr.msk.bf16.gmra.mrb[160].mxu1 %vm221_vm0, %v10362_v45  ;;  %v3665_v57 = vld [vmem:[#allocation2 + $0x378] sm:$0x1]  ;;  %v7997_v37 = vor.u32 %v7995_v5, %v7994_v24  ;;  %v19251_v41 = vpop.f32.mrb[60].mxu1  ;;  %v10076_v50 = vrot.slane %v10074_v3, 1  ;;  %v10079_v6 = vshrl.u32 %v15282_v17, 16 }
 0x394   : > { %v2277_v34 = vld [vmem:[#allocation2 + $0x3a8] sm:$0x80]  ;;  %v6999_v46 = vld [vmem:[#allocation2 + $0x380] sm:$0xff]  ;;  %20361 = vst [vmem:[#allocation63_spill] sm:$0xff] %v19251_v41  ;;  %v3666_v43 = vsel %vm16542_vm2, 0, %v3665_v57  ;;  %v15283_v5 = vld [vmem:[%s15659_s19 + $0x178] sm:$0xff]  }
 0x395   : > { %v19246_v9 = vpop.permute.xlu0 %4718  ;;  %v2278_v12 = vsel %vm16187_vm10, 0, %v2277_v34  ;;  %v7000_v55 = vsel %vm16456_vm14, %v18957_v10, %v6999_v46  ;;  %3667 = vst [vmem:[#allocation2 + $0x378] sm:$0x1] %v3666_v43  ;;  %8196 = vrot.lane.b32.xlu0 %v7997_v37, %s15471_s20  ;;  %v10081_v24 = vshll.u32 %v15282_v17, 16  ;;  %v10077_v18 = vor.u32 %v10076_v50, %v10072_v44  ;;  %v341_v34 = vld [vmem:[#allocation2 + $0x3c0] sm:$0x1] }
 0x396   : > { %v19253_v0 = vpop.permute.xlu1 %2001  ;;  %2279 = vst [vmem:[#allocation2 + $0x3a8] sm:$0x80] %v2278_v12  ;;  %7001 = vst [vmem:[#allocation2 + $0x380] sm:$0xff] %v7000_v55  ;;  %v7999_v45 = vshrl.u32 %v15283_v5, 16  ;;  %v8002_v40 = vshll.u32 %v15283_v5, 16  ;;  %v342_v10 = vsel %vm15873_vm5, 0, %v341_v34 }
 0x397   : > { %v10083_v41 = vrot.slane %v10081_v24, 1  ;;  %v15284_v46 = vld [vmem:[%s15659_s19 + $0x138] sm:$0xff]   ;;  %v15285_v57 = vld [vmem:[%s15659_s19 + $0x130] sm:$0xff]   ;;  %v10364_v3 = vld [vmem:[#allocation2 + $0x4c0] sm:$0xff]  ;;  %343 = vst [vmem:[#allocation2 + $0x3c0] sm:$0x1] %v342_v10 }
 0x398   : > { %v8001_v19 = vrot.slane %v7999_v45, 7  ;;  %v10365_v12 = vsel %vm17919_vm4, %v10077_v18, %v10364_v3  ;;  %v1093_v44 = vshrl.u32 %v15284_v46, 16  ;;  %v1096_v37 = vshll.u32 %v15284_v46, 16  ;;  %5578 = vst.msk [vmem:[#allocation2 + $0x398] sm:$0xff] %vm221_vm0, %v15285_v57  ;;  %v15286_v24 = vld [vmem:[%s15659_s19 + $0x170] sm:$0xff]   ;;  %v11094_v45 = vpop.f32.mrb[61].mxu0 }
 0x399   : > { %8982 = vrot.lane.b32.xlu0 %v15281_v36, %s15472_s22  ;;  %v10084_v17 = vor.u32 %v10083_v41, %v10079_v6  ;;  %10366 = vst [vmem:[#allocation2 + $0x4c0] sm:$0xff] %v10365_v12  ;;  %14607 = vmatprep.mubr.msk.bf16.mxu1 %vm221_vm0, %v10365_v12  ;;  %v10367_v50 = vld [vmem:[#allocation2 + $0x4d8] sm:$0xff]  ;;  %v11478_v18 = vpop.f32.mrb[61].mxu1  ;;  %v19281_v36 = vld [vmem:[%s20259_s2] ss:$0 sm:$0xff]  ;;  %v19285_v34 = vpop.f32.mrb[62].mxu0 }
 0x39a   : > { %v19272_v55 = vpop.permute.xlu0 %6776  ;;  %v8004_v5 = vor.u32 %v8002_v40, %v8001_v19  ;;  %v1095_v6 = vrot.slane %v1093_v44, 7  ;;  %20362 = vst [vmem:[#allocation64_spill] sm:$0xff] %v19285_v34  ;;  %v19287_v10 = vpop.f32.mrb[62].mxu1  ;;  %v15287_v46 = vld [vmem:[%s15659_s19 + $0x178] sm:$0xff]   ;;  %v4517_v19 = vshrl.u32 %v15286_v24, 16  ;;  %v4520_v40 = vshll.u32 %v15286_v24, 16 }
 0x39b   : > { %v10368_v41 = vsel %vm17919_vm4, %v10084_v17, %v10367_v50  ;;  %20363 = vst [vmem:[#allocation65_spill] sm:$0xff] %v19287_v10  ;;  %v8393_v3 = vld [vmem:[#allocation2 + $0x368] sm:$0xff]  ;;  %v3477_v12 = vld [vmem:[#allocation2 + $0x390] sm:$0xff]  ;;  %v11097_v18 = vpop.f32.mrb[63].mxu0  ;;  %v10981_v24 = vadd.f32 %v19281_v36, %v17576_v22 }
 0x39c   : > { %v19274_v43 = vpop.permute.xlu1 %8184  ;;  %10369 = vst [vmem:[#allocation2 + $0x4d8] sm:$0xff] %v10368_v41  ;;  %14608 = vmatmul.mubr.msk.bf16.gmra.mrb[164].mxu1 %vm221_vm0, %v10368_v41  ;;  %8198 = vrot.lane.b32.xlu1 %v8004_v5, %s15471_s20  ;;  %v1098_v17 = vor.u32 %v1096_v37, %v1095_v6  ;;  %v8394_v44 = vsel %vm16606_vm8, %v19040_v31, %v8393_v3  ;;  %v11481_v41 = vpop.f32.mrb[63].mxu1  ;;  %v10509_v5 = vld [vmem:[#allocation2 + $0x350] sm:$0xff]  ;;  %v4519_v34 = vrot.slane %v4517_v19, 7  ;;  %v15288_v6 = vld [vmem:[%s15659_s19 + $0x1a8] sm:$0xff]   ;;  %v15290_v18 = vld [vmem:[%s15659_s19 + $0x178] sm:$0xff]  }
 0x39d   : > { %v7192_v57 = vld [vmem:[#allocation2 + $0x380] sm:$0x1]  ;;  %v3478_v50 = vsel %vm16474_vm15, %v19069_v51, %v3477_v12  ;;  %v9289_v10 = vld [vmem:[#allocation2 + $0x4f0] sm:$0x80]  ;;  %8395 = vst [vmem:[#allocation2 + $0x368] sm:$0xff] %v8394_v44  ;;  %11250 = vmatprep.mubr.bf16.mxu0 %v10509_v5  ;;  %v14509_v22 = vpop.f32.mrb[64].mxu1 }
 0x39e   : > { %v7193_v45 = vsel %vm16520_vm12, 0, %v7192_v57  ;;  %3479 = vst [vmem:[#allocation2 + $0x390] sm:$0xff] %v3478_v50  ;;  %v9290_v31 = vsel %vm17876_vm1, 0, %v9289_v10  ;;  %v1427_v37 = vld [vmem:[#allocation2 + $0x3c0] sm:$0xff]  ;;  %11251 = vmatmul.mubr.bf16.gmra.mrb[140].mxu0 %v19231_v61  ;;  %v9292_v51 = vld [vmem:[#allocation2 + $0x508] sm:$0x80]  ;;  %v4522_v12 = vor.u32 %v4520_v40, %v4519_v34  ;;  %v19316_v61 = vadd.f32 %v14509_v22, %v10981_v24 }
 0x39f   : > { %7194 = vst [vmem:[#allocation2 + $0x380] sm:$0x1] %v7193_v45  ;;  %9291 = vst [vmem:[#allocation2 + $0x4f0] sm:$0x80] %v9290_v31  ;;  %v19308_v57 = vpop.permute.xlu0 %3265  ;;  %v1428_v19 = vsel %vm15906_vm6, %v1098_v17, %v1427_v37  ;;  %v5720_v3 = vld [vmem:[#allocation2 + $0x398] sm:$0x80]  ;;  %v10973_v34 = vadd.f32 %v19281_v36, %v17481_v11 }
 0x3a0   : > { %9110 = vst.msk [vmem:[#allocation2 + $0x368] sm:$0xff] %vm4834_vm3, %v19071_v35  ;;  %8984 = vrot.lane.b32.xlu1 %v15287_v46, %s15472_s22  ;;  %v9293_v10 = vsel %vm17876_vm1, 0, %v9292_v51  ;;  %v15289_v45 = vld [vmem:[%s15659_s19 + $0x1b0] sm:$0xff]   ;;  %1429 = vst [vmem:[#allocation2 + $0x3c0] sm:$0xff] %v1428_v19  ;;  %v5721_v35 = vsel %vm16435_vm13, 0, %v5720_v3  ;;  %v10086_v44 = vshrl.u32 %v15288_v6, 16  ;;  %v19321_v17 = vpop.permute.xlu1 %8970  ;;  %4734 = vrot.lane.b32.xlu0 %v4522_v12, %s15472_s22  ;;  %v10984_v51 = vadd.f32 %v19281_v36, %v17610_v27 }
 0x3a1   : > { %v10088_v50 = vshll.u32 %v15288_v6, 16  ;;  %9294 = vst [vmem:[#allocation2 + $0x508] sm:$0x80] %v9293_v10  ;;  %2138 = vst.msk [vmem:[#allocation2 + $0x3c0] sm:$0xff] %vm20333_vm9, %v19015_v7  ;;  %v10093_v46 = vshrl.u32 %v15289_v45, 16  ;;  %v10095_v40 = vshll.u32 %v15289_v45, 16 }
 0x3a2   : > { %5722 = vst [vmem:[#allocation2 + $0x398] sm:$0x80] %v5721_v35  ;;  %v4524_v5 = vshrl.u32 %v15290_v18, 16  ;;  %v4527_v24 = vshll.u32 %v15290_v18, 16  ;;  %v4944_v31 = vld [vmem:[#allocation2 + $0x360] sm:$0xff]  ;;  %v11517_v37 = vpop.f32.mrb[65].mxu1 }
 0x3a3   : > { %v10090_v41 = vrot.slane %v10088_v50, 1  ;;  %v15291_v6 = vld [vmem:[%s15659_s19 + $0x178] sm:$0xff]   ;;  %v10097_v22 = vrot.slane %v10095_v40, 1  ;;  %v19334_v11 = vsel %vm16689_vm11, %v19091_v20, %v4944_v31  ;;  %v19336_v7 = vadd.f32 %v11517_v37, %v10973_v34  ;;  %v14510_v19 = vpop.f32.mrb[66].mxu1  ;;  %v15292_v50 = vld [vmem:[%s15659_s19 + $0x140] sm:$0xff]   ;;  %v19340_v18 = vpop.permute.xlu0 %4720 }
 0x3a4   : > { %v4526_v10 = vrot.slane %v4524_v5, 7  ;;  %4946 = vst [vmem:[#allocation2 + $0x360] sm:$0xff] %v19334_v11  ;;  %v6576_v45 = vshrl.u32 %v15291_v6, 16  ;;  %v6578_v35 = vshll.u32 %v15291_v6, 16  ;;  %v11529_v20 = vadd.f32 %v14510_v19, %v10984_v51  ;;  %v344_v34 = vld [vmem:[#allocation2 + $0x3d8] sm:$0x1]  ;;  %v19348_v37 = vpop.permute.xlu1 %2003 }
 0x3a5   : > { %v3668_v3 = vld [vmem:[#allocation2 + $0x390] sm:$0x1]  ;;  %v10091_v12 = vor.u32 %v10090_v41, %v10086_v44  ;;  %v10098_v60 = vor.u32 %v10097_v22, %v10093_v46  ;;  %v345_v31 = vsel %vm15873_vm5, 0, %v344_v34  ;;  %v10976_v6 = vadd.f32 %v19281_v36, %v17494_v39  ;;  %v15293_v19 = vld [vmem:[%s15659_s19 + $0x138] sm:$0xff]  }
 0x3a6   : > { %v3669_v27 = vsel %vm16542_vm2, 0, %v3668_v3  ;;  %v10370_v40 = vld [vmem:[#allocation2 + $0x4f0] sm:$0xff]  ;;  %v4529_v41 = vor.u32 %v4527_v24, %v4526_v10  ;;  %v6580_v5 = vrot.slane %v6578_v35, 1  ;;  %v14062_v51 = vpack.c.bf16 %v11529_v20, %v19316_v61  ;;  %346 = vst [vmem:[#allocation2 + $0x3d8] sm:$0x1] %v345_v31  ;;  %v11520_v35 = vpop.f32.mrb[67].mxu1 }
 0x3a7   : > { %3670 = vst [vmem:[#allocation2 + $0x390] sm:$0x1] %v3669_v27  ;;  %v10371_v44 = vsel %vm17919_vm4, %v10091_v12, %v10370_v40  ;;  %v1100_v22 = vshrl.u32 %v15292_v50, 16  ;;  %v1103_v24 = vshll.u32 %v15292_v50, 16  ;;  %v19358_v27 = vpop.f32.mrb[64].mxu0  ;;  %v15294_v40 = vld [vmem:[%s15659_s19 + $0x1b8] sm:$0xff]  }
 0x3a8   : > { %10372 = vst [vmem:[#allocation2 + $0x4f0] sm:$0xff] %v10371_v44  ;;  %14611 = vmatprep.mubr.msk.bf16.mxu1 %vm221_vm0, %v10371_v44  ;;  %v10373_v46 = vld [vmem:[#allocation2 + $0x508] sm:$0xff]  ;;  %v2280_v3 = vld [vmem:[#allocation2 + $0x3c0] sm:$0x80]  ;;  %4736 = vrot.lane.b32.xlu1 %v4529_v41, %s15472_s22  ;;  %v6581_v39 = vor.u32 %v6580_v5, %v6576_v45  ;;  %14374 = vst [vmem:[%s19369_s9 + $0x8] sm:$0xff] %v14062_v51   ;;  %v11521_v45 = vadd.f32 %v11520_v35, %v10976_v6  ;;  %v10100_v34 = vshrl.u32 %v15294_v40, 16  ;;  %v19376_v5 = vpop.permute.xlu0 %6778 }
 0x3a9   : > { %v7002_v12 = vld [vmem:[#allocation2 + $0x398] sm:$0xff]  ;;  %v10374_v10 = vsel %vm17919_vm4, %v10098_v60, %v10373_v46  ;;  %v2281_v61 = vsel %vm16187_vm10, 0, %v2280_v3  ;;  %v1102_v60 = vrot.slane %v1100_v22, 7  ;;  %5579 = vst.msk [vmem:[#allocation2 + $0x3b0] sm:$0xff] %vm221_vm0, %v15293_v19  ;;  %v9295_v20 = vld [vmem:[#allocation2 + $0x520] sm:$0x80]  ;;  %v10997_v51 = vadd.f32 %v19281_v36, %v17719_v8 }
 0x3aa   : > { %v7003_v50 = vsel %vm16456_vm14, %v19036_v21, %v7002_v12  ;;  %10375 = vst [vmem:[#allocation2 + $0x508] sm:$0xff] %v10374_v10  ;;  %14612 = vmatmul.mubr.msk.bf16.gmra.mrb[168].mxu1 %vm221_vm0, %v10374_v10  ;;  %2282 = vst [vmem:[#allocation2 + $0x3c0] sm:$0x80] %v2281_v61  ;;  %6788 = vrot.lane.b32.xlu0 %v6581_v39, %s15469_s24  ;;  %v9296_v21 = vsel %vm17876_vm1, 0, %v9295_v20  ;;  %v10102_v44 = vshll.u32 %v15294_v40, 16  ;;  %v11102_v41 = vpop.f32.mrb[65].mxu0 }
 0x3ab   : > { %7004 = vst [vmem:[#allocation2 + $0x398] sm:$0xff] %v7003_v50  ;;  %v1105_v31 = vor.u32 %v1103_v24, %v1102_v60  ;;  %v14057_v46 = vpack.c.bf16 %v11521_v45, %v19336_v7  ;;  %9297 = vst [vmem:[#allocation2 + $0x520] sm:$0x80] %v9296_v21  ;;  %v9298_v6 = vld [vmem:[#allocation2 + $0x538] sm:$0x80]  ;;  %v15295_v3 = vld [vmem:[%s15659_s19 + $0x1c0] sm:$0xff]   ;;  %v10989_v24 = vadd.f32 %v19281_v36, %v17648_v38 }
 0x3ac   : > { %v10104_v22 = vrot.slane %v10102_v44, 1  ;;  %v9299_v19 = vsel %vm17876_vm1, 0, %v9298_v6  ;;  %v19384_v12 = vpop.f32.mrb[66].mxu0  ;;  %v8396_v10 = vld [vmem:[#allocation2 + $0x380] sm:$0xff]  ;;  %v3480_v39 = vld [vmem:[#allocation2 + $0x3a8] sm:$0xff]  ;;  %v10992_v7 = vadd.f32 %v19281_v36, %v17686_v23  ;;  %v14513_v60 = vpop.f32.mrb[68].mxu1  ;;  %v11000_v38 = vadd.f32 %v19281_v36, %v17746_v54 }
 0x3ad   : > { %14058 = vst [vmem:[%s19369_s9] sm:$0xff] %v14057_v46   ;;  %9300 = vst [vmem:[#allocation2 + $0x538] sm:$0x80] %v9299_v19  ;;  %v8397_v8 = vsel %vm16606_vm8, %v19115_v14, %v8396_v10  ;;  %v3481_v40 = vsel %vm16474_vm15, %v19145_v25, %v3480_v39  ;;  %v11105_v61 = vpop.f32.mrb[67].mxu0  ;;  %v10512_v50 = vld [vmem:[#allocation2 + $0x368] sm:$0xff]  ;;  %v4947_v45 = vld [vmem:[#allocation2 + $0x378] sm:$0xff]  ;;  %v10107_v21 = vshrl.u32 %v15295_v3, 16  ;;  %v11542_v14 = vadd.f32 %v14513_v60, %v10997_v51 }
 0x3ae   : > { %v9301_v20 = vld [vmem:[#allocation2 + $0x550] sm:$0x80]  ;;  %v1430_v23 = vld [vmem:[#allocation2 + $0x3d8] sm:$0xff]  ;;  %v10109_v44 = vshll.u32 %v15295_v3, 16  ;;  %8398 = vst [vmem:[#allocation2 + $0x380] sm:$0xff] %v8397_v8  ;;  %3482 = vst [vmem:[#allocation2 + $0x3a8] sm:$0xff] %v3481_v40  ;;  %11258 = vmatprep.mubr.bf16.mxu0 %v10512_v50  ;;  %v10105_v19 = vor.u32 %v10104_v22, %v10100_v34  ;;  %v19412_v54 = vsel %vm16689_vm11, %v19166_v28, %v4947_v45 }
 0x3af   : > { %v19386_v35 = vpop.permute.xlu1 %8186  ;;  %v11533_v41 = vpop.f32.mrb[69].mxu1  ;;  %v15296_v25 = vld [vmem:[%s15659_s19 + $0x1c8] sm:$0xff]   ;;  %v1431_v6 = vsel %vm15906_vm6, %v1105_v31, %v1430_v23  ;;  %11259 = vmatmul.mubr.bf16.gmra.mrb[144].mxu0 %v19334_v11  ;;  %9111 = vst.msk [vmem:[#allocation2 + $0x380] sm:$0xff] %vm4834_vm3, %v19147_v53  ;;  %4949 = vst [vmem:[#allocation2 + $0x378] sm:$0xff] %v19412_v54  ;;  %v9302_v11 = vsel %vm17876_vm1, 0, %v9301_v20  ;;  %s15377_s24 = scalar_lea.vmem %s20205_s4, 8192 }
 0x3b0   : > { %v19401_v46 = vpop.f32.mrb[68].mxu0  ;;  %v11534_v10 = vadd.f32 %v11533_v41, %v10989_v24  ;;  %v14514_v39 = vpop.f32.mrb[70].mxu1  ;;  %1432 = vst [vmem:[#allocation2 + $0x3d8] sm:$0xff] %v1431_v6  ;;  %v5723_v3 = vld [vmem:[#allocation2 + $0x3b0] sm:$0x80]  ;;  %v10111_v8 = vrot.slane %v10109_v44, 1  ;;  %p15378_p4 = scmp.ne.s32.totalorder %s20205_s4, %s15377_s24 }
 0x3b1   : > { %v11110_v51 = vpop.f32.mrb[69].mxu0  ;;  %v11545_v40 = vadd.f32 %v14514_v39, %v11000_v38  ;;  %v11536_v34 = vpop.f32.mrb[71].mxu1  ;;  %v10114_v31 = vshrl.u32 %v15296_v25, 16  ;;  %2139 = vst.msk [vmem:[#allocation2 + $0x3d8] sm:$0xff] %vm20333_vm9, %v19093_v56  ;;  %v5724_v28 = vsel %vm16435_vm13, 0, %v5723_v3  ;;  %v10116_v61 = vshll.u32 %v15296_v25, 16 }
 0x3b2   : > { %v19417_v22 = vpop.permute.xlu0 %3267  ;;  %v7195_v53 = vld [vmem:[#allocation2 + $0x398] sm:$0x1]  ;;  %v11537_v24 = vadd.f32 %v11536_v34, %v10992_v7  ;;  %9303 = vst [vmem:[#allocation2 + $0x550] sm:$0x80] %v9302_v11  ;;  %v9304_v50 = vld [vmem:[#allocation2 + $0x568] sm:$0x80]  ;;  %v10112_v20 = vor.u32 %v10111_v8, %v10107_v21  ;;  %v11013_v11 = vadd.f32 %v19281_v36, %v17910_v59  ;;  %p15379_p6 = pnand %p15378_p4, %p15594_p10 }
 0x3b3   : > { %v7196_v60 = vsel %vm16520_vm12, 0, %v7195_v53  ;;  %5725 = vst [vmem:[#allocation2 + $0x3b0] sm:$0x80] %v5724_v28  ;;  %v10376_v45 = vld [vmem:[#allocation2 + $0x520] sm:$0xff]  ;;  %v14072_v38 = vpack.c.bf16 %v11545_v40, %v11542_v14  ;;  %v9305_v23 = vsel %vm17876_vm1, 0, %v9304_v50  ;;  %v15297_v44 = vld [vmem:[%s15659_s19 + $0x1d0] sm:$0xff]   ;;  %v19432_v39 = vpop.permute.xlu1 %8972 }
 0x3b4   : > { %7197 = vst [vmem:[#allocation2 + $0x398] sm:$0x1] %v7196_v60  ;;  %v10377_v56 = vsel %vm17919_vm4, %v10105_v19, %v10376_v45  ;;  %v14067_v7 = vpack.c.bf16 %v11537_v24, %v11534_v10  ;;  %v10118_v41 = vrot.slane %v10116_v61, 1  ;;  %9306 = vst [vmem:[#allocation2 + $0x568] sm:$0x80] %v9305_v23  ;;  %v19430_v25 = vpop.f32.mrb[70].mxu0  ;;  %v11005_v61 = vadd.f32 %v19281_v36, %v17784_v62  ;;  %p15380_p8 = pneg %p15379_p6 }
 0x3b5   : > { %v347_v6 = vld [vmem:[#allocation2 + $0x3f0] sm:$0x1]  ;;  %10378 = vst [vmem:[#allocation2 + $0x520] sm:$0xff] %v10377_v56  ;;  %14615 = vmatprep.mubr.msk.bf16.mxu1 %vm221_vm0, %v10377_v56  ;;  %v10379_v21 = vld [vmem:[#allocation2 + $0x538] sm:$0xff]  ;;  %14376 = vst [vmem:[%s19369_s9 + $0x18] sm:$0xff] %v14072_v38   ;;  %v10121_v14 = vshrl.u32 %v15297_v44, 16 }
 0x3b6   : > { %v10123_v51 = vshll.u32 %v15297_v44, 16  ;;  %v348_v19 = vsel %vm15873_vm5, 0, %v347_v6  ;;  %v10380_v10 = vsel %vm17919_vm4, %v10112_v20, %v10379_v21  ;;  %v3671_v3 = vld [vmem:[#allocation2 + $0x3a8] sm:$0x1]  ;;  %14375 = vst [vmem:[%s19369_s9 + $0x10] sm:$0xff] %v14067_v7   ;;  %v10119_v8 = vor.u32 %v10118_v41, %v10114_v31  ;;  %v11113_v34 = vpop.f32.mrb[71].mxu0  ;;  %v19447_v24 = vpop.permute.xlu0 %4722 }
 0x3b7   : > { %349 = vst [vmem:[#allocation2 + $0x3f0] sm:$0x1] %v348_v19  ;;  %v15298_v40 = vld [vmem:[%s15659_s19 + $0x148] sm:$0xff]   ;;  %10381 = vst [vmem:[#allocation2 + $0x538] sm:$0xff] %v10380_v10  ;;  %14616 = vmatmul.mubr.msk.bf16.gmra.mrb[172].mxu1 %vm221_vm0, %v10380_v10  ;;  %v3672_v53 = vsel %vm16542_vm2, 0, %v3671_v3  ;;  %v20364_v50 = vld [vmem:[#allocation20_spill] sm:$0xff] }
 0x3b8   : > { %v10125_v28 = vrot.slane %v10123_v51, 1  ;;  %v11008_v31 = vadd.f32 %v19281_v36, %v20364_v50  ;;  %3673 = vst [vmem:[#allocation2 + $0x3a8] sm:$0x1] %v3672_v53  ;;  %v1107_v60 = vshrl.u32 %v15298_v40, 16  ;;  %v1110_v45 = vshll.u32 %v15298_v40, 16  ;;  %v15299_v20 = vld [vmem:[%s15659_s19 + $0x140] sm:$0xff]  }
 0x3b9   : > { %v14517_v59 = vpop.f32.mrb[72].mxu1  ;;  %v3483_v38 = vld [vmem:[#allocation2 + $0x3c0] sm:$0xff]  ;;  %v20365_v44 = vld [vmem:[#allocation23_spill] sm:$0xff]  ;;  %v2283_v7 = vld [vmem:[#allocation2 + $0x3d8] sm:$0x80]  ;;  %5580 = vst.msk [vmem:[#allocation2 + $0x3c8] sm:$0xff] %vm221_vm0, %v15299_v20 }
 0x3ba   : > { %v10515_v23 = vld [vmem:[#allocation2 + $0x380] sm:$0xff]  ;;  %v11016_v56 = vadd.f32 %v19281_v36, %v20365_v44  ;;  %v10382_v41 = vld [vmem:[#allocation2 + $0x550] sm:$0xff]  ;;  %v10126_v6 = vor.u32 %v10125_v28, %v10121_v14  ;;  %v11558_v21 = vadd.f32 %v14517_v59, %v11013_v11  ;;  %v11549_v51 = vpop.f32.mrb[73].mxu1  ;;  %v3484_v62 = vsel %vm16474_vm15, %v19216_v2, %v3483_v38  ;;  %v19465_v11 = vpop.permute.xlu1 %2005  ;;  %v15300_v44 = vld [vmem:[%s15659_s19 + $0x1d8] sm:$0xff]   ;;  %s15381_s22 = sshll.u32 %s15473_s15, 4  ;;  %s15382_s22 = int_to_ptr.vmem [resolvable:$false] %s15381_s22 }
 0x3bb   : > { %11266 = vmatprep.mubr.bf16.mxu0 %v10515_v23  ;;  %v9307_v19 = vld [vmem:[#allocation2 + $0x580] sm:$0x80]  ;;  %v2284_v10 = vsel %vm16187_vm10, 0, %v2283_v7  ;;  %v7005_v3 = vld [vmem:[#allocation2 + $0x3b0] sm:$0xff]  ;;  %v10383_v40 = vsel %vm17919_vm4, %v10119_v8, %v10382_v41  ;;  %v1109_v34 = vrot.slane %v1107_v60, 7  ;;  %v11550_v53 = vadd.f32 %v11549_v51, %v11005_v61  ;;  %v14518_v14 = vpop.f32.mrb[74].mxu1  ;;  %p15384_p12 = scmp.lt.s32.totalorder %s20205_s4, %s15382_s22 }
 0x3bc   : > { %3485 = vst [vmem:[#allocation2 + $0x3c0] sm:$0xff] %v3484_v62  ;;  %11267 = vmatmul.mubr.bf16.gmra.mrb[148].mxu0 %v19412_v54  ;;  %v20366_v2 = vld [vmem:[#allocation26_spill] sm:$0xff]  ;;  %2285 = vst [vmem:[#allocation2 + $0x3d8] sm:$0x80] %v2284_v10  ;;  %v7006_v50 = vsel %vm16456_vm14, %v19113_v42, %v7005_v3  ;;  %14619 = vmatprep.mubr.msk.bf16.mxu1 %vm221_vm0, %v10383_v40  ;;  %v10385_v8 = vld [vmem:[#allocation2 + $0x568] sm:$0xff]  ;;  %v11561_v61 = vadd.f32 %v14518_v14, %v11016_v56  ;;  %v11552_v20 = vpop.f32.mrb[75].mxu1 }
 0x3bd   : > { %v11021_v28 = vadd.f32 %v19281_v36, %v20366_v2  ;;  %10384 = vst [vmem:[#allocation2 + $0x550] sm:$0xff] %v10383_v40  ;;  %v8399_v60 = vld [vmem:[#allocation2 + $0x398] sm:$0xff]  ;;  %v9308_v54 = vsel %vm17876_vm1, 0, %v9307_v19  ;;  %7007 = vst [vmem:[#allocation2 + $0x3b0] sm:$0xff] %v7006_v50  ;;  %v10386_v59 = vsel %vm17919_vm4, %v10126_v6, %v10385_v8  ;;  %v1112_v38 = vor.u32 %v1110_v45, %v1109_v34  ;;  %v19481_v56 = vpop.f32.mrb[72].mxu0  ;;  %v20367_v41 = vld [vmem:[#allocation30_spill] sm:$0xff] }
 0x3be   : > { %v8400_v42 = vsel %vm16606_vm8, %v19198_v4, %v8399_v60  ;;  %v11553_v23 = vadd.f32 %v11552_v20, %v11008_v31  ;;  %9309 = vst [vmem:[#allocation2 + $0x580] sm:$0x80] %v9308_v54  ;;  %v9310_v7 = vld [vmem:[#allocation2 + $0x598] sm:$0x80]  ;;  %v11029_v51 = vadd.f32 %v19281_v36, %v20367_v41  ;;  %v20368_v62 = vld [vmem:[#allocation31_spill] sm:$0xff]  ;;  %10387 = vst [vmem:[#allocation2 + $0x568] sm:$0xff] %v10386_v59  ;;  %v19490_v3 = vpop.permute.xlu0 %6780 }
 0x3bf   : > { %v11032_v19 = vadd.f32 %v19281_v36, %v20368_v62  ;;  %v1433_v10 = vld [vmem:[#allocation2 + $0x3f0] sm:$0xff]  ;;  %v14082_v45 = vpack.c.bf16 %v11561_v61, %v11558_v21  ;;  %8401 = vst [vmem:[#allocation2 + $0x398] sm:$0xff] %v8400_v42  ;;  %v9311_v4 = vsel %vm17876_vm1, 0, %v9310_v7  ;;  %v15301_v31 = vld [vmem:[%s15659_s19 + $0x1e0] sm:$0xff]   ;;  %v14521_v6 = vpop.f32.mrb[76].mxu1  ;;  %v10128_v14 = vshrl.u32 %v15300_v44, 16  ;;  %14620 = vmatmul.mubr.msk.bf16.gmra.mrb[176].mxu1 %vm221_vm0, %v10386_v59 }
 0x3c0   : > { %v1434_v40 = vsel %vm15906_vm6, %v1112_v38, %v1433_v10  ;;  %v14077_v34 = vpack.c.bf16 %v11553_v23, %v11550_v53  ;;  %v10130_v2 = vshll.u32 %v15300_v44, 16  ;;  %9312 = vst [vmem:[#allocation2 + $0x598] sm:$0x80] %v9311_v4  ;;  %9112 = vst.msk [vmem:[#allocation2 + $0x398] sm:$0xff] %vm4834_vm3, %v19224_v16  ;;  %v4950_v21 = vld [vmem:[#allocation2 + $0x390] sm:$0xff]  ;;  %v11118_v50 = vpop.f32.mrb[73].mxu0  ;;  %v11574_v54 = vadd.f32 %v14521_v6, %v11029_v51 }
 0x3c1   : > { %v11565_v8 = vpop.f32.mrb[77].mxu1  ;;  %v15302_v61 = vld [vmem:[%s15659_s19 + $0x150] sm:$0xff]   ;;  %1435 = vst [vmem:[#allocation2 + $0x3f0] sm:$0xff] %v1434_v40  ;;  %14378 = vst [vmem:[%s19369_s9 + $0x28] sm:$0xff] %v14082_v45   ;;  %v10135_v60 = vshrl.u32 %v15301_v31, 16  ;;  %v10137_v20 = vshll.u32 %v15301_v31, 16  ;;  %v19502_v53 = vsel %vm16689_vm11, %v19246_v9, %v4950_v21 }
 0x3c2   : > { %v19504_v38 = vpop.f32.mrb[74].mxu0  ;;  %v14522_v16 = vpop.f32.mrb[78].mxu1  ;;  %v350_v42 = vld [vmem:[#allocation2 + $0x408] sm:$0x1]  ;;  %2140 = vst.msk [vmem:[#allocation2 + $0x3f0] sm:$0xff] %vm20333_vm9, %v19174_v26  ;;  %14377 = vst [vmem:[%s19369_s9 + $0x20] sm:$0xff] %v14077_v34   ;;  %v19510_v23 = vadd.f32 %v11565_v8, %v11021_v28 }
 0x3c3   : > { %v10132_v59 = vrot.slane %v10130_v2, 1  ;;  %4952 = vst [vmem:[#allocation2 + $0x390] sm:$0xff] %v19502_v53  ;;  %v11577_v44 = vadd.f32 %v14522_v16, %v11032_v19  ;;  %v15303_v7 = vld [vmem:[%s15659_s19 + $0x148] sm:$0xff]   ;;  %v19513_v41 = vpop.permute.xlu1 %8188  ;;  %v3674_v62 = vld [vmem:[#allocation2 + $0x3c0] sm:$0x1]  ;;  %v10139_v51 = vrot.slane %v10137_v20, 1 }
 0x3c4   : > { %v5726_v9 = vld [vmem:[#allocation2 + $0x3c8] sm:$0x80]  ;;  %v351_v10 = vsel %vm15873_vm5, 0, %v350_v42  ;;  %v3675_v26 = vsel %vm16542_vm2, 0, %v3674_v62  ;;  %5581 = vst.msk [vmem:[#allocation2 + $0x3e0] sm:$0xff] %vm221_vm0, %v15303_v7  ;;  %v20369_v19 = vld [vmem:[#allocation28_spill] sm:$0xff]  ;;  %v19524_v8 = vpop.permute.xlu0 %3269 }
 0x3c5   : > { %v5727_v45 = vsel %vm16435_vm13, 0, %v5726_v9  ;;  %v10133_v4 = vor.u32 %v10132_v59, %v10128_v14  ;;  %v14092_v28 = vpack.c.bf16 %v11577_v44, %v11574_v54  ;;  %352 = vst [vmem:[#allocation2 + $0x408] sm:$0x1] %v351_v10  ;;  %v11024_v31 = vadd.f32 %v19281_v36, %v20369_v19  ;;  %v7198_v6 = vld [vmem:[#allocation2 + $0x3b0] sm:$0x1]  ;;  %v10388_v40 = vld [vmem:[#allocation2 + $0x580] sm:$0xff] }
 0x3c6   : > { %5728 = vst [vmem:[#allocation2 + $0x3c8] sm:$0x80] %v5727_v45  ;;  %3676 = vst [vmem:[#allocation2 + $0x3c0] sm:$0x1] %v3675_v26  ;;  %v10140_v34 = vor.u32 %v10139_v51, %v10135_v60  ;;  %v1114_v2 = vshrl.u32 %v15302_v61, 16  ;;  %v1117_v21 = vshll.u32 %v15302_v61, 16 }
 0x3c7   : > { %v11121_v50 = vpop.f32.mrb[75].mxu0  ;;  %v7199_v14 = vsel %vm16520_vm12, 0, %v7198_v6  ;;  %v10389_v20 = vsel %vm17919_vm4, %v10133_v4, %v10388_v40  ;;  %14380 = vst [vmem:[%s19369_s9 + $0x38] sm:$0xff] %v14092_v28   ;;  %v11568_v54 = vpop.f32.mrb[79].mxu1  ;;  %v9313_v16 = vld [vmem:[#allocation2 + $0x5b0] sm:$0x80] }
 0x3c8   : > { %v19531_v42 = vpop.permute.xlu1 %8974  ;;  %7200 = vst [vmem:[#allocation2 + $0x3b0] sm:$0x1] %v7199_v14  ;;  %10390 = vst [vmem:[#allocation2 + $0x580] sm:$0xff] %v10389_v20  ;;  %14623 = vmatprep.mubr.msk.bf16.mxu1 %vm221_vm0, %v10389_v20  ;;  %v10391_v61 = vld [vmem:[#allocation2 + $0x598] sm:$0xff]  ;;  %v1116_v60 = vrot.slane %v1114_v2, 7  ;;  %v11569_v59 = vadd.f32 %v11568_v54, %v11024_v31  ;;  %v9314_v44 = vsel %vm17876_vm1, 0, %v9313_v16 }
 0x3c9   : > { %v15304_v7 = vld [vmem:[%s15659_s19 + $0x1e8] sm:$0xff]   ;;  %v20370_v9 = vld [vmem:[#allocation34_spill] sm:$0xff]  ;;  %v10392_v45 = vsel %vm17919_vm4, %v10140_v34, %v10391_v61  ;;  %9315 = vst [vmem:[#allocation2 + $0x5b0] sm:$0x80] %v9314_v44  ;;  %v2286_v4 = vld [vmem:[#allocation2 + $0x3f0] sm:$0x80] }
 0x3ca   : > { %v11037_v62 = vadd.f32 %v19281_v36, %v20370_v9  ;;  %v20371_v51 = vld [vmem:[#allocation35_spill] sm:$0xff]  ;;  %10393 = vst [vmem:[#allocation2 + $0x598] sm:$0xff] %v10392_v45  ;;  %14624 = vmatmul.mubr.msk.bf16.gmra.mrb[180].mxu1 %vm221_vm0, %v10392_v45  ;;  %v1119_v28 = vor.u32 %v1117_v21, %v1116_v60  ;;  %v14087_v19 = vpack.c.bf16 %v11569_v59, %v19510_v23  ;;  %v10142_v31 = vshrl.u32 %v15304_v7, 16  ;;  %v15305_v40 = vld [vmem:[%s15659_s19 + $0x1f0] sm:$0xff]   ;;  %v3486_v2 = vld [vmem:[#allocation2 + $0x3d8] sm:$0xff]  ;;  %v19557_v54 = vpop.f32.mrb[76].mxu0 }
 0x3cb   : > { %v19541_v10 = vadd.f32 %v19281_v36, %v20371_v51  ;;  %v9316_v26 = vld [vmem:[#allocation2 + $0x5c8] sm:$0x80]  ;;  %v10144_v6 = vshll.u32 %v15304_v7, 16  ;;  %v20372_v50 = vld [vmem:[#allocation38_spill] sm:$0xff]  ;;  %v2287_v34 = vsel %vm16187_vm10, 0, %v2286_v4  ;;  %v3487_v21 = vsel %vm16474_vm15, %v19308_v57, %v3486_v2  ;;  %v10518_v23 = vld [vmem:[#allocation2 + $0x398] sm:$0xff] }
 0x3cc   : > { %v11045_v14 = vadd.f32 %v19281_v36, %v20372_v50  ;;  %v9317_v20 = vsel %vm17876_vm1, 0, %v9316_v26  ;;  %v14525_v16 = vpop.f32.mrb[80].mxu1  ;;  %v4953_v61 = vld [vmem:[#allocation2 + $0x3a8] sm:$0xff]  ;;  %2288 = vst [vmem:[#allocation2 + $0x3f0] sm:$0x80] %v2287_v34  ;;  %14379 = vst [vmem:[%s19369_s9 + $0x30] sm:$0xff] %v14087_v19   ;;  %11274 = vmatprep.mubr.bf16.mxu0 %v10518_v23  ;;  %v19564_v57 = vpop.permute.xlu1 %2007 }
 0x3cd   : > { %v20373_v60 = vld [vmem:[#allocation39_spill] sm:$0xff]  ;;  %v5729_v7 = vld [vmem:[#allocation2 + $0x3e0] sm:$0x80]  ;;  %v10146_v9 = vrot.slane %v10144_v6, 1  ;;  %9318 = vst [vmem:[#allocation2 + $0x5c8] sm:$0x80] %v9317_v20  ;;  %v19562_v26 = vpop.permute.xlu0 %4724  ;;  %11275 = vmatmul.mubr.bf16.gmra.mrb[152].mxu0 %v19502_v53 }
 0x3ce   : > { %v11048_v59 = vadd.f32 %v19281_v36, %v20373_v60  ;;  %v1436_v44 = vld [vmem:[#allocation2 + $0x408] sm:$0xff]  ;;  %v10149_v51 = vshrl.u32 %v15305_v40, 16  ;;  %v10151_v45 = vshll.u32 %v15305_v40, 16  ;;  %3488 = vst [vmem:[#allocation2 + $0x3d8] sm:$0xff] %v3487_v21  ;;  %v5730_v50 = vsel %vm16435_vm13, 0, %v5729_v7  ;;  %v11126_v19 = vpop.f32.mrb[77].mxu0 }
 0x3cf   : > { %v7008_v4 = vld [vmem:[#allocation2 + $0x3c8] sm:$0xff]  ;;  %v1437_v2 = vsel %vm15906_vm6, %v1119_v28, %v1436_v44  ;;  %v11590_v34 = vadd.f32 %v14525_v16, %v11045_v14  ;;  %v11581_v6 = vpop.f32.mrb[81].mxu1  ;;  %v19574_v40 = vsel %vm16689_vm11, %v19340_v18, %v4953_v61  ;;  %v9319_v20 = vld [vmem:[#allocation2 + $0x5e0] sm:$0x80]  ;;  %5731 = vst [vmem:[#allocation2 + $0x3e0] sm:$0x80] %v5730_v50  ;;  %v10147_v28 = vor.u32 %v10146_v9, %v10142_v31 }
 0x3d0   : > { %v7009_v21 = vsel %vm16456_vm14, %v19194_v63, %v7008_v4  ;;  %1438 = vst [vmem:[#allocation2 + $0x408] sm:$0xff] %v1437_v2  ;;  %v10153_v23 = vrot.slane %v10151_v45, 1  ;;  %v11582_v60 = vadd.f32 %v11581_v6, %v11037_v62  ;;  %v19579_v14 = vpop.f32.mrb[78].mxu0  ;;  %v14526_v16 = vpop.f32.mrb[82].mxu1  ;;  %4955 = vst [vmem:[#allocation2 + $0x3a8] sm:$0xff] %v19574_v40  ;;  %v15306_v53 = vld [vmem:[%s15659_s19 + $0x1f8] sm:$0xff]  }
 0x3d1   : > { %v20374_v44 = vld [vmem:[#allocation42_spill] sm:$0xff]  ;;  %7010 = vst [vmem:[#allocation2 + $0x3c8] sm:$0xff] %v7009_v21  ;;  %2141 = vst.msk [vmem:[#allocation2 + $0x408] sm:$0xff] %vm20333_vm9, %v19253_v0  ;;  %v8402_v63 = vld [vmem:[#allocation2 + $0x3b0] sm:$0xff]  ;;  %v11593_v31 = vadd.f32 %v14526_v16, %v11048_v59  ;;  %v11129_v9 = vpop.f32.mrb[79].mxu0  ;;  %v11584_v62 = vpop.f32.mrb[83].mxu1 }
 0x3d2   : > { %v11053_v18 = vadd.f32 %v19281_v36, %v20374_v44  ;;  %v20375_v61 = vld [vmem:[#allocation46_spill] sm:$0xff]  ;;  %v9320_v45 = vsel %vm17876_vm1, 0, %v9319_v20  ;;  %v10394_v4 = vld [vmem:[#allocation2 + $0x5b0] sm:$0xff]  ;;  %v10154_v2 = vor.u32 %v10153_v23, %v10149_v51  ;;  %v8403_v50 = vsel %vm16606_vm8, %v19274_v43, %v8402_v63  ;;  %v14529_v0 = vpop.f32.mrb[84].mxu1  ;;  %v20376_v20 = vld [vmem:[#allocation43_spill] sm:$0xff]  ;;  %s15383_s10 = scalar_lea.vmem %s15382_s22, 16384 }
 0x3d3   : > { %v11061_v7 = vadd.f32 %v19281_v36, %v20375_v61  ;;  %v11585_v19 = vadd.f32 %v11584_v62, %v19541_v10  ;;  %9321 = vst [vmem:[#allocation2 + $0x5e0] sm:$0x80] %v9320_v45  ;;  %v10156_v6 = vshrl.u32 %v15306_v53, 16  ;;  %v353_v21 = vld [vmem:[#allocation2 + $0x420] sm:$0x1]  ;;  %v10395_v59 = vsel %vm17919_vm4, %v10147_v28, %v10394_v4  ;;  %8404 = vst [vmem:[#allocation2 + $0x3b0] sm:$0xff] %v8403_v50  ;;  %v19609_v61 = vpop.permute.xlu0 %6782  ;;  %p15385_p11 = scmp.lt.s32.totalorder %s15383_s10, %s15377_s24 }
 0x3d4   : > { %v14102_v16 = vpack.c.bf16 %v11593_v31, %v11590_v34  ;;  %v10158_v15 = vshll.u32 %v15306_v53, 16  ;;  %v354_v51 = vsel %vm15873_vm5, 0, %v353_v21  ;;  %v11056_v43 = vadd.f32 %v19281_v36, %v20376_v20  ;;  %v20377_v23 = vld [vmem:[#allocation48_spill] sm:$0xff]  ;;  %10396 = vst [vmem:[#allocation2 + $0x5b0] sm:$0xff] %v10395_v59  ;;  %14627 = vmatprep.mubr.msk.bf16.mxu1 %vm221_vm0, %v10395_v59  ;;  %9113 = vst.msk [vmem:[#allocation2 + $0x3b0] sm:$0xff] %vm4834_vm3, %v19321_v17  ;;  %v15307_v34 = vld [vmem:[%s15659_s19 + $0x158] sm:$0xff]   ;;  %v19619_v21 = vpop.permute.xlu1 %8190 }
 0x3d5   : > { %v11064_v10 = vadd.f32 %v19281_v36, %v20377_v23  ;;  %v14097_v28 = vpack.c.bf16 %v11585_v19, %v11582_v60  ;;  %355 = vst [vmem:[#allocation2 + $0x420] sm:$0x1] %v354_v51  ;;  %v19607_v53 = vadd.f32 %v14529_v0, %v11061_v7  ;;  %v11597_v44 = vpop.f32.mrb[85].mxu1  ;;  %20378 = vst [vmem:[#allocation20_spill] sm:$0xff] %v19609_v61  ;;  %v20379_v63 = vld [vmem:[#allocation50_spill] sm:$0xff]  ;;  %v10397_v45 = vld [vmem:[#allocation2 + $0x5c8] sm:$0xff]  ;;  %p15386_p0 = por %p15385_p11, %p15384_p12 }
 0x3d6   : > { %v19613_v31 = vadd.f32 %v19281_v36, %v20379_v63  ;;  %v20380_v9 = vld [vmem:[#allocation54_spill] sm:$0xff]  ;;  %v3677_v4 = vld [vmem:[#allocation2 + $0x3d8] sm:$0x1]  ;;  %14382 = vst [vmem:[%s19369_s9 + $0x48] sm:$0xff] %v14102_v16   ;;  %v10160_v17 = vrot.slane %v10158_v15, 1  ;;  %v15308_v60 = vld [vmem:[%s15659_s19 + $0x150] sm:$0xff]   ;;  %v11598_v50 = vadd.f32 %v11597_v44, %v11053_v18  ;;  %v10398_v7 = vsel %vm17919_vm4, %v10154_v2, %v10397_v45 }
 0x3d7   : > { %v11077_v62 = vadd.f32 %v19281_v36, %v20380_v9  ;;  %v14530_v19 = vpop.f32.mrb[86].mxu1  ;;  %20381 = vst [vmem:[#allocation23_spill] sm:$0xff] %v19619_v21  ;;  %v3678_v0 = vsel %vm16542_vm2, 0, %v3677_v4  ;;  %14381 = vst [vmem:[%s19369_s9 + $0x40] sm:$0xff] %v14097_v28   ;;  %v1121_v59 = vshrl.u32 %v15307_v34, 16  ;;  %v1124_v51 = vshll.u32 %v15307_v34, 16  ;;  %14628 = vmatmul.mubr.msk.bf16.gmra.mrb[184].mxu1 %vm221_vm0, %v10398_v7  ;;  %p15387_p5 = pnand %p15386_p0, %p15380_p8 }
 0x3d8   : > { %v3489_v20 = vld [vmem:[#allocation2 + $0x3f0] sm:$0xff]  ;;  %v11600_v23 = vpop.f32.mrb[87].mxu1  ;;  %v19626_v63 = vpop.f32.mrb[80].mxu0  ;;  %v7011_v16 = vld [vmem:[#allocation2 + $0x3e0] sm:$0xff]  ;;  %10399 = vst [vmem:[#allocation2 + $0x5c8] sm:$0xff] %v10398_v7  ;;  %v10161_v18 = vor.u32 %v10160_v17, %v10156_v6  ;;  %5582 = vst.msk [vmem:[#allocation2 + $0x3f8] sm:$0xff] %vm221_vm0, %v15308_v60  ;;  %v11609_v15 = vadd.f32 %v14530_v19, %v11064_v10 }
 0x3d9   : > { %3679 = vst [vmem:[#allocation2 + $0x3d8] sm:$0x1] %v3678_v0  ;;  %v3490_v2 = vsel %vm16474_vm15, %v19417_v22, %v3489_v20  ;;  %v11601_v28 = vadd.f32 %v11600_v23, %v11056_v43  ;;  %v11134_v44 = vpop.f32.mrb[81].mxu0  ;;  %v4956_v34 = vld [vmem:[#allocation2 + $0x3c0] sm:$0xff]  ;;  %v14533_v9 = vpop.f32.mrb[88].mxu1  ;;  %v20382_v4 = vld [vmem:[#allocation56_spill] sm:$0xff]  ;;  %v7012_v6 = vsel %vm16456_vm14, %v19272_v55, %v7011_v16  ;;  %vm20387_vm1 = vmmov %vm20333_vm9 }
 0x3da   : > { %v356_v45 = vld [vmem:[#allocation2 + $0x438] sm:$0x1]  ;;  %v11080_v21 = vadd.f32 %v19281_v36, %v20382_v4  ;;  %v7201_v61 = vld [vmem:[#allocation2 + $0x3c8] sm:$0x1]  ;;  %v2289_v7 = vld [vmem:[#allocation2 + $0x408] sm:$0x80]  ;;  %v19643_v22 = vsel %vm16689_vm11, %v19447_v24, %v4956_v34  ;;  %v14112_v55 = vpack.c.bf16 %v11609_v15, %v19607_v53  ;;  %v11622_v15 = vadd.f32 %v14533_v9, %v11077_v62  ;;  %v19670_v62 = vpop.permute.xlu1 %8976 }
 0x3db   : > { %v1123_v10 = vrot.slane %v1121_v59, 7  ;;  %3491 = vst [vmem:[#allocation2 + $0x3f0] sm:$0xff] %v3490_v2  ;;  %v19638_v17 = vpop.f32.mrb[82].mxu0  ;;  %v7202_v43 = vsel %vm16520_vm12, 0, %v7201_v61  ;;  %v2290_v36 = vsel %vm16187_vm10, 0, %v2289_v7  ;;  %7013 = vst [vmem:[#allocation2 + $0x3e0] sm:$0xff] %v7012_v6  ;;  %v14107_v19 = vpack.c.bf16 %v11601_v28, %v11598_v50  ;;  %v19668_v6 = vpop.permute.xlu0 %3271 }
 0x3dc   : > { %v10400_v60 = vld [vmem:[#allocation2 + $0x5e0] sm:$0xff]  ;;  %4958 = vst [vmem:[#allocation2 + $0x3c0] sm:$0xff] %v19643_v22  ;;  %v11137_v0 = vpop.f32.mrb[83].mxu0  ;;  %v11613_v59 = vpop.f32.mrb[89].mxu1  ;;  %v20383_v20 = vld [vmem:[#allocation51_spill] sm:$0xff]  ;;  %v10594_v50 = vld [vmem:[#allocation2 + $0x5f8] sm:$0xff] }
 0x3dd   : > { %v15309_v24 = vld [vmem:[%s15659_s19 + $0x160] sm:$0xff]   ;;  %7203 = vst [vmem:[#allocation2 + $0x3c8] sm:$0x1] %v7202_v43  ;;  %2291 = vst [vmem:[#allocation2 + $0x408] sm:$0x80] %v2290_v36  ;;  %v10401_v53 = vsel %vm17919_vm4, %v10161_v18, %v10400_v60  ;;  %v1126_v16 = vor.u32 %v1124_v51, %v1123_v10  ;;  %v14534_v2 = vpop.f32.mrb[90].mxu1  ;;  %v11614_v4 = vadd.f32 %v11613_v59, %v19613_v31 }
 0x3de   : > { %v19655_v61 = vld [vmem:[%s20259_s2] ss:$0 sm:$0xff]  ;;  %v15310_v28 = vld [vmem:[%s15659_s19 + $0x158] sm:$0xff]   ;;  %10402 = vst [vmem:[#allocation2 + $0x5e0] sm:$0xff] %v10401_v53  ;;  %14631 = vmatprep.mubr.msk.bf16.mxu1 %vm221_vm0, %v10401_v53  ;;  %14384 = vst [vmem:[%s19369_s9 + $0x58] sm:$0xff] %v14112_v55   ;;  %v11625_v7 = vadd.f32 %v14534_v2, %v11080_v21  ;;  %v357_v30 = vsel %vm15873_vm5, 0, %v356_v45 }
 0x3df   : > { %v11072_v23 = vadd.f32 %v19655_v61, %v20383_v20  ;;  %v1439_v44 = vld [vmem:[#allocation2 + $0x420] sm:$0xff]  ;;  %14383 = vst [vmem:[%s19369_s9 + $0x50] sm:$0xff] %v14107_v19   ;;  %v10521_v34 = vld [vmem:[#allocation2 + $0x3b0] sm:$0xff]  ;;  %v1128_v18 = vshrl.u32 %v15309_v24, 16  ;;  %358 = vst [vmem:[#allocation2 + $0x438] sm:$0x1] %v357_v30  ;;  %14632 = vmatmul.mubr.msk.bf16.gmra.mrb[188].mxu1 %vm221_vm0, %v10594_v50  ;;  %v11128_v49 = vadd.f32 %v19655_v61, %v19579_v14 }
 0x3e0   : > { %v20384_v51 = vld [vmem:[#allocation62_spill] sm:$0xff]  ;;  %v1440_v10 = vsel %vm15906_vm6, %v1126_v16, %v1439_v44  ;;  %11282 = vmatprep.mubr.bf16.mxu0 %v10521_v34  ;;  %v1131_v43 = vshll.u32 %v15309_v24, 16  ;;  %5583 = vst.msk [vmem:[#allocation2 + $0x410] sm:$0xff] %vm221_vm0, %v15310_v28  ;;  %v11616_v31 = vpop.f32.mrb[91].mxu1  ;;  %v19677_v21 = vpop.f32.mrb[84].mxu0  ;;  %v19680_v45 = vld [vmem:[%s15659_s19 + $0x168] sm:$0xff]   ;;  %v14122_v36 = vpack.c.bf16 %v11625_v7, %v11622_v15  ;;  %vm20389_vm4 = vmmov %vm20387_vm1 }
 0x3e1   : > { %v11093_v9 = vadd.f32 %v19655_v61, %v20384_v51  ;;  %1441 = vst [vmem:[#allocation2 + $0x420] sm:$0xff] %v1440_v10  ;;  %11283 = vmatmul.mubr.bf16.gmra.mrb[156].mxu0 %v19574_v40  ;;  %v1130_v60 = vrot.slane %v1128_v18, 7  ;;  %v11617_v55 = vadd.f32 %v11616_v31, %v11072_v23  ;;  %v11142_v19 = vpop.f32.mrb[85].mxu0  ;;  %v14537_v0 = vpop.f32.mrb[92].mxu1  ;;  %v359_v59 = vld [vmem:[#allocation2 + $0x450] sm:$0x1] }
 0x3e2   : > { %v15312_v20 = vld [vmem:[%s15659_s19 + $0x160] sm:$0xff]   ;;  %v20386_v16 = vld [vmem:[#allocation64_spill] sm:$0xff]  ;;  %2142 = vst.msk [vmem:[#allocation2 + $0x420] sm:$0xff] %vm20387_vm1, %v19348_v37  ;;  %v5732_v28 = vld [vmem:[#allocation2 + $0x3f8] sm:$0x80]  ;;  %v19690_v44 = vpop.f32.mrb[86].mxu0 }
 0x3e3   : > { %v20385_v53 = vld [vmem:[#allocation58_spill] sm:$0xff]  ;;  %v11096_v2 = vadd.f32 %v19655_v61, %v20386_v16  ;;  %v11638_v40 = vadd.f32 %v14537_v0, %v11093_v9  ;;  %v11629_v23 = vpop.f32.mrb[93].mxu1  ;;  %v4959_v15 = vld [vmem:[#allocation2 + $0x3d8] sm:$0xff]  ;;  %v360_v34 = vsel %vm15873_vm5, 0, %v359_v59  ;;  %v20388_v7 = vld [vmem:[#allocation59_spill] sm:$0xff]  ;;  %v5733_v18 = vsel %vm16435_vm13, 0, %v5732_v28 }
 0x3e4   : > { %v11085_v24 = vadd.f32 %v19655_v61, %v20385_v53  ;;  %v11088_v30 = vadd.f32 %v19655_v61, %v20388_v7  ;;  %v3680_v51 = vld [vmem:[#allocation2 + $0x3f0] sm:$0x1]  ;;  %14386 = vst [vmem:[%s19369_s9 + $0x68] sm:$0xff] %v14122_v36   ;;  %v1133_v37 = vor.u32 %v1131_v43, %v1130_v60  ;;  %v14117_v10 = vpack.c.bf16 %v11617_v55, %v11614_v4  ;;  %v11145_v31 = vpop.f32.mrb[87].mxu0  ;;  %v14538_v9 = vpop.f32.mrb[94].mxu1  ;;  %v8405_v55 = vld [vmem:[#allocation2 + $0x3c8] sm:$0xff] }
 0x3e5   : > { %361 = vst [vmem:[#allocation2 + $0x450] sm:$0x1] %v360_v34  ;;  %5584 = vst.msk [vmem:[#allocation2 + $0x428] sm:$0xff] %vm221_vm0, %v15312_v20  ;;  %v19702_v19 = vld [vmem:[%s15659_s19 + $0x170] sm:$0xff]   ;;  %v7204_v0 = vld [vmem:[#allocation2 + $0x3e0] sm:$0x1]  ;;  %v11641_v53 = vadd.f32 %v14538_v9, %v11096_v2  ;;  %v19709_v43 = vsel %vm16689_vm11, %v19562_v26, %v4959_v15  ;;  %v11109_v36 = vadd.f32 %v19655_v61, %v19401_v46  ;;  %v19718_v2 = vpop.permute.xlu1 %2009  ;;  %v19729_v34 = vpop.permute.xlu0 %4726 }
 0x3e6   : > { %5734 = vst [vmem:[#allocation2 + $0x3f8] sm:$0x80] %v5733_v18  ;;  %v3681_v50 = vsel %vm16542_vm2, 0, %v3680_v51  ;;  %v11630_v59 = vadd.f32 %v11629_v23, %v11085_v24  ;;  %v11632_v4 = vpop.f32.mrb[95].mxu1  ;;  %v7205_v60 = vsel %vm16520_vm12, 0, %v7204_v0  ;;  %14385 = vst [vmem:[%s19369_s9 + $0x60] sm:$0xff] %v14117_v10   ;;  %v8406_v26 = vsel %vm16606_vm8, %v19386_v35, %v8405_v55 }
 0x3e7   : > { %3682 = vst [vmem:[#allocation2 + $0x3f0] sm:$0x1] %v3681_v50  ;;  %v3492_v20 = vld [vmem:[#allocation2 + $0x408] sm:$0xff]  ;;  %4961 = vst [vmem:[#allocation2 + $0x3d8] sm:$0xff] %v19709_v43  ;;  %v11633_v24 = vadd.f32 %v11632_v4, %v11088_v30  ;;  %v1135_v16 = vshrl.u32 %v19680_v45, 16  ;;  %v14132_v28 = vpack.c.bf16 %v11641_v53, %v11638_v40  ;;  %v1138_v23 = vshll.u32 %v19680_v45, 16 }
 0x3e8   : > { %7206 = vst [vmem:[#allocation2 + $0x3e0] sm:$0x1] %v7205_v60  ;;  %v3493_v46 = vsel %vm16474_vm15, %v19524_v8, %v3492_v20  ;;  %v19727_v15 = vpop.f32.mrb[88].mxu0  ;;  %v11101_v7 = vadd.f32 %v19655_v61, %v19358_v27  ;;  %v11112_v30 = vadd.f32 %v19655_v61, %v19430_v25  ;;  %8407 = vst [vmem:[#allocation2 + $0x3c8] sm:$0xff] %v8406_v26  ;;  %v1442_v35 = vld [vmem:[#allocation2 + $0x438] sm:$0xff]  ;;  %v14541_v40 = vpop.f32.mrb[96].mxu1 }
 0x3e9   : > { %v5735_v18 = vld [vmem:[#allocation2 + $0x410] sm:$0x80]  ;;  %3494 = vst [vmem:[#allocation2 + $0x408] sm:$0xff] %v3493_v46  ;;  %v14127_v51 = vpack.c.bf16 %v11633_v24, %v11630_v59  ;;  %v1137_v8 = vrot.slane %v1135_v16, 7  ;;  %v11150_v45 = vpop.f32.mrb[89].mxu0  ;;  %9114 = vst.msk [vmem:[#allocation2 + $0x3c8] sm:$0xff] %vm4834_vm3, %v19432_v39  ;;  %v1443_v10 = vsel %vm15906_vm6, %v1133_v37, %v1442_v35  ;;  %v11654_v25 = vadd.f32 %v14541_v40, %v11109_v36 }
 0x3ea   : > { %v5736_v27 = vsel %vm16435_vm13, 0, %v5735_v18  ;;  %14388 = vst [vmem:[%s19369_s9 + $0x78] sm:$0xff] %v14132_v28   ;;  %v11645_v31 = vpop.f32.mrb[97].mxu1  ;;  %v19742_v9 = vpop.f32.mrb[90].mxu0  ;;  %v362_v0 = vld [vmem:[#allocation2 + $0x468] sm:$0x1]  ;;  %v11104_v59 = vadd.f32 %v19655_v61, %v19384_v12  ;;  %v11117_v20 = vadd.f32 %v19655_v61, %v19481_v56  ;;  %v11125_v24 = vadd.f32 %v19655_v61, %v19557_v54 }
 0x3eb   : > { %v1142_v50 = vshrl.u32 %v19702_v19, 16  ;;  %v2292_v53 = vld [vmem:[#allocation2 + $0x420] sm:$0x80]  ;;  %1444 = vst [vmem:[#allocation2 + $0x438] sm:$0xff] %v1443_v10  ;;  %5737 = vst [vmem:[#allocation2 + $0x410] sm:$0x80] %v5736_v27  ;;  %v1140_v39 = vor.u32 %v1138_v23, %v1137_v8  ;;  %v11646_v37 = vadd.f32 %v11645_v31, %v11101_v7  ;;  %v11120_v27 = vadd.f32 %v19655_v61, %v19504_v38 }
 0x3ec   : > { %14387 = vst [vmem:[%s19369_s9 + $0x70] sm:$0xff] %v14127_v51   ;;  %v14542_v4 = vpop.f32.mrb[98].mxu1  ;;  %v11153_v60 = vpop.f32.mrb[91].mxu0  ;;  %v363_v36 = vsel %vm15873_vm5, 0, %v362_v0  ;;  %v15314_v55 = vld [vmem:[%s15659_s19 + $0x168] sm:$0xff]   ;;  %v2293_v12 = vsel %vm16187_vm10, 0, %v2292_v53  ;;  %vm20390_vm5 = vmmov %vm20387_vm1  ;;  %v11141_v38 = vadd.f32 %v19655_v61, %v19677_v21 }
 0x3ed   : > { %2143 = vst.msk [vmem:[#allocation2 + $0x438] sm:$0xff] %vm20389_vm4, %v19465_v11  ;;  %v1445_v16 = vld [vmem:[#allocation2 + $0x450] sm:$0xff]  ;;  %v5738_v26 = vld [vmem:[#allocation2 + $0x428] sm:$0x80]  ;;  %v11657_v46 = vadd.f32 %v14542_v4, %v11112_v30  ;;  %v11648_v28 = vpop.f32.mrb[99].mxu1  ;;  %v19759_v23 = vpop.f32.mrb[92].mxu0 }
 0x3ee   : > { %364 = vst [vmem:[#allocation2 + $0x468] sm:$0x1] %v363_v36  ;;  %2294 = vst [vmem:[#allocation2 + $0x420] sm:$0x80] %v2293_v12  ;;  %v7014_v56 = vld [vmem:[#allocation2 + $0x3f8] sm:$0xff]  ;;  %v1446_v54 = vsel %vm15906_vm6, %v1140_v39, %v1445_v16  ;;  %v5739_v7 = vsel %vm16435_vm13, 0, %v5738_v26  ;;  %v11649_v35 = vadd.f32 %v11648_v28, %v11104_v59  ;;  %v19782_v53 = vpop.permute.xlu0 %6784  ;;  %v11133_v36 = vadd.f32 %v19655_v61, %v19626_v63 }
 0x3ef   : > { %v14545_v11 = vpop.f32.mrb[100].mxu1  ;;  %v11158_v18 = vpop.f32.mrb[93].mxu0  ;;  %5585 = vst.msk [vmem:[#allocation2 + $0x440] sm:$0xff] %vm221_vm0, %v15314_v55  ;;  %v7015_v30 = vsel %vm16456_vm14, %v19376_v5, %v7014_v56  ;;  %1447 = vst [vmem:[#allocation2 + $0x450] sm:$0xff] %v1446_v54  ;;  %v14142_v14 = vpack.c.bf16 %v11657_v46, %v11654_v25  ;;  %v4962_v51 = vld [vmem:[#allocation2 + $0x3f0] sm:$0xff]  ;;  %v1144_v10 = vrot.slane %v1142_v50, 7  ;;  %v11136_v56 = vadd.f32 %v19655_v61, %v19638_v17 }
 0x3f0   : > { %5740 = vst [vmem:[#allocation2 + $0x428] sm:$0x80] %v5739_v7  ;;  %v11670_v8 = vadd.f32 %v14545_v11, %v11125_v24  ;;  %v11661_v40 = vpop.f32.mrb[101].mxu1  ;;  %v19771_v45 = vpop.f32.mrb[94].mxu0  ;;  %7016 = vst [vmem:[#allocation2 + $0x3f8] sm:$0xff] %v7015_v30  ;;  %v8408_v31 = vld [vmem:[#allocation2 + $0x3e0] sm:$0xff]  ;;  %v14137_v5 = vpack.c.bf16 %v11649_v35, %v11646_v37  ;;  %v19780_v25 = vsel %vm16689_vm11, %v19729_v34, %v4962_v51 }
 0x3f1   : > { %2144 = vst.msk [vmem:[#allocation2 + $0x450] sm:$0xff] %vm20390_vm5, %v19564_v57  ;;  %v11662_v0 = vadd.f32 %v11661_v40, %v11117_v20  ;;  %v14546_v59 = vpop.f32.mrb[102].mxu1  ;;  %v8409_v50 = vsel %vm16606_vm8, %v19513_v41, %v8408_v31  ;;  %v3683_v39 = vld [vmem:[#allocation2 + $0x408] sm:$0x1]  ;;  %14390 = vst [vmem:[%s19369_s9 + $0x88] sm:$0xff] %v14142_v14   ;;  %v1145_v34 = vshll.u32 %v19702_v19, 16  ;;  %v19798_v20 = vpop.permute.xlu1 %8192  ;;  %v11144_v19 = vadd.f32 %v19655_v61, %v19690_v44 }
 0x3f2   : > { %4964 = vst [vmem:[#allocation2 + $0x3f0] sm:$0xff] %v19780_v25  ;;  %v11673_v57 = vadd.f32 %v14546_v59, %v11128_v49  ;;  %v11161_v37 = vpop.f32.mrb[95].mxu0  ;;  %v11664_v4 = vpop.f32.mrb[103].mxu1  ;;  %v15315_v60 = vld [vmem:[%s15659_s19 + $0x170] sm:$0xff]   ;;  %8410 = vst [vmem:[#allocation2 + $0x3e0] sm:$0xff] %v8409_v50  ;;  %v3684_v21 = vsel %vm16542_vm2, 0, %v3683_v39 }
 0x3f3   : > { %v10524_v55 = vld [vmem:[#allocation2 + $0x3c8] sm:$0xff]  ;;  %14389 = vst [vmem:[%s19369_s9 + $0x80] sm:$0xff] %v14137_v5   ;;  %v11665_v41 = vadd.f32 %v11664_v4, %v11120_v27  ;;  %v14549_v24 = vpop.f32.mrb[104].mxu1  ;;  %v15316_v12 = vld [vmem:[%s15659_s19 + $0x178] sm:$0xff]   ;;  %v7017_v16 = vld [vmem:[#allocation2 + $0x410] sm:$0xff]  ;;  %v1147_v26 = vor.u32 %v1145_v34, %v1144_v10  ;;  %v19805_v49 = vpop.f32.mrb[96].mxu0  ;;  %v11157_v27 = vadd.f32 %v19655_v61, %v19759_v23  ;;  %v11160_v23 = vadd.f32 %v19655_v61, %v19771_v45 }
 0x3f4   : > { %3685 = vst [vmem:[#allocation2 + $0x408] sm:$0x1] %v3684_v21  ;;  %11290 = vmatprep.mubr.bf16.mxu0 %v10524_v55  ;;  %9115 = vst.msk [vmem:[#allocation2 + $0x3e0] sm:$0xff] %vm4834_vm3, %v19531_v42  ;;  %v14152_v63 = vpack.c.bf16 %v11673_v57, %v11670_v8  ;;  %v11686_v46 = vadd.f32 %v14549_v24, %v11141_v38  ;;  %v11677_v28 = vpop.f32.mrb[105].mxu1  ;;  %v2295_v54 = vld [vmem:[#allocation2 + $0x438] sm:$0x80]  ;;  %v7018_v44 = vsel %vm16456_vm14, %v19490_v3, %v7017_v16  ;;  %v19814_v35 = vpop.permute.xlu0 %3273 }
 0x3f5   : > { %5586 = vst.msk [vmem:[#allocation2 + $0x458] sm:$0xff] %vm221_vm0, %v15315_v60  ;;  %11291 = vmatmul.mubr.bf16.gmra.mrb[160].mxu0 %v19643_v22  ;;  %v1448_v42 = vld [vmem:[#allocation2 + $0x468] sm:$0xff]  ;;  %v14147_v7 = vpack.c.bf16 %v11665_v41, %v11662_v0  ;;  %v11678_v11 = vadd.f32 %v11677_v28, %v11133_v36  ;;  %v14550_v18 = vpop.f32.mrb[106].mxu1  ;;  %5587 = vst.msk [vmem:[#allocation2 + $0x470] sm:$0xff] %vm221_vm0, %v15316_v12  ;;  %v2296_v30 = vsel %vm16187_vm10, 0, %v2295_v54  ;;  %v3495_v17 = vld [vmem:[#allocation2 + $0x420] sm:$0xff]  ;;  %v19830_v52 = vpop.permute.xlu1 %8978 }
 0x3f6   : > { %7019 = vst [vmem:[#allocation2 + $0x410] sm:$0xff] %v7018_v44  ;;  %14392 = vst [vmem:[%s19369_s9 + $0x98] sm:$0xff] %v14152_v63   ;;  %v1449_v3 = vsel %vm15906_vm6, %v1147_v26, %v1448_v42  ;;  %v5741_v14 = vld [vmem:[#allocation2 + $0x440] sm:$0x80]  ;;  %v11689_v22 = vadd.f32 %v14550_v18, %v11144_v19  ;;  %v11680_v51 = vpop.f32.mrb[107].mxu1  ;;  %v11166_v8 = vpop.f32.mrb[97].mxu0  ;;  %v3496_v10 = vsel %vm16474_vm15, %v19668_v6, %v3495_v17 }
 0x3f7   : > { %2297 = vst [vmem:[#allocation2 + $0x438] sm:$0x80] %v2296_v30  ;;  %v7020_v40 = vld [vmem:[#allocation2 + $0x428] sm:$0xff]  ;;  %1450 = vst [vmem:[#allocation2 + $0x468] sm:$0xff] %v1449_v3  ;;  %v5742_v31 = vsel %vm16435_vm13, 0, %v5741_v14  ;;  %v11681_v5 = vadd.f32 %v11680_v51, %v11136_v56  ;;  %v11167_v0 = vpop.f32.mrb[98].mxu0  ;;  %v11149_v6 = vadd.f32 %v19655_v61, %v19727_v15  ;;  %v11165_v54 = vadd.f32 %v19655_v61, %v19805_v49 }
 0x3f8   : > { %14391 = vst [vmem:[%s19369_s9 + $0x90] sm:$0xff] %v14147_v7   ;;  %v7207_v59 = vld [vmem:[#allocation2 + $0x3f8] sm:$0x1]  ;;  %v2298_v38 = vld [vmem:[#allocation2 + $0x450] sm:$0x80]  ;;  %3497 = vst [vmem:[#allocation2 + $0x420] sm:$0xff] %v3496_v10  ;;  %v14162_v57 = vpack.c.bf16 %v11689_v22, %v11686_v46  ;;  %v4729_v28 = vpop.permute.xlu0 %4728 }
 0x3f9   : > { %v20391_v50 = vld [vmem:[#allocation20_spill] sm:$0xff]  ;;  %vm20392_vm0 = vmmov %vm20387_vm1  ;;  %5743 = vst [vmem:[#allocation2 + $0x440] sm:$0x80] %v5742_v31  ;;  %v11169_v34 = vpop.f32.mrb[99].mxu0  ;;  %v14553_v37 = vpop.f32.mrb[108].mxu1  ;;  %v7208_v4 = vsel %vm16520_vm12, 0, %v7207_v59  ;;  %v14157_v15 = vpack.c.bf16 %v11681_v5, %v11678_v11 }
 0x3fa   : > { %v7021_v39 = vsel %vm16456_vm14, %v20391_v50, %v7020_v40  ;;  %2145 = vst.msk [vmem:[#allocation2 + $0x468] sm:$0xff] %vm20392_vm0, %v19718_v2  ;;  %v2299_v60 = vsel %vm16187_vm10, 0, %v2298_v38  ;;  %v11702_v36 = vadd.f32 %v14553_v37, %v11157_v27  ;;  %v11693_v21 = vpop.f32.mrb[109].mxu1  ;;  %v11172_v45 = vpop.f32.mrb[100].mxu0  ;;  %7209 = vst [vmem:[#allocation2 + $0x3f8] sm:$0x1] %v7208_v4  ;;  %v11152_v2 = vadd.f32 %v19655_v61, %v19742_v9 }
 0x3fb   : > { %7022 = vst [vmem:[#allocation2 + $0x428] sm:$0xff] %v7021_v39  ;;  %2300 = vst [vmem:[#allocation2 + $0x450] sm:$0x80] %v2299_v60  ;;  %v11694_v55 = vadd.f32 %v11693_v21, %v11149_v6  ;;  %v14554_v41 = vpop.f32.mrb[110].mxu1  ;;  %v11173_v24 = vadd.f32 %v19655_v61, %v11172_v45  ;;  %v11174_v12 = vpop.f32.mrb[101].mxu0  ;;  %v10527_v16 = vld [vmem:[#allocation2 + $0x3e0] sm:$0xff] }
 0x3fc   : > { %14394 = vst [vmem:[%s19369_s9 + $0xa8] sm:$0xff] %v14162_v57   ;;  %14393 = vst [vmem:[%s19369_s9 + $0xa0] sm:$0xff] %v14157_v15   ;;  %v5744_v19 = vld [vmem:[#allocation2 + $0x458] sm:$0x80]  ;;  %v11705_v63 = vadd.f32 %v14554_v41, %v11160_v23  ;;  %v11696_v26 = vpop.f32.mrb[111].mxu1  ;;  %v11175_v46 = vpop.f32.mrb[102].mxu0  ;;  %11298 = vmatprep.mubr.bf16.mxu0 %v10527_v16 }
 0x3fd   : > { %v4965_v56 = vld [vmem:[#allocation2 + $0x408] sm:$0xff]  ;;  %v5745_v9 = vsel %vm16435_vm13, 0, %v5744_v19  ;;  %v11697_v44 = vadd.f32 %v11696_v26, %v11152_v2  ;;  %v14557_v42 = vpop.f32.mrb[112].mxu1  ;;  %v11176_v7 = vadd.f32 %v19655_v61, %v11175_v46  ;;  %v5747_v11 = vld [vmem:[#allocation2 + $0x470] sm:$0x80]  ;;  %11299 = vmatmul.mubr.bf16.gmra.mrb[164].mxu0 %v19709_v43  ;;  %v11177_v49 = vpop.f32.mrb[103].mxu0  ;;  %v11168_v43 = vadd.f32 %v19655_v61, %v11167_v0 }
 0x3fe   : > { %v7210_v18 = vld [vmem:[#allocation2 + $0x410] sm:$0x1]  ;;  %v19858_v30 = vsel %vm16689_vm11, %v4729_v28, %v4965_v56  ;;  %5746 = vst [vmem:[#allocation2 + $0x458] sm:$0x80] %v5745_v9  ;;  %v14172_v17 = vpack.c.bf16 %v11705_v63, %v11702_v36  ;;  %v11718_v3 = vadd.f32 %v14557_v42, %v11173_v24  ;;  %v11709_v14 = vpop.f32.mrb[113].mxu1  ;;  %v5748_v22 = vsel %vm16435_vm13, 0, %v5747_v11  ;;  %v3276_v37 = vpop.permute.xlu1 %3275 }
 0x3ff   : > { %v7211_v51 = vsel %vm16520_vm12, 0, %v7210_v18  ;;  %v3498_v8 = vld [vmem:[#allocation2 + $0x438] sm:$0xff]  ;;  %4967 = vst [vmem:[#allocation2 + $0x408] sm:$0xff] %v19858_v30  ;;  %v14167_v40 = vpack.c.bf16 %v11697_v44, %v11694_v55  ;;  %v11710_v10 = vadd.f32 %v11709_v14, %v11165_v54  ;;  %v14558_v27 = vpop.f32.mrb[114].mxu1  ;;  %v11180_v31 = vpop.f32.mrb[104].mxu0  ;;  %v20393_v2 = vld [vmem:[#allocation23_spill] sm:$0xff] }
 0x400   : > { %5749 = vst [vmem:[#allocation2 + $0x470] sm:$0x80] %v5748_v22  ;;  %7212 = vst [vmem:[#allocation2 + $0x410] sm:$0x1] %v7211_v51  ;;  %v3686_v5 = vld [vmem:[#allocation2 + $0x420] sm:$0x1]  ;;  %v3499_v38 = vsel %vm16474_vm15, %v19814_v35, %v3498_v8  ;;  %v11721_v50 = vadd.f32 %v14558_v27, %v11176_v7  ;;  %v11181_v6 = vadd.f32 %v19655_v61, %v11180_v31  ;;  %v6787_v29 = vpop.permute.xlu0 %6786 }
 0x401   : > { %v2301_v59 = vld [vmem:[#allocation2 + $0x468] sm:$0x80]  ;;  %v7023_v1 = vld [vmem:[#allocation2 + $0x440] sm:$0xff]  ;;  %14396 = vst [vmem:[%s19369_s9 + $0xb8] sm:$0xff] %v14172_v17   ;;  %v11712_v39 = vpop.f32.mrb[115].mxu1  ;;  %v3687_v23 = vsel %vm16542_vm2, 0, %v3686_v5 }
 0x402   : > { %v7213_v0 = vld [vmem:[#allocation2 + $0x428] sm:$0x1]  ;;  %v2302_v57 = vsel %vm16187_vm10, 0, %v2301_v59  ;;  %v7024_v34 = vsel %vm16456_vm14, %v19782_v53, %v7023_v1  ;;  %3500 = vst [vmem:[#allocation2 + $0x438] sm:$0xff] %v3499_v38  ;;  %14395 = vst [vmem:[%s19369_s9 + $0xb0] sm:$0xff] %v14167_v40   ;;  %v11713_v35 = vadd.f32 %v11712_v39, %v11168_v43  ;;  %v11182_v4 = vpop.f32.mrb[105].mxu0  ;;  %v14182_v21 = vpack.c.bf16 %v11721_v50, %v11718_v3  ;;  %v4731_v28 = vpop.permute.xlu1 %4730 }
 0x403   : > { %v7214_v60 = vsel %vm16520_vm12, 0, %v7213_v0  ;;  %v8411_v15 = vld [vmem:[#allocation2 + $0x3f8] sm:$0xff]  ;;  %3688 = vst [vmem:[#allocation2 + $0x420] sm:$0x1] %v3687_v23  ;;  %2303 = vst [vmem:[#allocation2 + $0x468] sm:$0x80] %v2302_v57 }
 0x404   : > { %7025 = vst [vmem:[#allocation2 + $0x440] sm:$0xff] %v7024_v34  ;;  %v3501_v36 = vld [vmem:[#allocation2 + $0x450] sm:$0xff]  ;;  %v14561_v45 = vpop.f32.mrb[116].mxu1  ;;  %7215 = vst [vmem:[#allocation2 + $0x428] sm:$0x1] %v7214_v60  ;;  %v8412_v53 = vsel %vm16606_vm8, %v20393_v2, %v8411_v15  ;;  %v14177_v41 = vpack.c.bf16 %v11713_v35, %v11710_v10  ;;  %v11183_v24 = vpop.f32.mrb[106].mxu0 }
 0x405   : > { %v3502_v55 = vsel %vm16474_vm15, %v3276_v37, %v3501_v36  ;;  %v11725_v12 = vpop.f32.mrb[117].mxu1  ;;  %8413 = vst [vmem:[#allocation2 + $0x3f8] sm:$0xff] %v8412_v53  ;;  %14398 = vst [vmem:[%s19369_s9 + $0xc8] sm:$0xff] %v14182_v21   ;;  %v11184_v16 = vadd.f32 %v19655_v61, %v11183_v24  ;;  %v11185_v63 = vpop.f32.mrb[107].mxu0  ;;  %v7026_v46 = vld [vmem:[#allocation2 + $0x458] sm:$0xff]  ;;  %s12669_s19 = scalar_lea.sflag [#allocation5], %s15653_s30 }
 0x406   : > { %3503 = vst [vmem:[#allocation2 + $0x450] sm:$0xff] %v3502_v55  ;;  %v11726_v19 = vadd.f32 %v11725_v12, %v11181_v6  ;;  %v14562_v26 = vpop.f32.mrb[118].mxu1  ;;  %9116 = vst.msk [vmem:[#allocation2 + $0x3f8] sm:$0xff] %vm4834_vm3, %v19670_v62  ;;  %v7027_v54 = vsel %vm16456_vm14, %v6787_v29, %v7026_v46  ;;  %v8195_v9 = vpop.permute.xlu0 %8194 }
 0x407   : > { %14397 = vst [vmem:[%s19369_s9 + $0xc0] sm:$0xff] %v14177_v41   ;;  %v11728_v56 = vpop.f32.mrb[119].mxu1  ;;  %v11188_v42 = vpop.f32.mrb[108].mxu0  ;;  %v8414_v7 = vld [vmem:[#allocation2 + $0x410] sm:$0xff]  ;;  %7028 = vst [vmem:[#allocation2 + $0x458] sm:$0xff] %v7027_v54 }
 0x408   : > { %v11729_v44 = vadd.f32 %v11728_v56, %v11184_v16  ;;  %v11189_v11 = vadd.f32 %v19655_v61, %v11188_v42  ;;  %v11190_v18 = vpop.f32.mrb[109].mxu0  ;;  %v19894_v17 = vpop.f32.mrb[120].mxu1  ;;  %v8415_v62 = vsel %vm16606_vm8, %v19798_v20, %v8414_v7 }
 0x409   : > { %v3689_v3 = vld [vmem:[#allocation2 + $0x438] sm:$0x1]  ;;  %v11191_v49 = vpop.f32.mrb[110].mxu0  ;;  %v11741_v22 = vpop.f32.mrb[121].mxu1  ;;  %8416 = vst [vmem:[#allocation2 + $0x410] sm:$0xff] %v8415_v62 }
 0x40a   : > { %v14187_v14 = vpack.c.bf16 %v11729_v44, %v11726_v19  ;;  %v3690_v8 = vsel %vm16542_vm2, 0, %v3689_v3  ;;  %v4968_v43 = vld [vmem:[#allocation2 + $0x420] sm:$0xff]  ;;  %v11734_v40 = vadd.f32 %v14561_v45, %v11189_v11  ;;  %v11192_v10 = vadd.f32 %v19655_v61, %v11191_v49  ;;  %v11193_v27 = vpop.f32.mrb[111].mxu0  ;;  %9117 = vst.msk [vmem:[#allocation2 + $0x410] sm:$0xff] %vm4834_vm3, %v19830_v52  ;;  %v8981_v59 = vpop.permute.xlu0 %8980  ;;  %v3504_v45 = vld [vmem:[#allocation2 + $0x468] sm:$0xff] }
 0x40b   : > { %v7216_v51 = vld [vmem:[#allocation2 + $0x440] sm:$0x1]  ;;  %3691 = vst [vmem:[#allocation2 + $0x438] sm:$0x1] %v3690_v8  ;;  %v19908_v20 = vsel %vm16689_vm11, %v4731_v28, %v4968_v43  ;;  %v8417_v5 = vld [vmem:[#allocation2 + $0x428] sm:$0xff]  ;;  %v11196_v1 = vpop.f32.mrb[112].mxu0  ;;  %v3278_v21 = vpop.permute.xlu1 %3277 }
 0x40c   : > { %v7217_v31 = vsel %vm16520_vm12, 0, %v7216_v51  ;;  %14399 = vst [vmem:[%s19369_s9 + $0xd0] sm:$0xff] %v14187_v14   ;;  %4970 = vst [vmem:[#allocation2 + $0x420] sm:$0xff] %v19908_v20  ;;  %v8418_v50 = vsel %vm16606_vm8, %v8195_v9, %v8417_v5  ;;  %v11737_v39 = vadd.f32 %v14562_v26, %v11192_v10  ;;  %v11197_v6 = vadd.f32 %v19655_v61, %v11196_v1  ;;  %v11198_v0 = vpop.f32.mrb[113].mxu0  ;;  %v14566_v52 = vpop.f32.mrb[122].mxu1 }
 0x40d   : > { %7218 = vst [vmem:[#allocation2 + $0x440] sm:$0x1] %v7217_v31  ;;  %v3692_v38 = vld [vmem:[#allocation2 + $0x450] sm:$0x1]  ;;  %v10530_v23 = vld [vmem:[#allocation2 + $0x3f8] sm:$0xff]  ;;  %8419 = vst [vmem:[#allocation2 + $0x428] sm:$0xff] %v8418_v50  ;;  %v3505_v55 = vsel %vm16474_vm15, %v3278_v21, %v3504_v45 }
 0x40e   : > { %v3693_v57 = vsel %vm16542_vm2, 0, %v3692_v38  ;;  %v11199_v34 = vpop.f32.mrb[114].mxu0  ;;  %v11744_v37 = vpop.f32.mrb[123].mxu1  ;;  %11306 = vmatprep.mubr.bf16.mxu0 %v10530_v23  ;;  %9118 = vst.msk [vmem:[#allocation2 + $0x428] sm:$0xff] %vm4834_vm3, %v8981_v59  ;;  %v14192_v35 = vpack.c.bf16 %v11737_v39, %v11734_v40  ;;  %v11742_v60 = vadd.f32 %v11741_v22, %v11197_v6  ;;  %v7219_v29 = vld [vmem:[#allocation2 + $0x458] sm:$0x1] }
 0x40f   : > { %3694 = vst [vmem:[#allocation2 + $0x450] sm:$0x1] %v3693_v57  ;;  %v11200_v4 = vadd.f32 %v19655_v61, %v11199_v34  ;;  %v11201_v15 = vpop.f32.mrb[115].mxu0  ;;  %v19919_v36 = vpop.f32.mrb[124].mxu1  ;;  %11307 = vmatmul.mubr.bf16.gmra.mrb[168].mxu0 %v19780_v25  ;;  %v7220_v53 = vsel %vm16520_vm12, 0, %v7219_v29  ;;  %3506 = vst [vmem:[#allocation2 + $0x468] sm:$0xff] %v3505_v55 }
 0x410   : > { %v19922_v2 = vpop.f32.mrb[125].mxu1  ;;  %14400 = vst [vmem:[%s19369_s9 + $0xd8] sm:$0xff] %v14192_v35   ;;  %7221 = vst [vmem:[#allocation2 + $0x458] sm:$0x1] %v7220_v53  ;;  %v11204_v12 = vpop.f32.mrb[116].mxu0  ;;  %v7029_v21 = vld [vmem:[#allocation2 + $0x470] sm:$0xff] }
 0x411   : > { %v11745_v41 = vadd.f32 %v11744_v37, %v11200_v4  ;;  %v19929_v24 = vpop.f32.mrb[126].mxu1  ;;  %v10533_v16 = vld [vmem:[#allocation2 + $0x410] sm:$0xff]  ;;  %v11205_v63 = vadd.f32 %v19655_v61, %v11204_v12  ;;  %v11206_v26 = vpop.f32.mrb[117].mxu0 }
 0x412   : > { %v19931_v25 = vpop.f32.mrb[127].mxu1  ;;  %11314 = vmatprep.mubr.bf16.mxu0 %v10533_v16  ;;  %v11207_v13 = vpop.f32.mrb[118].mxu0  ;;  %v4971_v56 = vld [vmem:[#allocation2 + $0x438] sm:$0xff] }
 0x413   : > { %v14197_v19 = vpack.c.bf16 %v11745_v41, %v11742_v60  ;;  %v19934_v48 = vpop.f32.mrb[128].mxu1  ;;  %v4733_v28 = vpop.permute.xlu1 %4732  ;;  %v11750_v54 = vadd.f32 %v19894_v17, %v11205_v63  ;;  %v11208_v9 = vadd.f32 %v19655_v61, %v11207_v13  ;;  %v20394_v41 = vmov 0  }
 0x414   : > { %v19936_v46 = vpop.f32.mrb[129].mxu1  ;;  %v11209_v44 = vpop.f32.mrb[119].mxu0  ;;  %v4972_v42 = vsel %vm16689_vm11, %v4733_v28, %v4971_v56  ;;  %v8420_v18 = vld [vmem:[#allocation2 + $0x440] sm:$0xff] }
 0x415   : > { %14401 = vst [vmem:[%s19369_s9 + $0xe0] sm:$0xff] %v14197_v19   ;;  %v10536_v7 = vld [vmem:[#allocation2 + $0x428] sm:$0xff]  ;;  %v19943_v11 = vpop.f32.mrb[130].mxu1  ;;  %4973 = vst [vmem:[#allocation2 + $0x438] sm:$0xff] %v4972_v42  ;;  %v8197_v62 = vpop.permute.xlu0 %8196  ;;  %v11753_v3 = vadd.f32 %v14566_v52, %v11208_v9 }
 0x416   : > { %v19945_v14 = vpop.f32.mrb[131].mxu1  ;;  %v8421_v17 = vsel %vm16606_vm8, %v8197_v62, %v8420_v18  ;;  %v3695_v49 = vld [vmem:[#allocation2 + $0x468] sm:$0x1]  ;;  %v4974_v38 = vld [vmem:[#allocation2 + $0x450] sm:$0xff] }
 0x417   : > { %11315 = vmatmul.mubr.bf16.gmra.mrb[172].mxu0 %v19858_v30  ;;  %8422 = vst [vmem:[#allocation2 + $0x440] sm:$0xff] %v8421_v17  ;;  %v14202_v22 = vpack.c.bf16 %v11753_v3, %v11750_v54  ;;  %v19950_v51 = vpop.f32.mrb[132].mxu1  ;;  %v3696_v8 = vsel %vm16542_vm2, 0, %v3695_v49  ;;  %v8423_v30 = vld [vmem:[#allocation2 + $0x458] sm:$0xff]  ;;  %v8199_v31 = vpop.permute.xlu1 %8198 }
 0x418   : > { %11322 = vmatprep.mubr.bf16.mxu0 %v10536_v7  ;;  %v19954_v43 = vpop.f32.mrb[133].mxu1  ;;  %3697 = vst [vmem:[#allocation2 + $0x468] sm:$0x1] %v3696_v8  ;;  %v8424_v5 = vsel %vm16606_vm8, %v8199_v31, %v8423_v30 }
 0x419   : > { %v8983_v40 = vpop.permute.xlu0 %8982  ;;  %14402 = vst [vmem:[%s19369_s9 + $0xe8] sm:$0xff] %v14202_v22   ;;  %v19957_v10 = vpop.f32.mrb[134].mxu1  ;;  %8425 = vst [vmem:[#allocation2 + $0x458] sm:$0xff] %v8424_v5 }
 0x41a   : > { %9119 = vst.msk [vmem:[#allocation2 + $0x440] sm:$0xff] %vm4834_vm3, %v8983_v40  ;;  %v19960_v27 = vpop.f32.mrb[135].mxu1  ;;  %v11212_v50 = vpop.f32.mrb[120].mxu0 }
 0x41b   : > { %v8985_v33 = vpop.permute.xlu1 %8984  ;;  %v11213_v6 = vadd.f32 %v19655_v61, %v11212_v50  ;;  %v11214_v0 = vpop.f32.mrb[121].mxu0 }
 0x41c   : > { %9120 = vst.msk [vmem:[#allocation2 + $0x458] sm:$0xff] %vm4834_vm3, %v8985_v33  ;;  %v19969_v52 = vpop.f32.mrb[136].mxu1  ;;  %v11215_v58 = vpop.f32.mrb[122].mxu0  ;;  %v20032_v0 = vld [vmem:[%s20259_s2] ss:$0 sm:$0xff] }
 0x41d   : > { %v4735_v1 = vpop.permute.xlu0 %4734  ;;  %v19971_v23 = vpop.f32.mrb[137].mxu1  ;;  %v11758_v57 = vadd.f32 %v19922_v2, %v11213_v6 }
 0x41e   : > { %v4975_v39 = vsel %vm16689_vm11, %v4735_v1, %v4974_v38  ;;  %v11217_v34 = vpop.f32.mrb[123].mxu0  ;;  %v19975_v37 = vpop.f32.mrb[138].mxu1 }
 0x41f   : > { %11323 = vmatmul.mubr.bf16.gmra.mrb[176].mxu0 %v19908_v20  ;;  %4976 = vst [vmem:[#allocation2 + $0x450] sm:$0xff] %v4975_v39  ;;  %v11216_v20 = vadd.f32 %v19655_v61, %v11215_v58  ;;  %v19977_v35 = vpop.f32.mrb[139].mxu1  ;;  %v4977_v4 = vld [vmem:[#allocation2 + $0x468] sm:$0xff]  ;;  %v4737_v29 = vpop.permute.xlu1 %4736 }
 0x420   : > { %v4978_v53 = vsel %vm16689_vm11, %v4737_v29, %v4977_v4 }
 0x421   : > { %v10539_v59 = vld [vmem:[#allocation2 + $0x440] sm:$0xff]  ;;  %v11761_v60 = vadd.f32 %v19931_v25, %v11216_v20  ;;  %4979 = vst [vmem:[#allocation2 + $0x468] sm:$0xff] %v4978_v53  ;;  %v6789_v55 = vpop.permute.xlu0 %6788 }
 0x422   : > { %11330 = vmatprep.mubr.bf16.mxu0 %v10539_v59  ;;  %v7030_v2 = vsel %vm16456_vm14, %v6789_v55, %v7029_v21 }
 0x423   : > { %v10542_v15 = vld [vmem:[#allocation2 + $0x458] sm:$0xff]  ;;  %v14207_v45 = vpack.c.bf16 %v11761_v60, %v11758_v57  ;;  %7031 = vst [vmem:[#allocation2 + $0x470] sm:$0xff] %v7030_v2 }
 0x424   : > { %7083 = vst.msk [vmem:[#allocation2 + $0x470] sm:$0xff] %vm2161_vm7, %v20394_v41 }
 0x425   : > { %14403 = vst [vmem:[%s19369_s9 + $0xf0] sm:$0xff] %v14207_v45   ;;  %8474 = vst.msk [vmem:[#allocation2 + $0x470] sm:$0xff] %vm4834_vm3, %v20394_v41 }
 0x427   : > { %11331 = vmatmul.mubr.bf16.gmra.mrb[180].mxu0 %v4972_v42 }
 0x428   : > { %11338 = vmatprep.mubr.bf16.mxu0 %v10542_v15 }
 0x429   : > { %v19989_v12 = vpop.f32.mrb[140].mxu1 }
 0x42a   : > { %v19991_v25 = vpop.f32.mrb[141].mxu1 }
 0x42b   : > { %v19993_v32 = vpop.f32.mrb[142].mxu1 }
 0x42c   : > { %v19995_v16 = vpop.f32.mrb[143].mxu1  ;;  %v10545_v19 = vld [vmem:[#allocation2 + $0x470] sm:$0xff] }
 0x42f   : > { %11339 = vmatmul.mubr.bf16.gmra.mrb[184].mxu0 %v4975_v39 }
 0x430   : > { %11346 = vmatprep.mubr.bf16.mxu0 %v10545_v19  ;;  %v11220_v47 = vpop.f32.mrb[124].mxu0  ;;  %v20395_v19 = vld [vmem:[#allocation14_spill] sm:$0xff] }
 0x431   : > { %v11221_v63 = vadd.f32 %v19655_v61, %v11220_v47  ;;  %v11222_v26 = vpop.f32.mrb[125].mxu0  ;;  %v11365_v47 = vadd.f32 %v20032_v0, %v20395_v19 }
 0x432   : > { %v11223_v13 = vpop.f32.mrb[126].mxu0  ;;  %v20396_v26 = vld [vmem:[#allocation12_spill] sm:$0xff] }
 0x433   : > { %v11766_v28 = vadd.f32 %v19919_v36, %v11221_v63  ;;  %v11224_v56 = vadd.f32 %v19655_v61, %v11223_v13  ;;  %v11225_v54 = vpop.f32.mrb[127].mxu0  ;;  %v11357_v13 = vadd.f32 %v20032_v0, %v20396_v26 }
 0x435   : > { %v11769_v9 = vadd.f32 %v19929_v24, %v11224_v56  ;;  %v20397_v56 = vld [vmem:[#allocation15_spill] sm:$0xff] }
 0x436   : > { %v11368_v54 = vadd.f32 %v20032_v0, %v20397_v56 }
 0x437   : > { %11347 = vmatmul.mubr.bf16.gmra.mrb[188].mxu0 %v4978_v53  ;;  %v14212_v44 = vpack.c.bf16 %v11769_v9, %v11766_v28  ;;  %v20001_v42 = vpop.f32.mrb[144].mxu1 }
 0x438   : > { %v20004_v7 = vpop.f32.mrb[145].mxu1 }
 0x439   : > { %14404 = vst [vmem:[%s19369_s9 + $0xf8] sm:$0xff] %v14212_v44   ;;  %v20006_v18 = vpop.f32.mrb[146].mxu1 }
 0x43a   : > { %v20008_v62 = vpop.f32.mrb[147].mxu1 }
 0x43c   : > { %v11228_v3 = vpop.f32.mrb[128].mxu0 }
 0x43d   : > { %v11229_v17 = vadd.f32 %v19655_v61, %v11228_v3  ;;  %v11230_v36 = vpop.f32.mrb[129].mxu0  ;;  %v20398_v3 = vld [vmem:[#allocation13_spill] sm:$0xff] }
 0x43e   : > { %v11231_v49 = vpop.f32.mrb[130].mxu0 }
 0x43f   : > { %v11774_v22 = vadd.f32 %v19936_v46, %v11229_v17  ;;  %v11232_v24 = vadd.f32 %v19655_v61, %v11231_v49  ;;  %v11233_v8 = vpop.f32.mrb[131].mxu0  ;;  %v11360_v17 = vadd.f32 %v20032_v0, %v20398_v3 }
 0x441   : > { %v11777_v40 = vadd.f32 %v19945_v14, %v11232_v24 }
 0x443   : > { %v14217_v30 = vpack.c.bf16 %v11777_v40, %v11774_v22  ;;  %v20014_v31 = vpop.f32.mrb[148].mxu1 }
 0x444   : > { %v20016_v5 = vpop.f32.mrb[149].mxu1 }
 0x445   : > { %14405 = vst [vmem:[%s19369_s9 + $0x100] sm:$0xff] %v14217_v30   ;;  %v20019_v33 = vpop.f32.mrb[150].mxu1  ;;  %v20399_v30 = vld [vmem:[#allocation18_spill] sm:$0xff] }
 0x446   : > { %v20021_v59 = vpop.f32.mrb[151].mxu1 }
 0x44c   : > { %v11236_v1 = vpop.f32.mrb[132].mxu0 }
 0x44d   : > { %v11237_v38 = vadd.f32 %v19655_v61, %v11236_v1  ;;  %v11238_v50 = vpop.f32.mrb[133].mxu0  ;;  %v11381_v1 = vadd.f32 %v20032_v0, %v20399_v30 }
 0x44e   : > { %v20024_v46 = vpop.f32.mrb[152].mxu1  ;;  %v11239_v14 = vpop.f32.mrb[134].mxu0 }
 0x44f   : > { %v20026_v39 = vpop.f32.mrb[153].mxu1  ;;  %v11782_v6 = vadd.f32 %v19934_v48, %v11237_v38  ;;  %v11240_v58 = vadd.f32 %v20032_v0, %v11239_v14  ;;  %v11241_v57 = vpop.f32.mrb[135].mxu0  ;;  %v20400_v38 = vld [vmem:[#allocation16_spill] sm:$0xff] }
 0x450   : > { %v20035_v20 = vpop.f32.mrb[154].mxu1  ;;  %v11373_v50 = vadd.f32 %v20032_v0, %v20400_v38 }
 0x451   : > { %v20037_v34 = vpop.f32.mrb[155].mxu1  ;;  %v11785_v61 = vadd.f32 %v19943_v11, %v11240_v58 }
 0x453   : > { %v14222_v4 = vpack.c.bf16 %v11785_v61, %v11782_v6  ;;  %v20401_v6 = vld [vmem:[#allocation19_spill] sm:$0xff] }
 0x454   : > { %v11384_v58 = vadd.f32 %v20032_v0, %v20401_v6 }
 0x455   : > { %14406 = vst [vmem:[%s19369_s9 + $0x108] sm:$0xff] %v14222_v4   ;;  %v20402_v4 = vld [vmem:[#allocation17_spill] sm:$0xff] }
 0x457   : > { %v20041_v60 = vpop.f32.mrb[156].mxu1 }
 0x458   : > { %v20043_v15 = vpop.f32.mrb[157].mxu1 }
 0x459   : > { %v20045_v48 = vpop.f32.mrb[158].mxu1 }
 0x45a   : > { %v20047_v29 = vpop.f32.mrb[159].mxu1 }
 0x45f   : > { %v11244_v21 = vpop.f32.mrb[136].mxu0 }
 0x460   : > { %v11245_v45 = vadd.f32 %v20032_v0, %v11244_v21  ;;  %v11246_v53 = vpop.f32.mrb[137].mxu0  ;;  %v11376_v21 = vadd.f32 %v20032_v0, %v20402_v4 }
 0x461   : > { %v11247_v55 = vpop.f32.mrb[138].mxu0 }
 0x462   : > { %v11790_v2 = vadd.f32 %v19954_v43, %v11245_v45  ;;  %v11248_v11 = vadd.f32 %v20032_v0, %v11247_v55  ;;  %v11249_v41 = vpop.f32.mrb[139].mxu0 }
 0x464   : > { %v11793_v63 = vadd.f32 %v19960_v27, %v11248_v11 }
 0x466   : > { %v14605_v28 = vpop.f32.mrb[160].mxu1  ;;  %v14227_v44 = vpack.c.bf16 %v11793_v63, %v11790_v2 }
 0x467   : > { %v11910_v9 = vadd.f32 %v14605_v28, %v11365_v47  ;;  %v11901_v43 = vpop.f32.mrb[161].mxu1 }
 0x468   : > { %v11902_v36 = vadd.f32 %v11901_v43, %v11357_v13  ;;  %v14606_v49 = vpop.f32.mrb[162].mxu1  ;;  %14407 = vst [vmem:[%s19369_s9 + $0x110] sm:$0xff] %v14227_v44   ;;  %v20403_v44 = vld [vmem:[#allocation24_spill] sm:$0xff] }
 0x469   : > { %v11913_v22 = vadd.f32 %v14606_v49, %v11368_v54  ;;  %v11904_v24 = vpop.f32.mrb[163].mxu1  ;;  %v11397_v3 = vadd.f32 %v20032_v0, %v20403_v44 }
 0x46a   : > { %v11905_v27 = vadd.f32 %v11904_v24, %v11360_v17  ;;  %v20404_v17 = vld [vmem:[#allocation21_spill] sm:$0xff] }
 0x46b   : > { %v14302_v8 = vpack.c.bf16 %v11913_v22, %v11910_v9  ;;  %v20405_v22 = vld [vmem:[#allocation25_spill] sm:$0xff] }
 0x46c   : > { %v14297_v40 = vpack.c.bf16 %v11905_v27, %v11902_v36  ;;  %v11389_v36 = vadd.f32 %v20032_v0, %v20404_v17 }
 0x46d   : > { %14422 = vst [vmem:[%s19369_s9 + $0x188] sm:$0xff] %v14302_v8   ;;  %v20406_v8 = vld [vmem:[#allocation22_spill] sm:$0xff] }
 0x46e   : > { %14421 = vst [vmem:[%s19369_s9 + $0x180] sm:$0xff] %v14297_v40   ;;  %v11392_v40 = vadd.f32 %v20032_v0, %v20406_v8 }
 0x46f   : > { %v14609_v14 = vpop.f32.mrb[164].mxu1 }
 0x470   : > { %v11926_v57 = vadd.f32 %v14609_v14, %v11381_v1  ;;  %v11917_v61 = vpop.f32.mrb[165].mxu1 }
 0x471   : > { %v11918_v45 = vadd.f32 %v11917_v61, %v11373_v50  ;;  %v14610_v53 = vpop.f32.mrb[166].mxu1  ;;  %v11252_v11 = vpop.f32.mrb[140].mxu0 }
 0x472   : > { %v11929_v55 = vadd.f32 %v14610_v53, %v11384_v58  ;;  %v11920_v2 = vpop.f32.mrb[167].mxu1  ;;  %v11253_v19 = vadd.f32 %v20032_v0, %v11252_v11  ;;  %v11254_v47 = vpop.f32.mrb[141].mxu0 }
 0x473   : > { %v11921_v41 = vadd.f32 %v11920_v2, %v11376_v21  ;;  %v11255_v26 = vpop.f32.mrb[142].mxu0  ;;  %v20407_v2 = vld [vmem:[#allocation32_spill] sm:$0xff] }
 0x474   : > { %v14312_v63 = vpack.c.bf16 %v11929_v55, %v11926_v57  ;;  %v11798_v28 = vadd.f32 %v19950_v51, %v11253_v19  ;;  %v11256_v56 = vadd.f32 %v20032_v0, %v11255_v26  ;;  %v11257_v54 = vpop.f32.mrb[143].mxu0  ;;  %v11400_v51 = vadd.f32 %v20032_v0, %v20405_v22  ;;  %v20409_v26 = vld [vmem:[#allocation33_spill] sm:$0xff] }
 0x475   : > { %v14307_v13 = vpack.c.bf16 %v11921_v41, %v11918_v45  ;;  %v11413_v11 = vadd.f32 %v20032_v0, %v20407_v2  ;;  %v20408_v41 = vld [vmem:[#allocation27_spill] sm:$0xff]  ;;  %v20410_v54 = vld [vmem:[#allocation29_spill] sm:$0xff] }
 0x476   : > { %14424 = vst [vmem:[%s19369_s9 + $0x198] sm:$0xff] %v14312_v63   ;;  %v11801_v9 = vadd.f32 %v19957_v10, %v11256_v56  ;;  %v11405_v19 = vadd.f32 %v20032_v0, %v20408_v41 }
 0x477   : > { %14423 = vst [vmem:[%s19369_s9 + $0x190] sm:$0xff] %v14307_v13   ;;  %v11416_v13 = vadd.f32 %v20032_v0, %v20409_v26 }
 0x478   : > { %v14232_v43 = vpack.c.bf16 %v11801_v9, %v11798_v28 }
 0x47a   : > { %14408 = vst [vmem:[%s19369_s9 + $0x118] sm:$0xff] %v14232_v43  }
 0x47d   : > { %v14613_v49 = vpop.f32.mrb[168].mxu1 }
 0x47e   : > { %v11942_v24 = vadd.f32 %v14613_v49, %v11397_v3  ;;  %v11933_v27 = vpop.f32.mrb[169].mxu1 }
 0x47f   : > { %v11934_v10 = vadd.f32 %v11933_v27, %v11389_v36  ;;  %v14614_v30 = vpop.f32.mrb[170].mxu1 }
 0x480   : > { %v11945_v1 = vadd.f32 %v14614_v30, %v11400_v51  ;;  %v11936_v38 = vpop.f32.mrb[171].mxu1 }
 0x481   : > { %v11937_v50 = vadd.f32 %v11936_v38, %v11392_v40 }
 0x482   : > { %v14322_v14 = vpack.c.bf16 %v11945_v1, %v11942_v24  ;;  %v11260_v58 = vpop.f32.mrb[144].mxu0  ;;  %v20412_v1 = vld [vmem:[#allocation36_spill] sm:$0xff] }
 0x483   : > { %v14317_v6 = vpack.c.bf16 %v11937_v50, %v11934_v10  ;;  %v11261_v57 = vadd.f32 %v20032_v0, %v11260_v58  ;;  %v11262_v61 = vpop.f32.mrb[145].mxu0  ;;  %v20411_v10 = vld [vmem:[#allocation40_spill] sm:$0xff]  ;;  %v11421_v38 = vadd.f32 %v20032_v0, %v20412_v1 }
 0x484   : > { %14426 = vst [vmem:[%s19369_s9 + $0x1a8] sm:$0xff] %v14322_v14   ;;  %v11263_v4 = vpop.f32.mrb[146].mxu0  ;;  %v11429_v30 = vadd.f32 %v20032_v0, %v20411_v10  ;;  %v20414_v61 = vld [vmem:[#allocation37_spill] sm:$0xff] }
 0x485   : > { %14425 = vst [vmem:[%s19369_s9 + $0x1a0] sm:$0xff] %v14317_v6   ;;  %v11806_v21 = vadd.f32 %v19971_v23, %v11261_v57  ;;  %v11264_v45 = vadd.f32 %v20032_v0, %v11263_v4  ;;  %v11265_v53 = vpop.f32.mrb[147].mxu0  ;;  %v11408_v23 = vadd.f32 %v20032_v0, %v20410_v54  ;;  %v20413_v6 = vld [vmem:[#allocation41_spill] sm:$0xff]  ;;  %v11424_v4 = vadd.f32 %v20032_v0, %v20414_v61 }
 0x486   : > { %v11432_v58 = vadd.f32 %v20032_v0, %v20413_v6  ;;  %v20420_v6 = vld [vmem:[#allocation52_spill] sm:$0xff] }
 0x487   : > { %v11809_v55 = vadd.f32 %v19977_v35, %v11264_v45 }
 0x489   : > { %v14237_v63 = vpack.c.bf16 %v11809_v55, %v11806_v21 }
 0x48a   : > { %v14617_v47 = vpop.f32.mrb[172].mxu1 }
 0x48b   : > { %v11958_v28 = vadd.f32 %v14617_v47, %v11413_v11  ;;  %v11949_v56 = vpop.f32.mrb[173].mxu1  ;;  %14409 = vst [vmem:[%s19369_s9 + $0x120] sm:$0xff] %v14237_v63   ;;  %v20415_v47 = vld [vmem:[#allocation47_spill] sm:$0xff]  ;;  %v20416_v63 = vld [vmem:[#allocation44_spill] sm:$0xff] }
 0x48c   : > { %v11950_v9 = vadd.f32 %v11949_v56, %v11405_v19  ;;  %v14618_v43 = vpop.f32.mrb[174].mxu1  ;;  %v11437_v26 = vadd.f32 %v20032_v0, %v20416_v63 }
 0x48d   : > { %v11961_v35 = vadd.f32 %v14618_v43, %v11416_v13  ;;  %v11952_v44 = vpop.f32.mrb[175].mxu1 }
 0x48e   : > { %v11953_v17 = vadd.f32 %v11952_v44, %v11408_v23 }
 0x48f   : > { %v11268_v3 = vpop.f32.mrb[148].mxu0  ;;  %v14332_v22 = vpack.c.bf16 %v11961_v35, %v11958_v28  ;;  %v20417_v28 = vld [vmem:[#allocation49_spill] sm:$0xff] }
 0x490   : > { %v11269_v36 = vadd.f32 %v20032_v0, %v11268_v3  ;;  %v11270_v49 = vpop.f32.mrb[149].mxu0  ;;  %v14327_v24 = vpack.c.bf16 %v11953_v17, %v11950_v9  ;;  %v11448_v56 = vadd.f32 %v20032_v0, %v20417_v28  ;;  %v20418_v9 = vld [vmem:[#allocation45_spill] sm:$0xff]  ;;  %v20424_v28 = vld [vmem:[#allocation60_spill] sm:$0xff] }
 0x491   : > { %v11271_v51 = vpop.f32.mrb[150].mxu0  ;;  %14428 = vst [vmem:[%s19369_s9 + $0x1b8] sm:$0xff] %v14332_v22   ;;  %v11440_v43 = vadd.f32 %v20032_v0, %v20418_v9  ;;  %v20425_v9 = vld [vmem:[#allocation65_spill] sm:$0xff] }
 0x492   : > { %v11814_v27 = vadd.f32 %v19969_v52, %v11269_v36  ;;  %v11272_v8 = vadd.f32 %v20032_v0, %v11271_v51  ;;  %v11273_v40 = vpop.f32.mrb[151].mxu0  ;;  %14427 = vst [vmem:[%s19369_s9 + $0x1b0] sm:$0xff] %v14327_v24   ;;  %v14621_v50 = vpop.f32.mrb[176].mxu1 }
 0x493   : > { %v11974_v52 = vadd.f32 %v14621_v50, %v11429_v30  ;;  %v11965_v57 = vpop.f32.mrb[177].mxu1 }
 0x494   : > { %v11817_v14 = vadd.f32 %v19975_v37, %v11272_v8  ;;  %v11966_v21 = vadd.f32 %v11965_v57, %v11421_v38  ;;  %v14622_v45 = vpop.f32.mrb[178].mxu1  ;;  %v11445_v37 = vadd.f32 %v20032_v0, %v20415_v47  ;;  %v20419_v38 = vld [vmem:[#allocation55_spill] sm:$0xff]  ;;  %v20421_v57 = vld [vmem:[#allocation57_spill] sm:$0xff] }
 0x495   : > { %v11977_v55 = vadd.f32 %v14622_v45, %v11432_v58  ;;  %v11968_v2 = vpop.f32.mrb[179].mxu1  ;;  %v11461_v50 = vadd.f32 %v20032_v0, %v20419_v38  ;;  %v11453_v58 = vadd.f32 %v20032_v0, %v20420_v6  ;;  %v11464_v61 = vadd.f32 %v20032_v0, %v20421_v57 }
 0x496   : > { %v14242_v53 = vpack.c.bf16 %v11817_v14, %v11814_v27  ;;  %v11969_v11 = vadd.f32 %v11968_v2, %v11424_v4 }
 0x497   : > { %v14342_v41 = vpack.c.bf16 %v11977_v55, %v11974_v52 }
 0x498   : > { %14410 = vst [vmem:[%s19369_s9 + $0x128] sm:$0xff] %v14242_v53   ;;  %v14337_v19 = vpack.c.bf16 %v11969_v11, %v11966_v21  ;;  %v20422_v21 = vld [vmem:[#allocation53_spill] sm:$0xff] }
 0x499   : > { %14430 = vst [vmem:[%s19369_s9 + $0x1c8] sm:$0xff] %v14342_v41   ;;  %v11456_v45 = vadd.f32 %v20032_v0, %v20422_v21 }
 0x49a   : > { %14429 = vst [vmem:[%s19369_s9 + $0x1c0] sm:$0xff] %v14337_v19  }
 0x49d   : > { %v14625_v13 = vpop.f32.mrb[180].mxu1 }
 0x49e   : > { %v11990_v54 = vadd.f32 %v14625_v13, %v11445_v37  ;;  %v11981_v23 = vpop.f32.mrb[181].mxu1  ;;  %v20423_v37 = vld [vmem:[#allocation63_spill] sm:$0xff] }
 0x49f   : > { %v11982_v35 = vadd.f32 %v11981_v23, %v11437_v26  ;;  %v14626_v44 = vpop.f32.mrb[182].mxu1  ;;  %v11477_v63 = vadd.f32 %v20032_v0, %v20423_v37 }
 0x4a0   : > { %v11993_v3 = vadd.f32 %v14626_v44, %v11448_v56  ;;  %v11984_v17 = vpop.f32.mrb[183].mxu1  ;;  %v11276_v36 = vpop.f32.mrb[152].mxu0  ;;  %v11469_v56 = vadd.f32 %v20032_v0, %v20424_v28 }
 0x4a1   : > { %v11985_v49 = vadd.f32 %v11984_v17, %v11440_v43  ;;  %v11277_v22 = vadd.f32 %v20032_v0, %v11276_v36  ;;  %v11278_v51 = vpop.f32.mrb[153].mxu0  ;;  %v11480_v43 = vadd.f32 %v20032_v0, %v20425_v9 }
 0x4a2   : > { %v14352_v24 = vpack.c.bf16 %v11993_v3, %v11990_v54  ;;  %v11279_v27 = vpop.f32.mrb[154].mxu0 }
 0x4a3   : > { %v14347_v8 = vpack.c.bf16 %v11985_v49, %v11982_v35  ;;  %v11822_v40 = vadd.f32 %v19991_v25, %v11277_v22  ;;  %v11280_v10 = vadd.f32 %v20032_v0, %v11279_v27  ;;  %v11281_v30 = vpop.f32.mrb[155].mxu0  ;;  %v20426_v49 = vld [vmem:[#allocation61_spill] sm:$0xff] }
 0x4a4   : > { %14432 = vst [vmem:[%s19369_s9 + $0x1d8] sm:$0xff] %v14352_v24   ;;  %v11472_v22 = vadd.f32 %v20032_v0, %v20426_v49 }
 0x4a5   : > { %14431 = vst [vmem:[%s19369_s9 + $0x1d0] sm:$0xff] %v14347_v8   ;;  %v11825_v1 = vadd.f32 %v19995_v16, %v11280_v10 }
 0x4a7   : > { %v14247_v14 = vpack.c.bf16 %v11825_v1, %v11822_v40 }
 0x4a9   : > { %14411 = vst [vmem:[%s19369_s9 + $0x130] sm:$0xff] %v14247_v14  }
 0x4aa   : > { %v14629_v52 = vpop.f32.mrb[184].mxu1 }
 0x4ab   : > { %v12006_v25 = vadd.f32 %v14629_v52, %v11461_v50  ;;  %v11997_v4 = vpop.f32.mrb[185].mxu1 }
 0x4ac   : > { %v11998_v16 = vadd.f32 %v11997_v4, %v11453_v58  ;;  %v14630_v53 = vpop.f32.mrb[186].mxu1 }
 0x4ad   : > { %v12009_v55 = vadd.f32 %v14630_v53, %v11464_v61  ;;  %v12000_v2 = vpop.f32.mrb[187].mxu1 }
 0x4ae   : > { %v12001_v11 = vadd.f32 %v12000_v2, %v11456_v45 }
 0x4af   : > { %v14362_v41 = vpack.c.bf16 %v12009_v55, %v12006_v25 }
 0x4b0   : > { %v14357_v19 = vpack.c.bf16 %v12001_v11, %v11998_v16 }
 0x4b1   : > { %14434 = vst [vmem:[%s19369_s9 + $0x1e8] sm:$0xff] %v14362_v41  }
 0x4b2   : > { %14433 = vst [vmem:[%s19369_s9 + $0x1e0] sm:$0xff] %v14357_v19   ;;  %v14633_v54 = vpop.f32.mrb[188].mxu1 }
 0x4b3   : > { %v12022_v35 = vadd.f32 %v14633_v54, %v11477_v63  ;;  %v12013_v44 = vpop.f32.mrb[189].mxu1 }
 0x4b4   : > { %v11284_v47 = vpop.f32.mrb[156].mxu0  ;;  %v12014_v51 = vadd.f32 %v12013_v44, %v11469_v56  ;;  %v14634_v24 = vpop.f32.mrb[190].mxu1 }
 0x4b5   : > { %v11285_v26 = vadd.f32 %v20032_v0, %v11284_v47  ;;  %v11286_v13 = vpop.f32.mrb[157].mxu0  ;;  %v12025_v27 = vadd.f32 %v14634_v24, %v11480_v43  ;;  %v12016_v8 = vpop.f32.mrb[191].mxu1 }
 0x4b6   : > { %v11287_v23 = vpop.f32.mrb[158].mxu0  ;;  %v12017_v10 = vadd.f32 %v12016_v8, %v11472_v22 }
 0x4b7   : > { %v11830_v3 = vadd.f32 %v19989_v12, %v11285_v26  ;;  %v11288_v17 = vadd.f32 %v20032_v0, %v11287_v23  ;;  %v11289_v36 = vpop.f32.mrb[159].mxu0  ;;  %v14372_v30 = vpack.c.bf16 %v12025_v27, %v12022_v35 }
 0x4b8   : > { %v14367_v38 = vpack.c.bf16 %v12017_v10, %v12014_v51 }
 0x4b9   : > { %v11833_v40 = vadd.f32 %v19993_v32, %v11288_v17  ;;  %14436 = vst [vmem:[%s19369_s9 + $0x1f8] sm:$0xff] %v14372_v30  }
 0x4ba   : > { %14435 = vst [vmem:[%s19369_s9 + $0x1f0] sm:$0xff] %v14367_v38  }
 0x4bb   : > { %v14252_v1 = vpack.c.bf16 %v11833_v40, %v11830_v3 }
 0x4bd   : > { %14412 = vst [vmem:[%s19369_s9 + $0x138] sm:$0xff] %v14252_v1  }
 0x4c8   : > { %v11292_v12 = vpop.f32.mrb[160].mxu0 }
 0x4c9   : > { %v11293_v50 = vadd.f32 %v20032_v0, %v11292_v12  ;;  %v11294_v14 = vpop.f32.mrb[161].mxu0 }
 0x4ca   : > { %v11295_v6 = vpop.f32.mrb[162].mxu0 }
 0x4cb   : > { %v11838_v58 = vadd.f32 %v20004_v7, %v11293_v50  ;;  %v11296_v52 = vadd.f32 %v20032_v0, %v11295_v6  ;;  %v11297_v57 = vpop.f32.mrb[163].mxu0 }
 0x4cd   : > { %v11841_v32 = vadd.f32 %v20008_v62, %v11296_v52 }
 0x4cf   : > { %v14257_v61 = vpack.c.bf16 %v11841_v32, %v11838_v58 }
 0x4d0   : > { %v11300_v25 = vpop.f32.mrb[164].mxu0 }
 0x4d1   : > { %14413 = vst [vmem:[%s19369_s9 + $0x140] sm:$0xff] %v14257_v61   ;;  %v11301_v4 = vadd.f32 %v20032_v0, %v11300_v25  ;;  %v11302_v21 = vpop.f32.mrb[165].mxu0 }
 0x4d2   : > { %v11303_v45 = vpop.f32.mrb[166].mxu0 }
 0x4d3   : > { %v11846_v16 = vadd.f32 %v20001_v42, %v11301_v4  ;;  %v11304_v53 = vadd.f32 %v20032_v0, %v11303_v45  ;;  %v11305_v55 = vpop.f32.mrb[167].mxu0 }
 0x4d5   : > { %v11849_v7 = vadd.f32 %v20006_v18, %v11304_v53 }
 0x4d7   : > { %v14262_v2 = vpack.c.bf16 %v11849_v7, %v11846_v16 }
 0x4d9   : > { %14414 = vst [vmem:[%s19369_s9 + $0x148] sm:$0xff] %v14262_v2  }
 0x4e2   : > { %v11308_v11 = vpop.f32.mrb[168].mxu0 }
 0x4e3   : > { %v11309_v62 = vadd.f32 %v20032_v0, %v11308_v11  ;;  %v11310_v41 = vpop.f32.mrb[169].mxu0 }
 0x4e4   : > { %v11311_v19 = vpop.f32.mrb[170].mxu0 }
 0x4e5   : > { %v11854_v47 = vadd.f32 %v20016_v5, %v11309_v62  ;;  %v11312_v37 = vadd.f32 %v20032_v0, %v11311_v19  ;;  %v11313_v63 = vpop.f32.mrb[171].mxu0 }
 0x4e7   : > { %v11857_v42 = vadd.f32 %v20021_v59, %v11312_v37 }
 0x4e9   : > { %v14267_v26 = vpack.c.bf16 %v11857_v42, %v11854_v47 }
 0x4ea   : > { %v11316_v13 = vpop.f32.mrb[172].mxu0 }
 0x4eb   : > { %14415 = vst [vmem:[%s19369_s9 + $0x150] sm:$0xff] %v14267_v26   ;;  %v11317_v18 = vadd.f32 %v20032_v0, %v11316_v13  ;;  %v11318_v28 = vpop.f32.mrb[173].mxu0 }
 0x4ec   : > { %v11319_v56 = vpop.f32.mrb[174].mxu0 }
 0x4ed   : > { %v11862_v54 = vadd.f32 %v20014_v31, %v11317_v18  ;;  %v11320_v23 = vadd.f32 %v20032_v0, %v11319_v56  ;;  %v11321_v9 = vpop.f32.mrb[175].mxu0 }
 0x4ef   : > { %v11865_v5 = vadd.f32 %v20019_v33, %v11320_v23 }
 0x4f1   : > { %v14272_v43 = vpack.c.bf16 %v11865_v5, %v11862_v54 }
 0x4f2   : > { %v11324_v35 = vpop.f32.mrb[176].mxu0 }
 0x4f3   : > { %14416 = vst [vmem:[%s19369_s9 + $0x158] sm:$0xff] %v14272_v43   ;;  %v11325_v59 = vadd.f32 %v20032_v0, %v11324_v35  ;;  %v11326_v44 = vpop.f32.mrb[177].mxu0 }
 0x4f4   : > { %v11327_v3 = vpop.f32.mrb[178].mxu0 }
 0x4f5   : > { %v11870_v17 = vadd.f32 %v20026_v39, %v11325_v59  ;;  %v11328_v36 = vadd.f32 %v20032_v0, %v11327_v3  ;;  %v11329_v49 = vpop.f32.mrb[179].mxu0 }
 0x4f7   : > { %v11873_v31 = vadd.f32 %v20037_v34, %v11328_v36 }
 0x4f9   : > { %v14277_v22 = vpack.c.bf16 %v11873_v31, %v11870_v17 }
 0x4fa   : > { %v11332_v51 = vpop.f32.mrb[180].mxu0 }
 0x4fb   : > { %14417 = vst [vmem:[%s19369_s9 + $0x160] sm:$0xff] %v14277_v22   ;;  %v11333_v33 = vadd.f32 %v20032_v0, %v11332_v51  ;;  %v11334_v24 = vpop.f32.mrb[181].mxu0 }
 0x4fc   : > { %v11335_v27 = vpop.f32.mrb[182].mxu0 }
 0x4fd   : > { %v11878_v8 = vadd.f32 %v20024_v46, %v11333_v33  ;;  %v11336_v40 = vadd.f32 %v20032_v0, %v11335_v27  ;;  %v11337_v10 = vpop.f32.mrb[183].mxu0 }
 0x4ff   : > { %v11881_v39 = vadd.f32 %v20035_v20, %v11336_v40 }
 0x501   : > { %v14282_v30 = vpack.c.bf16 %v11881_v39, %v11878_v8 }
 0x502   : > { %v11340_v1 = vpop.f32.mrb[184].mxu0 }
 0x503   : > { %14418 = vst [vmem:[%s19369_s9 + $0x168] sm:$0xff] %v14282_v30   ;;  %v11341_v34 = vadd.f32 %v20032_v0, %v11340_v1  ;;  %v11342_v38 = vpop.f32.mrb[185].mxu0 }
 0x504   : > { %v11343_v12 = vpop.f32.mrb[186].mxu0 }
 0x505   : > { %v11886_v50 = vadd.f32 %v20043_v15, %v11341_v34  ;;  %v11344_v14 = vadd.f32 %v20032_v0, %v11343_v12  ;;  %v11345_v6 = vpop.f32.mrb[187].mxu0 }
 0x507   : > { %v11889_v46 = vadd.f32 %v20047_v29, %v11344_v14 }
 0x509   : > { %v14287_v58 = vpack.c.bf16 %v11889_v46, %v11886_v50 }
 0x50a   : > { %v11348_v20 = vpop.f32.mrb[188].mxu0 }
 0x50b   : > { %14419 = vst [vmem:[%s19369_s9 + $0x170] sm:$0xff] %v14287_v58   ;;  %v11349_v52 = vadd.f32 %v20032_v0, %v11348_v20  ;;  %v11350_v57 = vpop.f32.mrb[189].mxu0 }
 0x50c   : > { %v11351_v32 = vpop.f32.mrb[190].mxu0 }
 0x50d   : > { %v11894_v61 = vadd.f32 %v20041_v60, %v11349_v52  ;;  %v11352_v25 = vadd.f32 %v20032_v0, %v11351_v32  ;;  %v11353_v15 = vpop.f32.mrb[191].mxu0 }
 0x50f   : > { %v11897_v4 = vadd.f32 %v20045_v48, %v11352_v25 }
 0x511   : > { %v14292_v29 = vpack.c.bf16 %v11897_v4, %v11894_v61 }
 0x513   : > { %14420 = vst [vmem:[%s19369_s9 + $0x178] sm:$0xff] %v14292_v29  }
 0x514   : > { %15390 = shalt.err (!%p15387_p5)
}
 0x515   : > { %s15391_s11 = scalar_lea.hbm %s20203_s7, 8192  ;;  %s15395_s25 = scalar_lea.hbm %s20260_s3, 16384 }
 0x516   : > { %p15392_p9 = scmp.ne.s32.totalorder %s20203_s7, %s15391_s11  ;;  %p15396_p3 = scmp.lt.u32.totalorder %s20203_s7, %s20260_s3 }
 0x517   : > { %p15397_p7 = scmp.lt.u32.totalorder %s15395_s25, %s15391_s11  ;;  %p15399_p4 = scmp.lt.u32.totalorder %s15391_s11, %s20203_s7 }
 0x518   : > { %p15393_p1 = pnand %p15392_p9, %p15594_p10 }
 0x519   : > { %p15398_p13 = por %p15397_p7, %p15396_p3 }
 0x51a   : > { %p15394_p2 = pneg %p15393_p1 }
 0x51b   : > { %p15400_p6 = por %p15399_p4, %p15398_p13 }
 0x51d   : > { %p15401_p8 = pnand %p15400_p6, %p15394_p2 }
 0x51f   : > { %15404 = shalt.err (!%p15401_p8)
}
 0x520   : > { %s15474_s21 = smov 4  }
 0x521   : > { %14673 = dma.vmem_to_hbm [thread:$0]  (%p15594_p10), %s20205_s4, 8192, %s20203_s7, %s12669_s19, %s15471_s20, %s15471_s20, %s15474_s21  }
 0x522 PF: > { %s12699_s6 = sand.u32 1, %s15443_s12   ;;  %p20427_p12 = scmp.ne.s32.totalorder %s20273_s23, 0 }
 0x523   : > { %p20428_p11 = scmp.ge.s32.totalorder %s15463_s17, 2  ;;  %s12700_s29 = scalar_lea.sflag [#allocation5], %s12699_s6 }
 0x525   : > { %p14684_p0 = pnand %p20428_p11, %p20427_p12 }
 0x527   : > { %15438 = dma.done.wait (!%p14684_p0), %s12700_s29, 8192  }
 0x528   : > { %15440 = vsyncadd (!%p14684_p0), %s12700_s29, 4294959104  ;;  %s20_s17 = sadd.s32 1, %s15463_s17   ;;  %s20429_s12 = smov %s15447_s13 }
 0x529   : > { %p17_p5 = scmp.ge.s32.totalorder %s20_s17, 4   ;;  %s20430_s13 = smov %s15451_s14 }
 0x52a   : > { %s20431_s14 = smov %s15603_s5  ;;  %s20432_s15 = smov %s15459_s16 }
 0x52b   : > { %s20433_s16 = smov %s20435_s28  ;;  %19 = sbr.rel (!%p17_p5) target bundleno = 7 (0x7), region = 85 }
 0x532   :  { %12705 = vsyncpa [#allocation4], 1 }
 0x533   :  { %12707 = vsyncpa [#allocation4 + $0x1], 1 }
 0x534   :  { %12708 = vsyncpa [#allocation7], 1 }
 0x535   :  { %12709 = vsyncpa [#allocation5], 1 }
 0x536   :  { %12711 = vsyncpa [#allocation5 + $0x1], 1 }

</bundles_post_ra>
